<compile_context>
chip_gen: v7x
topology: tpu7x:2x2x1
jax: 0.10.0
libtpu: 0.0.40
codegen_flags: <defaults>
</compile_context>

<pallas_src>
import functools

import numpy as np
import jax
import jax.numpy as jnp
from jax.experimental import pallas as pl
from jax.experimental.pallas import tpu as pltpu


# ----------------------------------------------------------------------------- config
# VGG16 feature config scaled down by 16x (64->4 ... 512->32), 'M' = MaxPool3d((1,2,2)).
CFG = [4, 4, 'M', 8, 8, 'M', 16, 16, 16, 'M', 32, 32, 32, 'M', 32, 32, 32, 'M']
IN_CH = 3
HIDDEN = 128         # stands in for the 4096-wide reused classifier layers (lane-dense)


# ------------------------------------------------------------------- layer bookkeeping
def build_layer_cfg(spatial):
    """Walk CFG, fusing each 'M' into the conv that precedes it."""
    layers, c, s, i = [], IN_CH, spatial, 0
    while i < len(CFG):
        v = CFG[i]
        pool = (i + 1 < len(CFG) and CFG[i + 1] == 'M')
        layers.append(dict(cin=c, cout=v, hw=s, pool=pool))
        c = v
        if pool:
            s //= 2
            i += 2
        else:
            i += 1
    return layers, c, s


# --------------------------------------------------------------------------- parameters
def _banded_weight(kern, W, out_pixels):
    """kern: (3,3,Cin,Cout) -> (3, W*Cin, len(out_pixels)*Cout) banded matmul weights.

    band[kh][(w+kw-1)*Cin + ci, j*Cout + co] = kern[kh, kw, ci, co]; out-of-range taps are
    simply omitted, which is exactly the zero-padding boundary condition (fused im2col)."""
    _, _, cin, cout = kern.shape
    band = np.zeros((3, W * cin, len(out_pixels) * cout), np.float32)
    for kh in range(3):
        for j, w in enumerate(out_pixels):
            for kw in range(3):
                p = w + kw - 1
                if 0 <= p < W:
                    band[kh, p * cin:(p + 1) * cin, j * cout:(j + 1) * cout] = kern[kh, kw]
    return band


def init_params(layer_cfg, feat_dim):
    rng = np.random.default_rng(0)
    convs = []
    for lc in layer_cfg:
        cin, cout, hw, pool = lc['cin'], lc['cout'], lc['hw'], lc['pool']
        std = (2.0 / (9 * cin)) ** 0.5
        kern = (rng.standard_normal((3, 3, cin, cout)) * std).astype(np.float32)
        bias = np.zeros((cout,), np.float32)
        if pool:
            # even / odd output-pixel bands -> horizontal 2x1 max pool becomes elementwise
            band = np.concatenate([_banded_weight(kern, hw, range(0, hw, 2)),
                                   _banded_weight(kern, hw, range(1, hw, 2))], axis=0)
            ncols = (hw // 2) * cout
        else:
            band = _banded_weight(kern, hw, range(hw))
            ncols = hw * cout
        bias_row = np.tile(bias, ncols // cout)[None, :].astype(np.float32)
        convs.append((jnp.asarray(band, dtype=jnp.bfloat16), jnp.asarray(bias_row)))

    fcs = []
    # TODO(synk): with a 1x1 final feature map the (H,W,C) flatten used here equals
    #             PyTorch's (C,H,W) flatten; for larger spatial sizes the fc1 weight rows
    #             would be permuted once at init instead of transposing activations.
    for fi, fo in [(feat_dim, HIDDEN), (HIDDEN, HIDDEN)]:
        std = (2.0 / fi) ** 0.5
        w = (rng.standard_normal((fi, fo)) * std).astype(np.float32)
        b = np.zeros((fo,), np.float32)
        fcs.append((jnp.asarray(w, dtype=jnp.bfloat16), jnp.asarray(b)))
    return {'convs': convs, 'fc': fcs}


# ------------------------------------------------- fully fused features kernel (13 convs)
def _features_kernel(x_ref, *refs, layer_cfg):
    """x_ref : (fb, H0, W0*Cin) bf16 frame block (unpadded; padding fused below)
       refs  : band_0, bias_0, ..., band_12, bias_12, o_ref
       band_l: (3 or 6, W*Cin, Wo*Cout) bf16 banded weights (even/odd halves when pooled)
       bias_l: (1, Wo*Cout) f32
       o_ref : (fb, Hf, Wf*Cf) bf16 final feature map of the frame block."""
    o_ref = refs[-1]
    fb = x_ref.shape[0]
    act = x_ref[...]                                             # (fb, H0, W0*Cin) bf16

    for li, lc in enumerate(layer_cfg):
        band_ref = refs[2 * li]
        bias_ref = refs[2 * li + 1]
        H = W = lc['hw']
        Cin, Cout, pool = lc['cin'], lc['cout'], lc['pool']
        WC = W * Cin
        Ho = H // 2 if pool else H
        Wo = W // 2 if pool else W
        nc = Wo * Cout

        # 1-row vertical zero padding, built in VMEM (no HBM pad pass, no padded rows in HBM)
        zrow = jnp.zeros((fb, 1, WC), act.dtype)
        xpad = jnp.concatenate([zrow, act, zrow], axis=1)        # (fb, H+2, WC) bf16
        bias = bias_ref[...]                                     # (1, nc) f32

        if pool:
            # frame-batched matmuls: M = fb*H fills the MXU instead of per-frame M = H
            acc_e = jnp.zeros((fb * H, nc), jnp.float32)
            acc_o = jnp.zeros((fb * H, nc), jnp.float32)
            for kh in range(3):
                lhs = xpad[:, kh:kh + H, :].reshape(fb * H, WC)  # bf16 MXU input
                acc_e += jnp.dot(lhs, band_ref[kh], preferred_element_type=jnp.float32)
                acc_o += jnp.dot(lhs, band_ref[kh + 3], preferred_element_type=jnp.float32)
            # horizontal (1,2) max = elementwise max of the even/odd accumulators
            pm = jnp.maximum(jnp.maximum(acc_e, acc_o) + bias, 0.0)       # bias + ReLU
            # vertical (2,1) max on the VPU (row-pair max), no MXU row-selection matmuls
            res = jnp.max(pm.reshape(fb, Ho, 2, nc), axis=2)              # (fb, Ho, nc)
        else:
            acc = jnp.zeros((fb * H, nc), jnp.float32)
            for kh in range(3):
                lhs = xpad[:, kh:kh + H, :].reshape(fb * H, WC)
                acc += jnp.dot(lhs, band_ref[kh], preferred_element_type=jnp.float32)
            res = jnp.maximum(acc + bias, 0.0).reshape(fb, Ho, nc)        # (fb, Ho, nc)

        act = res.astype(jnp.bfloat16)                            # next layer's input

    o_ref[...] = act                                              # (fb, Hf, Wf*Cf) bf16


def features_pallas(layer_cfg, conv_params, y, *, frames_per_block=4):
    """y: (L*B, H0, W0*Cin) bf16 -> (L*B, feat_dim) bf16, all conv layers in one call."""
    BL, H0, WC0 = y.shape
    fb = max(1, min(frames_per_block, BL))
    while BL % fb:
        fb -= 1

    last = layer_cfg[-1]
    Hf = last['hw'] // 2 if last['pool'] else last['hw']
    ncf = Hf * last['cout']                                       # Wf == Hf (square maps)

    in_specs = [pl.BlockSpec((fb, H0, WC0), lambda i: (i, 0, 0))]
    args = [y]
    for band, bias_row in conv_params:
        in_specs.append(pl.BlockSpec(band.shape, lambda i: (0, 0, 0)))
        in_specs.append(pl.BlockSpec(bias_row.shape, lambda i: (0, 0)))
        args.extend([band, bias_row])

    kernel = functools.partial(_features_kernel, layer_cfg=tuple(layer_cfg))
    out = pl.pallas_call(
        kernel,
        out_shape=jax.ShapeDtypeStruct((BL, Hf, ncf), jnp.bfloat16),
        grid=(BL // fb,),
        in_specs=in_specs,
        out_specs=pl.BlockSpec((fb, Hf, ncf), lambda i: (i, 0, 0)),
        compiler_params=pltpu.CompilerParams(dimension_semantics=("parallel",)),
    )(*args)
    return out.reshape(BL, Hf * ncf)


# ------------------------------------------------------------------ tiled linear kernel
def _linear_kernel(x_ref, w_ref, b_ref, o_ref, acc_ref, *, relu):
    @pl.when(pl.program_id(2) == 0)
    def _():
        acc_ref[...] = jnp.zeros_like(acc_ref)
    acc_ref[...] += jnp.dot(x_ref[...], w_ref[...], preferred_element_type=jnp.float32)

    @pl.when(pl.program_id(2) == pl.num_programs(2) - 1)
    def _():
        y = acc_ref[...] + b_ref[...]
        if relu:
            y = jnp.maximum(y, 0.0)
        o_ref[...] = y.astype(o_ref.dtype)


def linear_pallas(x, w, b, *, relu, out_dtype, tm=256, tn=512, tk=1024):
    """relu?(x @ w + b); M/N parallel-tiled, K reduction-tiled with f32 VMEM accumulator.
    Large weight tiles keep the (weight-bandwidth-bound) classifier at HBM roofline at
    real 25088x4096 sizes; M is padded to the tile so odd L*B values don't fail."""
    M, K = x.shape
    K2, N = w.shape
    assert K == K2
    tm, tn, tk = min(tm, M), min(tn, N), min(tk, K)
    assert N % tn == 0 and K % tk == 0
    Mp = ((M + tm - 1) // tm) * tm
    if Mp != M:
        x = jnp.pad(x, ((0, Mp - M), (0, 0)))
    out = pl.pallas_call(
        functools.partial(_linear_kernel, relu=relu),
        out_shape=jax.ShapeDtypeStruct((Mp, N), out_dtype),
        grid=(Mp // tm, N // tn, K // tk),
        in_specs=[
            pl.BlockSpec((tm, tk), lambda i, j, k: (i, k)),
            pl.BlockSpec((tk, tn), lambda i, j, k: (k, j)),
            pl.BlockSpec((1, tn), lambda i, j, k: (0, j)),
        ],
        out_specs=pl.BlockSpec((tm, tn), lambda i, j, k: (i, j)),
        scratch_shapes=[pltpu.VMEM((tm, tn), jnp.float32)],
        compiler_params=pltpu.CompilerParams(
            dimension_semantics=("parallel", "parallel", "arbitrary")),
    )(x, w, b.reshape(1, N))
    return out[:M] if Mp != M else out


# ------------------------------------------------------------------------------ forward
def vggface_forward(layer_cfg, frames_per_block, params, x):
    """x: (B, C, L, H, W) f32  ->  (L, B, HIDDEN) f32 (matches the PyTorch forward)."""
    B, C, L, H, W = x.shape
    # (B,C,L,H,W) -> frames ordered (l, b) (matches x.permute(2,0,...)), channels-last and
    # lane-interleaved (column = w*C + c).  Vertical padding is fused into the kernel.
    y = jnp.transpose(x, (2, 0, 3, 4, 1)).reshape(L * B, H, W * C).astype(jnp.bfloat16)

    # all 13 conv(+pool) layers in one pallas_call, grid over frame blocks
    feats = features_pallas(layer_cfg, params['convs'], y,
                            frames_per_block=frames_per_block)    # (L*B, feat_dim) bf16

    # permute(2,0,1,3,4).view(L, B, -1): frames are already (l, b)-ordered, and the final
    # feature map is 1x1 so no activation transpose is needed (see init_params note).
    (w1, b1), (w2, b2) = params['fc']
    h = linear_pallas(feats, w1, b1, relu=True, out_dtype=jnp.bfloat16)   # Linear+ReLU
    out = linear_pallas(h, w2, b2, relu=True, out_dtype=jnp.float32)      # Linear+ReLU
    # The module-level self.relu after the reused classifier is a no-op here (output is
    # already ReLU'd), so no extra elementwise HBM pass is launched.
    return out.reshape(L, B, HIDDEN)


# --------------------------------------------------------------------------------- main
if __name__ == "__main__":
    B, L, H, W = 2, 4, 32, 32                   # spatial 32 -> 1x1 after the 5 pools
    C = IN_CH
    layer_cfg, feat_c, feat_s = build_layer_cfg(H)
    params = init_params(layer_cfg, feat_c * feat_s * feat_s)

    x = jax.random.normal(jax.random.PRNGKey(0), (B, C, L, H, W), jnp.float32)

    # fb=4 -> grid=2 (both v7x TensorCores busy) and MXU M = fb*H = 128 on the early layers
    fwd = jax.jit(functools.partial(vggface_forward, layer_cfg, 4))
    out = jax.block_until_ready(fwd(params, x))

    assert out.shape == (L, B, HIDDEN)
    assert out.dtype == jnp.float32
    assert bool(jnp.all(jnp.isfinite(out)))
    assert bool(jnp.all(out >= 0.0))            # final ReLU
    print("KERNEL_OK")
</pallas_src>

<mosaic_0001>
module attributes {stable_mosaic.version = 11 : i64} {
  func.func @_linear_kernel(%arg0: i32, %arg1: i32, %arg2: i32, %arg3: memref<8x32xbf16, #tpu.memory_space<vmem>>, %arg4: memref<32x128xbf16, #tpu.memory_space<vmem>>, %arg5: memref<1x128xf32, #tpu.memory_space<vmem>>, %arg6: memref<8x128xbf16, #tpu.memory_space<vmem>>, %arg7: memref<8x128xf32, #tpu.memory_space<vmem>>) attributes {dimension_semantics = [#tpu.dimension_semantics<parallel>, #tpu.dimension_semantics<parallel>, #tpu.dimension_semantics<arbitrary>], iteration_bounds = array<i64: 1, 1, 1>, scalar_prefetch = 0 : i64, scratch_operands = 1 : i64, tpu.core_type = #tpu.core_type<tc>, window_params = [{transform_indices = @transform_0, window_bounds = array<i64: 8, 32>}, {transform_indices = @transform_1, window_bounds = array<i64: 32, 128>}, {transform_indices = @transform_2, window_bounds = array<i64: 1, 128>}, {transform_indices = @transform_3, window_bounds = array<i64: 8, 128>}]} {
    %c0_i32 = arith.constant 0 : i32
    %0 = arith.cmpi eq, %arg2, %c0_i32 : i32
    %1 = arith.extui %0 : i1 to i32
    %c0_i32_0 = arith.constant 0 : i32
    %2 = arith.cmpi ne, %1, %c0_i32_0 : i32
    scf.if %2 {
      %cst_10 = arith.constant 0.000000e+00 : f32
      %12 = vector.broadcast %cst_10 : f32 to vector<8x128xf32>
      %c0_11 = arith.constant 0 : index
      %c0_12 = arith.constant 0 : index
      %13 = vector.load %arg7[%c0_11, %c0_12] : memref<8x128xf32, #tpu.memory_space<vmem>>, vector<8x128xf32>
      tpu.vector_store %arg7[%c0_11, %c0_12], %12 {strides = array<i32>} : memref<8x128xf32, #tpu.memory_space<vmem>>, vector<8x128xf32>,
    } else {
    }
    %c0 = arith.constant 0 : index
    %c0_1 = arith.constant 0 : index
    %3 = vector.load %arg7[%c0, %c0_1] : memref<8x128xf32, #tpu.memory_space<vmem>>, vector<8x128xf32>
    %c0_2 = arith.constant 0 : index
    %c0_3 = arith.constant 0 : index
    %4 = vector.load %arg3[%c0_2, %c0_3] : memref<8x32xbf16, #tpu.memory_space<vmem>>, vector<8x32xbf16>
    %c0_4 = arith.constant 0 : index
    %c0_5 = arith.constant 0 : index
    %5 = vector.load %arg4[%c0_4, %c0_5] : memref<32x128xbf16, #tpu.memory_space<vmem>>, vector<32x128xbf16>
    %cst = arith.constant dense<0.000000e+00> : vector<8x128xf32>
    %6 = tpu.matmul %4, %5, %cst {dimension_numbers = #tpu.dot_dimension_numbers<[1], [0], [0], [1], [0, 0, 1, 1], [], []>} : vector<8x32xbf16>, vector<32x128xbf16>, vector<8x128xf32> -> vector<8x128xf32>
    %7 = arith.addf %3, %6 : vector<8x128xf32>
    %c0_6 = arith.constant 0 : index
    %c0_7 = arith.constant 0 : index
    %8 = vector.load %arg7[%c0_6, %c0_7] : memref<8x128xf32, #tpu.memory_space<vmem>>, vector<8x128xf32>
    tpu.vector_store %arg7[%c0_6, %c0_7], %7 {strides = array<i32>} : memref<8x128xf32, #tpu.memory_space<vmem>>, vector<8x128xf32>,
    %c0_i32_8 = arith.constant 0 : i32
    %9 = arith.cmpi eq, %arg2, %c0_i32_8 : i32
    %10 = arith.extui %9 : i1 to i32
    %c0_i32_9 = arith.constant 0 : i32
    %11 = arith.cmpi ne, %10, %c0_i32_9 : i32
    scf.if %11 {
      %c0_10 = arith.constant 0 : index
      %c0_11 = arith.constant 0 : index
      %12 = vector.load %arg7[%c0_10, %c0_11] : memref<8x128xf32, #tpu.memory_space<vmem>>, vector<8x128xf32>
      %c0_12 = arith.constant 0 : index
      %c0_13 = arith.constant 0 : index
      %13 = vector.load %arg5[%c0_12, %c0_13] : memref<1x128xf32, #tpu.memory_space<vmem>>, vector<1x128xf32>
      %14 = vector.broadcast %13 : vector<1x128xf32> to vector<8x128xf32>
      %15 = arith.addf %12, %14 : vector<8x128xf32>
      %cst_14 = arith.constant 0.000000e+00 : f32
      %16 = vector.broadcast %cst_14 : f32 to vector<8x128xf32>
      %17 = arith.maximumf %15, %16 : vector<8x128xf32>
      %18 = arith.truncf %17 : vector<8x128xf32> to vector<8x128xbf16>
      %c0_15 = arith.constant 0 : index
      %c0_16 = arith.constant 0 : index
      %19 = vector.load %arg6[%c0_15, %c0_16] : memref<8x128xbf16, #tpu.memory_space<vmem>>, vector<8x128xbf16>
      tpu.vector_store %arg6[%c0_15, %c0_16], %18 {strides = array<i32>} : memref<8x128xbf16, #tpu.memory_space<vmem>>, vector<8x128xbf16>,
    } else {
    }
    return
  }
  func.func @transform_0(%arg0: i32, %arg1: i32, %arg2: i32) -> (i32, i32) {
    %c0_i32 = arith.constant 0 : i32
    return %arg0, %arg2 : i32, i32
  }
  func.func @transform_1(%arg0: i32, %arg1: i32, %arg2: i32) -> (i32, i32) {
    %c0_i32 = arith.constant 0 : i32
    return %arg2, %arg1 : i32, i32
  }
  func.func @transform_2(%arg0: i32, %arg1: i32, %arg2: i32) -> (i32, i32) {
    %c0_i32 = arith.constant 0 : i32
    %c0_i32_0 = arith.constant 0 : i32
    return %c0_i32, %arg1 : i32, i32
  }
  func.func @transform_3(%arg0: i32, %arg1: i32, %arg2: i32) -> (i32, i32) {
    %c0_i32 = arith.constant 0 : i32
    return %arg0, %arg1 : i32, i32
  }
}

module attributes {stable_mosaic.version = 11 : i64} {
  func.func @_linear_kernel(%arg0: i32, %arg1: i32, %arg2: i32, %arg3: memref<8x128xbf16, #tpu.memory_space<vmem>>, %arg4: memref<128x128xbf16, #tpu.memory_space<vmem>>, %arg5: memref<1x128xf32, #tpu.memory_space<vmem>>, %arg6: memref<8x128xf32, #tpu.memory_space<vmem>>, %arg7: memref<8x128xf32, #tpu.memory_space<vmem>>) attributes {dimension_semantics = [#tpu.dimension_semantics<parallel>, #tpu.dimension_semantics<parallel>, #tpu.dimension_semantics<arbitrary>], iteration_bounds = array<i64: 1, 1, 1>, scalar_prefetch = 0 : i64, scratch_operands = 1 : i64, tpu.core_type = #tpu.core_type<tc>, window_params = [{transform_indices = @transform_0, window_bounds = array<i64: 8, 128>}, {transform_indices = @transform_1, window_bounds = array<i64: 128, 128>}, {transform_indices = @transform_2, window_bounds = array<i64: 1, 128>}, {transform_indices = @transform_3, window_bounds = array<i64: 8, 128>}]} {
    %c0_i32 = arith.constant 0 : i32
    %0 = arith.cmpi eq, %arg2, %c0_i32 : i32
    %1 = arith.extui %0 : i1 to i32
    %c0_i32_0 = arith.constant 0 : i32
    %2 = arith.cmpi ne, %1, %c0_i32_0 : i32
    scf.if %2 {
      %cst_10 = arith.constant 0.000000e+00 : f32
      %12 = vector.broadcast %cst_10 : f32 to vector<8x128xf32>
      %c0_11 = arith.constant 0 : index
      %c0_12 = arith.constant 0 : index
      %13 = vector.load %arg7[%c0_11, %c0_12] : memref<8x128xf32, #tpu.memory_space<vmem>>, vector<8x128xf32>
      tpu.vector_store %arg7[%c0_11, %c0_12], %12 {strides = array<i32>} : memref<8x128xf32, #tpu.memory_space<vmem>>, vector<8x128xf32>,
    } else {
    }
    %c0 = arith.constant 0 : index
    %c0_1 = arith.constant 0 : index
    %3 = vector.load %arg7[%c0, %c0_1] : memref<8x128xf32, #tpu.memory_space<vmem>>, vector<8x128xf32>
    %c0_2 = arith.constant 0 : index
    %c0_3 = arith.constant 0 : index
    %4 = vector.load %arg3[%c0_2, %c0_3] : memref<8x128xbf16, #tpu.memory_space<vmem>>, vector<8x128xbf16>
    %c0_4 = arith.constant 0 : index
    %c0_5 = arith.constant 0 : index
    %5 = vector.load %arg4[%c0_4, %c0_5] : memref<128x128xbf16, #tpu.memory_space<vmem>>, vector<128x128xbf16>
    %cst = arith.constant dense<0.000000e+00> : vector<8x128xf32>
    %6 = tpu.matmul %4, %5, %cst {dimension_numbers = #tpu.dot_dimension_numbers<[1], [0], [0], [1], [0, 0, 1, 1], [], []>} : vector<8x128xbf16>, vector<128x128xbf16>, vector<8x128xf32> -> vector<8x128xf32>
    %7 = arith.addf %3, %6 : vector<8x128xf32>
    %c0_6 = arith.constant 0 : index
    %c0_7 = arith.constant 0 : index
    %8 = vector.load %arg7[%c0_6, %c0_7] : memref<8x128xf32, #tpu.memory_space<vmem>>, vector<8x128xf32>
    tpu.vector_store %arg7[%c0_6, %c0_7], %7 {strides = array<i32>} : memref<8x128xf32, #tpu.memory_space<vmem>>, vector<8x128xf32>,
    %c0_i32_8 = arith.constant 0 : i32
    %9 = arith.cmpi eq, %arg2, %c0_i32_8 : i32
    %10 = arith.extui %9 : i1 to i32
    %c0_i32_9 = arith.constant 0 : i32
    %11 = arith.cmpi ne, %10, %c0_i32_9 : i32
    scf.if %11 {
      %c0_10 = arith.constant 0 : index
      %c0_11 = arith.constant 0 : index
      %12 = vector.load %arg7[%c0_10, %c0_11] : memref<8x128xf32, #tpu.memory_space<vmem>>, vector<8x128xf32>
      %c0_12 = arith.constant 0 : index
      %c0_13 = arith.constant 0 : index
      %13 = vector.load %arg5[%c0_12, %c0_13] : memref<1x128xf32, #tpu.memory_space<vmem>>, vector<1x128xf32>
      %14 = vector.broadcast %13 : vector<1x128xf32> to vector<8x128xf32>
      %15 = arith.addf %12, %14 : vector<8x128xf32>
      %cst_14 = arith.constant 0.000000e+00 : f32
      %16 = vector.broadcast %cst_14 : f32 to vector<8x128xf32>
      %17 = arith.maximumf %15, %16 : vector<8x128xf32>
      %c0_15 = arith.constant 0 : index
      %c0_16 = arith.constant 0 : index
      %18 = vector.load %arg6[%c0_15, %c0_16] : memref<8x128xf32, #tpu.memory_space<vmem>>, vector<8x128xf32>
      tpu.vector_store %arg6[%c0_15, %c0_16], %17 {strides = array<i32>} : memref<8x128xf32, #tpu.memory_space<vmem>>, vector<8x128xf32>,
    } else {
    }
    return
  }
  func.func @transform_0(%arg0: i32, %arg1: i32, %arg2: i32) -> (i32, i32) {
    %c0_i32 = arith.constant 0 : i32
    return %arg0, %arg2 : i32, i32
  }
  func.func @transform_1(%arg0: i32, %arg1: i32, %arg2: i32) -> (i32, i32) {
    %c0_i32 = arith.constant 0 : i32
    return %arg2, %arg1 : i32, i32
  }
  func.func @transform_2(%arg0: i32, %arg1: i32, %arg2: i32) -> (i32, i32) {
    %c0_i32 = arith.constant 0 : i32
    %c0_i32_0 = arith.constant 0 : i32
    return %c0_i32, %arg1 : i32, i32
  }
  func.func @transform_3(%arg0: i32, %arg1: i32, %arg2: i32) -> (i32, i32) {
    %c0_i32 = arith.constant 0 : i32
    return %arg0, %arg1 : i32, i32
  }
}

module attributes {stable_mosaic.version = 11 : i64} {
  func.func @_features_kernel(%arg0: i32, %arg1: memref<4x32x96xbf16, #tpu.memory_space<vmem>>, %arg2: memref<3x96x128xbf16, #tpu.memory_space<vmem>>, %arg3: memref<1x128xf32, #tpu.memory_space<vmem>>, %arg4: memref<6x128x64xbf16, #tpu.memory_space<vmem>>, %arg5: memref<1x64xf32, #tpu.memory_space<vmem>>, %arg6: memref<3x64x128xbf16, #tpu.memory_space<vmem>>, %arg7: memref<1x128xf32, #tpu.memory_space<vmem>>, %arg8: memref<6x128x64xbf16, #tpu.memory_space<vmem>>, %arg9: memref<1x64xf32, #tpu.memory_space<vmem>>, %arg10: memref<3x64x128xbf16, #tpu.memory_space<vmem>>, %arg11: memref<1x128xf32, #tpu.memory_space<vmem>>, %arg12: memref<3x128x128xbf16, #tpu.memory_space<vmem>>, %arg13: memref<1x128xf32, #tpu.memory_space<vmem>>, %arg14: memref<6x128x64xbf16, #tpu.memory_space<vmem>>, %arg15: memref<1x64xf32, #tpu.memory_space<vmem>>, %arg16: memref<3x64x128xbf16, #tpu.memory_space<vmem>>, %arg17: memref<1x128xf32, #tpu.memory_space<vmem>>, %arg18: memref<3x128x128xbf16, #tpu.memory_space<vmem>>, %arg19: memref<1x128xf32, #tpu.memory_space<vmem>>, %arg20: memref<6x128x64xbf16, #tpu.memory_space<vmem>>, %arg21: memref<1x64xf32, #tpu.memory_space<vmem>>, %arg22: memref<3x64x64xbf16, #tpu.memory_space<vmem>>, %arg23: memref<1x64xf32, #tpu.memory_space<vmem>>, %arg24: memref<3x64x64xbf16, #tpu.memory_space<vmem>>, %arg25: memref<1x64xf32, #tpu.memory_space<vmem>>, %arg26: memref<6x64x32xbf16, #tpu.memory_space<vmem>>, %arg27: memref<1x32xf32, #tpu.memory_space<vmem>>, %arg28: memref<4x1x32xbf16, #tpu.memory_space<vmem>>) attributes {dimension_semantics = [#tpu.dimension_semantics<parallel>], iteration_bounds = array<i64: 2>, scalar_prefetch = 0 : i64, scratch_operands = 0 : i64, tpu.core_type = #tpu.core_type<tc>, window_params = [{transform_indices = @transform_0, window_bounds = array<i64: 4, 32, 96>}, {pipeline_mode = #tpu.pipeline_mode<synchronous>, transform_indices = @transform_1, window_bounds = array<i64: 3, 96, 128>}, {pipeline_mode = #tpu.pipeline_mode<synchronous>, transform_indices = @transform_2, window_bounds = array<i64: 1, 128>}, {pipeline_mode = #tpu.pipeline_mode<synchronous>, transform_indices = @transform_3, window_bounds = array<i64: 6, 128, 64>}, {pipeline_mode = #tpu.pipeline_mode<synchronous>, transform_indices = @transform_4, window_bounds = array<i64: 1, 64>}, {pipeline_mode = #tpu.pipeline_mode<synchronous>, transform_indices = @transform_5, window_bounds = array<i64: 3, 64, 128>}, {pipeline_mode = #tpu.pipeline_mode<synchronous>, transform_indices = @transform_6, window_bounds = array<i64: 1, 128>}, {pipeline_mode = #tpu.pipeline_mode<synchronous>, transform_indices = @transform_7, window_bounds = array<i64: 6, 128, 64>}, {pipeline_mode = #tpu.pipeline_mode<synchronous>, transform_indices = @transform_8, window_bounds = array<i64: 1, 64>}, {pipeline_mode = #tpu.pipeline_mode<synchronous>, transform_indices = @transform_9, window_bounds = array<i64: 3, 64, 128>}, {pipeline_mode = #tpu.pipeline_mode<synchronous>, transform_indices = @transform_10, window_bounds = array<i64: 1, 128>}, {pipeline_mode = #tpu.pipeline_mode<synchronous>, transform_indices = @transform_11, window_bounds = array<i64: 3, 128, 128>}, {pipeline_mode = #tpu.pipeline_mode<synchronous>, transform_indices = @transform_12, window_bounds = array<i64: 1, 128>}, {pipeline_mode = #tpu.pipeline_mode<synchronous>, transform_indices = @transform_13, window_bounds = array<i64: 6, 128, 64>}, {pipeline_mode = #tpu.pipeline_mode<synchronous>, transform_indices = @transform_14, window_bounds = array<i64: 1, 64>}, {pipeline_mode = #tpu.pipeline_mode<synchronous>, transform_indices = @transform_15, window_bounds = array<i64: 3, 64, 128>}, {pipeline_mode = #tpu.pipeline_mode<synchronous>, transform_indices = @transform_16, window_bounds = array<i64: 1, 128>}, {pipeline_mode = #tpu.pipeline_mode<synchronous>, transform_indices = @transform_17, window_bounds = array<i64: 3, 128, 128>}, {pipeline_mode = #tpu.pipeline_mode<synchronous>, transform_indices = @transform_18, window_bounds = array<i64: 1, 128>}, {pipeline_mode = #tpu.pipeline_mode<synchronous>, transform_indices = @transform_19, window_bounds = array<i64: 6, 128, 64>}, {pipeline_mode = #tpu.pipeline_mode<synchronous>, transform_indices = @transform_20, window_bounds = array<i64: 1, 64>}, {pipeline_mode = #tpu.pipeline_mode<synchronous>, transform_indices = @transform_21, window_bounds = array<i64: 3, 64, 64>}, {pipeline_mode = #tpu.pipeline_mode<synchronous>, transform_indices = @transform_22, window_bounds = array<i64: 1, 64>}, {pipeline_mode = #tpu.pipeline_mode<synchronous>, transform_indices = @transform_23, window_bounds = array<i64: 3, 64, 64>}, {pipeline_mode = #tpu.pipeline_mode<synchronous>, transform_indices = @transform_24, window_bounds = array<i64: 1, 64>}, {pipeline_mode = #tpu.pipeline_mode<synchronous>, transform_indices = @transform_25, window_bounds = array<i64: 6, 64, 32>}, {pipeline_mode = #tpu.pipeline_mode<synchronous>, transform_indices = @transform_26, window_bounds = array<i64: 1, 32>}, {transform_indices = @transform_27, window_bounds = array<i64: 4, 1, 32>}]} {
    %c0 = arith.constant 0 : index
    %c0_0 = arith.constant 0 : index
    %c0_1 = arith.constant 0 : index
    %0 = vector.load %arg1[%c0, %c0_0, %c0_1] : memref<4x32x96xbf16, #tpu.memory_space<vmem>>, vector<4x32x96xbf16>
    %cst = arith.constant 0.000000e+00 : bf16
    %1 = vector.broadcast %cst : bf16 to vector<4x1x96xbf16>
    %2 = tpu.concatenate %1, %0, %1 in 1 : vector<4x1x96xbf16>, vector<4x32x96xbf16>, vector<4x1x96xbf16> -> vector<4x34x96xbf16>
    %c0_2 = arith.constant 0 : index
    %c0_3 = arith.constant 0 : index
    %3 = vector.load %arg3[%c0_2, %c0_3] : memref<1x128xf32, #tpu.memory_space<vmem>>, vector<1x128xf32>
    %cst_4 = arith.constant 0.000000e+00 : f32
    %4 = vector.broadcast %cst_4 : f32 to vector<128x128xf32>
    %5 = vector.extract_strided_slice %2 {offsets = [0, 0, 0], sizes = [4, 32, 96], strides = [1, 1, 1]} : vector<4x34x96xbf16> to vector<4x32x96xbf16>
    %6 = vector.shape_cast %5 : vector<4x32x96xbf16> to vector<128x96xbf16>
    %c0_5 = arith.constant 0 : index
    %c0_6 = arith.constant 0 : index
    %c0_7 = arith.constant 0 : index
    %7 = vector.load %arg2[%c0_5, %c0_6, %c0_7] : memref<3x96x128xbf16, #tpu.memory_space<vmem>>, vector<1x96x128xbf16>
    %8 = vector.shape_cast %7 : vector<1x96x128xbf16> to vector<96x128xbf16>
    %cst_8 = arith.constant dense<0.000000e+00> : vector<128x128xf32>
    %9 = tpu.matmul %6, %8, %cst_8 {dimension_numbers = #tpu.dot_dimension_numbers<[1], [0], [0], [1], [0, 0, 1, 1], [], []>} : vector<128x96xbf16>, vector<96x128xbf16>, vector<128x128xf32> -> vector<128x128xf32>
    %10 = arith.addf %4, %9 : vector<128x128xf32>
    %11 = vector.extract_strided_slice %2 {offsets = [0, 1, 0], sizes = [4, 32, 96], strides = [1, 1, 1]} : vector<4x34x96xbf16> to vector<4x32x96xbf16>
    %12 = vector.shape_cast %11 : vector<4x32x96xbf16> to vector<128x96xbf16>
    %c1 = arith.constant 1 : index
    %c0_9 = arith.constant 0 : index
    %c0_10 = arith.constant 0 : index
    %13 = vector.load %arg2[%c1, %c0_9, %c0_10] : memref<3x96x128xbf16, #tpu.memory_space<vmem>>, vector<1x96x128xbf16>
    %14 = vector.shape_cast %13 : vector<1x96x128xbf16> to vector<96x128xbf16>
    %cst_11 = arith.constant dense<0.000000e+00> : vector<128x128xf32>
    %15 = tpu.matmul %12, %14, %cst_11 {dimension_numbers = #tpu.dot_dimension_numbers<[1], [0], [0], [1], [0, 0, 1, 1], [], []>} : vector<128x96xbf16>, vector<96x128xbf16>, vector<128x128xf32> -> vector<128x128xf32>
    %16 = arith.addf %10, %15 : vector<128x128xf32>
    %17 = vector.extract_strided_slice %2 {offsets = [0, 2, 0], sizes = [4, 32, 96], strides = [1, 1, 1]} : vector<4x34x96xbf16> to vector<4x32x96xbf16>
    %18 = vector.shape_cast %17 : vector<4x32x96xbf16> to vector<128x96xbf16>
    %c2 = arith.constant 2 : index
    %c0_12 = arith.constant 0 : index
    %c0_13 = arith.constant 0 : index
    %19 = vector.load %arg2[%c2, %c0_12, %c0_13] : memref<3x96x128xbf16, #tpu.memory_space<vmem>>, vector<1x96x128xbf16>
    %20 = vector.shape_cast %19 : vector<1x96x128xbf16> to vector<96x128xbf16>
    %cst_14 = arith.constant dense<0.000000e+00> : vector<128x128xf32>
    %21 = tpu.matmul %18, %20, %cst_14 {dimension_numbers = #tpu.dot_dimension_numbers<[1], [0], [0], [1], [0, 0, 1, 1], [], []>} : vector<128x96xbf16>, vector<96x128xbf16>, vector<128x128xf32> -> vector<128x128xf32>
    %22 = arith.addf %16, %21 : vector<128x128xf32>
    %23 = vector.broadcast %3 : vector<1x128xf32> to vector<128x128xf32>
    %24 = arith.addf %22, %23 : vector<128x128xf32>
    %cst_15 = arith.constant 0.000000e+00 : f32
    %25 = vector.broadcast %cst_15 : f32 to vector<128x128xf32>
    %26 = arith.maximumf %24, %25 : vector<128x128xf32>
    %27 = vector.shape_cast %26 : vector<128x128xf32> to vector<4x32x128xf32>
    %28 = arith.truncf %27 : vector<4x32x128xf32> to vector<4x32x128xbf16>
    %cst_16 = arith.constant 0.000000e+00 : bf16
    %29 = vector.broadcast %cst_16 : bf16 to vector<4x1x128xbf16>
    %30 = tpu.concatenate %29, %28, %29 in 1 : vector<4x1x128xbf16>, vector<4x32x128xbf16>, vector<4x1x128xbf16> -> vector<4x34x128xbf16>
    %c0_17 = arith.constant 0 : index
    %c0_18 = arith.constant 0 : index
    %31 = vector.load %arg5[%c0_17, %c0_18] : memref<1x64xf32, #tpu.memory_space<vmem>>, vector<1x64xf32>
    %cst_19 = arith.constant 0.000000e+00 : f32
    %32 = vector.broadcast %cst_19 : f32 to vector<128x64xf32>
    %cst_20 = arith.constant 0.000000e+00 : f32
    %33 = vector.broadcast %cst_20 : f32 to vector<128x64xf32>
    %34 = vector.extract_strided_slice %30 {offsets = [0, 0, 0], sizes = [4, 32, 128], strides = [1, 1, 1]} : vector<4x34x128xbf16> to vector<4x32x128xbf16>
    %35 = vector.shape_cast %34 : vector<4x32x128xbf16> to vector<128x128xbf16>
    %c0_21 = arith.constant 0 : index
    %c0_22 = arith.constant 0 : index
    %c0_23 = arith.constant 0 : index
    %36 = vector.load %arg4[%c0_21, %c0_22, %c0_23] : memref<6x128x64xbf16, #tpu.memory_space<vmem>>, vector<1x128x64xbf16>
    %37 = vector.shape_cast %36 : vector<1x128x64xbf16> to vector<128x64xbf16>
    %cst_24 = arith.constant dense<0.000000e+00> : vector<128x64xf32>
    %38 = tpu.matmul %35, %37, %cst_24 {dimension_numbers = #tpu.dot_dimension_numbers<[1], [0], [0], [1], [0, 0, 1, 1], [], []>} : vector<128x128xbf16>, vector<128x64xbf16>, vector<128x64xf32> -> vector<128x64xf32>
    %39 = arith.addf %32, %38 : vector<128x64xf32>
    %c3 = arith.constant 3 : index
    %c0_25 = arith.constant 0 : index
    %c0_26 = arith.constant 0 : index
    %40 = vector.load %arg4[%c3, %c0_25, %c0_26] : memref<6x128x64xbf16, #tpu.memory_space<vmem>>, vector<1x128x64xbf16>
    %41 = vector.shape_cast %40 : vector<1x128x64xbf16> to vector<128x64xbf16>
    %cst_27 = arith.constant dense<0.000000e+00> : vector<128x64xf32>
    %42 = tpu.matmul %35, %41, %cst_27 {dimension_numbers = #tpu.dot_dimension_numbers<[1], [0], [0], [1], [0, 0, 1, 1], [], []>} : vector<128x128xbf16>, vector<128x64xbf16>, vector<128x64xf32> -> vector<128x64xf32>
    %43 = arith.addf %33, %42 : vector<128x64xf32>
    %44 = vector.extract_strided_slice %30 {offsets = [0, 1, 0], sizes = [4, 32, 128], strides = [1, 1, 1]} : vector<4x34x128xbf16> to vector<4x32x128xbf16>
    %45 = vector.shape_cast %44 : vector<4x32x128xbf16> to vector<128x128xbf16>
    %c1_28 = arith.constant 1 : index
    %c0_29 = arith.constant 0 : index
    %c0_30 = arith.constant 0 : index
    %46 = vector.load %arg4[%c1_28, %c0_29, %c0_30] : memref<6x128x64xbf16, #tpu.memory_space<vmem>>, vector<1x128x64xbf16>
    %47 = vector.shape_cast %46 : vector<1x128x64xbf16> to vector<128x64xbf16>
    %cst_31 = arith.constant dense<0.000000e+00> : vector<128x64xf32>
    %48 = tpu.matmul %45, %47, %cst_31 {dimension_numbers = #tpu.dot_dimension_numbers<[1], [0], [0], [1], [0, 0, 1, 1], [], []>} : vector<128x128xbf16>, vector<128x64xbf16>, vector<128x64xf32> -> vector<128x64xf32>
    %49 = arith.addf %39, %48 : vector<128x64xf32>
    %c4 = arith.constant 4 : index
    %c0_32 = arith.constant 0 : index
    %c0_33 = arith.constant 0 : index
    %50 = vector.load %arg4[%c4, %c0_32, %c0_33] : memref<6x128x64xbf16, #tpu.memory_space<vmem>>, vector<1x128x64xbf16>
    %51 = vector.shape_cast %50 : vector<1x128x64xbf16> to vector<128x64xbf16>
    %cst_34 = arith.constant dense<0.000000e+00> : vector<128x64xf32>
    %52 = tpu.matmul %45, %51, %cst_34 {dimension_numbers = #tpu.dot_dimension_numbers<[1], [0], [0], [1], [0, 0, 1, 1], [], []>} : vector<128x128xbf16>, vector<128x64xbf16>, vector<128x64xf32> -> vector<128x64xf32>
    %53 = arith.addf %43, %52 : vector<128x64xf32>
    %54 = vector.extract_strided_slice %30 {offsets = [0, 2, 0], sizes = [4, 32, 128], strides = [1, 1, 1]} : vector<4x34x128xbf16> to vector<4x32x128xbf16>
    %55 = vector.shape_cast %54 : vector<4x32x128xbf16> to vector<128x128xbf16>
    %c2_35 = arith.constant 2 : index
    %c0_36 = arith.constant 0 : index
    %c0_37 = arith.constant 0 : index
    %56 = vector.load %arg4[%c2_35, %c0_36, %c0_37] : memref<6x128x64xbf16, #tpu.memory_space<vmem>>, vector<1x128x64xbf16>
    %57 = vector.shape_cast %56 : vector<1x128x64xbf16> to vector<128x64xbf16>
    %cst_38 = arith.constant dense<0.000000e+00> : vector<128x64xf32>
    %58 = tpu.matmul %55, %57, %cst_38 {dimension_numbers = #tpu.dot_dimension_numbers<[1], [0], [0], [1], [0, 0, 1, 1], [], []>} : vector<128x128xbf16>, vector<128x64xbf16>, vector<128x64xf32> -> vector<128x64xf32>
    %59 = arith.addf %49, %58 : vector<128x64xf32>
    %c5 = arith.constant 5 : index
    %c0_39 = arith.constant 0 : index
    %c0_40 = arith.constant 0 : index
    %60 = vector.load %arg4[%c5, %c0_39, %c0_40] : memref<6x128x64xbf16, #tpu.memory_space<vmem>>, vector<1x128x64xbf16>
    %61 = vector.shape_cast %60 : vector<1x128x64xbf16> to vector<128x64xbf16>
    %cst_41 = arith.constant dense<0.000000e+00> : vector<128x64xf32>
    %62 = tpu.matmul %55, %61, %cst_41 {dimension_numbers = #tpu.dot_dimension_numbers<[1], [0], [0], [1], [0, 0, 1, 1], [], []>} : vector<128x128xbf16>, vector<128x64xbf16>, vector<128x64xf32> -> vector<128x64xf32>
    %63 = arith.addf %53, %62 : vector<128x64xf32>
    %64 = arith.maximumf %59, %63 : vector<128x64xf32>
    %65 = vector.broadcast %31 : vector<1x64xf32> to vector<128x64xf32>
    %66 = arith.addf %64, %65 : vector<128x64xf32>
    %cst_42 = arith.constant 0.000000e+00 : f32
    %67 = vector.broadcast %cst_42 : f32 to vector<128x64xf32>
    %68 = arith.maximumf %66, %67 : vector<128x64xf32>
    %69 = vector.shape_cast %68 : vector<128x64xf32> to vector<4x16x2x64xf32>
    %cst_43 = arith.constant dense<0xFF800000> : vector<4x16x64xf32>
    %70 = vector.multi_reduction <maximumf>, %69, %cst_43 [2] : vector<4x16x2x64xf32> to vector<4x16x64xf32>
    %71 = arith.truncf %70 : vector<4x16x64xf32> to vector<4x16x64xbf16>
    %cst_44 = arith.constant 0.000000e+00 : bf16
    %72 = vector.broadcast %cst_44 : bf16 to vector<4x1x64xbf16>
    %73 = tpu.concatenate %72, %71, %72 in 1 : vector<4x1x64xbf16>, vector<4x16x64xbf16>, vector<4x1x64xbf16> -> vector<4x18x64xbf16>
    %c0_45 = arith.constant 0 : index
    %c0_46 = arith.constant 0 : index
    %74 = vector.load %arg7[%c0_45, %c0_46] : memref<1x128xf32, #tpu.memory_space<vmem>>, vector<1x128xf32>
    %cst_47 = arith.constant 0.000000e+00 : f32
    %75 = vector.broadcast %cst_47 : f32 to vector<64x128xf32>
    %76 = vector.extract_strided_slice %73 {offsets = [0, 0, 0], sizes = [4, 16, 64], strides = [1, 1, 1]} : vector<4x18x64xbf16> to vector<4x16x64xbf16>
    %77 = vector.shape_cast %76 : vector<4x16x64xbf16> to vector<64x64xbf16>
    %c0_48 = arith.constant 0 : index
    %c0_49 = arith.constant 0 : index
    %c0_50 = arith.constant 0 : index
    %78 = vector.load %arg6[%c0_48, %c0_49, %c0_50] : memref<3x64x128xbf16, #tpu.memory_space<vmem>>, vector<1x64x128xbf16>
    %79 = vector.shape_cast %78 : vector<1x64x128xbf16> to vector<64x128xbf16>
    %cst_51 = arith.constant dense<0.000000e+00> : vector<64x128xf32>
    %80 = tpu.matmul %77, %79, %cst_51 {dimension_numbers = #tpu.dot_dimension_numbers<[1], [0], [0], [1], [0, 0, 1, 1], [], []>} : vector<64x64xbf16>, vector<64x128xbf16>, vector<64x128xf32> -> vector<64x128xf32>
    %81 = arith.addf %75, %80 : vector<64x128xf32>
    %82 = vector.extract_strided_slice %73 {offsets = [0, 1, 0], sizes = [4, 16, 64], strides = [1, 1, 1]} : vector<4x18x64xbf16> to vector<4x16x64xbf16>
    %83 = vector.shape_cast %82 : vector<4x16x64xbf16> to vector<64x64xbf16>
    %c1_52 = arith.constant 1 : index
    %c0_53 = arith.constant 0 : index
    %c0_54 = arith.constant 0 : index
    %84 = vector.load %arg6[%c1_52, %c0_53, %c0_54] : memref<3x64x128xbf16, #tpu.memory_space<vmem>>, vector<1x64x128xbf16>
    %85 = vector.shape_cast %84 : vector<1x64x128xbf16> to vector<64x128xbf16>
    %cst_55 = arith.constant dense<0.000000e+00> : vector<64x128xf32>
    %86 = tpu.matmul %83, %85, %cst_55 {dimension_numbers = #tpu.dot_dimension_numbers<[1], [0], [0], [1], [0, 0, 1, 1], [], []>} : vector<64x64xbf16>, vector<64x128xbf16>, vector<64x128xf32> -> vector<64x128xf32>
    %87 = arith.addf %81, %86 : vector<64x128xf32>
    %88 = vector.extract_strided_slice %73 {offsets = [0, 2, 0], sizes = [4, 16, 64], strides = [1, 1, 1]} : vector<4x18x64xbf16> to vector<4x16x64xbf16>
    %89 = vector.shape_cast %88 : vector<4x16x64xbf16> to vector<64x64xbf16>
    %c2_56 = arith.constant 2 : index
    %c0_57 = arith.constant 0 : index
    %c0_58 = arith.constant 0 : index
    %90 = vector.load %arg6[%c2_56, %c0_57, %c0_58] : memref<3x64x128xbf16, #tpu.memory_space<vmem>>, vector<1x64x128xbf16>
    %91 = vector.shape_cast %90 : vector<1x64x128xbf16> to vector<64x128xbf16>
    %cst_59 = arith.constant dense<0.000000e+00> : vector<64x128xf32>
    %92 = tpu.matmul %89, %91, %cst_59 {dimension_numbers = #tpu.dot_dimension_numbers<[1], [0], [0], [1], [0, 0, 1, 1], [], []>} : vector<64x64xbf16>, vector<64x128xbf16>, vector<64x128xf32> -> vector<64x128xf32>
    %93 = arith.addf %87, %92 : vector<64x128xf32>
    %94 = vector.broadcast %74 : vector<1x128xf32> to vector<64x128xf32>
    %95 = arith.addf %93, %94 : vector<64x128xf32>
    %cst_60 = arith.constant 0.000000e+00 : f32
    %96 = vector.broadcast %cst_60 : f32 to vector<64x128xf32>
    %97 = arith.maximumf %95, %96 : vector<64x128xf32>
    %98 = vector.shape_cast %97 : vector<64x128xf32> to vector<4x16x128xf32>
    %99 = arith.truncf %98 : vector<4x16x128xf32> to vector<4x16x128xbf16>
    %cst_61 = arith.constant 0.000000e+00 : bf16
    %100 = vector.broadcast %cst_61 : bf16 to vector<4x1x128xbf16>
    %101 = tpu.concatenate %100, %99, %100 in 1 : vector<4x1x128xbf16>, vector<4x16x128xbf16>, vector<4x1x128xbf16> -> vector<4x18x128xbf16>
    %c0_62 = arith.constant 0 : index
    %c0_63 = arith.constant 0 : index
    %102 = vector.load %arg9[%c0_62, %c0_63] : memref<1x64xf32, #tpu.memory_space<vmem>>, vector<1x64xf32>
    %cst_64 = arith.constant 0.000000e+00 : f32
    %103 = vector.broadcast %cst_64 : f32 to vector<64x64xf32>
    %cst_65 = arith.constant 0.000000e+00 : f32
    %104 = vector.broadcast %cst_65 : f32 to vector<64x64xf32>
    %105 = vector.extract_strided_slice %101 {offsets = [0, 0, 0], sizes = [4, 16, 128], strides = [1, 1, 1]} : vector<4x18x128xbf16> to vector<4x16x128xbf16>
    %106 = vector.shape_cast %105 : vector<4x16x128xbf16> to vector<64x128xbf16>
    %c0_66 = arith.constant 0 : index
    %c0_67 = arith.constant 0 : index
    %c0_68 = arith.constant 0 : index
    %107 = vector.load %arg8[%c0_66, %c0_67, %c0_68] : memref<6x128x64xbf16, #tpu.memory_space<vmem>>, vector<1x128x64xbf16>
    %108 = vector.shape_cast %107 : vector<1x128x64xbf16> to vector<128x64xbf16>
    %cst_69 = arith.constant dense<0.000000e+00> : vector<64x64xf32>
    %109 = tpu.matmul %106, %108, %cst_69 {dimension_numbers = #tpu.dot_dimension_numbers<[1], [0], [0], [1], [0, 0, 1, 1], [], []>} : vector<64x128xbf16>, vector<128x64xbf16>, vector<64x64xf32> -> vector<64x64xf32>
    %110 = arith.addf %103, %109 : vector<64x64xf32>
    %c3_70 = arith.constant 3 : index
    %c0_71 = arith.constant 0 : index
    %c0_72 = arith.constant 0 : index
    %111 = vector.load %arg8[%c3_70, %c0_71, %c0_72] : memref<6x128x64xbf16, #tpu.memory_space<vmem>>, vector<1x128x64xbf16>
    %112 = vector.shape_cast %111 : vector<1x128x64xbf16> to vector<128x64xbf16>
    %cst_73 = arith.constant dense<0.000000e+00> : vector<64x64xf32>
    %113 = tpu.matmul %106, %112, %cst_73 {dimension_numbers = #tpu.dot_dimension_numbers<[1], [0], [0], [1], [0, 0, 1, 1], [], []>} : vector<64x128xbf16>, vector<128x64xbf16>, vector<64x64xf32> -> vector<64x64xf32>
    %114 = arith.addf %104, %113 : vector<64x64xf32>
    %115 = vector.extract_strided_slice %101 {offsets = [0, 1, 0], sizes = [4, 16, 128], strides = [1, 1, 1]} : vector<4x18x128xbf16> to vector<4x16x128xbf16>
    %116 = vector.shape_cast %115 : vector<4x16x128xbf16> to vector<64x128xbf16>
    %c1_74 = arith.constant 1 : index
    %c0_75 = arith.constant 0 : index
    %c0_76 = arith.constant 0 : index
    %117 = vector.load %arg8[%c1_74, %c0_75, %c0_76] : memref<6x128x64xbf16, #tpu.memory_space<vmem>>, vector<1x128x64xbf16>
    %118 = vector.shape_cast %117 : vector<1x128x64xbf16> to vector<128x64xbf16>
    %cst_77 = arith.constant dense<0.000000e+00> : vector<64x64xf32>
    %119 = tpu.matmul %116, %118, %cst_77 {dimension_numbers = #tpu.dot_dimension_numbers<[1], [0], [0], [1], [0, 0, 1, 1], [], []>} : vector<64x128xbf16>, vector<128x64xbf16>, vector<64x64xf32> -> vector<64x64xf32>
    %120 = arith.addf %110, %119 : vector<64x64xf32>
    %c4_78 = arith.constant 4 : index
    %c0_79 = arith.constant 0 : index
    %c0_80 = arith.constant 0 : index
    %121 = vector.load %arg8[%c4_78, %c0_79, %c0_80] : memref<6x128x64xbf16, #tpu.memory_space<vmem>>, vector<1x128x64xbf16>
    %122 = vector.shape_cast %121 : vector<1x128x64xbf16> to vector<128x64xbf16>
    %cst_81 = arith.constant dense<0.000000e+00> : vector<64x64xf32>
    %123 = tpu.matmul %116, %122, %cst_81 {dimension_numbers = #tpu.dot_dimension_numbers<[1], [0], [0], [1], [0, 0, 1, 1], [], []>} : vector<64x128xbf16>, vector<128x64xbf16>, vector<64x64xf32> -> vector<64x64xf32>
    %124 = arith.addf %114, %123 : vector<64x64xf32>
    %125 = vector.extract_strided_slice %101 {offsets = [0, 2, 0], sizes = [4, 16, 128], strides = [1, 1, 1]} : vector<4x18x128xbf16> to vector<4x16x128xbf16>
    %126 = vector.shape_cast %125 : vector<4x16x128xbf16> to vector<64x128xbf16>
    %c2_82 = arith.constant 2 : index
    %c0_83 = arith.constant 0 : index
    %c0_84 = arith.constant 0 : index
    %127 = vector.load %arg8[%c2_82, %c0_83, %c0_84] : memref<6x128x64xbf16, #tpu.memory_space<vmem>>, vector<1x128x64xbf16>
    %128 = vector.shape_cast %127 : vector<1x128x64xbf16> to vector<128x64xbf16>
    %cst_85 = arith.constant dense<0.000000e+00> : vector<64x64xf32>
    %129 = tpu.matmul %126, %128, %cst_85 {dimension_numbers = #tpu.dot_dimension_numbers<[1], [0], [0], [1], [0, 0, 1, 1], [], []>} : vector<64x128xbf16>, vector<128x64xbf16>, vector<64x64xf32> -> vector<64x64xf32>
    %130 = arith.addf %120, %129 : vector<64x64xf32>
    %c5_86 = arith.constant 5 : index
    %c0_87 = arith.constant 0 : index
    %c0_88 = arith.constant 0 : index
    %131 = vector.load %arg8[%c5_86, %c0_87, %c0_88] : memref<6x128x64xbf16, #tpu.memory_space<vmem>>, vector<1x128x64xbf16>
    %132 = vector.shape_cast %131 : vector<1x128x64xbf16> to vector<128x64xbf16>
    %cst_89 = arith.constant dense<0.000000e+00> : vector<64x64xf32>
    %133 = tpu.matmul %126, %132, %cst_89 {dimension_numbers = #tpu.dot_dimension_numbers<[1], [0], [0], [1], [0, 0, 1, 1], [], []>} : vector<64x128xbf16>, vector<128x64xbf16>, vector<64x64xf32> -> vector<64x64xf32>
    %134 = arith.addf %124, %133 : vector<64x64xf32>
    %135 = arith.maximumf %130, %134 : vector<64x64xf32>
    %136 = vector.broadcast %102 : vector<1x64xf32> to vector<64x64xf32>
    %137 = arith.addf %135, %136 : vector<64x64xf32>
    %cst_90 = arith.constant 0.000000e+00 : f32
    %138 = vector.broadcast %cst_90 : f32 to vector<64x64xf32>
    %139 = arith.maximumf %137, %138 : vector<64x64xf32>
    %140 = vector.shape_cast %139 : vector<64x64xf32> to vector<4x8x2x64xf32>
    %cst_91 = arith.constant dense<0xFF800000> : vector<4x8x64xf32>
    %141 = vector.multi_reduction <maximumf>, %140, %cst_91 [2] : vector<4x8x2x64xf32> to vector<4x8x64xf32>
    %142 = arith.truncf %141 : vector<4x8x64xf32> to vector<4x8x64xbf16>
    %cst_92 = arith.constant 0.000000e+00 : bf16
    %143 = vector.broadcast %cst_92 : bf16 to vector<4x1x64xbf16>
    %144 = tpu.concatenate %143, %142, %143 in 1 : vector<4x1x64xbf16>, vector<4x8x64xbf16>, vector<4x1x64xbf16> -> vector<4x10x64xbf16>
    %c0_93 = arith.constant 0 : index
    %c0_94 = arith.constant 0 : index
    %145 = vector.load %arg11[%c0_93, %c0_94] : memref<1x128xf32, #tpu.memory_space<vmem>>, vector<1x128xf32>
    %cst_95 = arith.constant 0.000000e+00 : f32
    %146 = vector.broadcast %cst_95 : f32 to vector<32x128xf32>
    %147 = vector.extract_strided_slice %144 {offsets = [0, 0, 0], sizes = [4, 8, 64], strides = [1, 1, 1]} : vector<4x10x64xbf16> to vector<4x8x64xbf16>
    %148 = vector.shape_cast %147 : vector<4x8x64xbf16> to vector<32x64xbf16>
    %c0_96 = arith.constant 0 : index
    %c0_97 = arith.constant 0 : index
    %c0_98 = arith.constant 0 : index
    %149 = vector.load %arg10[%c0_96, %c0_97, %c0_98] : memref<3x64x128xbf16, #tpu.memory_space<vmem>>, vector<1x64x128xbf16>
    %150 = vector.shape_cast %149 : vector<1x64x128xbf16> to vector<64x128xbf16>
    %cst_99 = arith.constant dense<0.000000e+00> : vector<32x128xf32>
    %151 = tpu.matmul %148, %150, %cst_99 {dimension_numbers = #tpu.dot_dimension_numbers<[1], [0], [0], [1], [0, 0, 1, 1], [], []>} : vector<32x64xbf16>, vector<64x128xbf16>, vector<32x128xf32> -> vector<32x128xf32>
    %152 = arith.addf %146, %151 : vector<32x128xf32>
    %153 = vector.extract_strided_slice %144 {offsets = [0, 1, 0], sizes = [4, 8, 64], strides = [1, 1, 1]} : vector<4x10x64xbf16> to vector<4x8x64xbf16>
    %154 = vector.shape_cast %153 : vector<4x8x64xbf16> to vector<32x64xbf16>
    %c1_100 = arith.constant 1 : index
    %c0_101 = arith.constant 0 : index
    %c0_102 = arith.constant 0 : index
    %155 = vector.load %arg10[%c1_100, %c0_101, %c0_102] : memref<3x64x128xbf16, #tpu.memory_space<vmem>>, vector<1x64x128xbf16>
    %156 = vector.shape_cast %155 : vector<1x64x128xbf16> to vector<64x128xbf16>
    %cst_103 = arith.constant dense<0.000000e+00> : vector<32x128xf32>
    %157 = tpu.matmul %154, %156, %cst_103 {dimension_numbers = #tpu.dot_dimension_numbers<[1], [0], [0], [1], [0, 0, 1, 1], [], []>} : vector<32x64xbf16>, vector<64x128xbf16>, vector<32x128xf32> -> vector<32x128xf32>
    %158 = arith.addf %152, %157 : vector<32x128xf32>
    %159 = vector.extract_strided_slice %144 {offsets = [0, 2, 0], sizes = [4, 8, 64], strides = [1, 1, 1]} : vector<4x10x64xbf16> to vector<4x8x64xbf16>
    %160 = vector.shape_cast %159 : vector<4x8x64xbf16> to vector<32x64xbf16>
    %c2_104 = arith.constant 2 : index
    %c0_105 = arith.constant 0 : index
    %c0_106 = arith.constant 0 : index
    %161 = vector.load %arg10[%c2_104, %c0_105, %c0_106] : memref<3x64x128xbf16, #tpu.memory_space<vmem>>, vector<1x64x128xbf16>
    %162 = vector.shape_cast %161 : vector<1x64x128xbf16> to vector<64x128xbf16>
    %cst_107 = arith.constant dense<0.000000e+00> : vector<32x128xf32>
    %163 = tpu.matmul %160, %162, %cst_107 {dimension_numbers = #tpu.dot_dimension_numbers<[1], [0], [0], [1], [0, 0, 1, 1], [], []>} : vector<32x64xbf16>, vector<64x128xbf16>, vector<32x128xf32> -> vector<32x128xf32>
    %164 = arith.addf %158, %163 : vector<32x128xf32>
    %165 = vector.broadcast %145 : vector<1x128xf32> to vector<32x128xf32>
    %166 = arith.addf %164, %165 : vector<32x128xf32>
    %cst_108 = arith.constant 0.000000e+00 : f32
    %167 = vector.broadcast %cst_108 : f32 to vector<32x128xf32>
    %168 = arith.maximumf %166, %167 : vector<32x128xf32>
    %169 = vector.shape_cast %168 : vector<32x128xf32> to vector<4x8x128xf32>
    %170 = arith.truncf %169 : vector<4x8x128xf32> to vector<4x8x128xbf16>
    %cst_109 = arith.constant 0.000000e+00 : bf16
    %171 = vector.broadcast %cst_109 : bf16 to vector<4x1x128xbf16>
    %172 = tpu.concatenate %171, %170, %171 in 1 : vector<4x1x128xbf16>, vector<4x8x128xbf16>, vector<4x1x128xbf16> -> vector<4x10x128xbf16>
    %c0_110 = arith.constant 0 : index
    %c0_111 = arith.constant 0 : index
    %173 = vector.load %arg13[%c0_110, %c0_111] : memref<1x128xf32, #tpu.memory_space<vmem>>, vector<1x128xf32>
    %cst_112 = arith.constant 0.000000e+00 : f32
    %174 = vector.broadcast %cst_112 : f32 to vector<32x128xf32>
    %175 = vector.extract_strided_slice %172 {offsets = [0, 0, 0], sizes = [4, 8, 128], strides = [1, 1, 1]} : vector<4x10x128xbf16> to vector<4x8x128xbf16>
    %176 = vector.shape_cast %175 : vector<4x8x128xbf16> to vector<32x128xbf16>
    %c0_113 = arith.constant 0 : index
    %c0_114 = arith.constant 0 : index
    %c0_115 = arith.constant 0 : index
    %177 = vector.load %arg12[%c0_113, %c0_114, %c0_115] : memref<3x128x128xbf16, #tpu.memory_space<vmem>>, vector<1x128x128xbf16>
    %178 = vector.shape_cast %177 : vector<1x128x128xbf16> to vector<128x128xbf16>
    %cst_116 = arith.constant dense<0.000000e+00> : vector<32x128xf32>
    %179 = tpu.matmul %176, %178, %cst_116 {dimension_numbers = #tpu.dot_dimension_numbers<[1], [0], [0], [1], [0, 0, 1, 1], [], []>} : vector<32x128xbf16>, vector<128x128xbf16>, vector<32x128xf32> -> vector<32x128xf32>
    %180 = arith.addf %174, %179 : vector<32x128xf32>
    %181 = vector.extract_strided_slice %172 {offsets = [0, 1, 0], sizes = [4, 8, 128], strides = [1, 1, 1]} : vector<4x10x128xbf16> to vector<4x8x128xbf16>
    %182 = vector.shape_cast %181 : vector<4x8x128xbf16> to vector<32x128xbf16>
    %c1_117 = arith.constant 1 : index
    %c0_118 = arith.constant 0 : index
    %c0_119 = arith.constant 0 : index
    %183 = vector.load %arg12[%c1_117, %c0_118, %c0_119] : memref<3x128x128xbf16, #tpu.memory_space<vmem>>, vector<1x128x128xbf16>
    %184 = vector.shape_cast %183 : vector<1x128x128xbf16> to vector<128x128xbf16>
    %cst_120 = arith.constant dense<0.000000e+00> : vector<32x128xf32>
    %185 = tpu.matmul %182, %184, %cst_120 {dimension_numbers = #tpu.dot_dimension_numbers<[1], [0], [0], [1], [0, 0, 1, 1], [], []>} : vector<32x128xbf16>, vector<128x128xbf16>, vector<32x128xf32> -> vector<32x128xf32>
    %186 = arith.addf %180, %185 : vector<32x128xf32>
    %187 = vector.extract_strided_slice %172 {offsets = [0, 2, 0], sizes = [4, 8, 128], strides = [1, 1, 1]} : vector<4x10x128xbf16> to vector<4x8x128xbf16>
    %188 = vector.shape_cast %187 : vector<4x8x128xbf16> to vector<32x128xbf16>
    %c2_121 = arith.constant 2 : index
    %c0_122 = arith.constant 0 : index
    %c0_123 = arith.constant 0 : index
    %189 = vector.load %arg12[%c2_121, %c0_122, %c0_123] : memref<3x128x128xbf16, #tpu.memory_space<vmem>>, vector<1x128x128xbf16>
    %190 = vector.shape_cast %189 : vector<1x128x128xbf16> to vector<128x128xbf16>
    %cst_124 = arith.constant dense<0.000000e+00> : vector<32x128xf32>
    %191 = tpu.matmul %188, %190, %cst_124 {dimension_numbers = #tpu.dot_dimension_numbers<[1], [0], [0], [1], [0, 0, 1, 1], [], []>} : vector<32x128xbf16>, vector<128x128xbf16>, vector<32x128xf32> -> vector<32x128xf32>
    %192 = arith.addf %186, %191 : vector<32x128xf32>
    %193 = vector.broadcast %173 : vector<1x128xf32> to vector<32x128xf32>
    %194 = arith.addf %192, %193 : vector<32x128xf32>
    %cst_125 = arith.constant 0.000000e+00 : f32
    %195 = vector.broadcast %cst_125 : f32 to vector<32x128xf32>
    %196 = arith.maximumf %194, %195 : vector<32x128xf32>
    %197 = vector.shape_cast %196 : vector<32x128xf32> to vector<4x8x128xf32>
    %198 = arith.truncf %197 : vector<4x8x128xf32> to vector<4x8x128xbf16>
    %cst_126 = arith.constant 0.000000e+00 : bf16
    %199 = vector.broadcast %cst_126 : bf16 to vector<4x1x128xbf16>
    %200 = tpu.concatenate %199, %198, %199 in 1 : vector<4x1x128xbf16>, vector<4x8x128xbf16>, vector<4x1x128xbf16> -> vector<4x10x128xbf16>
    %c0_127 = arith.constant 0 : index
    %c0_128 = arith.constant 0 : index
    %201 = vector.load %arg15[%c0_127, %c0_128] : memref<1x64xf32, #tpu.memory_space<vmem>>, vector<1x64xf32>
    %cst_129 = arith.constant 0.000000e+00 : f32
    %202 = vector.broadcast %cst_129 : f32 to vector<32x64xf32>
    %cst_130 = arith.constant 0.000000e+00 : f32
    %203 = vector.broadcast %cst_130 : f32 to vector<32x64xf32>
    %204 = vector.extract_strided_slice %200 {offsets = [0, 0, 0], sizes = [4, 8, 128], strides = [1, 1, 1]} : vector<4x10x128xbf16> to vector<4x8x128xbf16>
    %205 = vector.shape_cast %204 : vector<4x8x128xbf16> to vector<32x128xbf16>
    %c0_131 = arith.constant 0 : index
    %c0_132 = arith.constant 0 : index
    %c0_133 = arith.constant 0 : index
    %206 = vector.load %arg14[%c0_131, %c0_132, %c0_133] : memref<6x128x64xbf16, #tpu.memory_space<vmem>>, vector<1x128x64xbf16>
    %207 = vector.shape_cast %206 : vector<1x128x64xbf16> to vector<128x64xbf16>
    %cst_134 = arith.constant dense<0.000000e+00> : vector<32x64xf32>
    %208 = tpu.matmul %205, %207, %cst_134 {dimension_numbers = #tpu.dot_dimension_numbers<[1], [0], [0], [1], [0, 0, 1, 1], [], []>} : vector<32x128xbf16>, vector<128x64xbf16>, vector<32x64xf32> -> vector<32x64xf32>
    %209 = arith.addf %202, %208 : vector<32x64xf32>
    %c3_135 = arith.constant 3 : index
    %c0_136 = arith.constant 0 : index
    %c0_137 = arith.constant 0 : index
    %210 = vector.load %arg14[%c3_135, %c0_136, %c0_137] : memref<6x128x64xbf16, #tpu.memory_space<vmem>>, vector<1x128x64xbf16>
    %211 = vector.shape_cast %210 : vector<1x128x64xbf16> to vector<128x64xbf16>
    %cst_138 = arith.constant dense<0.000000e+00> : vector<32x64xf32>
    %212 = tpu.matmul %205, %211, %cst_138 {dimension_numbers = #tpu.dot_dimension_numbers<[1], [0], [0], [1], [0, 0, 1, 1], [], []>} : vector<32x128xbf16>, vector<128x64xbf16>, vector<32x64xf32> -> vector<32x64xf32>
    %213 = arith.addf %203, %212 : vector<32x64xf32>
    %214 = vector.extract_strided_slice %200 {offsets = [0, 1, 0], sizes = [4, 8, 128], strides = [1, 1, 1]} : vector<4x10x128xbf16> to vector<4x8x128xbf16>
    %215 = vector.shape_cast %214 : vector<4x8x128xbf16> to vector<32x128xbf16>
    %c1_139 = arith.constant 1 : index
    %c0_140 = arith.constant 0 : index
    %c0_141 = arith.constant 0 : index
    %216 = vector.load %arg14[%c1_139, %c0_140, %c0_141] : memref<6x128x64xbf16, #tpu.memory_space<vmem>>, vector<1x128x64xbf16>
    %217 = vector.shape_cast %216 : vector<1x128x64xbf16> to vector<128x64xbf16>
    %cst_142 = arith.constant dense<0.000000e+00> : vector<32x64xf32>
    %218 = tpu.matmul %215, %217, %cst_142 {dimension_numbers = #tpu.dot_dimension_numbers<[1], [0], [0], [1], [0, 0, 1, 1], [], []>} : vector<32x128xbf16>, vector<128x64xbf16>, vector<32x64xf32> -> vector<32x64xf32>
    %219 = arith.addf %209, %218 : vector<32x64xf32>
    %c4_143 = arith.constant 4 : index
    %c0_144 = arith.constant 0 : index
    %c0_145 = arith.constant 0 : index
    %220 = vector.load %arg14[%c4_143, %c0_144, %c0_145] : memref<6x128x64xbf16, #tpu.memory_space<vmem>>, vector<1x128x64xbf16>
    %221 = vector.shape_cast %220 : vector<1x128x64xbf16> to vector<128x64xbf16>
    %cst_146 = arith.constant dense<0.000000e+00> : vector<32x64xf32>
    %222 = tpu.matmul %215, %221, %cst_146 {dimension_numbers = #tpu.dot_dimension_numbers<[1], [0], [0], [1], [0, 0, 1, 1], [], []>} : vector<32x128xbf16>, vector<128x64xbf16>, vector<32x64xf32> -> vector<32x64xf32>
    %223 = arith.addf %213, %222 : vector<32x64xf32>
    %224 = vector.extract_strided_slice %200 {offsets = [0, 2, 0], sizes = [4, 8, 128], strides = [1, 1, 1]} : vector<4x10x128xbf16> to vector<4x8x128xbf16>
    %225 = vector.shape_cast %224 : vector<4x8x128xbf16> to vector<32x128xbf16>
    %c2_147 = arith.constant 2 : index
    %c0_148 = arith.constant 0 : index
    %c0_149 = arith.constant 0 : index
    %226 = vector.load %arg14[%c2_147, %c0_148, %c0_149] : memref<6x128x64xbf16, #tpu.memory_space<vmem>>, vector<1x128x64xbf16>
    %227 = vector.shape_cast %226 : vector<1x128x64xbf16> to vector<128x64xbf16>
    %cst_150 = arith.constant dense<0.000000e+00> : vector<32x64xf32>
    %228 = tpu.matmul %225, %227, %cst_150 {dimension_numbers = #tpu.dot_dimension_numbers<[1], [0], [0], [1], [0, 0, 1, 1], [], []>} : vector<32x128xbf16>, vector<128x64xbf16>, vector<32x64xf32> -> vector<32x64xf32>
    %229 = arith.addf %219, %228 : vector<32x64xf32>
    %c5_151 = arith.constant 5 : index
    %c0_152 = arith.constant 0 : index
    %c0_153 = arith.constant 0 : index
    %230 = vector.load %arg14[%c5_151, %c0_152, %c0_153] : memref<6x128x64xbf16, #tpu.memory_space<vmem>>, vector<1x128x64xbf16>
    %231 = vector.shape_cast %230 : vector<1x128x64xbf16> to vector<128x64xbf16>
    %cst_154 = arith.constant dense<0.000000e+00> : vector<32x64xf32>
    %232 = tpu.matmul %225, %231, %cst_154 {dimension_numbers = #tpu.dot_dimension_numbers<[1], [0], [0], [1], [0, 0, 1, 1], [], []>} : vector<32x128xbf16>, vector<128x64xbf16>, vector<32x64xf32> -> vector<32x64xf32>
    %233 = arith.addf %223, %232 : vector<32x64xf32>
    %234 = arith.maximumf %229, %233 : vector<32x64xf32>
    %235 = vector.broadcast %201 : vector<1x64xf32> to vector<32x64xf32>
    %236 = arith.addf %234, %235 : vector<32x64xf32>
    %cst_155 = arith.constant 0.000000e+00 : f32
    %237 = vector.broadcast %cst_155 : f32 to vector<32x64xf32>
    %238 = arith.maximumf %236, %237 : vector<32x64xf32>
    %239 = vector.shape_cast %238 : vector<32x64xf32> to vector<4x4x2x64xf32>
    %cst_156 = arith.constant dense<0xFF800000> : vector<4x4x64xf32>
    %240 = vector.multi_reduction <maximumf>, %239, %cst_156 [2] : vector<4x4x2x64xf32> to vector<4x4x64xf32>
    %241 = arith.truncf %240 : vector<4x4x64xf32> to vector<4x4x64xbf16>
    %cst_157 = arith.constant 0.000000e+00 : bf16
    %242 = vector.broadcast %cst_157 : bf16 to vector<4x1x64xbf16>
    %243 = tpu.concatenate %242, %241, %242 in 1 : vector<4x1x64xbf16>, vector<4x4x64xbf16>, vector<4x1x64xbf16> -> vector<4x6x64xbf16>
    %c0_158 = arith.constant 0 : index
    %c0_159 = arith.constant 0 : index
    %244 = vector.load %arg17[%c0_158, %c0_159] : memref<1x128xf32, #tpu.memory_space<vmem>>, vector<1x128xf32>
    %cst_160 = arith.constant 0.000000e+00 : f32
    %245 = vector.broadcast %cst_160 : f32 to vector<16x128xf32>
    %246 = vector.extract_strided_slice %243 {offsets = [0, 0, 0], sizes = [4, 4, 64], strides = [1, 1, 1]} : vector<4x6x64xbf16> to vector<4x4x64xbf16>
    %247 = vector.shape_cast %246 : vector<4x4x64xbf16> to vector<16x64xbf16>
    %c0_161 = arith.constant 0 : index
    %c0_162 = arith.constant 0 : index
    %c0_163 = arith.constant 0 : index
    %248 = vector.load %arg16[%c0_161, %c0_162, %c0_163] : memref<3x64x128xbf16, #tpu.memory_space<vmem>>, vector<1x64x128xbf16>
    %249 = vector.shape_cast %248 : vector<1x64x128xbf16> to vector<64x128xbf16>
    %cst_164 = arith.constant dense<0.000000e+00> : vector<16x128xf32>
    %250 = tpu.matmul %247, %249, %cst_164 {dimension_numbers = #tpu.dot_dimension_numbers<[1], [0], [0], [1], [0, 0, 1, 1], [], []>} : vector<16x64xbf16>, vector<64x128xbf16>, vector<16x128xf32> -> vector<16x128xf32>
    %251 = arith.addf %245, %250 : vector<16x128xf32>
    %252 = vector.extract_strided_slice %243 {offsets = [0, 1, 0], sizes = [4, 4, 64], strides = [1, 1, 1]} : vector<4x6x64xbf16> to vector<4x4x64xbf16>
    %253 = vector.shape_cast %252 : vector<4x4x64xbf16> to vector<16x64xbf16>
    %c1_165 = arith.constant 1 : index
    %c0_166 = arith.constant 0 : index
    %c0_167 = arith.constant 0 : index
    %254 = vector.load %arg16[%c1_165, %c0_166, %c0_167] : memref<3x64x128xbf16, #tpu.memory_space<vmem>>, vector<1x64x128xbf16>
    %255 = vector.shape_cast %254 : vector<1x64x128xbf16> to vector<64x128xbf16>
    %cst_168 = arith.constant dense<0.000000e+00> : vector<16x128xf32>
    %256 = tpu.matmul %253, %255, %cst_168 {dimension_numbers = #tpu.dot_dimension_numbers<[1], [0], [0], [1], [0, 0, 1, 1], [], []>} : vector<16x64xbf16>, vector<64x128xbf16>, vector<16x128xf32> -> vector<16x128xf32>
    %257 = arith.addf %251, %256 : vector<16x128xf32>
    %258 = vector.extract_strided_slice %243 {offsets = [0, 2, 0], sizes = [4, 4, 64], strides = [1, 1, 1]} : vector<4x6x64xbf16> to vector<4x4x64xbf16>
    %259 = vector.shape_cast %258 : vector<4x4x64xbf16> to vector<16x64xbf16>
    %c2_169 = arith.constant 2 : index
    %c0_170 = arith.constant 0 : index
    %c0_171 = arith.constant 0 : index
    %260 = vector.load %arg16[%c2_169, %c0_170, %c0_171] : memref<3x64x128xbf16, #tpu.memory_space<vmem>>, vector<1x64x128xbf16>
    %261 = vector.shape_cast %260 : vector<1x64x128xbf16> to vector<64x128xbf16>
    %cst_172 = arith.constant dense<0.000000e+00> : vector<16x128xf32>
    %262 = tpu.matmul %259, %261, %cst_172 {dimension_numbers = #tpu.dot_dimension_numbers<[1], [0], [0], [1], [0, 0, 1, 1], [], []>} : vector<16x64xbf16>, vector<64x128xbf16>, vector<16x128xf32> -> vector<16x128xf32>
    %263 = arith.addf %257, %262 : vector<16x128xf32>
    %264 = vector.broadcast %244 : vector<1x128xf32> to vector<16x128xf32>
    %265 = arith.addf %263, %264 : vector<16x128xf32>
    %cst_173 = arith.constant 0.000000e+00 : f32
    %266 = vector.broadcast %cst_173 : f32 to vector<16x128xf32>
    %267 = arith.maximumf %265, %266 : vector<16x128xf32>
    %268 = vector.shape_cast %267 : vector<16x128xf32> to vector<4x4x128xf32>
    %269 = arith.truncf %268 : vector<4x4x128xf32> to vector<4x4x128xbf16>
    %cst_174 = arith.constant 0.000000e+00 : bf16
    %270 = vector.broadcast %cst_174 : bf16 to vector<4x1x128xbf16>
    %271 = tpu.concatenate %270, %269, %270 in 1 : vector<4x1x128xbf16>, vector<4x4x128xbf16>, vector<4x1x128xbf16> -> vector<4x6x128xbf16>
    %c0_175 = arith.constant 0 : index
    %c0_176 = arith.constant 0 : index
    %272 = vector.load %arg19[%c0_175, %c0_176] : memref<1x128xf32, #tpu.memory_space<vmem>>, vector<1x128xf32>
    %cst_177 = arith.constant 0.000000e+00 : f32
    %273 = vector.broadcast %cst_177 : f32 to vector<16x128xf32>
    %274 = vector.extract_strided_slice %271 {offsets = [0, 0, 0], sizes = [4, 4, 128], strides = [1, 1, 1]} : vector<4x6x128xbf16> to vector<4x4x128xbf16>
    %275 = vector.shape_cast %274 : vector<4x4x128xbf16> to vector<16x128xbf16>
    %c0_178 = arith.constant 0 : index
    %c0_179 = arith.constant 0 : index
    %c0_180 = arith.constant 0 : index
    %276 = vector.load %arg18[%c0_178, %c0_179, %c0_180] : memref<3x128x128xbf16, #tpu.memory_space<vmem>>, vector<1x128x128xbf16>
    %277 = vector.shape_cast %276 : vector<1x128x128xbf16> to vector<128x128xbf16>
    %cst_181 = arith.constant dense<0.000000e+00> : vector<16x128xf32>
    %278 = tpu.matmul %275, %277, %cst_181 {dimension_numbers = #tpu.dot_dimension_numbers<[1], [0], [0], [1], [0, 0, 1, 1], [], []>} : vector<16x128xbf16>, vector<128x128xbf16>, vector<16x128xf32> -> vector<16x128xf32>
    %279 = arith.addf %273, %278 : vector<16x128xf32>
    %280 = vector.extract_strided_slice %271 {offsets = [0, 1, 0], sizes = [4, 4, 128], strides = [1, 1, 1]} : vector<4x6x128xbf16> to vector<4x4x128xbf16>
    %281 = vector.shape_cast %280 : vector<4x4x128xbf16> to vector<16x128xbf16>
    %c1_182 = arith.constant 1 : index
    %c0_183 = arith.constant 0 : index
    %c0_184 = arith.constant 0 : index
    %282 = vector.load %arg18[%c1_182, %c0_183, %c0_184] : memref<3x128x128xbf16, #tpu.memory_space<vmem>>, vector<1x128x128xbf16>
    %283 = vector.shape_cast %282 : vector<1x128x128xbf16> to vector<128x128xbf16>
    %cst_185 = arith.constant dense<0.000000e+00> : vector<16x128xf32>
    %284 = tpu.matmul %281, %283, %cst_185 {dimension_numbers = #tpu.dot_dimension_numbers<[1], [0], [0], [1], [0, 0, 1, 1], [], []>} : vector<16x128xbf16>, vector<128x128xbf16>, vector<16x128xf32> -> vector<16x128xf32>
    %285 = arith.addf %279, %284 : vector<16x128xf32>
    %286 = vector.extract_strided_slice %271 {offsets = [0, 2, 0], sizes = [4, 4, 128], strides = [1, 1, 1]} : vector<4x6x128xbf16> to vector<4x4x128xbf16>
    %287 = vector.shape_cast %286 : vector<4x4x128xbf16> to vector<16x128xbf16>
    %c2_186 = arith.constant 2 : index
    %c0_187 = arith.constant 0 : index
    %c0_188 = arith.constant 0 : index
    %288 = vector.load %arg18[%c2_186, %c0_187, %c0_188] : memref<3x128x128xbf16, #tpu.memory_space<vmem>>, vector<1x128x128xbf16>
    %289 = vector.shape_cast %288 : vector<1x128x128xbf16> to vector<128x128xbf16>
    %cst_189 = arith.constant dense<0.000000e+00> : vector<16x128xf32>
    %290 = tpu.matmul %287, %289, %cst_189 {dimension_numbers = #tpu.dot_dimension_numbers<[1], [0], [0], [1], [0, 0, 1, 1], [], []>} : vector<16x128xbf16>, vector<128x128xbf16>, vector<16x128xf32> -> vector<16x128xf32>
    %291 = arith.addf %285, %290 : vector<16x128xf32>
    %292 = vector.broadcast %272 : vector<1x128xf32> to vector<16x128xf32>
    %293 = arith.addf %291, %292 : vector<16x128xf32>
    %cst_190 = arith.constant 0.000000e+00 : f32
    %294 = vector.broadcast %cst_190 : f32 to vector<16x128xf32>
    %295 = arith.maximumf %293, %294 : vector<16x128xf32>
    %296 = vector.shape_cast %295 : vector<16x128xf32> to vector<4x4x128xf32>
    %297 = arith.truncf %296 : vector<4x4x128xf32> to vector<4x4x128xbf16>
    %cst_191 = arith.constant 0.000000e+00 : bf16
    %298 = vector.broadcast %cst_191 : bf16 to vector<4x1x128xbf16>
    %299 = tpu.concatenate %298, %297, %298 in 1 : vector<4x1x128xbf16>, vector<4x4x128xbf16>, vector<4x1x128xbf16> -> vector<4x6x128xbf16>
    %c0_192 = arith.constant 0 : index
    %c0_193 = arith.constant 0 : index
    %300 = vector.load %arg21[%c0_192, %c0_193] : memref<1x64xf32, #tpu.memory_space<vmem>>, vector<1x64xf32>
    %cst_194 = arith.constant 0.000000e+00 : f32
    %301 = vector.broadcast %cst_194 : f32 to vector<16x64xf32>
    %cst_195 = arith.constant 0.000000e+00 : f32
    %302 = vector.broadcast %cst_195 : f32 to vector<16x64xf32>
    %303 = vector.extract_strided_slice %299 {offsets = [0, 0, 0], sizes = [4, 4, 128], strides = [1, 1, 1]} : vector<4x6x128xbf16> to vector<4x4x128xbf16>
    %304 = vector.shape_cast %303 : vector<4x4x128xbf16> to vector<16x128xbf16>
    %c0_196 = arith.constant 0 : index
    %c0_197 = arith.constant 0 : index
    %c0_198 = arith.constant 0 : index
    %305 = vector.load %arg20[%c0_196, %c0_197, %c0_198] : memref<6x128x64xbf16, #tpu.memory_space<vmem>>, vector<1x128x64xbf16>
    %306 = vector.shape_cast %305 : vector<1x128x64xbf16> to vector<128x64xbf16>
    %cst_199 = arith.constant dense<0.000000e+00> : vector<16x64xf32>
    %307 = tpu.matmul %304, %306, %cst_199 {dimension_numbers = #tpu.dot_dimension_numbers<[1], [0], [0], [1], [0, 0, 1, 1], [], []>} : vector<16x128xbf16>, vector<128x64xbf16>, vector<16x64xf32> -> vector<16x64xf32>
    %308 = arith.addf %301, %307 : vector<16x64xf32>
    %c3_200 = arith.constant 3 : index
    %c0_201 = arith.constant 0 : index
    %c0_202 = arith.constant 0 : index
    %309 = vector.load %arg20[%c3_200, %c0_201, %c0_202] : memref<6x128x64xbf16, #tpu.memory_space<vmem>>, vector<1x128x64xbf16>
    %310 = vector.shape_cast %309 : vector<1x128x64xbf16> to vector<128x64xbf16>
    %cst_203 = arith.constant dense<0.000000e+00> : vector<16x64xf32>
    %311 = tpu.matmul %304, %310, %cst_203 {dimension_numbers = #tpu.dot_dimension_numbers<[1], [0], [0], [1], [0, 0, 1, 1], [], []>} : vector<16x128xbf16>, vector<128x64xbf16>, vector<16x64xf32> -> vector<16x64xf32>
    %312 = arith.addf %302, %311 : vector<16x64xf32>
    %313 = vector.extract_strided_slice %299 {offsets = [0, 1, 0], sizes = [4, 4, 128], strides = [1, 1, 1]} : vector<4x6x128xbf16> to vector<4x4x128xbf16>
    %314 = vector.shape_cast %313 : vector<4x4x128xbf16> to vector<16x128xbf16>
    %c1_204 = arith.constant 1 : index
    %c0_205 = arith.constant 0 : index
    %c0_206 = arith.constant 0 : index
    %315 = vector.load %arg20[%c1_204, %c0_205, %c0_206] : memref<6x128x64xbf16, #tpu.memory_space<vmem>>, vector<1x128x64xbf16>
    %316 = vector.shape_cast %315 : vector<1x128x64xbf16> to vector<128x64xbf16>
    %cst_207 = arith.constant dense<0.000000e+00> : vector<16x64xf32>
    %317 = tpu.matmul %314, %316, %cst_207 {dimension_numbers = #tpu.dot_dimension_numbers<[1], [0], [0], [1], [0, 0, 1, 1], [], []>} : vector<16x128xbf16>, vector<128x64xbf16>, vector<16x64xf32> -> vector<16x64xf32>
    %318 = arith.addf %308, %317 : vector<16x64xf32>
    %c4_208 = arith.constant 4 : index
    %c0_209 = arith.constant 0 : index
    %c0_210 = arith.constant 0 : index
    %319 = vector.load %arg20[%c4_208, %c0_209, %c0_210] : memref<6x128x64xbf16, #tpu.memory_space<vmem>>, vector<1x128x64xbf16>
    %320 = vector.shape_cast %319 : vector<1x128x64xbf16> to vector<128x64xbf16>
    %cst_211 = arith.constant dense<0.000000e+00> : vector<16x64xf32>
    %321 = tpu.matmul %314, %320, %cst_211 {dimension_numbers = #tpu.dot_dimension_numbers<[1], [0], [0], [1], [0, 0, 1, 1], [], []>} : vector<16x128xbf16>, vector<128x64xbf16>, vector<16x64xf32> -> vector<16x64xf32>
    %322 = arith.addf %312, %321 : vector<16x64xf32>
    %323 = vector.extract_strided_slice %299 {offsets = [0, 2, 0], sizes = [4, 4, 128], strides = [1, 1, 1]} : vector<4x6x128xbf16> to vector<4x4x128xbf16>
    %324 = vector.shape_cast %323 : vector<4x4x128xbf16> to vector<16x128xbf16>
    %c2_212 = arith.constant 2 : index
    %c0_213 = arith.constant 0 : index
    %c0_214 = arith.constant 0 : index
    %325 = vector.load %arg20[%c2_212, %c0_213, %c0_214] : memref<6x128x64xbf16, #tpu.memory_space<vmem>>, vector<1x128x64xbf16>
    %326 = vector.shape_cast %325 : vector<1x128x64xbf16> to vector<128x64xbf16>
    %cst_215 = arith.constant dense<0.000000e+00> : vector<16x64xf32>
    %327 = tpu.matmul %324, %326, %cst_215 {dimension_numbers = #tpu.dot_dimension_numbers<[1], [0], [0], [1], [0, 0, 1, 1], [], []>} : vector<16x128xbf16>, vector<128x64xbf16>, vector<16x64xf32> -> vector<16x64xf32>
    %328 = arith.addf %318, %327 : vector<16x64xf32>
    %c5_216 = arith.constant 5 : index
    %c0_217 = arith.constant 0 : index
    %c0_218 = arith.constant 0 : index
    %329 = vector.load %arg20[%c5_216, %c0_217, %c0_218] : memref<6x128x64xbf16, #tpu.memory_space<vmem>>, vector<1x128x64xbf16>
    %330 = vector.shape_cast %329 : vector<1x128x64xbf16> to vector<128x64xbf16>
    %cst_219 = arith.constant dense<0.000000e+00> : vector<16x64xf32>
    %331 = tpu.matmul %324, %330, %cst_219 {dimension_numbers = #tpu.dot_dimension_numbers<[1], [0], [0], [1], [0, 0, 1, 1], [], []>} : vector<16x128xbf16>, vector<128x64xbf16>, vector<16x64xf32> -> vector<16x64xf32>
    %332 = arith.addf %322, %331 : vector<16x64xf32>
    %333 = arith.maximumf %328, %332 : vector<16x64xf32>
    %334 = vector.broadcast %300 : vector<1x64xf32> to vector<16x64xf32>
    %335 = arith.addf %333, %334 : vector<16x64xf32>
    %cst_220 = arith.constant 0.000000e+00 : f32
    %336 = vector.broadcast %cst_220 : f32 to vector<16x64xf32>
    %337 = arith.maximumf %335, %336 : vector<16x64xf32>
    %338 = vector.shape_cast %337 : vector<16x64xf32> to vector<4x2x2x64xf32>
    %cst_221 = arith.constant dense<0xFF800000> : vector<4x2x64xf32>
    %339 = vector.multi_reduction <maximumf>, %338, %cst_221 [2] : vector<4x2x2x64xf32> to vector<4x2x64xf32>
    %340 = arith.truncf %339 : vector<4x2x64xf32> to vector<4x2x64xbf16>
    %cst_222 = arith.constant 0.000000e+00 : bf16
    %341 = vector.broadcast %cst_222 : bf16 to vector<4x1x64xbf16>
    %342 = tpu.concatenate %341, %340, %341 in 1 : vector<4x1x64xbf16>, vector<4x2x64xbf16>, vector<4x1x64xbf16> -> vector<4x4x64xbf16>
    %c0_223 = arith.constant 0 : index
    %c0_224 = arith.constant 0 : index
    %343 = vector.load %arg23[%c0_223, %c0_224] : memref<1x64xf32, #tpu.memory_space<vmem>>, vector<1x64xf32>
    %cst_225 = arith.constant 0.000000e+00 : f32
    %344 = vector.broadcast %cst_225 : f32 to vector<8x64xf32>
    %345 = vector.extract_strided_slice %342 {offsets = [0, 0, 0], sizes = [4, 2, 64], strides = [1, 1, 1]} : vector<4x4x64xbf16> to vector<4x2x64xbf16>
    %346 = vector.shape_cast %345 : vector<4x2x64xbf16> to vector<8x64xbf16>
    %c0_226 = arith.constant 0 : index
    %c0_227 = arith.constant 0 : index
    %c0_228 = arith.constant 0 : index
    %347 = vector.load %arg22[%c0_226, %c0_227, %c0_228] : memref<3x64x64xbf16, #tpu.memory_space<vmem>>, vector<1x64x64xbf16>
    %348 = vector.shape_cast %347 : vector<1x64x64xbf16> to vector<64x64xbf16>
    %cst_229 = arith.constant dense<0.000000e+00> : vector<8x64xf32>
    %349 = tpu.matmul %346, %348, %cst_229 {dimension_numbers = #tpu.dot_dimension_numbers<[1], [0], [0], [1], [0, 0, 1, 1], [], []>} : vector<8x64xbf16>, vector<64x64xbf16>, vector<8x64xf32> -> vector<8x64xf32>
    %350 = arith.addf %344, %349 : vector<8x64xf32>
    %351 = vector.extract_strided_slice %342 {offsets = [0, 1, 0], sizes = [4, 2, 64], strides = [1, 1, 1]} : vector<4x4x64xbf16> to vector<4x2x64xbf16>
    %352 = vector.shape_cast %351 : vector<4x2x64xbf16> to vector<8x64xbf16>
    %c1_230 = arith.constant 1 : index
    %c0_231 = arith.constant 0 : index
    %c0_232 = arith.constant 0 : index
    %353 = vector.load %arg22[%c1_230, %c0_231, %c0_232] : memref<3x64x64xbf16, #tpu.memory_space<vmem>>, vector<1x64x64xbf16>
    %354 = vector.shape_cast %353 : vector<1x64x64xbf16> to vector<64x64xbf16>
    %cst_233 = arith.constant dense<0.000000e+00> : vector<8x64xf32>
    %355 = tpu.matmul %352, %354, %cst_233 {dimension_numbers = #tpu.dot_dimension_numbers<[1], [0], [0], [1], [0, 0, 1, 1], [], []>} : vector<8x64xbf16>, vector<64x64xbf16>, vector<8x64xf32> -> vector<8x64xf32>
    %356 = arith.addf %350, %355 : vector<8x64xf32>
    %357 = vector.extract_strided_slice %342 {offsets = [0, 2, 0], sizes = [4, 2, 64], strides = [1, 1, 1]} : vector<4x4x64xbf16> to vector<4x2x64xbf16>
    %358 = vector.shape_cast %357 : vector<4x2x64xbf16> to vector<8x64xbf16>
    %c2_234 = arith.constant 2 : index
    %c0_235 = arith.constant 0 : index
    %c0_236 = arith.constant 0 : index
    %359 = vector.load %arg22[%c2_234, %c0_235, %c0_236] : memref<3x64x64xbf16, #tpu.memory_space<vmem>>, vector<1x64x64xbf16>
    %360 = vector.shape_cast %359 : vector<1x64x64xbf16> to vector<64x64xbf16>
    %cst_237 = arith.constant dense<0.000000e+00> : vector<8x64xf32>
    %361 = tpu.matmul %358, %360, %cst_237 {dimension_numbers = #tpu.dot_dimension_numbers<[1], [0], [0], [1], [0, 0, 1, 1], [], []>} : vector<8x64xbf16>, vector<64x64xbf16>, vector<8x64xf32> -> vector<8x64xf32>
    %362 = arith.addf %356, %361 : vector<8x64xf32>
    %363 = vector.broadcast %343 : vector<1x64xf32> to vector<8x64xf32>
    %364 = arith.addf %362, %363 : vector<8x64xf32>
    %cst_238 = arith.constant 0.000000e+00 : f32
    %365 = vector.broadcast %cst_238 : f32 to vector<8x64xf32>
    %366 = arith.maximumf %364, %365 : vector<8x64xf32>
    %367 = vector.shape_cast %366 : vector<8x64xf32> to vector<4x2x64xf32>
    %368 = arith.truncf %367 : vector<4x2x64xf32> to vector<4x2x64xbf16>
    %cst_239 = arith.constant 0.000000e+00 : bf16
    %369 = vector.broadcast %cst_239 : bf16 to vector<4x1x64xbf16>
    %370 = tpu.concatenate %369, %368, %369 in 1 : vector<4x1x64xbf16>, vector<4x2x64xbf16>, vector<4x1x64xbf16> -> vector<4x4x64xbf16>
    %c0_240 = arith.constant 0 : index
    %c0_241 = arith.constant 0 : index
    %371 = vector.load %arg25[%c0_240, %c0_241] : memref<1x64xf32, #tpu.memory_space<vmem>>, vector<1x64xf32>
    %cst_242 = arith.constant 0.000000e+00 : f32
    %372 = vector.broadcast %cst_242 : f32 to vector<8x64xf32>
    %373 = vector.extract_strided_slice %370 {offsets = [0, 0, 0], sizes = [4, 2, 64], strides = [1, 1, 1]} : vector<4x4x64xbf16> to vector<4x2x64xbf16>
    %374 = vector.shape_cast %373 : vector<4x2x64xbf16> to vector<8x64xbf16>
    %c0_243 = arith.constant 0 : index
    %c0_244 = arith.constant 0 : index
    %c0_245 = arith.constant 0 : index
    %375 = vector.load %arg24[%c0_243, %c0_244, %c0_245] : memref<3x64x64xbf16, #tpu.memory_space<vmem>>, vector<1x64x64xbf16>
    %376 = vector.shape_cast %375 : vector<1x64x64xbf16> to vector<64x64xbf16>
    %cst_246 = arith.constant dense<0.000000e+00> : vector<8x64xf32>
    %377 = tpu.matmul %374, %376, %cst_246 {dimension_numbers = #tpu.dot_dimension_numbers<[1], [0], [0], [1], [0, 0, 1, 1], [], []>} : vector<8x64xbf16>, vector<64x64xbf16>, vector<8x64xf32> -> vector<8x64xf32>
    %378 = arith.addf %372, %377 : vector<8x64xf32>
    %379 = vector.extract_strided_slice %370 {offsets = [0, 1, 0], sizes = [4, 2, 64], strides = [1, 1, 1]} : vector<4x4x64xbf16> to vector<4x2x64xbf16>
    %380 = vector.shape_cast %379 : vector<4x2x64xbf16> to vector<8x64xbf16>
    %c1_247 = arith.constant 1 : index
    %c0_248 = arith.constant 0 : index
    %c0_249 = arith.constant 0 : index
    %381 = vector.load %arg24[%c1_247, %c0_248, %c0_249] : memref<3x64x64xbf16, #tpu.memory_space<vmem>>, vector<1x64x64xbf16>
    %382 = vector.shape_cast %381 : vector<1x64x64xbf16> to vector<64x64xbf16>
    %cst_250 = arith.constant dense<0.000000e+00> : vector<8x64xf32>
    %383 = tpu.matmul %380, %382, %cst_250 {dimension_numbers = #tpu.dot_dimension_numbers<[1], [0], [0], [1], [0, 0, 1, 1], [], []>} : vector<8x64xbf16>, vector<64x64xbf16>, vector<8x64xf32> -> vector<8x64xf32>
    %384 = arith.addf %378, %383 : vector<8x64xf32>
    %385 = vector.extract_strided_slice %370 {offsets = [0, 2, 0], sizes = [4, 2, 64], strides = [1, 1, 1]} : vector<4x4x64xbf16> to vector<4x2x64xbf16>
    %386 = vector.shape_cast %385 : vector<4x2x64xbf16> to vector<8x64xbf16>
    %c2_251 = arith.constant 2 : index
    %c0_252 = arith.constant 0 : index
    %c0_253 = arith.constant 0 : index
    %387 = vector.load %arg24[%c2_251, %c0_252, %c0_253] : memref<3x64x64xbf16, #tpu.memory_space<vmem>>, vector<1x64x64xbf16>
    %388 = vector.shape_cast %387 : vector<1x64x64xbf16> to vector<64x64xbf16>
    %cst_254 = arith.constant dense<0.000000e+00> : vector<8x64xf32>
    %389 = tpu.matmul %386, %388, %cst_254 {dimension_numbers = #tpu.dot_dimension_numbers<[1], [0], [0], [1], [0, 0, 1, 1], [], []>} : vector<8x64xbf16>, vector<64x64xbf16>, vector<8x64xf32> -> vector<8x64xf32>
    %390 = arith.addf %384, %389 : vector<8x64xf32>
    %391 = vector.broadcast %371 : vector<1x64xf32> to vector<8x64xf32>
    %392 = arith.addf %390, %391 : vector<8x64xf32>
    %cst_255 = arith.constant 0.000000e+00 : f32
    %393 = vector.broadcast %cst_255 : f32 to vector<8x64xf32>
    %394 = arith.maximumf %392, %393 : vector<8x64xf32>
    %395 = vector.shape_cast %394 : vector<8x64xf32> to vector<4x2x64xf32>
    %396 = arith.truncf %395 : vector<4x2x64xf32> to vector<4x2x64xbf16>
    %cst_256 = arith.constant 0.000000e+00 : bf16
    %397 = vector.broadcast %cst_256 : bf16 to vector<4x1x64xbf16>
    %398 = tpu.concatenate %397, %396, %397 in 1 : vector<4x1x64xbf16>, vector<4x2x64xbf16>, vector<4x1x64xbf16> -> vector<4x4x64xbf16>
    %c0_257 = arith.constant 0 : index
    %c0_258 = arith.constant 0 : index
    %399 = vector.load %arg27[%c0_257, %c0_258] : memref<1x32xf32, #tpu.memory_space<vmem>>, vector<1x32xf32>
    %cst_259 = arith.constant 0.000000e+00 : f32
    %400 = vector.broadcast %cst_259 : f32 to vector<8x32xf32>
    %cst_260 = arith.constant 0.000000e+00 : f32
    %401 = vector.broadcast %cst_260 : f32 to vector<8x32xf32>
    %402 = vector.extract_strided_slice %398 {offsets = [0, 0, 0], sizes = [4, 2, 64], strides = [1, 1, 1]} : vector<4x4x64xbf16> to vector<4x2x64xbf16>
    %403 = vector.shape_cast %402 : vector<4x2x64xbf16> to vector<8x64xbf16>
    %c0_261 = arith.constant 0 : index
    %c0_262 = arith.constant 0 : index
    %c0_263 = arith.constant 0 : index
    %404 = vector.load %arg26[%c0_261, %c0_262, %c0_263] : memref<6x64x32xbf16, #tpu.memory_space<vmem>>, vector<1x64x32xbf16>
    %405 = vector.shape_cast %404 : vector<1x64x32xbf16> to vector<64x32xbf16>
    %cst_264 = arith.constant dense<0.000000e+00> : vector<8x32xf32>
    %406 = tpu.matmul %403, %405, %cst_264 {dimension_numbers = #tpu.dot_dimension_numbers<[1], [0], [0], [1], [0, 0, 1, 1], [], []>} : vector<8x64xbf16>, vector<64x32xbf16>, vector<8x32xf32> -> vector<8x32xf32>
    %407 = arith.addf %400, %406 : vector<8x32xf32>
    %c3_265 = arith.constant 3 : index
    %c0_266 = arith.constant 0 : index
    %c0_267 = arith.constant 0 : index
    %408 = vector.load %arg26[%c3_265, %c0_266, %c0_267] : memref<6x64x32xbf16, #tpu.memory_space<vmem>>, vector<1x64x32xbf16>
    %409 = vector.shape_cast %408 : vector<1x64x32xbf16> to vector<64x32xbf16>
    %cst_268 = arith.constant dense<0.000000e+00> : vector<8x32xf32>
    %410 = tpu.matmul %403, %409, %cst_268 {dimension_numbers = #tpu.dot_dimension_numbers<[1], [0], [0], [1], [0, 0, 1, 1], [], []>} : vector<8x64xbf16>, vector<64x32xbf16>, vector<8x32xf32> -> vector<8x32xf32>
    %411 = arith.addf %401, %410 : vector<8x32xf32>
    %412 = vector.extract_strided_slice %398 {offsets = [0, 1, 0], sizes = [4, 2, 64], strides = [1, 1, 1]} : vector<4x4x64xbf16> to vector<4x2x64xbf16>
    %413 = vector.shape_cast %412 : vector<4x2x64xbf16> to vector<8x64xbf16>
    %c1_269 = arith.constant 1 : index
    %c0_270 = arith.constant 0 : index
    %c0_271 = arith.constant 0 : index
    %414 = vector.load %arg26[%c1_269, %c0_270, %c0_271] : memref<6x64x32xbf16, #tpu.memory_space<vmem>>, vector<1x64x32xbf16>
    %415 = vector.shape_cast %414 : vector<1x64x32xbf16> to vector<64x32xbf16>
    %cst_272 = arith.constant dense<0.000000e+00> : vector<8x32xf32>
    %416 = tpu.matmul %413, %415, %cst_272 {dimension_numbers = #tpu.dot_dimension_numbers<[1], [0], [0], [1], [0, 0, 1, 1], [], []>} : vector<8x64xbf16>, vector<64x32xbf16>, vector<8x32xf32> -> vector<8x32xf32>
    %417 = arith.addf %407, %416 : vector<8x32xf32>
    %c4_273 = arith.constant 4 : index
    %c0_274 = arith.constant 0 : index
    %c0_275 = arith.constant 0 : index
    %418 = vector.load %arg26[%c4_273, %c0_274, %c0_275] : memref<6x64x32xbf16, #tpu.memory_space<vmem>>, vector<1x64x32xbf16>
    %419 = vector.shape_cast %418 : vector<1x64x32xbf16> to vector<64x32xbf16>
    %cst_276 = arith.constant dense<0.000000e+00> : vector<8x32xf32>
    %420 = tpu.matmul %413, %419, %cst_276 {dimension_numbers = #tpu.dot_dimension_numbers<[1], [0], [0], [1], [0, 0, 1, 1], [], []>} : vector<8x64xbf16>, vector<64x32xbf16>, vector<8x32xf32> -> vector<8x32xf32>
    %421 = arith.addf %411, %420 : vector<8x32xf32>
    %422 = vector.extract_strided_slice %398 {offsets = [0, 2, 0], sizes = [4, 2, 64], strides = [1, 1, 1]} : vector<4x4x64xbf16> to vector<4x2x64xbf16>
    %423 = vector.shape_cast %422 : vector<4x2x64xbf16> to vector<8x64xbf16>
    %c2_277 = arith.constant 2 : index
    %c0_278 = arith.constant 0 : index
    %c0_279 = arith.constant 0 : index
    %424 = vector.load %arg26[%c2_277, %c0_278, %c0_279] : memref<6x64x32xbf16, #tpu.memory_space<vmem>>, vector<1x64x32xbf16>
    %425 = vector.shape_cast %424 : vector<1x64x32xbf16> to vector<64x32xbf16>
    %cst_280 = arith.constant dense<0.000000e+00> : vector<8x32xf32>
    %426 = tpu.matmul %423, %425, %cst_280 {dimension_numbers = #tpu.dot_dimension_numbers<[1], [0], [0], [1], [0, 0, 1, 1], [], []>} : vector<8x64xbf16>, vector<64x32xbf16>, vector<8x32xf32> -> vector<8x32xf32>
    %427 = arith.addf %417, %426 : vector<8x32xf32>
    %c5_281 = arith.constant 5 : index
    %c0_282 = arith.constant 0 : index
    %c0_283 = arith.constant 0 : index
    %428 = vector.load %arg26[%c5_281, %c0_282, %c0_283] : memref<6x64x32xbf16, #tpu.memory_space<vmem>>, vector<1x64x32xbf16>
    %429 = vector.shape_cast %428 : vector<1x64x32xbf16> to vector<64x32xbf16>
    %cst_284 = arith.constant dense<0.000000e+00> : vector<8x32xf32>
    %430 = tpu.matmul %423, %429, %cst_284 {dimension_numbers = #tpu.dot_dimension_numbers<[1], [0], [0], [1], [0, 0, 1, 1], [], []>} : vector<8x64xbf16>, vector<64x32xbf16>, vector<8x32xf32> -> vector<8x32xf32>
    %431 = arith.addf %421, %430 : vector<8x32xf32>
    %432 = arith.maximumf %427, %431 : vector<8x32xf32>
    %433 = vector.broadcast %399 : vector<1x32xf32> to vector<8x32xf32>
    %434 = arith.addf %432, %433 : vector<8x32xf32>
    %cst_285 = arith.constant 0.000000e+00 : f32
    %435 = vector.broadcast %cst_285 : f32 to vector<8x32xf32>
    %436 = arith.maximumf %434, %435 : vector<8x32xf32>
    %437 = vector.shape_cast %436 : vector<8x32xf32> to vector<4x1x2x32xf32>
    %cst_286 = arith.constant dense<0xFF800000> : vector<4x1x32xf32>
    %438 = vector.multi_reduction <maximumf>, %437, %cst_286 [2] : vector<4x1x2x32xf32> to vector<4x1x32xf32>
    %439 = arith.truncf %438 : vector<4x1x32xf32> to vector<4x1x32xbf16>
    %c0_287 = arith.constant 0 : index
    %c0_288 = arith.constant 0 : index
    %c0_289 = arith.constant 0 : index
    %440 = vector.load %arg28[%c0_287, %c0_288, %c0_289] : memref<4x1x32xbf16, #tpu.memory_space<vmem>>, vector<4x1x32xbf16>
    tpu.vector_store %arg28[%c0_287, %c0_288, %c0_289], %439 {strides = array<i32>} : memref<4x1x32xbf16, #tpu.memory_space<vmem>>, vector<4x1x32xbf16>,
    return
  }
  func.func @transform_0(%arg0: i32) -> (i32, i32, i32) {
    %c0_i32 = arith.constant 0 : i32
    %c0_i32_0 = arith.constant 0 : i32
    %c0_i32_1 = arith.constant 0 : i32
    return %arg0, %c0_i32, %c0_i32_0 : i32, i32, i32
  }
  func.func @transform_1(%arg0: i32) -> (i32, i32, i32) {
    %c0_i32 = arith.constant 0 : i32
    %c0_i32_0 = arith.constant 0 : i32
    %c0_i32_1 = arith.constant 0 : i32
    %c0_i32_2 = arith.constant 0 : i32
    return %c0_i32, %c0_i32_0, %c0_i32_1 : i32, i32, i32
  }
  func.func @transform_2(%arg0: i32) -> (i32, i32) {
    %c0_i32 = arith.constant 0 : i32
    %c0_i32_0 = arith.constant 0 : i32
    %c0_i32_1 = arith.constant 0 : i32
    return %c0_i32, %c0_i32_0 : i32, i32
  }
  func.func @transform_3(%arg0: i32) -> (i32, i32, i32) {
    %c0_i32 = arith.constant 0 : i32
    %c0_i32_0 = arith.constant 0 : i32
    %c0_i32_1 = arith.constant 0 : i32
    %c0_i32_2 = arith.constant 0 : i32
    return %c0_i32, %c0_i32_0, %c0_i32_1 : i32, i32, i32
  }
  func.func @transform_4(%arg0: i32) -> (i32, i32) {
    %c0_i32 = arith.constant 0 : i32
    %c0_i32_0 = arith.constant 0 : i32
    %c0_i32_1 = arith.constant 0 : i32
    return %c0_i32, %c0_i32_0 : i32, i32
  }
  func.func @transform_5(%arg0: i32) -> (i32, i32, i32) {
    %c0_i32 = arith.constant 0 : i32
    %c0_i32_0 = arith.constant 0 : i32
    %c0_i32_1 = arith.constant 0 : i32
    %c0_i32_2 = arith.constant 0 : i32
    return %c0_i32, %c0_i32_0, %c0_i32_1 : i32, i32, i32
  }
  func.func @transform_6(%arg0: i32) -> (i32, i32) {
    %c0_i32 = arith.constant 0 : i32
    %c0_i32_0 = arith.constant 0 : i32
    %c0_i32_1 = arith.constant 0 : i32
    return %c0_i32, %c0_i32_0 : i32, i32
  }
  func.func @transform_7(%arg0: i32) -> (i32, i32, i32) {
    %c0_i32 = arith.constant 0 : i32
    %c0_i32_0 = arith.constant 0 : i32
    %c0_i32_1 = arith.constant 0 : i32
    %c0_i32_2 = arith.constant 0 : i32
    return %c0_i32, %c0_i32_0, %c0_i32_1 : i32, i32, i32
  }
  func.func @transform_8(%arg0: i32) -> (i32, i32) {
    %c0_i32 = arith.constant 0 : i32
    %c0_i32_0 = arith.constant 0 : i32
    %c0_i32_1 = arith.constant 0 : i32
    return %c0_i32, %c0_i32_0 : i32, i32
  }
  func.func @transform_9(%arg0: i32) -> (i32, i32, i32) {
    %c0_i32 = arith.constant 0 : i32
    %c0_i32_0 = arith.constant 0 : i32
    %c0_i32_1 = arith.constant 0 : i32
    %c0_i32_2 = arith.constant 0 : i32
    return %c0_i32, %c0_i32_0, %c0_i32_1 : i32, i32, i32
  }
  func.func @transform_10(%arg0: i32) -> (i32, i32) {
    %c0_i32 = arith.constant 0 : i32
    %c0_i32_0 = arith.constant 0 : i32
    %c0_i32_1 = arith.constant 0 : i32
    return %c0_i32, %c0_i32_0 : i32, i32
  }
  func.func @transform_11(%arg0: i32) -> (i32, i32, i32) {
    %c0_i32 = arith.constant 0 : i32
    %c0_i32_0 = arith.constant 0 : i32
    %c0_i32_1 = arith.constant 0 : i32
    %c0_i32_2 = arith.constant 0 : i32
    return %c0_i32, %c0_i32_0, %c0_i32_1 : i32, i32, i32
  }
  func.func @transform_12(%arg0: i32) -> (i32, i32) {
    %c0_i32 = arith.constant 0 : i32
    %c0_i32_0 = arith.constant 0 : i32
    %c0_i32_1 = arith.constant 0 : i32
    return %c0_i32, %c0_i32_0 : i32, i32
  }
  func.func @transform_13(%arg0: i32) -> (i32, i32, i32) {
    %c0_i32 = arith.constant 0 : i32
    %c0_i32_0 = arith.constant 0 : i32
    %c0_i32_1 = arith.constant 0 : i32
    %c0_i32_2 = arith.constant 0 : i32
    return %c0_i32, %c0_i32_0, %c0_i32_1 : i32, i32, i32
  }
  func.func @transform_14(%arg0: i32) -> (i32, i32) {
    %c0_i32 = arith.constant 0 : i32
    %c0_i32_0 = arith.constant 0 : i32
    %c0_i32_1 = arith.constant 0 : i32
    return %c0_i32, %c0_i32_0 : i32, i32
  }
  func.func @transform_15(%arg0: i32) -> (i32, i32, i32) {
    %c0_i32 = arith.constant 0 : i32
    %c0_i32_0 = arith.constant 0 : i32
    %c0_i32_1 = arith.constant 0 : i32
    %c0_i32_2 = arith.constant 0 : i32
    return %c0_i32, %c0_i32_0, %c0_i32_1 : i32, i32, i32
  }
  func.func @transform_16(%arg0: i32) -> (i32, i32) {
    %c0_i32 = arith.constant 0 : i32
    %c0_i32_0 = arith.constant 0 : i32
    %c0_i32_1 = arith.constant 0 : i32
    return %c0_i32, %c0_i32_0 : i32, i32
  }
  func.func @transform_17(%arg0: i32) -> (i32, i32, i32) {
    %c0_i32 = arith.constant 0 : i32
    %c0_i32_0 = arith.constant 0 : i32
    %c0_i32_1 = arith.constant 0 : i32
    %c0_i32_2 = arith.constant 0 : i32
    return %c0_i32, %c0_i32_0, %c0_i32_1 : i32, i32, i32
  }
  func.func @transform_18(%arg0: i32) -> (i32, i32) {
    %c0_i32 = arith.constant 0 : i32
    %c0_i32_0 = arith.constant 0 : i32
    %c0_i32_1 = arith.constant 0 : i32
    return %c0_i32, %c0_i32_0 : i32, i32
  }
  func.func @transform_19(%arg0: i32) -> (i32, i32, i32) {
    %c0_i32 = arith.constant 0 : i32
    %c0_i32_0 = arith.constant 0 : i32
    %c0_i32_1 = arith.constant 0 : i32
    %c0_i32_2 = arith.constant 0 : i32
    return %c0_i32, %c0_i32_0, %c0_i32_1 : i32, i32, i32
  }
  func.func @transform_20(%arg0: i32) -> (i32, i32) {
    %c0_i32 = arith.constant 0 : i32
    %c0_i32_0 = arith.constant 0 : i32
    %c0_i32_1 = arith.constant 0 : i32
    return %c0_i32, %c0_i32_0 : i32, i32
  }
  func.func @transform_21(%arg0: i32) -> (i32, i32, i32) {
    %c0_i32 = arith.constant 0 : i32
    %c0_i32_0 = arith.constant 0 : i32
    %c0_i32_1 = arith.constant 0 : i32
    %c0_i32_2 = arith.constant 0 : i32
    return %c0_i32, %c0_i32_0, %c0_i32_1 : i32, i32, i32
  }
  func.func @transform_22(%arg0: i32) -> (i32, i32) {
    %c0_i32 = arith.constant 0 : i32
    %c0_i32_0 = arith.constant 0 : i32
    %c0_i32_1 = arith.constant 0 : i32
    return %c0_i32, %c0_i32_0 : i32, i32
  }
  func.func @transform_23(%arg0: i32) -> (i32, i32, i32) {
    %c0_i32 = arith.constant 0 : i32
    %c0_i32_0 = arith.constant 0 : i32
    %c0_i32_1 = arith.constant 0 : i32
    %c0_i32_2 = arith.constant 0 : i32
    return %c0_i32, %c0_i32_0, %c0_i32_1 : i32, i32, i32
  }
  func.func @transform_24(%arg0: i32) -> (i32, i32) {
    %c0_i32 = arith.constant 0 : i32
    %c0_i32_0 = arith.constant 0 : i32
    %c0_i32_1 = arith.constant 0 : i32
    return %c0_i32, %c0_i32_0 : i32, i32
  }
  func.func @transform_25(%arg0: i32) -> (i32, i32, i32) {
    %c0_i32 = arith.constant 0 : i32
    %c0_i32_0 = arith.constant 0 : i32
    %c0_i32_1 = arith.constant 0 : i32
    %c0_i32_2 = arith.constant 0 : i32
    return %c0_i32, %c0_i32_0, %c0_i32_1 : i32, i32, i32
  }
  func.func @transform_26(%arg0: i32) -> (i32, i32) {
    %c0_i32 = arith.constant 0 : i32
    %c0_i32_0 = arith.constant 0 : i32
    %c0_i32_1 = arith.constant 0 : i32
    return %c0_i32, %c0_i32_0 : i32, i32
  }
  func.func @transform_27(%arg0: i32) -> (i32, i32, i32) {
    %c0_i32 = arith.constant 0 : i32
    %c0_i32_0 = arith.constant 0 : i32
    %c0_i32_1 = arith.constant 0 : i32
    return %arg0, %c0_i32, %c0_i32_0 : i32, i32, i32
  }
}

</mosaic_0001>

<bundles_post_ra>
// kernel: vggface_forward.5
= control target key start
LH: loop header
LB: loop body
LE: loop exit
PB: predicated region body
PF: predicated region fallthrough
CT: control target
= control target key end

     0   :  { %v230_v1 = vmov 0.0   ;;  %vm231_vm0 = vmmov 0   ;;  %s295_s0 = inlined_call_operand.vmem [shape: bf16[8,128], index: 0, kind: input, shape index: {}]   ;;  %s296_s1 = inlined_call_operand.vmem [shape: bf16[128,128], index: 1, kind: input, shape index: {}]   ;;  %s297_s2 = inlined_call_operand.vmem [shape: f32[1,128], index: 2, kind: input, shape index: {}]   ;;  %s298_s3 = inlined_call_operand.hbm [shape: f32[8,128], index: 3, kind: output, shape index: {}]  }
   0x1   :  { %v198_v0 = vld [vmem:[%s296_s1] sm:$0xff]   ;;  %175 = vmatprep.subr.bf16.mxu0 %v230_v1  ;;  %v199_v2 = vld [vmem:[%s296_s1 + $0x8] sm:$0xff]   ;;  %191 = vmatprep.mubr.msk.bf16.mxu0 %vm231_vm0, %v230_v1  ;;  %v200_v3 = vld [vmem:[%s296_s1 + $0x10] sm:$0xff]  }
   0x2   :  { %176 = vmatpush3.bf16.msra.mxu0 %v198_v0 }
   0x3   :  { %177 = vmatprep.subr.bf16.mxu0 %v230_v1 }
   0x6   :  { %178 = vmatpush3.bf16.msra.mxu0 %v199_v2 }
   0x7   :  { %179 = vmatprep.subr.bf16.mxu0 %v230_v1 }
   0x8   :  { %8 = vsyncpa [#allocation4], 0  ;;  %v201_v4 = vld [vmem:[%s296_s1 + $0x18] sm:$0xff]   ;;  %v202_v5 = vld [vmem:[%s296_s1 + $0x20] sm:$0xff]   ;;  %s232_s5 = smov [#allocation3]  }
   0x9   :  { %v203_v6 = vld [vmem:[%s296_s1 + $0x28] sm:$0xff]   ;;  %v204_v7 = vld [vmem:[%s296_s1 + $0x30] sm:$0xff]   ;;  %v205_v8 = vld [vmem:[%s296_s1 + $0x38] sm:$0xff]   ;;  %s149_s6 = sshll.u32 %s232_s5, 4  ;;  %s150_s6 = int_to_ptr.vmem [resolvable:$true] %s149_s6 }
   0xa   :  { %180 = vmatpush3.bf16.msra.mxu0 %v200_v3  ;;  %v22_v9 = vld [vmem:[%s295_s0] sm:$0xf]  ;;  %s206_s1 = scalar_lea.vmem %s150_s6, 128  ;;  %p211_p1 = scmp.lt.s32.totalorder %s150_s6, %s150_s6 }
   0xb   :  { %181 = vmatprep.subr.bf16.mxu0 %v230_v1  ;;  %v165_v10 = vld [vmem:[%s297_s2] ss:$0 sm:$0xff]  ;;  %p207_p0 = scmp.ne.s32.totalorder %s150_s6, %s206_s1  ;;  %p212_p2 = scmp.lt.s32.totalorder %s206_s1, %s206_s1 }
   0xd   :  { %p213_p3 = por %p212_p2, %p211_p1 }
   0xe   :  { %182 = vmatpush3.bf16.msra.mxu0 %v201_v4 }
   0xf   :  { %183 = vmatprep.subr.bf16.mxu0 %v230_v1  ;;  %p214_p4 = pnand %p213_p3, %p207_p0 }
  0x12   :  { %184 = vmatpush3.bf16.msra.mxu0 %v202_v5 }
  0x13   :  { %185 = vmatprep.subr.bf16.mxu0 %v230_v1 }
  0x16   :  { %186 = vmatpush3.bf16.msra.mxu0 %v203_v6 }
  0x17   :  { %187 = vmatprep.subr.bf16.mxu0 %v230_v1 }
  0x1a   :  { %188 = vmatpush3.bf16.msra.mxu0 %v204_v7 }
  0x1b   :  { %189 = vmatprep.subr.bf16.mxu0 %v230_v1 }
  0x1e   :  { %190 = vmatpush3.bf16.msra.mxu0 %v205_v8 }
  0x21   :  { %192 = vmatmul.mubr.bf16.vlgmr.msra.gmra.mrb[0].mxu0 %v22_v9 }
  0xf4   :  { %v121_v11 = vpop.f32.mrb[0].mxu0 }
  0xf5   :  { %v140_v12 = vadd.f32 %v165_v10, %v121_v11  ;;  %v193_v13 = vpop.f32.mrb[1].mxu0 }
  0xf6   :  { %v124_v14 = vpop.f32.mrb[2].mxu0 }
  0xf7   :  { %v141_v15 = vmax.f32 %v140_v12, 0.0  ;;  %v194_v16 = vpop.f32.mrb[3].mxu0 }
  0xf9   :  { %142 = vst [vmem:[#allocation3] sm:$0xff] %v141_v15 }
  0xfa   :  { %217 = shalt.err (!%p214_p4)
}
  0xfb   :  { %s218_s2 = scalar_lea.hbm %s298_s3, 128 }
  0xfc   :  { %p219_p5 = scmp.ne.s32.totalorder %s298_s3, %s218_s2  ;;  %p222_p6 = scmp.lt.u32.totalorder %s218_s2, %s298_s3 }
  0xfe   :  { %p224_p7 = pnand %p222_p6, %p219_p5 }
 0x100   :  { %227 = shalt.err (!%p224_p7)
}
 0x101   :  { %152 = dma.vmem_to_hbm [thread:$0]  %s150_s6, 128, %s298_s3, [#allocation4]  }
 0x102   :  { %228 = dma.done.wait [#allocation4], 128  }
 0x103   :  { %229 = vsyncadd [#allocation4], 4294967168 }
 0x104   :  { %156 = vsyncpa [#allocation4], 1 }

// kernel: vggface_forward.4
= control target key start
LH: loop header
LB: loop body
LE: loop exit
PB: predicated region body
PF: predicated region fallthrough
CT: control target
= control target key end

     0   :  { %v122_v0 = vmov 0.0   ;;  %vm123_vm0 = vmmov 0   ;;  %vm38_vm1 = vcmask 261120   ;;  %s159_s1 = inlined_call_operand.vmem [shape: bf16[32,128], index: 1, kind: input, shape index: {}]   ;;  %s160_s0 = inlined_call_operand.vmem [shape: bf16[8,32], index: 0, kind: input, shape index: {}]   ;;  %s161_s2 = inlined_call_operand.vmem [shape: f32[1,128], index: 2, kind: input, shape index: {}]   ;;  %s162_s3 = inlined_call_operand.vmem [shape: bf16[8,128], index: 3, kind: output, shape index: {}]  }
   0x1   :  { %110 = vmatprep.subr.bf16.mxu0 %v122_v0  ;;  %v120_v1 = vld [vmem:[%s159_s1] sm:$0xff]   ;;  %114 = vmatprep.mubr.msk.bf16.mxu0 %vm123_vm0, %v122_v0  ;;  %v121_v2 = vld [vmem:[%s159_s1 + $0x8] sm:$0xff]  }
   0x2   :  { %111 = vmatpush3.bf16.msra.mxu0 %v120_v1  ;;  %v21_v3 = vld [vmem:[%s160_s0] sm:$0xf] }
   0x3   :  { %112 = vmatprep.subr.bf16.mxu0 %v122_v0  ;;  %v106_v4 = vld [vmem:[%s161_s2] ss:$0 sm:$0xff] }
   0x6   :  { %113 = vmatpush3.bf16.msra.mxu0 %v121_v2 }
   0x9   :  { %115 = vmatmul.mubr.msk.bf16.vlgmr.msra.gmra.mrb[0].mxu0 %vm38_vm1, %v21_v3 }
  0xdc   :  { %v76_v5 = vpop.f32.mrb[0].mxu0 }
  0xdd   :  { %v95_v6 = vadd.f32 %v106_v4, %v76_v5  ;;  %v116_v7 = vpop.f32.mrb[1].mxu0 }
  0xde   :  { %v79_v8 = vpop.f32.mrb[2].mxu0 }
  0xdf   :  { %v96_v9 = vmax.f32 %v95_v6, 0.0  ;;  %v117_v10 = vpop.f32.mrb[3].mxu0 }
  0xe1   :  { %v97_v11 = vpack.c.bf16 %v96_v9, %v96_v9 }
  0xe3   :  { %98 = vst [vmem:[%s162_s3] sm:$0xf] %v97_v11 }

// kernel: vggface_forward.3
= control target key start
LH: loop header
LB: loop body
LE: loop exit
PB: predicated region body
PF: predicated region fallthrough
CT: control target
= control target key end

     0   :  { %s17984_s0 = inlined_call_operand.vmem [shape: bf16[8,32,96], index: 0, kind: input, shape index: {}]   ;;  %s17985_s1 = inlined_call_operand.vmem [shape: bf16[3,96,128], index: 1, kind: input, shape index: {}]   ;;  %s17986_s2 = inlined_call_operand.vmem [shape: f32[1,128], index: 2, kind: input, shape index: {}]   ;;  %s17987_s3 = inlined_call_operand.vmem [shape: bf16[6,128,64], index: 3, kind: input, shape index: {}]   ;;  %s17988_s4 = inlined_call_operand.vmem [shape: f32[1,64], index: 4, kind: input, shape index: {}]   ;;  %s17989_s5 = inlined_call_operand.vmem [shape: bf16[3,64,128], index: 5, kind: input, shape index: {}]   ;;  %s17990_s6 = inlined_call_operand.vmem [shape: f32[1,128], index: 6, kind: input, shape index: {}]   ;;  %s17991_s7 = inlined_call_operand.vmem [shape: bf16[6,128,64], index: 7, kind: input, shape index: {}]   ;;  %s17992_s8 = inlined_call_operand.vmem [shape: f32[1,64], index: 8, kind: input, shape index: {}]   ;;  %s17993_s9 = inlined_call_operand.vmem [shape: bf16[3,64,128], index: 9, kind: input, shape index: {}]   ;;  %s17994_s10 = inlined_call_operand.vmem [shape: f32[1,128], index: 10, kind: input, shape index: {}]   ;;  %s17995_s11 = inlined_call_operand.vmem [shape: bf16[3,128,128], index: 11, kind: input, shape index: {}]   ;;  %s17996_s12 = inlined_call_operand.vmem [shape: f32[1,128], index: 12, kind: input, shape index: {}]   ;;  %s17997_s13 = inlined_call_operand.vmem [shape: bf16[6,128,64], index: 13, kind: input, shape index: {}]   ;;  %s17998_s14 = inlined_call_operand.vmem [shape: f32[1,64], index: 14, kind: input, shape index: {}]   ;;  %s17999_s15 = inlined_call_operand.vmem [shape: bf16[3,64,128], index: 15, kind: input, shape index: {}]   ;;  %s18000_s16 = inlined_call_operand.vmem [shape: f32[1,128], index: 16, kind: input, shape index: {}]   ;;  %s18001_s17 = inlined_call_operand.vmem [shape: bf16[3,128,128], index: 17, kind: input, shape index: {}]   ;;  %s18002_s18 = inlined_call_operand.vmem [shape: f32[1,128], index: 18, kind: input, shape index: {}]   ;;  %s18003_s19 = inlined_call_operand.vmem [shape: bf16[6,128,64], index: 19, kind: input, shape index: {}]   ;;  %s18004_s20 = inlined_call_operand.vmem [shape: f32[1,64], index: 20, kind: input, shape index: {}]   ;;  %s18005_s21 = inlined_call_operand.vmem [shape: bf16[3,64,64], index: 21, kind: input, shape index: {}]   ;;  %s18006_s22 = inlined_call_operand.vmem [shape: f32[1,64], index: 22, kind: input, shape index: {}]   ;;  %s18007_s23 = inlined_call_operand.vmem [shape: bf16[3,64,64], index: 23, kind: input, shape index: {}]   ;;  %s18008_s24 = inlined_call_operand.vmem [shape: f32[1,64], index: 24, kind: input, shape index: {}]   ;;  %s18009_s25 = inlined_call_operand.vmem [shape: bf16[6,64,32], index: 25, kind: input, shape index: {}]   ;;  %s18010_s26 = inlined_call_operand.vmem [shape: f32[1,32], index: 26, kind: input, shape index: {}]   ;;  %s18011_s27 = inlined_call_operand.vmem [shape: bf16[8,1,32], index: 27, kind: output, shape index: {}]  }
   0x1   :  { %18025 = sst [smem:[#allocation4_spill]] %s17984_s0 }
   0x2   :  { %18026 = sst [smem:[#allocation5_spill]] %s17985_s1 }
   0x3   :  { %18027 = sst [smem:[#allocation6_spill]] %s17986_s2 }
   0x4   :  { %18028 = sst [smem:[#allocation7_spill]] %s17987_s3 }
   0x5   :  { %18029 = sst [smem:[#allocation8_spill]] %s17988_s4 }
   0x6   :  { %18030 = sst [smem:[#allocation9_spill]] %s17989_s5 }
   0x7   :  { %18031 = sst [smem:[#allocation10_spill]] %s17990_s6 }
   0x8   :  { %18032 = sst [smem:[#allocation11_spill]] %s17991_s7  ;;  %s15015_s7 = smov 0  }
   0x9   :  { %18033 = sst [smem:[#allocation12_spill]] %s17992_s8 }
   0xa   :  { %18034 = sst [smem:[#allocation13_spill]] %s17993_s9 }
   0xb   :  { %18035 = sst [smem:[#allocation14_spill]] %s17994_s10 }
   0xc   :  { %18036 = sst [smem:[#allocation15_spill]] %s17995_s11 }
   0xd LB: > { %s11704_s4 = sadd.s32 4294967295, %s14869_s7   ;;  %p11708_p0 = scmp.ge.s32.totalorder %s14869_s7, 1  ;;  %s14869_s7 = sphi %s15015_s7, %s37_s7  }
   0xe   : > { %p739_p1 = scmp.lt.s32.totalorder %s14869_s7, 3 }
  0x10   : > { %p740_p2 = pnand %p11708_p0, %p739_p1 }
  0x12   : > { %743 = sbr.rel (%p740_p2) target bundleno = 4352 (0x1100), region = 128 }
  0x19   : > { %s18037_s9 = sld [smem:[#allocation5_spill]]  ;;  %s11709_s5 = sshll.u32 %s11704_s4, 2  ;;  %vm18023_vm0 = vsmask.f32 256  ;;  %vm949_vm1 = vcmask 1040384   ;;  %vm1102_vm4 = vcmask 785408  }
  0x1a   : > { %p812_p3 = scmp.lt.s32.totalorder %s11709_s5, 7  ;;  %s18038_s4 = sld [smem:[#allocation4_spill]]  ;;  %vm15050_vm2 = vmand %vm949_vm1, %vm18023_vm0  ;;  %vm972_vm3 = vsmask.f32 7424  ;;  %vm1381_vm5 = vcmask 1046528   ;;  %vm18024_vm6 = vcmask 517120  }
  0x1b   : > { %s18041_s0 = sld [smem:[#allocation7_spill]]  ;;  %s18042_s29 = sld [smem:[#allocation6_spill]]  ;;  %vm3889_vm7 = vcmask 1042434   ;;  %vm3891_vm8 = vcmask 1043459   ;;  %vm3893_vm9 = vcmask 1044484   ;;  %vm3895_vm10 = vcmask 1045509  }
  0x1c   : > { %s18089_s5 = smov (!%p812_p3, %s11709_s5), 7  ;;  %s18044_s2 = sld [smem:[#allocation8_spill]]  ;;  %vm3901_vm11 = vcmask 1041409   ;;  %vm3897_vm12 = vcmask 1046534   ;;  %vm3899_vm13 = vcmask 1047559   ;;  %vm4062_vm14 = vcmask 523264  }
  0x1d   : > { %s12745_s1 = sshll.u32 %s18089_s5, 4  ;;  %s18049_s28 = sld [smem:[#allocation11_spill]]  ;;  %vm5879_vm15 = vcmask 1044480  }
  0x1e   : > { %s18054_s6 = sld [smem:[#allocation12_spill]]  ;;  %s18055_s11 = sld [smem:[#allocation15_spill]] }
  0x1f   : > { %v14512_v0 = vld [vmem:[%s18037_s9 + $0x30] sm:$0xff]   ;;  %v14513_v1 = vld [vmem:[%s18037_s9 + $0x38] sm:$0xff]   ;;  %v14514_v2 = vld [vmem:[%s18037_s9 + $0x40] sm:$0xff]   ;;  %s18062_s30 = sld [smem:[#allocation14_spill]] }
  0x20   : > { %13248 = vmatprep.subr.bf16.mxu0 %v14512_v0  ;;  %v14515_v3 = vld [vmem:[%s18037_s9 + $0x48] sm:$0xff]   ;;  %s15041_s8 = scalar_lea.vmem %s18038_s4, %s12745_s1  ;;  %v14516_v10 = vld [vmem:[%s18037_s9 + $0x50] sm:$0xff]   ;;  %v14517_v19 = vld [vmem:[%s18037_s9 + $0x58] sm:$0xff]   ;;  %s18052_s4 = sld [smem:[#allocation10_spill]] }
  0x21   : > { %13249 = vmatpush3.bf16.msra.mxu0 %v14512_v0  ;;  %v14518_v4 = vld [vmem:[%s15041_s8] sm:$0xff]   ;;  %v14519_v5 = vld [vmem:[%s15041_s8 + $0x8] sm:$0xff]   ;;  %v14522_v14 = vld [vmem:[%s15041_s8 + $0x10] sm:$0xff]  }
  0x22   : > { %13250 = vmatprep.subr.bf16.mxu0 %v14513_v1  ;;  %v882_v6 = vshrl.u32 %v14518_v4, 16  ;;  %v885_v7 = vshll.u32 %v14518_v4, 16  ;;  %v889_v8 = vshrl.u32 %v14519_v5, 16  ;;  %v892_v9 = vshll.u32 %v14519_v5, 16  ;;  %v14523_v15 = vld [vmem:[%s15041_s8 + $0x18] sm:$0xff]   ;;  %v14525_v27 = vld [vmem:[%s15041_s8 + $0x20] sm:$0xff]  }
  0x23   : > { %v897_v21 = vshrl.u32 %v14522_v14, 16  ;;  %v900_v22 = vshll.u32 %v14522_v14, 16  ;;  %v904_v25 = vshrl.u32 %v14523_v15, 16  ;;  %v907_v26 = vshll.u32 %v14523_v15, 16  ;;  %v14526_v35 = vld [vmem:[%s15041_s8 + $0x28] sm:$0xff]   ;;  %v14520_v40 = vld [vmem:[%s18037_s9] sm:$0xff]  }
  0x24   : > { %v884_v11 = vrot.slane %v882_v6, 7  ;;  %v891_v12 = vrot.slane %v889_v8, 7  ;;  %v912_v38 = vshrl.u32 %v14525_v27, 16  ;;  %v915_v39 = vshll.u32 %v14525_v27, 16  ;;  %v14529_v53 = vld [vmem:[%s15041_s8 + $0x30] sm:$0xff]   ;;  %v14521_v58 = vld [vmem:[%s18037_s9 + $0x8] sm:$0xff]  }
  0x25   : > { %13251 = vmatpush3.bf16.msra.mxu0 %v14513_v1  ;;  %v899_v33 = vrot.slane %v897_v21, 7  ;;  %v906_v34 = vrot.slane %v904_v25, 7  ;;  %v919_v44 = vshrl.u32 %v14526_v35, 16  ;;  %v922_v52 = vshll.u32 %v14526_v35, 16  ;;  %v14530_v1 = vld [vmem:[%s15041_s8 + $0x38] sm:$0xff]   ;;  %s18045_s8 = sld [smem:[#allocation9_spill]] }
  0x26   : > { %13252 = vmatprep.subr.bf16.mxu0 %v14514_v2  ;;  %v887_v16 = vor.u32 %v885_v7, %v884_v11  ;;  %v894_v17 = vor.u32 %v892_v9, %v891_v12  ;;  %v15058_v18 = vsel %vm15050_vm2, %v891_v12, 0  ;;  %v914_v48 = vrot.slane %v912_v38, 7  ;;  %v14524_v12 = vld [vmem:[%s18037_s9 + $0x10] sm:$0xff]  }
  0x27   : > { %v989_v20 = vshll.u32 %v15058_v18, 16  ;;  %v902_v41 = vor.u32 %v900_v22, %v899_v33  ;;  %v909_v42 = vor.u32 %v907_v26, %v906_v34  ;;  %v15082_v43 = vsel %vm15050_vm2, %v906_v34, 0 }
  0x28   : > { %v15065_v23 = vsel %vm18023_vm0, %v884_v11, %v894_v17  ;;  %v15069_v24 = vsel %vm15050_vm2, 0, %v887_v16  ;;  %v1009_v47 = vshll.u32 %v15082_v43, 16  ;;  %v921_v51 = vrot.slane %v919_v44, 7 }
  0x29   : > { %13253 = vmatpush3.bf16.msra.mxu0 %v14514_v2  ;;  %v974_v28 = vshrl.u32 %v15069_v24, 16  ;;  %v976_v29 = vshll.u32 %v15069_v24, 16  ;;  %v981_v30 = vshll.u32 %v15065_v23, 16  ;;  %v985_v31 = vshrl.u32 %v15065_v23, 16 }
  0x2a   : > { %13254 = vmatprep.subr.bf16.mxu0 %v14515_v3  ;;  %v991_v32 = vrot.slane %v989_v20, 1  ;;  %v15086_v49 = vsel %vm18023_vm0, %v899_v33, %v909_v42  ;;  %v15090_v50 = vsel %vm15050_vm2, 0, %v902_v41  ;;  %v917_v61 = vor.u32 %v915_v39, %v914_v48  ;;  %v14528_v41 = vld [vmem:[%s18037_s9 + $0x20] sm:$0xff]  }
  0x2b   : > { %v978_v36 = vrot.slane %v976_v29, 1  ;;  %v983_v37 = vrot.slane %v981_v30, 1  ;;  %v994_v56 = vshrl.u32 %v15090_v50, 16  ;;  %v996_v57 = vshll.u32 %v15090_v50, 16 }
  0x2c   : > { %v1001_v59 = vshll.u32 %v15086_v49, 16  ;;  %v1005_v60 = vshrl.u32 %v15086_v49, 16  ;;  %v924_v63 = vor.u32 %v922_v52, %v921_v51  ;;  %v15105_v0 = vsel %vm15050_vm2, %v921_v51, 0 }
  0x2d   : > { %13255 = vmatpush3.bf16.msra.mxu0 %v14515_v3  ;;  %v979_v45 = vor.u32 %v978_v36, %v974_v28  ;;  %v987_v46 = vor.u32 %v985_v31, %v983_v37  ;;  %v998_v62 = vrot.slane %v996_v57, 1  ;;  %v927_v2 = vshrl.u32 %v14529_v53, 16 }
  0x2e   : > { %13256 = vmatprep.subr.bf16.mxu0 %v14516_v10  ;;  %v1003_v3 = vrot.slane %v1001_v59, 1  ;;  %v1011_v4 = vrot.slane %v1009_v47, 1  ;;  %v15111_v5 = vsel %vm15050_vm2, 0, %v917_v61  ;;  %v930_v6 = vshll.u32 %v14529_v53, 16 }
  0x2f   : > { %v984_v54 = vsel %vm972_vm3, %v979_v45, %v983_v37  ;;  %v992_v55 = vsel %vm972_vm3, %v987_v46, %v991_v32  ;;  %v999_v7 = vor.u32 %v998_v62, %v994_v56  ;;  %v15114_v8 = vsel %vm18023_vm0, %v914_v48, %v924_v63  ;;  %v14527_v32 = vld [vmem:[%s18037_s9 + $0x18] sm:$0xff]   ;;  %v14539_v46 = vld [vmem:[%s18041_s0 + $0x48] sm:$0xff]  }
  0x30   : > { %13260 = vmatprep.mubr.msk.bf16.mxu0 %vm1102_vm4, %v984_v54  ;;  %v1014_v9 = vshrl.u32 %v15111_v5, 16  ;;  %v1007_v11 = vor.u32 %v1005_v60, %v1003_v3  ;;  %v1021_v14 = vshll.u32 %v15114_v8, 16  ;;  %v1025_v15 = vshrl.u32 %v15114_v8, 16 }
  0x31   : > { %13257 = vmatpush3.bf16.msra.mxu0 %v14516_v10  ;;  %v1016_v10 = vshll.u32 %v15111_v5, 16  ;;  %v1029_v16 = vshll.u32 %v15105_v0, 16  ;;  %v1004_v17 = vsel %vm972_vm3, %v999_v7, %v1003_v3  ;;  %v929_v20 = vrot.slane %v927_v2, 7 }
  0x32   : > { %13258 = vmatprep.subr.bf16.mxu0 %v14517_v19  ;;  %v934_v21 = vshrl.u32 %v14530_v1, 16  ;;  %v1023_v22 = vrot.slane %v1021_v14, 1  ;;  %v937_v25 = vshll.u32 %v14530_v1, 16  ;;  %v1012_v26 = vsel %vm972_vm3, %v1007_v11, %v1011_v4  ;;  %v14534_v14 = vld [vmem:[%s18037_s9 + $0x70] sm:$0xff]  }
  0x33   : > { %v932_v28 = vor.u32 %v930_v6, %v929_v20  ;;  %v1031_v31 = vrot.slane %v1029_v16, 1  ;;  %v1385_v37 = vrot.slane %v15058_v18, 1  ;;  %v1382_v45 = vrot.slane %v15069_v24, 1  ;;  %v14536_v16 = vld [vmem:[%s18037_s9 + $0x80] sm:$0xff]   ;;  %v14540_v18 = vld [vmem:[%s18041_s0 + $0x50] sm:$0xff]  }
  0x34   : > { %v936_v29 = vrot.slane %v934_v21, 7  ;;  %v1027_v30 = vor.u32 %v1025_v15, %v1023_v22  ;;  %v1383_v51 = vrot.slane %v15065_v23, 1  ;;  %v1387_v52 = vrot.slane %v15090_v50, 1  ;;  %v14535_v15 = vld [vmem:[%s18037_s9 + $0x78] sm:$0xff]  }
  0x35   : > { %13259 = vmatpush3.bf16.msra.mxu0 %v14517_v19  ;;  %v1018_v19 = vrot.slane %v1016_v10, 1  ;;  %v15133_v35 = vsel %vm15050_vm2, 0, %v932_v28  ;;  %v1392_v59 = vrot.slane %v15111_v5, 1  ;;  %v1393_v60 = vrot.slane %v15114_v8, 1  ;;  %v14545_v21 = vld [vmem:[%s18041_s0 + $0x78] sm:$0xff]  }
  0x36   : > { %13276 = vmatprep.subr.bf16.mxu0 %v14520_v40  ;;  %v939_v34 = vor.u32 %v937_v25, %v936_v29  ;;  %v958_v36 = vsel %vm15050_vm2, %v936_v29, 0  ;;  %v1034_v38 = vshrl.u32 %v15133_v35, 16  ;;  %v1036_v39 = vshll.u32 %v15133_v35, 16  ;;  %v15266_v25 = vld [vmem:[%s18042_s29] ss:$0 sm:$0xff]  ;;  %s18053_s29 = sld [smem:[#allocation13_spill]] }
  0x37   : > { %v1019_v27 = vor.u32 %v1018_v19, %v1014_v9  ;;  %v1049_v44 = vshll.u32 %v958_v36, 16  ;;  %v1032_v53 = vsel %vm972_vm3, %v1027_v30, %v1031_v31  ;;  %v1395_v62 = vrot.slane %v15105_v0, 1  ;;  %v14532_v0 = vld [vmem:[%s18037_s9 + $0x60] sm:$0xff]  }
  0x38   : > { %13261 = vmatmul.mubr.msk.bf16.vlgmr.msra.gmra.mrb[0].mxu0 %vm1102_vm4, %v992_v55  ;;  %v15149_v42 = vsel %vm18023_vm0, %v929_v20, %v939_v34  ;;  %v1038_v47 = vrot.slane %v1036_v39, 1  ;;  %v1388_v55 = vrot.slane %v15086_v49, 1  ;;  %v1397_v63 = vrot.slane %v15133_v35, 1  ;;  %v14544_v20 = vld [vmem:[%s18041_s0 + $0x70] sm:$0xff]  }
  0x39   : > { %13277 = vmatpush3.bf16.msra.mxu0 %v14520_v40  ;;  %13264 = vmatprep.mubr.msk.bf16.mxu0 %vm1102_vm4, %v1004_v17  ;;  %v1024_v33 = vsel %vm972_vm3, %v1019_v27, %v1023_v22  ;;  %v14538_v40 = vld [vmem:[%s18041_s0 + $0x40] sm:$0xff]   ;;  %v1041_v48 = vshll.u32 %v15149_v42, 16  ;;  %v1045_v54 = vshrl.u32 %v15149_v42, 16  ;;  %v1051_v61 = vrot.slane %v1049_v44, 1  ;;  %v14537_v17 = vld [vmem:[%s18037_s9 + $0x88] sm:$0xff]  }
  0x3a   : > { %13278 = vmatprep.subr.bf16.mxu0 %v14521_v58  ;;  %13332 = vmatprep.subr.bf16.mxu1 %v14538_v40  ;;  %v1039_v56 = vor.u32 %v1038_v47, %v1034_v38  ;;  %v1398_v1 = vrot.slane %v15149_v42, 1  ;;  %v1390_v3 = vrot.slane %v15082_v43, 1  ;;  %v1394_v4 = vsel %vm1381_vm5, %v1392_v59, %v1393_v60  ;;  %v15260_v22 = vld [vmem:[%s18041_s0] sm:$0xff]  }
  0x3b   : > { %13333 = vmatpush3.bf16.msra.mxu1 %v14538_v40  ;;  %v1043_v57 = vrot.slane %v1041_v48, 1  ;;  %v1400_v6 = vrot.slane %v958_v36, 1  ;;  %v1396_v7 = vsel %vm1381_vm5, %v1393_v60, %v1395_v62  ;;  %v1389_v19 = vsel %vm1381_vm5, %v1387_v52, %v1388_v55 }
  0x3c   : > { %13334 = vmatprep.subr.bf16.mxu1 %v14539_v46  ;;  %v1399_v9 = vsel %vm1381_vm5, %v1397_v63, %v1398_v1 }
  0x3d   : > { %13279 = vmatpush3.bf16.msra.mxu0 %v14521_v58  ;;  %v14531_v58 = vld [vmem:[%s18037_s9 + $0x28] sm:$0xff]   ;;  %v1044_v2 = vsel %vm972_vm3, %v1039_v56, %v1043_v57  ;;  %v1401_v10 = vsel %vm1381_vm5, %v1398_v1, %v1400_v6  ;;  %v1047_v43 = vor.u32 %v1045_v54, %v1043_v57 }
  0x3e   : > { %13280 = vmatprep.subr.bf16.mxu0 %v14524_v12 }
  0x3f   : > { %13335 = vmatpush3.bf16.msra.mxu1 %v14539_v46  ;;  %v1052_v11 = vsel %vm972_vm3, %v1047_v43, %v1051_v61 }
  0x40   : > { %13265 = vmatmul.mubr.msk.bf16.gmra.mrb[4].mxu0 %vm1102_vm4, %v1012_v26  ;;  %13336 = vmatprep.subr.bf16.mxu1 %v14540_v18 }
  0x41   : > { %13281 = vmatpush3.bf16.msra.mxu0 %v14524_v12  ;;  %13268 = vmatprep.mubr.msk.bf16.mxu0 %vm1102_vm4, %v1024_v33  ;;  %v14533_v12 = vld [vmem:[%s18037_s9 + $0x68] sm:$0xff]  }
  0x42   : > { %13282 = vmatprep.subr.bf16.mxu0 %v14527_v32 }
  0x43   : > { %13337 = vmatpush3.bf16.msra.mxu1 %v14540_v18 }
  0x45   : > { %13283 = vmatpush3.bf16.msra.mxu0 %v14527_v32 }
  0x46   : > { %13284 = vmatprep.subr.bf16.mxu0 %v14528_v41 }
  0x48   : > { %13269 = vmatmul.mubr.msk.bf16.gmra.mrb[8].mxu0 %vm1102_vm4, %v1032_v53 }
  0x49   : > { %13272 = vmatprep.mubr.msk.bf16.mxu0 %vm1102_vm4, %v1044_v2  ;;  %13285 = vmatpush3.bf16.msra.mxu0 %v14528_v41 }
  0x4a   : > { %13286 = vmatprep.subr.bf16.mxu0 %v14531_v58 }
  0x4d   : > { %13287 = vmatpush3.bf16.msra.mxu0 %v14531_v58 }
  0x4e   : > { %13304 = vmatprep.subr.bf16.mxu0 %v14532_v0 }
  0x50   : > { %13273 = vmatmul.mubr.msk.bf16.gmra.mrb[12].mxu0 %vm1102_vm4, %v1052_v11 }
  0x51   : > { %13288 = vmatprep.mubr.msk.bf16.mxu0 %vm1102_vm4, %v15069_v24  ;;  %v1391_v24 = vsel %vm1381_vm5, %v1388_v55, %v1390_v3 }
  0x58   : > { %13289 = vmatmul.mubr.msk.bf16.vlgmr.msra.gmra.mrb[0].mxu0 %vm1102_vm4, %v15065_v23  ;;  %v14541_v23 = vld [vmem:[%s18041_s0 + $0x58] sm:$0xff]  }
  0x59   : > { %13305 = vmatpush3.bf16.msra.mxu0 %v14532_v0  ;;  %13292 = vmatprep.mubr.msk.bf16.mxu0 %vm1102_vm4, %v15090_v50  ;;  %v14543_v50 = vld [vmem:[%s18041_s0 + $0x68] sm:$0xff]  }
  0x5a   : > { %13306 = vmatprep.subr.bf16.mxu0 %v14533_v12  ;;  %13338 = vmatprep.subr.bf16.mxu1 %v14541_v23 }
  0x5b   : > { %13339 = vmatpush3.bf16.msra.mxu1 %v14541_v23 }
  0x5d   : > { %13307 = vmatpush3.bf16.msra.mxu0 %v14533_v12 }
  0x5e   : > { %13308 = vmatprep.subr.bf16.mxu0 %v14534_v14 }
  0x60   : > { %13293 = vmatmul.mubr.msk.bf16.gmra.mrb[4].mxu0 %vm1102_vm4, %v15086_v49  ;;  %v14542_v49 = vld [vmem:[%s18041_s0 + $0x60] sm:$0xff]  }
  0x61   : > { %13309 = vmatpush3.bf16.msra.mxu0 %v14534_v14  ;;  %13296 = vmatprep.mubr.msk.bf16.mxu0 %vm1102_vm4, %v15111_v5  ;;  %v1384_v5 = vsel %vm1381_vm5, %v1382_v45, %v1383_v51 }
  0x62   : > { %13310 = vmatprep.subr.bf16.mxu0 %v14535_v15  ;;  %13340 = vmatprep.subr.bf16.mxu1 %v14542_v49 }
  0x63   : > { %13341 = vmatpush3.bf16.msra.mxu1 %v14542_v49 }
  0x64   : > { %13342 = vmatprep.subr.bf16.mxu1 %v14543_v50 }
  0x65   : > { %13311 = vmatpush3.bf16.msra.mxu0 %v14535_v15 }
  0x66   : > { %13312 = vmatprep.subr.bf16.mxu0 %v14536_v16 }
  0x67   : > { %13343 = vmatpush3.bf16.msra.mxu1 %v14543_v50 }
  0x68   : > { %13297 = vmatmul.mubr.msk.bf16.gmra.mrb[8].mxu0 %vm1102_vm4, %v15114_v8  ;;  %v1386_v8 = vsel %vm1381_vm5, %v1383_v51, %v1385_v37  ;;  %13344 = vmatprep.subr.bf16.mxu1 %v14544_v20 }
  0x69   : > { %13300 = vmatprep.mubr.msk.bf16.mxu0 %vm1102_vm4, %v15133_v35  ;;  %13313 = vmatpush3.bf16.msra.mxu0 %v14536_v16 }
  0x6a   : > { %13314 = vmatprep.subr.bf16.mxu0 %v14537_v17 }
  0x6b   : > { %13345 = vmatpush3.bf16.msra.mxu1 %v14544_v20 }
  0x6c   : > { %13346 = vmatprep.subr.bf16.mxu1 %v14545_v21 }
  0x6d   : > { %13315 = vmatpush3.bf16.msra.mxu0 %v14537_v17 }
  0x6f   : > { %13347 = vmatpush3.bf16.msra.mxu1 %v14545_v21 }
  0x70   : > { %13301 = vmatmul.mubr.msk.bf16.gmra.mrb[12].mxu0 %vm1102_vm4, %v15149_v42  ;;  %13364 = vmatprep.subr.bf16.mxu1 %v15260_v22 }
  0x71   : > { %13316 = vmatprep.mubr.msk.bf16.mxu0 %vm1102_vm4, %v1384_v5 }
  0x78   : > { %13317 = vmatmul.mubr.msk.bf16.vlgmr.msra.gmra.mrb[0].mxu0 %vm1102_vm4, %v1386_v8 }
  0x79   : > { %13320 = vmatprep.mubr.msk.bf16.mxu0 %vm1102_vm4, %v1389_v19 }
  0x80   : > { %13321 = vmatmul.mubr.msk.bf16.gmra.mrb[4].mxu0 %vm1102_vm4, %v1391_v24 }
  0x81   : > { %13324 = vmatprep.mubr.msk.bf16.mxu0 %vm1102_vm4, %v1394_v4 }
  0x88   : > { %13325 = vmatmul.mubr.msk.bf16.gmra.mrb[8].mxu0 %vm1102_vm4, %v1396_v7 }
  0x89   : > { %13328 = vmatprep.mubr.msk.bf16.mxu0 %vm1102_vm4, %v1399_v9 }
  0x90   : > { %13329 = vmatmul.mubr.msk.bf16.gmra.mrb[12].mxu0 %vm1102_vm4, %v1401_v10 }
 0x14b   : > { %v13318_v26 = vpop.f32.mrb[0].mxu0 }
 0x14c   : > { %v1596_v27 = vadd.f32 %v13318_v26, %v15266_v25  ;;  %v1509_v28 = vpop.f32.mrb[1].mxu0 }
 0x14d   : > { %v1594_v29 = vadd.f32 %v15266_v25, %v1509_v28  ;;  %v13319_v30 = vpop.f32.mrb[2].mxu0 }
 0x14e   : > { %v1597_v31 = vadd.f32 %v13319_v30, %v15266_v25  ;;  %v1512_v32 = vpop.f32.mrb[3].mxu0  ;;  %v1612_v34 = vmax.f32 %v1596_v27, 0.0 }
 0x14f   : > { %v1595_v33 = vadd.f32 %v15266_v25, %v1512_v32  ;;  %v1610_v36 = vmax.f32 %v1594_v29, 0.0 }
 0x150   : > { %v1613_v35 = vmax.f32 %v1597_v31, 0.0 }
 0x151   : > { %v1611_v37 = vmax.f32 %v1595_v33, 0.0 }
 0x152   : > { %v1627_v38 = vpack.c.bf16 %v1613_v35, %v1612_v34 }
 0x153   : > { %v1626_v39 = vpack.c.bf16 %v1611_v37, %v1610_v36  ;;  %v13322_v40 = vpop.f32.mrb[4].mxu0 }
 0x154   : > { %v1642_v41 = vshrl.u32 %v1627_v38, 16  ;;  %v1600_v42 = vadd.f32 %v13322_v40, %v15266_v25  ;;  %v1525_v44 = vpop.f32.mrb[5].mxu0  ;;  %v1645_v51 = vshll.u32 %v1627_v38, 16 }
 0x155   : > { %v1635_v45 = vshrl.u32 %v1626_v39, 16  ;;  %v1598_v46 = vadd.f32 %v15266_v25, %v1525_v44  ;;  %v13323_v47 = vpop.f32.mrb[6].mxu0  ;;  %v1638_v55 = vshll.u32 %v1626_v39, 16 }
 0x156   : > { %v1644_v48 = vrot.slane %v1642_v41, 7  ;;  %v1601_v52 = vadd.f32 %v13323_v47, %v15266_v25  ;;  %v1528_v53 = vpop.f32.mrb[7].mxu0  ;;  %v1616_v59 = vmax.f32 %v1600_v42, 0.0  ;;  %v14547_v41 = vld [vmem:[%s18041_s0 + $0x8] sm:$0xff]  }
 0x157   : > { %v1637_v54 = vrot.slane %v1635_v45, 7  ;;  %v1599_v56 = vadd.f32 %v15266_v25, %v1528_v53  ;;  %v1614_v62 = vmax.f32 %v1598_v46, 0.0 }
 0x158   : > { %v1647_v57 = vor.u32 %v1645_v51, %v1644_v48  ;;  %v15278_v58 = vsel %vm15050_vm2, %v1644_v48, 0  ;;  %v1617_v60 = vmax.f32 %v1601_v52, 0.0 }
 0x159   : > { %v1640_v61 = vor.u32 %v1638_v55, %v1637_v54  ;;  %v1615_v63 = vmax.f32 %v1599_v56, 0.0  ;;  %v1764_v9 = vshll.u32 %v15278_v58, 16 }
 0x15a   : > { %v15281_v1 = vsel %vm18023_vm0, %v1637_v54, %v1647_v57  ;;  %v1629_v2 = vpack.c.bf16 %v1617_v60, %v1616_v59 }
 0x15b   : > { %v15285_v3 = vsel %vm15050_vm2, 0, %v1640_v61  ;;  %v1628_v4 = vpack.c.bf16 %v1615_v63, %v1614_v62  ;;  %v13326_v6 = vpop.f32.mrb[8].mxu0  ;;  %v1756_v7 = vshll.u32 %v15281_v1, 16  ;;  %v1760_v12 = vshrl.u32 %v15281_v1, 16 }
 0x15c   : > { %v1657_v0 = vshrl.u32 %v1629_v2, 16  ;;  %v1660_v10 = vshll.u32 %v1629_v2, 16  ;;  %v1604_v43 = vadd.f32 %v13326_v6, %v15266_v25  ;;  %v1541_v11 = vpop.f32.mrb[9].mxu0  ;;  %v1749_v17 = vshrl.u32 %v15285_v3, 16  ;;  %v14548_v6 = vld [vmem:[%s18041_s0 + $0x10] sm:$0xff]  }
 0x15d   : > { %v1650_v14 = vshrl.u32 %v1628_v4, 16  ;;  %v1602_v15 = vadd.f32 %v15266_v25, %v1541_v11  ;;  %v13327_v16 = vpop.f32.mrb[10].mxu0  ;;  %v1751_v5 = vshll.u32 %v15285_v3, 16  ;;  %v1653_v19 = vshll.u32 %v1628_v4, 16 }
 0x15e   : > { %v1659_v8 = vrot.slane %v1657_v0, 7  ;;  %v1605_v24 = vadd.f32 %v13327_v16, %v15266_v25  ;;  %v1544_v18 = vpop.f32.mrb[11].mxu0  ;;  %v1758_v23 = vrot.slane %v1756_v7, 1  ;;  %v1620_v50 = vmax.f32 %v1604_v43, 0.0 }
 0x15f   : > { %v1652_v49 = vrot.slane %v1650_v14, 7  ;;  %v1603_v20 = vadd.f32 %v15266_v25, %v1544_v18  ;;  %v1753_v21 = vrot.slane %v1751_v5, 1  ;;  %v1618_v31 = vmax.f32 %v1602_v15, 0.0  ;;  %v14549_v18 = vld [vmem:[%s18041_s0 + $0x18] sm:$0xff]  }
 0x160   : > { %v1662_v26 = vor.u32 %v1660_v10, %v1659_v8  ;;  %v15298_v27 = vsel %vm15050_vm2, %v1659_v8, 0  ;;  %v1621_v28 = vmax.f32 %v1605_v24, 0.0  ;;  %v1762_v29 = vor.u32 %v1760_v12, %v1758_v23 }
 0x161   : > { %v1655_v30 = vor.u32 %v1653_v19, %v1652_v49  ;;  %v1619_v32 = vmax.f32 %v1603_v20, 0.0  ;;  %v1754_v33 = vor.u32 %v1753_v21, %v1749_v17  ;;  %v1766_v36 = vrot.slane %v1764_v9, 1 }
 0x162   : > { %v15301_v34 = vsel %vm18023_vm0, %v1652_v49, %v1662_v26  ;;  %v1631_v35 = vpack.c.bf16 %v1621_v28, %v1620_v50  ;;  %v1784_v42 = vshll.u32 %v15298_v27, 16 }
 0x163   : > { %v15305_v37 = vsel %vm15050_vm2, 0, %v1655_v30  ;;  %v1630_v38 = vpack.c.bf16 %v1619_v32, %v1618_v31  ;;  %v13330_v39 = vpop.f32.mrb[12].mxu0  ;;  %v15308_v40 = vsel %vm972_vm3, %v1754_v33, %v1758_v23  ;;  %v15317_v48 = vsel %vm972_vm3, %v1762_v29, %v1766_v36 }
 0x164   : > { %v1672_v44 = vshrl.u32 %v1631_v35, 16  ;;  %v1675_v45 = vshll.u32 %v1631_v35, 16  ;;  %v1608_v46 = vadd.f32 %v13330_v39, %v15266_v25  ;;  %13348 = vmatprep.mubr.bf16.mxu1 %v15308_v40  ;;  %v1557_v47 = vpop.f32.mrb[13].mxu0  ;;  %v1769_v54 = vshrl.u32 %v15305_v37, 16  ;;  %v14550_v39 = vld [vmem:[%s18041_s0 + $0x20] sm:$0xff]  }
 0x165   : > { %v1665_v51 = vshrl.u32 %v1630_v38, 16  ;;  %v1606_v52 = vadd.f32 %v15266_v25, %v1557_v47  ;;  %13349 = vmatmul.mubr.bf16.vlgmr.msra.gmra.mrb[0].mxu1 %v15317_v48  ;;  %v13331_v53 = vpop.f32.mrb[14].mxu0  ;;  %v1771_v55 = vshll.u32 %v15305_v37, 16  ;;  %v1668_v57 = vshll.u32 %v1630_v38, 16 }
 0x166   : > { %v1674_v56 = vrot.slane %v1672_v44, 7  ;;  %v1609_v59 = vadd.f32 %v13331_v53, %v15266_v25  ;;  %13365 = vmatpush3.bf16.msra.mxu1 %v15260_v22  ;;  %v1560_v60 = vpop.f32.mrb[15].mxu0  ;;  %v1776_v61 = vshll.u32 %v15301_v34, 16  ;;  %v1624_v63 = vmax.f32 %v1608_v46, 0.0  ;;  %v14551_v53 = vld [vmem:[%s18041_s0 + $0x28] sm:$0xff]  }
 0x167   : > { %v1667_v62 = vrot.slane %v1665_v51, 7  ;;  %v1607_v2 = vadd.f32 %v15266_v25, %v1560_v60  ;;  %13366 = vmatprep.subr.bf16.mxu1 %v14547_v41  ;;  %v1773_v4 = vrot.slane %v1771_v55, 1  ;;  %v1622_v9 = vmax.f32 %v1606_v52, 0.0 }
 0x168   : > { %v1677_v7 = vor.u32 %v1675_v45, %v1674_v56  ;;  %v1625_v0 = vmax.f32 %v1609_v59, 0.0  ;;  %v1778_v10 = vrot.slane %v1776_v61, 1  ;;  %v1780_v12 = vshrl.u32 %v15301_v34, 16 }
 0x169   : > { %v1670_v43 = vor.u32 %v1668_v57, %v1667_v62  ;;  %v1623_v11 = vmax.f32 %v1607_v2, 0.0  ;;  %v1774_v22 = vor.u32 %v1773_v4, %v1769_v54  ;;  %v15333_v14 = vsel %vm15050_vm2, %v1674_v56, 0 }
 0x16a   : > { %v15336_v25 = vsel %vm18023_vm0, %v1667_v62, %v1677_v7  ;;  %v1633_v15 = vpack.c.bf16 %v1625_v0, %v1624_v63  ;;  %13367 = vmatpush3.bf16.msra.mxu1 %v14547_v41  ;;  %v1786_v16 = vrot.slane %v1784_v42, 1  ;;  %v1782_v19 = vor.u32 %v1780_v12, %v1778_v10  ;;  %v14552_v63 = vld [vmem:[%s18041_s0 + $0x30] sm:$0xff]   ;;  %v14553_v7 = vld [vmem:[%s18041_s0 + $0x38] sm:$0xff]   ;;  %v14554_v0 = vld [vmem:[%s18041_s0 + $0x100] sm:$0xff]  }
 0x16b   : > { %v15340_v17 = vsel %vm15050_vm2, 0, %v1670_v43  ;;  %v1632_v5 = vpack.c.bf16 %v1623_v11, %v1622_v9  ;;  %v15343_v8 = vsel %vm972_vm3, %v1774_v22, %v1778_v10  ;;  %13368 = vmatprep.subr.bf16.mxu1 %v14548_v6  ;;  %v1796_v20 = vshll.u32 %v15336_v25, 16  ;;  %v14555_v10 = vld [vmem:[%s18041_s0 + $0x108] sm:$0xff]   ;;  %v14556_v43 = vld [vmem:[%s18041_s0 + $0x110] sm:$0xff]   ;;  %v14557_v11 = vld [vmem:[%s18041_s0 + $0x118] sm:$0xff]  }
 0x16c   : > { %v1687_v24 = vshrl.u32 %v1633_v15, 16  ;;  %13352 = vmatprep.mubr.bf16.mxu1 %v15343_v8  ;;  %v1791_v23 = vshll.u32 %v15340_v17, 16  ;;  %v15351_v50 = vsel %vm972_vm3, %v1782_v19, %v1786_v16  ;;  %v1804_v21 = vshll.u32 %v15333_v14, 16  ;;  %v14558_v22 = vld [vmem:[%s18041_s0 + $0x120] sm:$0xff]   ;;  %v14559_v12 = vld [vmem:[%s18041_s0 + $0x128] sm:$0xff]   ;;  %v14561_v16 = vld [vmem:[%s18041_s0 + $0x138] sm:$0xff]  }
 0x16d   : > { %v1680_v49 = vshrl.u32 %v1632_v5, 16  ;;  %v1690_v28 = vshll.u32 %v1633_v15, 16  ;;  %13353 = vmatmul.mubr.bf16.gmra.mrb[4].mxu1 %v15351_v50  ;;  %v1789_v29 = vshrl.u32 %v15340_v17, 16  ;;  %v1683_v32 = vshll.u32 %v1632_v5, 16  ;;  %v14560_v15 = vld [vmem:[%s18041_s0 + $0x130] sm:$0xff]   ;;  %v14562_v5 = vld [vmem:[%s18041_s0 + $0xc0] sm:$0xff]  }
 0x16e   : > { %v1689_v26 = vrot.slane %v1687_v24, 7  ;;  %v1793_v30 = vrot.slane %v1791_v23, 1  ;;  %13369 = vmatpush3.bf16.msra.mxu1 %v14548_v6  ;;  %v1798_v33 = vrot.slane %v1796_v20, 1  ;;  %v1800_v35 = vshrl.u32 %v15336_v25, 16  ;;  %v14563_v19 = vld [vmem:[%s18041_s0 + $0xc8] sm:$0xff]   ;;  %v14565_v24 = vld [vmem:[%s18041_s0 + $0xd8] sm:$0xff]  }
 0x16f   : > { %v1682_v31 = vrot.slane %v1680_v49, 7  ;;  %13370 = vmatprep.subr.bf16.mxu1 %v14549_v18  ;;  %v1806_v47 = vrot.slane %v1804_v21, 1  ;;  %v14569_v23 = vld [vmem:[%s18041_s0 + $0xf8] sm:$0xff]   ;;  %v14570_v49 = vld [vmem:[%s18041_s0 + $0x80] sm:$0xff]   ;;  %v14572_v20 = vld [vmem:[%s18041_s0 + $0x90] sm:$0xff]  }
 0x170   : > { %v1692_v36 = vor.u32 %v1690_v28, %v1689_v26  ;;  %v1794_v38 = vor.u32 %v1793_v30, %v1789_v29  ;;  %v1802_v42 = vor.u32 %v1800_v35, %v1798_v33  ;;  %v15375_v52 = vsel %vm15050_vm2, %v1689_v26, 0  ;;  %v14573_v21 = vld [vmem:[%s18041_s0 + $0x98] sm:$0xff]   ;;  %v14574_v26 = vld [vmem:[%s18041_s0 + $0xa0] sm:$0xff]   ;;  %v14575_v28 = vld [vmem:[%s18041_s0 + $0xa8] sm:$0xff]  }
 0x171   : > { %v1685_v41 = vor.u32 %v1683_v32, %v1682_v31  ;;  %v1824_v61 = vshll.u32 %v15375_v52, 16  ;;  %v14576_v29 = vld [vmem:[%s18041_s0 + $0xb0] sm:$0xff]   ;;  %v2458_v30 = vrot.slane %v15285_v3, 1  ;;  %v14577_v32 = vld [vmem:[%s18041_s0 + $0xb8] sm:$0xff]   ;;  %v14578_v35 = vld [vmem:[%s18041_s0 + $0x140] sm:$0xff]  }
 0x172   : > { %v15362_v44 = vsel %vm18023_vm0, %v1682_v31, %v1692_v36  ;;  %v15365_v45 = vsel %vm972_vm3, %v1794_v38, %v1798_v33  ;;  %13371 = vmatpush3.bf16.msra.mxu1 %v14549_v18  ;;  %v15382_v55 = vsel %vm972_vm3, %v1802_v42, %v1806_v47  ;;  %v14568_v18 = vld [vmem:[%s18041_s0 + $0xf0] sm:$0xff]   ;;  %v2459_v31 = vrot.slane %v15281_v1, 1  ;;  %v14579_v38 = vld [vmem:[%s18041_s0 + $0x148] sm:$0xff]  }
 0x173   : > { %v15369_v46 = vsel %vm15050_vm2, 0, %v1685_v41  ;;  %13356 = vmatprep.mubr.bf16.mxu1 %v15365_v45  ;;  %v1816_v51 = vshll.u32 %v15362_v44, 16  ;;  %13372 = vmatprep.subr.bf16.mxu1 %v14550_v39  ;;  %v1820_v60 = vshrl.u32 %v15362_v44, 16  ;;  %v1826_v6 = vrot.slane %v1824_v61, 1 }
 0x174   : > { %v1811_v54 = vshll.u32 %v15369_v46, 16  ;;  %v1809_v57 = vshrl.u32 %v15369_v46, 16  ;;  %v2460_v33 = vsel %vm1381_vm5, %v2458_v30, %v2459_v31  ;;  %v2461_v36 = vrot.slane %v15278_v58, 1 }
 0x175   : > { %v1818_v56 = vrot.slane %v1816_v51, 1  ;;  %13357 = vmatmul.mubr.bf16.gmra.mrb[8].mxu1 %v15382_v55  ;;  %v2468_v58 = vrot.slane %v15340_v17, 1  ;;  %v2466_v42 = vrot.slane %v15298_v27, 1  ;;  %v2474_v27 = vrot.slane %v15362_v44, 1 }
 0x176   : > { %v1813_v59 = vrot.slane %v1811_v54, 1  ;;  %13373 = vmatpush3.bf16.msra.mxu1 %v14550_v39  ;;  %v2462_v39 = vsel %vm1381_vm5, %v2459_v31, %v2461_v36  ;;  %v14583_v54 = vld [vmem:[%s18041_s0 + $0x168] sm:$0xff]  }
 0x177   : > { %13374 = vmatprep.subr.bf16.mxu1 %v14551_v53  ;;  %v1822_v2 = vor.u32 %v1820_v60, %v1818_v56 }
 0x178   : > { %v1814_v62 = vor.u32 %v1813_v59, %v1809_v57 }
 0x179   : > { %v15399_v9 = vsel %vm972_vm3, %v1822_v2, %v1826_v6 }
 0x17a   : > { %v15392_v4 = vsel %vm972_vm3, %v1814_v62, %v1818_v56  ;;  %13375 = vmatpush3.bf16.msra.mxu1 %v14551_v53  ;;  %v2471_v53 = vrot.slane %v15333_v14, 1  ;;  %v2476_v14 = vrot.slane %v15375_v52, 1 }
 0x17b   : > { %13360 = vmatprep.mubr.bf16.mxu1 %v15392_v4  ;;  %13376 = vmatprep.subr.bf16.mxu1 %v14552_v63 }
 0x17c   : > { %v2477_v57 = vsel %vm1381_vm5, %v2474_v27, %v2476_v14 }
 0x17d   : > { %13361 = vmatmul.mubr.bf16.gmra.mrb[12].mxu1 %v15399_v9 }
 0x17e   : > { %13377 = vmatpush3.bf16.msra.mxu1 %v14552_v63  ;;  %13380 = vmatprep.mubr.bf16.mxu1 %v15285_v3 }
 0x17f   : > { %13378 = vmatprep.subr.bf16.mxu1 %v14553_v7 }
 0x182   : > { %13379 = vmatpush3.bf16.msra.mxu1 %v14553_v7 }
 0x183   : > { %13396 = vmatprep.subr.bf16.mxu1 %v14554_v0 }
 0x185   : > { %13381 = vmatmul.mubr.bf16.vlgmr.msra.gmra.mrb[0].mxu1 %v15281_v1 }
 0x186   : > { %13384 = vmatprep.mubr.bf16.mxu1 %v15305_v37  ;;  %13397 = vmatpush3.bf16.msra.mxu1 %v14554_v0 }
 0x187   : > { %13398 = vmatprep.subr.bf16.mxu1 %v14555_v10 }
 0x18a   : > { %13399 = vmatpush3.bf16.msra.mxu1 %v14555_v10 }
 0x18b   : > { %13400 = vmatprep.subr.bf16.mxu1 %v14556_v43 }
 0x18d   : > { %13385 = vmatmul.mubr.bf16.gmra.mrb[4].mxu1 %v15301_v34 }
 0x18e   : > { %13388 = vmatprep.mubr.bf16.mxu1 %v15340_v17  ;;  %13401 = vmatpush3.bf16.msra.mxu1 %v14556_v43 }
 0x18f   : > { %13402 = vmatprep.subr.bf16.mxu1 %v14557_v11 }
 0x192   : > { %13403 = vmatpush3.bf16.msra.mxu1 %v14557_v11 }
 0x193   : > { %13404 = vmatprep.subr.bf16.mxu1 %v14558_v22 }
 0x195   : > { %13389 = vmatmul.mubr.bf16.gmra.mrb[8].mxu1 %v15336_v25 }
 0x196   : > { %13392 = vmatprep.mubr.bf16.mxu1 %v15369_v46  ;;  %13405 = vmatpush3.bf16.msra.mxu1 %v14558_v22 }
 0x197   : > { %13406 = vmatprep.subr.bf16.mxu1 %v14559_v12 }
 0x19a   : > { %13407 = vmatpush3.bf16.msra.mxu1 %v14559_v12  ;;  %v14871_v12 = vmov 1983009808  }
 0x19b   : > { %13408 = vmatprep.subr.bf16.mxu1 %v14560_v15 }
 0x19d   : > { %13393 = vmatmul.mubr.bf16.gmra.mrb[12].mxu1 %v15362_v44 }
 0x19e   : > { %13409 = vmatpush3.bf16.msra.mxu1 %v14560_v15  ;;  %13412 = vmatprep.mubr.bf16.mxu1 %v15308_v40  ;;  %v14564_v40 = vld [vmem:[%s18041_s0 + $0xd0] sm:$0xff]   ;;  %v2914_v15 = vunpack.c.l.s4 %v14871_v12 }
 0x19f   : > { %13410 = vmatprep.subr.bf16.mxu1 %v14561_v16 }
 0x1a2   : > { %13411 = vmatpush3.bf16.msra.mxu1 %v14561_v16  ;;  %v2916_v16 = vlaneseq }
 0x1a3   : > { %13428 = vmatprep.subr.bf16.mxu1 %v14562_v5 }
 0x1a5   : > { %13413 = vmatmul.mubr.bf16.vlgmr.msra.gmra.mrb[16].mxu1 %v15317_v48  ;;  %v14566_v48 = vld [vmem:[%s18041_s0 + $0xe0] sm:$0xff]  }
 0x1a6   : > { %13416 = vmatprep.mubr.bf16.mxu1 %v15343_v8  ;;  %13429 = vmatpush3.bf16.msra.mxu1 %v14562_v5  ;;  %v14567_v8 = vld [vmem:[%s18041_s0 + $0xe8] sm:$0xff]   ;;  %v2915_v5 = vunpack.c.0.s8 %v2914_v15 }
 0x1a7   : > { %13430 = vmatprep.subr.bf16.mxu1 %v14563_v19 }
 0x1aa   : > { %13431 = vmatpush3.bf16.msra.mxu1 %v14563_v19  ;;  %v15566_v19 = vshrl.u32 %v2916_v16, 7 }
 0x1ab   : > { %13432 = vmatprep.subr.bf16.mxu1 %v14564_v40 }
 0x1ac   : > { %18043 = vst [vmem:[#allocation2_spill] sm:$0xff] %v15566_v19 }
 0x1ad   : > { %13417 = vmatmul.mubr.bf16.gmra.mrb[20].mxu1 %v15351_v50  ;;  %v14571_v50 = vld [vmem:[%s18041_s0 + $0x88] sm:$0xff]  }
 0x1ae   : > { %13420 = vmatprep.mubr.bf16.mxu1 %v15365_v45  ;;  %13433 = vmatpush3.bf16.msra.mxu1 %v14564_v40  ;;  %v14581_v45 = vld [vmem:[%s18041_s0 + $0x158] sm:$0xff]   ;;  %v15571_v40 = vld [vmem:[%s18044_s2] ss:$0 sm:$0xff] }
 0x1af   : > { %13434 = vmatprep.subr.bf16.mxu1 %v14565_v24 }
 0x1b2   : > { %13435 = vmatpush3.bf16.msra.mxu1 %v14565_v24 }
 0x1b3   : > { %13436 = vmatprep.subr.bf16.mxu1 %v14566_v48 }
 0x1b5   : > { %13421 = vmatmul.mubr.bf16.gmra.mrb[24].mxu1 %v15382_v55 }
 0x1b6   : > { %13424 = vmatprep.mubr.bf16.mxu1 %v15392_v4  ;;  %13437 = vmatpush3.bf16.msra.mxu1 %v14566_v48 }
 0x1b7   : > { %13438 = vmatprep.subr.bf16.mxu1 %v14567_v8 }
 0x1ba   : > { %13439 = vmatpush3.bf16.msra.mxu1 %v14567_v8 }
 0x1bb   : > { %13440 = vmatprep.subr.bf16.mxu1 %v14568_v18 }
 0x1bd   : > { %13425 = vmatmul.mubr.bf16.gmra.mrb[28].mxu1 %v15399_v9 }
 0x1be   : > { %13441 = vmatpush3.bf16.msra.mxu1 %v14568_v18  ;;  %13444 = vmatprep.mubr.bf16.mxu1 %v15285_v3  ;;  %v2463_v3 = vrot.slane %v15305_v37, 1 }
 0x1bf   : > { %13442 = vmatprep.subr.bf16.mxu1 %v14569_v23 }
 0x1c2   : > { %13443 = vmatpush3.bf16.msra.mxu1 %v14569_v23 }
 0x1c3   : > { %13460 = vmatprep.subr.bf16.mxu1 %v14570_v49 }
 0x1c5   : > { %13445 = vmatmul.mubr.bf16.vlgmr.msra.gmra.mrb[16].mxu1 %v15281_v1  ;;  %v2464_v1 = vrot.slane %v15301_v34, 1 }
 0x1c6   : > { %13448 = vmatprep.mubr.bf16.mxu1 %v15305_v37  ;;  %13461 = vmatpush3.bf16.msra.mxu1 %v14570_v49  ;;  %v2469_v37 = vrot.slane %v15336_v25, 1 }
 0x1c7   : > { %13462 = vmatprep.subr.bf16.mxu1 %v14571_v50  ;;  %v2465_v41 = vsel %vm1381_vm5, %v2463_v3, %v2464_v1  ;;  %v2467_v47 = vsel %vm1381_vm5, %v2464_v1, %v2466_v42 }
 0x1c8   : > { %v2470_v51 = vsel %vm1381_vm5, %v2468_v58, %v2469_v37  ;;  %v2472_v55 = vsel %vm1381_vm5, %v2469_v37, %v2471_v53 }
 0x1ca   : > { %13463 = vmatpush3.bf16.msra.mxu1 %v14571_v50  ;;  %v15575_v50 = vsub.s32 %v2915_v5, %v15566_v19 }
 0x1cb   : > { %13464 = vmatprep.subr.bf16.mxu1 %v14572_v20 }
 0x1cd   : > { %13449 = vmatmul.mubr.bf16.gmra.mrb[20].mxu1 %v15301_v34  ;;  %v14580_v34 = vld [vmem:[%s18041_s0 + $0x150] sm:$0xff]  }
 0x1ce   : > { %13452 = vmatprep.mubr.bf16.mxu1 %v15340_v17  ;;  %13465 = vmatpush3.bf16.msra.mxu1 %v14572_v20  ;;  %v2473_v17 = vrot.slane %v15369_v46, 1 }
 0x1cf   : > { %13466 = vmatprep.subr.bf16.mxu1 %v14573_v21 }
 0x1d0   : > { %v2475_v56 = vsel %vm1381_vm5, %v2473_v17, %v2474_v27 }
 0x1d2   : > { %13467 = vmatpush3.bf16.msra.mxu1 %v14573_v21 }
 0x1d3   : > { %13468 = vmatprep.subr.bf16.mxu1 %v14574_v26 }
 0x1d5   : > { %13453 = vmatmul.mubr.bf16.gmra.mrb[24].mxu1 %v15336_v25  ;;  %v14582_v25 = vld [vmem:[%s18041_s0 + $0x160] sm:$0xff]  }
 0x1d6   : > { %13456 = vmatprep.mubr.bf16.mxu1 %v15369_v46  ;;  %13469 = vmatpush3.bf16.msra.mxu1 %v14574_v26  ;;  %v14585_v46 = vld [vmem:[%s18041_s0 + $0x178] sm:$0xff]  }
 0x1d7   : > { %13470 = vmatprep.subr.bf16.mxu1 %v14575_v28 }
 0x1da   : > { %13471 = vmatpush3.bf16.msra.mxu1 %v14575_v28 }
 0x1db   : > { %13472 = vmatprep.subr.bf16.mxu1 %v14576_v29 }
 0x1dd   : > { %13457 = vmatmul.mubr.bf16.gmra.mrb[28].mxu1 %v15362_v44  ;;  %v14584_v44 = vld [vmem:[%s18041_s0 + $0x170] sm:$0xff]  }
 0x1de   : > { %13473 = vmatpush3.bf16.msra.mxu1 %v14576_v29  ;;  %13476 = vmatprep.mubr.bf16.mxu1 %v2460_v33 }
 0x1df   : > { %13474 = vmatprep.subr.bf16.mxu1 %v14577_v32 }
 0x1e2   : > { %13475 = vmatpush3.bf16.msra.mxu1 %v14577_v32 }
 0x1e3   : > { %13492 = vmatprep.subr.bf16.mxu1 %v14578_v35 }
 0x1e5   : > { %13477 = vmatmul.mubr.bf16.vlgmr.msra.gmra.mrb[0].mxu1 %v2462_v39 }
 0x1e6   : > { %13480 = vmatprep.mubr.bf16.mxu1 %v2465_v41  ;;  %13493 = vmatpush3.bf16.msra.mxu1 %v14578_v35 }
 0x1e7   : > { %13494 = vmatprep.subr.bf16.mxu1 %v14579_v38 }
 0x1ea   : > { %13495 = vmatpush3.bf16.msra.mxu1 %v14579_v38 }
 0x1eb   : > { %13496 = vmatprep.subr.bf16.mxu1 %v14580_v34 }
 0x1ed   : > { %13481 = vmatmul.mubr.bf16.gmra.mrb[4].mxu1 %v2467_v47 }
 0x1ee   : > { %13484 = vmatprep.mubr.bf16.mxu1 %v2470_v51  ;;  %13497 = vmatpush3.bf16.msra.mxu1 %v14580_v34 }
 0x1ef   : > { %13498 = vmatprep.subr.bf16.mxu1 %v14581_v45 }
 0x1f2   : > { %13499 = vmatpush3.bf16.msra.mxu1 %v14581_v45 }
 0x1f3   : > { %13500 = vmatprep.subr.bf16.mxu1 %v14582_v25 }
 0x1f5   : > { %13485 = vmatmul.mubr.bf16.gmra.mrb[8].mxu1 %v2472_v55 }
 0x1f6   : > { %13488 = vmatprep.mubr.bf16.mxu1 %v2475_v56  ;;  %13501 = vmatpush3.bf16.msra.mxu1 %v14582_v25 }
 0x1f7   : > { %13502 = vmatprep.subr.bf16.mxu1 %v14583_v54 }
 0x1fa   : > { %13503 = vmatpush3.bf16.msra.mxu1 %v14583_v54 }
 0x1fb   : > { %13504 = vmatprep.subr.bf16.mxu1 %v14584_v44 }
 0x1fd   : > { %13489 = vmatmul.mubr.bf16.gmra.mrb[12].mxu1 %v2477_v57 }
 0x1fe   : > { %13505 = vmatpush3.bf16.msra.mxu1 %v14584_v44  ;;  %13508 = vmatprep.mubr.bf16.mxu1 %v2460_v33 }
 0x1ff   : > { %13506 = vmatprep.subr.bf16.mxu1 %v14585_v46 }
 0x202   : > { %13507 = vmatpush3.bf16.msra.mxu1 %v14585_v46 }
 0x205   : > { %13509 = vmatmul.mubr.bf16.vlgmr.msra.gmra.mrb[16].mxu1 %v2462_v39 }
 0x206   : > { %13512 = vmatprep.mubr.bf16.mxu1 %v2465_v41 }
 0x20d   : > { %13513 = vmatmul.mubr.bf16.gmra.mrb[20].mxu1 %v2467_v47 }
 0x20e   : > { %13516 = vmatprep.mubr.bf16.mxu1 %v2470_v51 }
 0x215   : > { %13517 = vmatmul.mubr.bf16.gmra.mrb[24].mxu1 %v2472_v55 }
 0x216   : > { %13520 = vmatprep.mubr.bf16.mxu1 %v2475_v56 }
 0x21d   : > { %13521 = vmatmul.mubr.bf16.gmra.mrb[28].mxu1 %v2477_v57 }
 0x2b8   : > { %v13478_v52 = vpop.f32.mrb[0].mxu1 }
 0x2b9   : > { %v2585_v59 = vpop.f32.mrb[1].mxu1 }
 0x2ba   : > { %v13479_v60 = vpop.f32.mrb[2].mxu1 }
 0x2bb   : > { %v2588_v61 = vpop.f32.mrb[3].mxu1 }
 0x2c0   : > { %v15542_v62 = vpop.f32.mrb[4].mxu1 }
 0x2c1   : > { %v15544_v63 = vpop.f32.mrb[5].mxu1 }
 0x2c2   : > { %v15546_v2 = vpop.f32.mrb[6].mxu1 }
 0x2c3   : > { %v15548_v4 = vpop.f32.mrb[7].mxu1 }
 0x2c8   : > { %v15550_v6 = vpop.f32.mrb[8].mxu1 }
 0x2c9   : > { %v15552_v7 = vpop.f32.mrb[9].mxu1 }
 0x2ca   : > { %v15554_v9 = vpop.f32.mrb[10].mxu1 }
 0x2cb   : > { %v15556_v0 = vpop.f32.mrb[11].mxu1 }
 0x2d0   : > { %v15558_v10 = vpop.f32.mrb[12].mxu1 }
 0x2d1   : > { %v15560_v43 = vpop.f32.mrb[13].mxu1 }
 0x2d2   : > { %v15562_v11 = vpop.f32.mrb[14].mxu1 }
 0x2d3   : > { %v15564_v22 = vpop.f32.mrb[15].mxu1 }
 0x2d8   : > { %v13510_v24 = vpop.f32.mrb[16].mxu1 }
 0x2d9   : > { %v2844_v48 = vmax.f32 %v13478_v52, %v13510_v24  ;;  %v2763_v8 = vpop.f32.mrb[17].mxu1 }
 0x2da   : > { %v2842_v18 = vmax.f32 %v2585_v59, %v2763_v8  ;;  %v13511_v23 = vpop.f32.mrb[18].mxu1 }
 0x2db   : > { %v2866_v49 = vadd.f32 %v15571_v40, %v2844_v48  ;;  %v2845_v20 = vmax.f32 %v13479_v60, %v13511_v23  ;;  %v2766_v21 = vpop.f32.mrb[19].mxu1 }
 0x2dc   : > { %v2864_v26 = vadd.f32 %v15571_v40, %v2842_v18  ;;  %v2843_v28 = vmax.f32 %v2588_v61, %v2766_v21 }
 0x2dd   : > { %v2882_v29 = vmax.f32 %v2866_v49, 0.0  ;;  %v2867_v30 = vadd.f32 %v15571_v40, %v2845_v20 }
 0x2de   : > { %v2880_v31 = vmax.f32 %v2864_v26, 0.0  ;;  %v15584_v36 = vadd.f32 %v15571_v40, %v2843_v28 }
 0x2df   : > { %v2946_v32 = vcombine.high %v2882_v29, %v2882_v29  ;;  %v2953_v33 = vrot.slane %v2882_v29, %v15575_v50  ;;  %v15580_v35 = vmax.f32 %v2867_v30, 0.0 }
 0x2e0   : > { %v2912_v3 = vcombine.high %v2880_v31, %v2880_v31  ;;  %v2919_v1 = vrot.slane %v2880_v31, %v15575_v50  ;;  %v15586_v38 = vpop.f32.mrb[20].mxu1 }
 0x2e1   : > { %v2960_v39 = vrot.slane %v2946_v32, %v15575_v50  ;;  %v2961_v41 = vcombine.high %v2953_v33, %v2953_v33  ;;  %v3305_v34 = vsel %vm18024_vm6, %v2953_v33, -inf  ;;  %v2963_v58 = vcombine.high %v15580_v35, %v15580_v35  ;;  %v15592_v37 = vpop.f32.mrb[21].mxu1 }
 0x2e2   : > { %v3306_v42 = vrot.slane %v3305_v34, 4  ;;  %v2926_v45 = vrot.slane %v2912_v3, %v15575_v50  ;;  %v2927_v47 = vcombine.high %v2919_v1, %v2919_v1  ;;  %v3249_v51 = vsel %vm18024_vm6, %v2919_v1, -inf  ;;  %v15596_v25 = vpop.f32.mrb[22].mxu1 }
 0x2e3   : > { %v2962_v17 = vcombine.high %v2960_v39, %v2960_v39  ;;  %v3312_v27 = vsel %vm18024_vm6, %v2961_v41, -inf  ;;  %v3319_v53 = vsel %vm18024_vm6, %v2960_v39, -inf  ;;  %v3250_v54 = vrot.slane %v3249_v51, 4  ;;  %v15600_v55 = vpop.f32.mrb[23].mxu1 }
 0x2e4   : > { %v3307_v56 = vmax.f32 %v3305_v34, %v3306_v42  ;;  %v3313_v44 = vrot.slane %v3312_v27, 4  ;;  %v3320_v14 = vrot.slane %v3319_v53, 4  ;;  %v2928_v46 = vcombine.high %v2926_v45, %v2926_v45 }
 0x2e5   : > { %v3326_v57 = vsel %vm18024_vm6, %v2962_v17, -inf  ;;  %v3251_v52 = vmax.f32 %v3249_v51, %v3250_v54  ;;  %v3256_v59 = vsel %vm18024_vm6, %v2927_v47, -inf  ;;  %v3263_v60 = vsel %vm18024_vm6, %v2926_v45, -inf }
 0x2e6   : > { %v3308_v61 = vrot.slane %v3307_v56, 2  ;;  %v3314_v12 = vmax.f32 %v3312_v27, %v3313_v44  ;;  %v3321_v15 = vmax.f32 %v3319_v53, %v3320_v14  ;;  %v3327_v16 = vrot.slane %v3326_v57, 4 }
 0x2e7   : > { %v3252_v5 = vrot.slane %v3251_v52, 2  ;;  %v3257_v24 = vrot.slane %v3256_v59, 4  ;;  %v3264_v48 = vrot.slane %v3263_v60, 4  ;;  %v3270_v8 = vsel %vm18024_vm6, %v2928_v46, -inf }
 0x2e8   : > { %v3309_v18 = vmax.f32 %v3307_v56, %v3308_v61  ;;  %v3315_v23 = vrot.slane %v3314_v12, 2  ;;  %v3322_v49 = vrot.slane %v3321_v15, 2  ;;  %v3328_v20 = vmax.f32 %v3326_v57, %v3327_v16  ;;  %v15606_v21 = vpop.f32.mrb[24].mxu1 }
 0x2e9   : > { %v3253_v26 = vmax.f32 %v3251_v52, %v3252_v5  ;;  %v3258_v28 = vmax.f32 %v3256_v59, %v3257_v24  ;;  %v3265_v29 = vmax.f32 %v3263_v60, %v3264_v48  ;;  %v3271_v30 = vrot.slane %v3270_v8, 4  ;;  %v15608_v31 = vpop.f32.mrb[25].mxu1 }
 0x2ea   : > { %v3310_v32 = vrot.slane %v3309_v18, 1  ;;  %v3316_v33 = vmax.f32 %v3314_v12, %v3315_v23  ;;  %v3323_v3 = vmax.f32 %v3321_v15, %v3322_v49  ;;  %v3329_v1 = vrot.slane %v3328_v20, 2  ;;  %v15610_v39 = vpop.f32.mrb[26].mxu1 }
 0x2eb   : > { %v3254_v41 = vrot.slane %v3253_v26, 1  ;;  %v3259_v34 = vrot.slane %v3258_v28, 2  ;;  %v3266_v42 = vrot.slane %v3265_v29, 2  ;;  %v3272_v45 = vmax.f32 %v3270_v8, %v3271_v30  ;;  %v15612_v47 = vpop.f32.mrb[27].mxu1 }
 0x2ec   : > { %v3311_v51 = vmax.f32 %v3309_v18, %v3310_v32  ;;  %v3317_v17 = vrot.slane %v3316_v33, 1  ;;  %v3324_v27 = vrot.slane %v3323_v3, 1  ;;  %v3330_v53 = vmax.f32 %v3328_v20, %v3329_v1 }
 0x2ed   : > { %v3255_v54 = vmax.f32 %v3253_v26, %v3254_v41  ;;  %v3260_v56 = vmax.f32 %v3258_v28, %v3259_v34  ;;  %v3267_v44 = vmax.f32 %v3265_v29, %v3266_v42  ;;  %v3273_v14 = vrot.slane %v3272_v45, 2 }
 0x2ee   : > { %v3318_v46 = vmax.f32 %v3316_v33, %v3317_v17  ;;  %v3325_v57 = vmax.f32 %v3323_v3, %v3324_v27  ;;  %v3331_v52 = vrot.slane %v3330_v53, 1  ;;  %v3705_v59 = vpack.c.bf16 %v3311_v51, %v3311_v51 }
 0x2ef   : > { %v3261_v60 = vrot.slane %v3260_v56, 1  ;;  %v3268_v61 = vrot.slane %v3267_v44, 1  ;;  %v3274_v12 = vmax.f32 %v3272_v45, %v3273_v14  ;;  %v3697_v15 = vpack.c.bf16 %v3255_v54, %v3255_v54 }
 0x2f0   : > { %v3332_v16 = vmax.f32 %v3330_v53, %v3331_v52  ;;  %v3706_v5 = vpack.c.bf16 %v3318_v46, %v3318_v46  ;;  %v3707_v24 = vpack.c.bf16 %v3325_v57, %v3325_v57  ;;  %v2881_v48 = vmax.f32 %v15584_v36, 0.0  ;;  %v15615_v8 = vpop.f32.mrb[28].mxu1 }
 0x2f1   : > { %v15617_v18 = vunpack.c.l.b16 %v3705_v59  ;;  %v3262_v23 = vmax.f32 %v3260_v56, %v3261_v60  ;;  %v3269_v49 = vmax.f32 %v3267_v44, %v3268_v61  ;;  %v3275_v20 = vrot.slane %v3274_v12, 1  ;;  %v15619_v26 = vpop.f32.mrb[29].mxu1 }
 0x2f2   : > { %v3708_v28 = vpack.c.bf16 %v3332_v16, %v3332_v16  ;;  %v15621_v29 = vunpack.c.l.b16 %v3706_v5  ;;  %v3825_v30 = vunpack.c.l.b16 %v3697_v15  ;;  %v2970_v32 = vrot.slane %v15580_v35, %v15575_v50  ;;  %v15625_v33 = vpop.f32.mrb[30].mxu1 }
 0x2f3   : > { %v3276_v36 = vmax.f32 %v3274_v12, %v3275_v20  ;;  %v3698_v3 = vpack.c.bf16 %v3262_v23, %v3262_v23  ;;  %v3699_v1 = vpack.c.bf16 %v3269_v49, %v3269_v49  ;;  %v2977_v41 = vrot.slane %v2963_v58, %v15575_v50  ;;  %v15631_v34 = vpop.f32.mrb[31].mxu1 }
 0x2f4   : > { %v15633_v42 = vunpack.c.l.b16 %v3707_v24  ;;  %v2978_v45 = vcombine.high %v2970_v32, %v2970_v32  ;;  %v3333_v51 = vsel %vm18024_vm6, %v2970_v32, -inf  ;;  %v2929_v17 = vcombine.high %v2881_v48, %v2881_v48 }
 0x2f5   : > { %v15636_v27 = vunpack.c.l.b16 %v3708_v28  ;;  %v3700_v53 = vpack.c.bf16 %v3276_v36, %v3276_v36  ;;  %v3826_v54 = vunpack.c.l.b16 %v3698_v3  ;;  %v2979_v56 = vcombine.high %v2977_v41, %v2977_v41 }
 0x2f6   : > { %v3334_v44 = vrot.slane %v3333_v51, 4  ;;  %v3340_v14 = vsel %vm18024_vm6, %v2978_v45, -inf  ;;  %v3347_v46 = vsel %vm18024_vm6, %v2977_v41, -inf  ;;  %v2936_v35 = vrot.slane %v2881_v48, %v15575_v50 }
 0x2f7   : > { %v3827_v58 = vunpack.c.l.b16 %v3699_v1  ;;  %v3828_v57 = vunpack.c.l.b16 %v3700_v53  ;;  %v3341_v52 = vrot.slane %v3340_v14, 4  ;;  %v3348_v59 = vrot.slane %v3347_v46, 4 }
 0x2f8   : > { %v3890_v60 = vsel %vm3889_vm7, %v3826_v54, %v3825_v30  ;;  %v3335_v61 = vmax.f32 %v3333_v51, %v3334_v44  ;;  %v3354_v12 = vsel %vm18024_vm6, %v2979_v56, -inf  ;;  %v2943_v15 = vrot.slane %v2929_v17, %v15575_v50 }
 0x2f9   : > { %v3342_v16 = vmax.f32 %v3340_v14, %v3341_v52  ;;  %v3349_v5 = vmax.f32 %v3347_v46, %v3348_v59  ;;  %v3355_v24 = vrot.slane %v3354_v12, 4  ;;  %v2944_v23 = vcombine.high %v2936_v35, %v2936_v35 }
 0x2fa   : > { %v3336_v49 = vrot.slane %v3335_v61, 2  ;;  %v2945_v20 = vcombine.high %v2943_v15, %v2943_v15  ;;  %v3277_v48 = vsel %vm18024_vm6, %v2936_v35, -inf  ;;  %v3291_v28 = vsel %vm18024_vm6, %v2943_v15, -inf }
 0x2fb   : > { %v3343_v32 = vrot.slane %v3342_v16, 2  ;;  %v3350_v36 = vrot.slane %v3349_v5, 2  ;;  %v15646_v3 = vmax.f32 %v3354_v12, %v3355_v24  ;;  %v3278_v30 = vrot.slane %v3277_v48, 4 }
 0x2fc   : > { %v3337_v1 = vmax.f32 %v3335_v61, %v3336_v49  ;;  %v3284_v41 = vsel %vm18024_vm6, %v2944_v23, -inf  ;;  %v3292_v45 = vrot.slane %v3291_v28, 4  ;;  %v3298_v51 = vsel %vm18024_vm6, %v2945_v20, -inf }
 0x2fd   : > { %v3892_v17 = vsel %vm3891_vm8, %v3827_v58, %v3890_v60  ;;  %v3344_v53 = vmax.f32 %v3342_v16, %v3343_v32  ;;  %v3351_v54 = vmax.f32 %v3349_v5, %v3350_v36  ;;  %v3279_v56 = vmax.f32 %v3277_v48, %v3278_v30 }
 0x2fe   : > { %v3338_v44 = vrot.slane %v3337_v1, 1  ;;  %v3285_v14 = vrot.slane %v3284_v41, 4  ;;  %v3293_v46 = vmax.f32 %v3291_v28, %v3292_v45  ;;  %v3299_v35 = vrot.slane %v3298_v51, 4 }
 0x2ff   : > { %v3345_v52 = vrot.slane %v3344_v53, 1  ;;  %v3352_v59 = vrot.slane %v3351_v54, 1  ;;  %v3280_v15 = vrot.slane %v3279_v56, 2  ;;  %v2848_v60 = vmax.f32 %v15542_v62, %v15586_v38 }
 0x300   : > { %v3339_v61 = vmax.f32 %v3337_v1, %v3338_v44  ;;  %v3286_v24 = vmax.f32 %v3284_v41, %v3285_v14  ;;  %v3294_v23 = vrot.slane %v3293_v46, 2  ;;  %v3300_v49 = vmax.f32 %v3298_v51, %v3299_v35 }
 0x301   : > { %v3346_v20 = vmax.f32 %v3344_v53, %v3345_v52  ;;  %v3353_v19 = vmax.f32 %v3351_v54, %v3352_v59  ;;  %v3281_v58 = vmax.f32 %v3279_v56, %v3280_v15  ;;  %v3894_v30 = vsel %vm3893_vm9, %v3828_v57, %v3892_v17 }
 0x302   : > { %v3709_v16 = vpack.c.bf16 %v3339_v61, %v3339_v61  ;;  %v3287_v5 = vrot.slane %v3286_v24, 2  ;;  %v3295_v48 = vmax.f32 %v3293_v46, %v3294_v23  ;;  %v3301_v28 = vrot.slane %v3300_v49, 2 }
 0x303   : > { %v3710_v32 = vpack.c.bf16 %v3346_v20, %v3346_v20  ;;  %v3282_v36 = vrot.slane %v3281_v58, 1  ;;  %v2870_v1 = vadd.f32 %v15571_v40, %v2848_v60  ;;  %v3711_v41 = vpack.c.bf16 %v3353_v19, %v3353_v19 }
 0x304   : > { %v3288_v45 = vmax.f32 %v3286_v24, %v3287_v5  ;;  %v3296_v51 = vrot.slane %v3295_v48, 1  ;;  %v3302_v53 = vmax.f32 %v3300_v49, %v3301_v28  ;;  %v15656_v54 = vunpack.c.l.b16 %v3709_v16 }
 0x305   : > { %v15658_v56 = vunpack.c.l.b16 %v3710_v32  ;;  %v3283_v62 = vmax.f32 %v3281_v58, %v3282_v36  ;;  %v2886_v38 = vmax.f32 %v2870_v1, 0.0  ;;  %v2846_v35 = vmax.f32 %v15544_v63, %v15592_v37  ;;  %v14586_v63 = vld [vmem:[%s18045_s8 + $0x20] sm:$0xff]  }
 0x306   : > { %v3289_v44 = vrot.slane %v3288_v45, 1  ;;  %v3297_v14 = vmax.f32 %v3295_v48, %v3296_v51  ;;  %v3303_v46 = vrot.slane %v3302_v53, 1  ;;  %v2849_v19 = vmax.f32 %v15546_v2, %v15596_v25  ;;  %13524 = vmatprep.subr.bf16.mxu0 %v14586_v63 }
 0x307   : > { %v3701_v57 = vpack.c.bf16 %v3283_v62, %v3283_v62  ;;  %v3014_v17 = vcombine.high %v2886_v38, %v2886_v38  ;;  %v3021_v52 = vrot.slane %v2886_v38, %v15575_v50  ;;  %v2868_v24 = vadd.f32 %v15571_v40, %v2846_v35  ;;  %13525 = vmatpush3.bf16.msra.mxu0 %v14586_v63 }
 0x308   : > { %v15665_v59 = vmax.f32 %v3288_v45, %v3289_v44  ;;  %v3304_v15 = vmax.f32 %v3302_v53, %v3303_v46  ;;  %v3703_v61 = vpack.c.bf16 %v3297_v14, %v3297_v14  ;;  %v15673_v37 = vunpack.c.l.b16 %v3711_v41 }
 0x309   : > { %v3829_v23 = vunpack.c.l.b16 %v3701_v57  ;;  %v3028_v49 = vrot.slane %v3014_v17, %v15575_v50  ;;  %v3029_v20 = vcombine.high %v3021_v52, %v3021_v52  ;;  %v3417_v58 = vsel %vm18024_vm6, %v3021_v52, -inf }
 0x30a   : > { %v3702_v2 = vpack.c.bf16 %v15665_v59, %v15665_v59  ;;  %v3704_v25 = vpack.c.bf16 %v3304_v15, %v3304_v15  ;;  %v3418_v60 = vrot.slane %v3417_v58, 4  ;;  %v15682_v32 = vunpack.c.l.b16 %v3703_v61 }
 0x30b   : > { %v15678_v16 = vsel %vm3895_vm10, %v3829_v23, %v3894_v30  ;;  %v3030_v5 = vcombine.high %v3028_v49, %v3028_v49  ;;  %v3424_v48 = vsel %vm18024_vm6, %v3029_v20, -inf  ;;  %v3431_v28 = vsel %vm18024_vm6, %v3028_v49, -inf  ;;  %v14587_v30 = vld [vmem:[%s18045_s8 + $0x28] sm:$0xff]  }
 0x30c   : > { %v3832_v36 = vunpack.c.l.b16 %v3704_v25  ;;  %v3419_v1 = vmax.f32 %v3417_v58, %v3418_v60  ;;  %v3425_v41 = vrot.slane %v3424_v48, 4  ;;  %v3432_v45 = vrot.slane %v3431_v28, 4  ;;  %13526 = vmatprep.subr.bf16.mxu0 %v14587_v30 }
 0x30d   : > { %v3438_v51 = vsel %vm18024_vm6, %v3030_v5, -inf  ;;  %v2884_v53 = vmax.f32 %v2868_v24, 0.0  ;;  %v2871_v62 = vadd.f32 %v15571_v40, %v2849_v19  ;;  %13527 = vmatpush3.bf16.msra.mxu0 %v14587_v30 }
 0x30e   : > { %v3902_v38 = vsel %vm3901_vm11, %v15617_v18, %v3832_v36  ;;  %v3420_v44 = vrot.slane %v3419_v1, 2  ;;  %v3426_v14 = vmax.f32 %v3424_v48, %v3425_v41  ;;  %v3439_v46 = vrot.slane %v3438_v51, 4 }
 0x30f   : > { %v15693_v35 = vsel %vm3889_vm7, %v15621_v29, %v3902_v38  ;;  %v3433_v57 = vmax.f32 %v3431_v28, %v3432_v45  ;;  %v2980_v17 = vcombine.high %v2884_v53, %v2884_v53  ;;  %v2987_v52 = vrot.slane %v2884_v53, %v15575_v50  ;;  %v14588_v29 = vld [vmem:[%s18045_s8 + $0x30] sm:$0xff]  }
 0x310   : > { %v3421_v19 = vmax.f32 %v3419_v1, %v3420_v44  ;;  %v3427_v59 = vrot.slane %v3426_v14, 2  ;;  %v3440_v15 = vmax.f32 %v3438_v51, %v3439_v46  ;;  %v2887_v61 = vmax.f32 %v2871_v62, 0.0  ;;  %13528 = vmatprep.subr.bf16.mxu0 %v14588_v29 }
 0x311   : > { %v3434_v24 = vrot.slane %v3433_v57, 2  ;;  %v2994_v18 = vrot.slane %v2980_v17, %v15575_v50  ;;  %v2995_v23 = vcombine.high %v2987_v52, %v2987_v52  ;;  %v3361_v49 = vsel %vm18024_vm6, %v2987_v52, -inf  ;;  %13529 = vmatpush3.bf16.msra.mxu0 %v14588_v29 }
 0x312   : > { %v3422_v20 = vrot.slane %v3421_v19, 1  ;;  %v3428_v58 = vmax.f32 %v3426_v14, %v3427_v59  ;;  %v3441_v63 = vrot.slane %v3440_v15, 2  ;;  %v3362_v25 = vrot.slane %v3361_v49, 4 }
 0x313   : > { %v3435_v60 = vmax.f32 %v3433_v57, %v3434_v24  ;;  %v2996_v5 = vcombine.high %v2994_v18, %v2994_v18  ;;  %v3368_v48 = vsel %vm18024_vm6, %v2995_v23, -inf  ;;  %v3375_v28 = vsel %vm18024_vm6, %v2994_v18, -inf }
 0x314   : > { %v3423_v36 = vmax.f32 %v3421_v19, %v3422_v20  ;;  %v3429_v1 = vrot.slane %v3428_v58, 1  ;;  %v3442_v41 = vmax.f32 %v3440_v15, %v3441_v63  ;;  %v3363_v45 = vmax.f32 %v3361_v49, %v3362_v25 }
 0x315   : > { %v3436_v51 = vrot.slane %v3435_v60, 1  ;;  %v3369_v53 = vrot.slane %v3368_v48, 4  ;;  %v3376_v62 = vrot.slane %v3375_v28, 4  ;;  %v3382_v30 = vsel %vm18024_vm6, %v2996_v5, -inf }
 0x316   : > { %v3430_v38 = vmax.f32 %v3428_v58, %v3429_v1  ;;  %v3443_v44 = vrot.slane %v3442_v41, 1  ;;  %v3721_v14 = vpack.c.bf16 %v3423_v36, %v3423_v36  ;;  %v3364_v46 = vrot.slane %v3363_v45, 2 }
 0x317   : > { %v3437_v57 = vmax.f32 %v3435_v60, %v3436_v51  ;;  %v3370_v17 = vmax.f32 %v3368_v48, %v3369_v53  ;;  %v3377_v52 = vmax.f32 %v3375_v28, %v3376_v62  ;;  %v3383_v59 = vrot.slane %v3382_v30, 4  ;;  %v14589_v60 = vld [vmem:[%s18045_s8 + $0x38] sm:$0xff]  }
 0x318   : > { %v15704_v24 = vunpack.c.l.b16 %v3702_v2  ;;  %v3444_v19 = vmax.f32 %v3442_v41, %v3443_v44  ;;  %v3722_v18 = vpack.c.bf16 %v3430_v38, %v3430_v38  ;;  %v3365_v15 = vmax.f32 %v3363_v45, %v3364_v46  ;;  %13530 = vmatprep.subr.bf16.mxu0 %v14589_v60 }
 0x319   : > { %v3723_v23 = vpack.c.bf16 %v3437_v57, %v3437_v57  ;;  %v3371_v49 = vrot.slane %v3370_v17, 2  ;;  %v3378_v29 = vrot.slane %v3377_v52, 2  ;;  %v3384_v20 = vmax.f32 %v3382_v30, %v3383_v59  ;;  %13531 = vmatpush3.bf16.msra.mxu0 %v14589_v60 }
 0x31a   : > { %v3724_v63 = vpack.c.bf16 %v3444_v19, %v3444_v19  ;;  %v15706_v25 = vunpack.c.l.b16 %v3721_v14  ;;  %v3366_v58 = vrot.slane %v3365_v15, 1  ;;  %v3031_v5 = vcombine.high %v2887_v61, %v2887_v61 }
 0x31b   : > { %v15711_v48 = vunpack.c.l.b16 %v3722_v18  ;;  %v3372_v2 = vmax.f32 %v3370_v17, %v3371_v49  ;;  %v3379_v28 = vmax.f32 %v3377_v52, %v3378_v29  ;;  %v3385_v36 = vrot.slane %v3384_v20, 2 }
 0x31c   : > { %v15713_v1 = vunpack.c.l.b16 %v3723_v23  ;;  %v3367_v41 = vmax.f32 %v3365_v15, %v3366_v58  ;;  %v3038_v45 = vrot.slane %v2887_v61, %v15575_v50  ;;  %v3045_v51 = vrot.slane %v3031_v5, %v15575_v50 }
 0x31d   : > { %v3373_v53 = vrot.slane %v3372_v2, 1  ;;  %v3380_v62 = vrot.slane %v3379_v28, 1  ;;  %v3386_v30 = vmax.f32 %v3384_v20, %v3385_v36  ;;  %v2847_v38 = vmax.f32 %v15548_v4, %v15600_v55 }
 0x31e   : > { %v3713_v44 = vpack.c.bf16 %v3367_v41, %v3367_v41  ;;  %v3046_v14 = vcombine.high %v3038_v45, %v3038_v45  ;;  %v3047_v46 = vcombine.high %v3045_v51, %v3045_v51  ;;  %v3445_v57 = vsel %vm18024_vm6, %v3038_v45, -inf }
 0x31f   : > { %v3374_v17 = vmax.f32 %v3372_v2, %v3373_v53  ;;  %v3381_v52 = vmax.f32 %v3379_v28, %v3380_v62  ;;  %v3387_v59 = vrot.slane %v3386_v30, 1  ;;  %v3446_v19 = vrot.slane %v3445_v57, 4 }
 0x320   : > { %v3841_v61 = vunpack.c.l.b16 %v3713_v44  ;;  %v3452_v18 = vsel %vm18024_vm6, %v3046_v14, -inf  ;;  %v3459_v15 = vsel %vm18024_vm6, %v3045_v51, -inf  ;;  %v3466_v23 = vsel %vm18024_vm6, %v3047_v46, -inf }
 0x321   : > { %v3388_v49 = vmax.f32 %v3386_v30, %v3387_v59  ;;  %v3714_v29 = vpack.c.bf16 %v3374_v17, %v3374_v17  ;;  %v3715_v4 = vpack.c.bf16 %v3381_v52, %v3381_v52  ;;  %v3447_v55 = vmax.f32 %v3445_v57, %v3446_v19 }
 0x322   : > { %v3453_v20 = vrot.slane %v3452_v18, 4  ;;  %v3460_v58 = vrot.slane %v3459_v15, 4  ;;  %v3467_v5 = vrot.slane %v3466_v23, 4  ;;  %v2869_v60 = vadd.f32 %v15571_v40, %v2847_v38 }
 0x323   : > { %v3716_v2 = vpack.c.bf16 %v3388_v49, %v3388_v49  ;;  %v3842_v28 = vunpack.c.l.b16 %v3714_v29  ;;  %v3843_v36 = vunpack.c.l.b16 %v3715_v4  ;;  %v3448_v41 = vrot.slane %v3447_v55, 2 }
 0x324   : > { %v3454_v45 = vmax.f32 %v3452_v18, %v3453_v20  ;;  %v3461_v53 = vmax.f32 %v3459_v15, %v3460_v58  ;;  %v3468_v62 = vmax.f32 %v3466_v23, %v3467_v5  ;;  %v2885_v44 = vmax.f32 %v2869_v60, 0.0  ;;  %v15734_v15 = vld [vmem:[%s18045_s8] sm:$0xff]  }
 0x325   : > { %v3844_v51 = vunpack.c.l.b16 %v3716_v2  ;;  %v3909_v14 = vsel %vm3889_vm7, %v3842_v28, %v3841_v61  ;;  %v3449_v30 = vmax.f32 %v3447_v55, %v3448_v41  ;;  %v2852_v46 = vmax.f32 %v15550_v6, %v15606_v21  ;;  %18046 = vst [vmem:[#allocation3_spill] sm:$0xff] %v15734_v15  ;;  %13540 = vmatprep.subr.bf16.mxu0 %v15734_v15 }
 0x326   : > { %v3910_v57 = vsel %vm3891_vm8, %v3843_v36, %v3909_v14  ;;  %v3455_v17 = vrot.slane %v3454_v45, 2  ;;  %v3462_v52 = vrot.slane %v3461_v53, 2  ;;  %v3469_v38 = vrot.slane %v3468_v62, 2 }
 0x327   : > { %v15728_v59 = vunpack.c.l.b16 %v3724_v63  ;;  %v3450_v19 = vrot.slane %v3449_v30, 1  ;;  %v2997_v49 = vcombine.high %v2885_v44, %v2885_v44  ;;  %v3004_v18 = vrot.slane %v2885_v44, %v15575_v50 }
 0x328   : > { %v3456_v61 = vmax.f32 %v3454_v45, %v3455_v17  ;;  %v3463_v23 = vmax.f32 %v3461_v53, %v3462_v52  ;;  %v15736_v29 = vmax.f32 %v3468_v62, %v3469_v38  ;;  %v15739_v6 = vsel %vm3893_vm9, %v3844_v51, %v3910_v57 }
 0x329   : > { %v3451_v21 = vmax.f32 %v3449_v30, %v3450_v19  ;;  %v3011_v63 = vrot.slane %v2997_v49, %v15575_v50  ;;  %v3012_v4 = vcombine.high %v3004_v18, %v3004_v18  ;;  %v3389_v55 = vsel %vm18024_vm6, %v3004_v18, -inf }
 0x32a   : > { %v3457_v20 = vrot.slane %v3456_v61, 1  ;;  %v3464_v58 = vrot.slane %v3463_v23, 1  ;;  %v3390_v5 = vrot.slane %v3389_v55, 4  ;;  %v2874_v60 = vadd.f32 %v15571_v40, %v2852_v46 }
 0x32b   : > { %v3725_v2 = vpack.c.bf16 %v3451_v21, %v3451_v21  ;;  %v3013_v28 = vcombine.high %v3011_v63, %v3011_v63  ;;  %v3396_v36 = vsel %vm18024_vm6, %v3012_v4, -inf  ;;  %v3403_v41 = vsel %vm18024_vm6, %v3011_v63, -inf }
 0x32c   : > { %v3458_v45 = vmax.f32 %v3456_v61, %v3457_v20  ;;  %v3465_v53 = vmax.f32 %v3463_v23, %v3464_v58  ;;  %v3391_v44 = vmax.f32 %v3389_v55, %v3390_v5  ;;  %v3397_v14 = vrot.slane %v3396_v36, 4 }
 0x32d   : > { %v15748_v51 = vunpack.c.l.b16 %v3725_v2  ;;  %v3404_v30 = vrot.slane %v3403_v41, 4  ;;  %v3410_v57 = vsel %vm18024_vm6, %v3013_v28, -inf  ;;  %v2890_v18 = vmax.f32 %v2874_v60, 0.0 }
 0x32e   : > { %v3726_v17 = vpack.c.bf16 %v3458_v45, %v3458_v45  ;;  %v3727_v52 = vpack.c.bf16 %v3465_v53, %v3465_v53  ;;  %v3392_v46 = vrot.slane %v3391_v44, 2  ;;  %v3411_v38 = vrot.slane %v3410_v57, 4 }
 0x32f   : > { %v3398_v19 = vmax.f32 %v3396_v36, %v3397_v14  ;;  %v3405_v49 = vmax.f32 %v3403_v41, %v3404_v30  ;;  %v2850_v61 = vmax.f32 %v15552_v7, %v15608_v31  ;;  %v3082_v58 = vcombine.high %v2890_v18, %v2890_v18 }
 0x330   : > { %v15753_v23 = vunpack.c.l.b16 %v3726_v17  ;;  %v15755_v21 = vunpack.c.l.b16 %v3727_v52  ;;  %v3393_v63 = vmax.f32 %v3391_v44, %v3392_v46  ;;  %v3412_v4 = vmax.f32 %v3410_v57, %v3411_v38 }
 0x331   : > { %v3399_v55 = vrot.slane %v3398_v19, 2  ;;  %v3406_v20 = vrot.slane %v3405_v49, 2  ;;  %v3089_v5 = vrot.slane %v2890_v18, %v15575_v50  ;;  %v2872_v36 = vadd.f32 %v15571_v40, %v2850_v61 }
 0x332   : > { %v3394_v2 = vrot.slane %v3393_v63, 1  ;;  %v3413_v28 = vrot.slane %v3412_v4, 2  ;;  %v3096_v31 = vrot.slane %v3082_v58, %v15575_v50 }
 0x333   : > { %v3400_v41 = vmax.f32 %v3398_v19, %v3399_v55  ;;  %v3407_v7 = vmax.f32 %v3405_v49, %v3406_v20  ;;  %v3097_v45 = vcombine.high %v3089_v5, %v3089_v5  ;;  %v3529_v14 = vsel %vm18024_vm6, %v3089_v5, -inf }
 0x334   : > { %v3395_v53 = vmax.f32 %v3393_v63, %v3394_v2  ;;  %v3414_v44 = vmax.f32 %v3412_v4, %v3413_v28  ;;  %v2888_v30 = vmax.f32 %v2872_v36, 0.0  ;;  %v3098_v52 = vcombine.high %v3096_v31, %v3096_v31 }
 0x335   : > { %v3401_v57 = vrot.slane %v3400_v41, 1  ;;  %v3408_v17 = vrot.slane %v3407_v7, 1  ;;  %v3530_v46 = vrot.slane %v3529_v14, 4  ;;  %v3536_v61 = vsel %vm18024_vm6, %v3097_v45, -inf }
 0x336   : > { %v3415_v38 = vrot.slane %v3414_v44, 1  ;;  %v3717_v18 = vpack.c.bf16 %v3395_v53, %v3395_v53  ;;  %v3543_v19 = vsel %vm18024_vm6, %v3096_v31, -inf  ;;  %v3537_v63 = vrot.slane %v3536_v61, 4 }
 0x337   : > { %v3402_v49 = vmax.f32 %v3400_v41, %v3401_v57  ;;  %v3409_v55 = vmax.f32 %v3407_v7, %v3408_v17  ;;  %v3531_v20 = vmax.f32 %v3529_v14, %v3530_v46  ;;  %v3544_v2 = vrot.slane %v3543_v19, 4 }
 0x338   : > { %v3416_v4 = vmax.f32 %v3414_v44, %v3415_v38  ;;  %v3845_v58 = vunpack.c.l.b16 %v3717_v18  ;;  %v3550_v5 = vsel %vm18024_vm6, %v3098_v52, -inf  ;;  %v3538_v60 = vmax.f32 %v3536_v61, %v3537_v63 }
 0x339   : > { %v3718_v28 = vpack.c.bf16 %v3402_v49, %v3402_v49  ;;  %v3719_v36 = vpack.c.bf16 %v3409_v55, %v3409_v55  ;;  %v3532_v12 = vrot.slane %v3531_v20, 2  ;;  %v3545_v45 = vmax.f32 %v3543_v19, %v3544_v2 }
 0x33a   : > { %v3720_v62 = vpack.c.bf16 %v3416_v4, %v3416_v4  ;;  %v3912_v53 = vsel %vm3895_vm10, %v3845_v58, %v15739_v6  ;;  %v3551_v15 = vrot.slane %v3550_v5, 4  ;;  %v3539_v14 = vrot.slane %v3538_v60, 2 }
 0x33b   : > { %v3846_v31 = vunpack.c.l.b16 %v3718_v28  ;;  %v3847_v41 = vunpack.c.l.b16 %v3719_v36  ;;  %v3533_v7 = vmax.f32 %v3531_v20, %v3532_v12  ;;  %v3546_v44 = vrot.slane %v3545_v45, 2 }
 0x33c   : > { %v3848_v57 = vunpack.c.l.b16 %v3720_v62  ;;  %v3552_v17 = vmax.f32 %v3550_v5, %v3551_v15  ;;  %v3048_v46 = vcombine.high %v2888_v30, %v2888_v30  ;;  %v3540_v18 = vmax.f32 %v3538_v60, %v3539_v14 }
 0x33d   : > { %v3913_v52 = vsel %vm3897_vm12, %v3846_v31, %v3912_v53  ;;  %v3534_v38 = vrot.slane %v3533_v7, 1  ;;  %v3055_v61 = vrot.slane %v2888_v30, %v15575_v50  ;;  %v3547_v19 = vmax.f32 %v3545_v45, %v3546_v44 }
 0x33e   : > { %v15771_v49 = vsel %vm3899_vm13, %v3847_v41, %v3913_v52  ;;  %v3915_v6 = vsel %vm3901_vm11, %v15706_v25, %v3848_v57  ;;  %v3553_v55 = vrot.slane %v3552_v17, 2  ;;  %v3541_v15 = vrot.slane %v3540_v18, 1 }
 0x33f   : > { %v3916_v12 = vsel %vm3889_vm7, %v15711_v48, %v3915_v6  ;;  %v3535_v62 = vmax.f32 %v3533_v7, %v3534_v38  ;;  %v3062_v20 = vrot.slane %v3048_v46, %v15575_v50  ;;  %v3548_v63 = vrot.slane %v3547_v19, 1 }
 0x340   : > { %v3917_v60 = vsel %vm3891_vm8, %v15713_v1, %v3916_v12  ;;  %v3554_v30 = vmax.f32 %v3552_v17, %v3553_v55  ;;  %v3063_v4 = vcombine.high %v3055_v61, %v3055_v61  ;;  %v3542_v2 = vmax.f32 %v3540_v18, %v3541_v15 }
 0x341   : > { %v3918_v58 = vsel %vm3893_vm9, %v15728_v59, %v3917_v60  ;;  %v3737_v25 = vpack.c.bf16 %v3535_v62, %v3535_v62  ;;  %v3064_v5 = vcombine.high %v3062_v20, %v3062_v20  ;;  %v3549_v48 = vmax.f32 %v3547_v19, %v3548_v63 }
 0x342   : > { %v3919_v28 = vsel %vm3895_vm10, %v15748_v51, %v3918_v58  ;;  %v3555_v36 = vrot.slane %v3554_v30, 1  ;;  %v3473_v53 = vsel %vm18024_vm6, %v3055_v61, -inf  ;;  %v18047_v45 = vrot.slane %v15736_v29, 1 }
 0x343   : > { %v3920_v31 = vsel %vm3897_vm12, %v15753_v23, %v3919_v28  ;;  %v3738_v41 = vpack.c.bf16 %v3542_v2, %v3542_v2  ;;  %v3474_v59 = vrot.slane %v3473_v53, 4  ;;  %v3739_v51 = vpack.c.bf16 %v3549_v48, %v3549_v48 }
 0x344   : > { %v15788_v1 = vmax.f32 %v15736_v29, %v18047_v45  ;;  %v15794_v7 = vsel %vm3899_vm13, %v15755_v21, %v3920_v31  ;;  %v3556_v14 = vmax.f32 %v3554_v30, %v3555_v36  ;;  %v3480_v57 = vsel %vm18024_vm6, %v3063_v4, -inf }
 0x345   : > { %v3950_v44 = vpack.c.b16 %v15794_v7, %v15771_v49  ;;  %v15799_v17 = vunpack.c.l.b16 %v3737_v25  ;;  %v3475_v29 = vmax.f32 %v3473_v53, %v3474_v59  ;;  %v3481_v46 = vrot.slane %v3480_v57, 4 }
 0x346   : > { %v3740_v52 = vpack.c.bf16 %v3556_v14, %v3556_v14  ;;  %v15801_v38 = vunpack.c.l.b16 %v3738_v41  ;;  %v3487_v23 = vsel %vm18024_vm6, %v3062_v20, -inf  ;;  %v3494_v18 = vsel %vm18024_vm6, %v3064_v5, -inf }
 0x347   : > { %v3476_v21 = vrot.slane %v3475_v29, 2  ;;  %v3482_v61 = vmax.f32 %v3480_v57, %v3481_v46  ;;  %v3488_v6 = vrot.slane %v3487_v23, 4  ;;  %v3495_v19 = vrot.slane %v3494_v18, 4 }
 0x348   : > { %v15805_v55 = vunpack.c.l.b16 %v3739_v51  ;;  %v18048_v12 = vmax.f32 %v15554_v9, %v15610_v39  ;;  %v2851_v15 = vmax.f32 %v15556_v0, %v15612_v47  ;;  %v2856_v60 = vmax.f32 %v15558_v10, %v15615_v8  ;;  %v14599_v39 = vld [vmem:[%s18049_s28 + $0x100] sm:$0xff]   ;;  %v14601_v8 = vld [vmem:[%s18049_s28 + $0x108] sm:$0xff]  }
 0x349   : > { %v3477_v20 = vmax.f32 %v3475_v29, %v3476_v21  ;;  %v3483_v63 = vrot.slane %v3482_v61, 2  ;;  %v3489_v30 = vmax.f32 %v3487_v23, %v3488_v6  ;;  %v3496_v4 = vmax.f32 %v3494_v18, %v3495_v19  ;;  %13620 = vmatprep.subr.bf16.mxu1 %v14599_v39 }
 0x34a   : > { %v2875_v62 = vadd.f32 %v15571_v40, %v18048_v12  ;;  %v15815_v58 = vunpack.c.l.b16 %v3740_v52  ;;  %v2873_v25 = vadd.f32 %v15571_v40, %v2851_v15  ;;  %v2854_v9 = vmax.f32 %v15560_v43, %v15619_v26  ;;  %13621 = vmatpush3.bf16.msra.mxu1 %v14599_v39 }
 0x34b   : > { %v3478_v0 = vrot.slane %v3477_v20, 1  ;;  %v3484_v47 = vmax.f32 %v3482_v61, %v3483_v63  ;;  %v3490_v5 = vrot.slane %v3489_v30, 2  ;;  %v3497_v10 = vrot.slane %v3496_v4, 2  ;;  %13622 = vmatprep.subr.bf16.mxu1 %v14601_v8 }
 0x34c   : > { %v2891_v2 = vmax.f32 %v2875_v62, 0.0  ;;  %v2889_v36 = vmax.f32 %v2873_v25, 0.0  ;;  %v2878_v53 = vadd.f32 %v15571_v40, %v2856_v60 }
 0x34d   : > { %v3479_v45 = vmax.f32 %v3477_v20, %v3478_v0  ;;  %v3485_v31 = vrot.slane %v3484_v47, 1  ;;  %v3491_v41 = vmax.f32 %v3489_v30, %v3490_v5  ;;  %v3498_v59 = vmax.f32 %v3496_v4, %v3497_v10 }
 0x34e   : > { %v3099_v28 = vcombine.high %v2891_v2, %v2891_v2  ;;  %v3106_v48 = vrot.slane %v2891_v2, %v15575_v50  ;;  %v3065_v29 = vcombine.high %v2889_v36, %v2889_v36  ;;  %13623 = vmatpush3.bf16.msra.mxu1 %v14601_v8  ;;  %v3072_v10 = vrot.slane %v2889_v36, %v15575_v50 }
 0x34f   : > { %v3486_v46 = vmax.f32 %v3484_v47, %v3485_v31  ;;  %v3492_v52 = vrot.slane %v3491_v41, 1  ;;  %v3499_v23 = vrot.slane %v3498_v59, 1  ;;  %v3729_v18 = vpack.c.bf16 %v3479_v45, %v3479_v45 }
 0x350   : > { %v3113_v14 = vrot.slane %v3099_v28, %v15575_v50  ;;  %v3114_v51 = vcombine.high %v3106_v48, %v3106_v48  ;;  %v3557_v57 = vsel %vm18024_vm6, %v3106_v48, -inf  ;;  %v2894_v8 = vmax.f32 %v2878_v53, 0.0 }
 0x351   : > { %v3558_v61 = vrot.slane %v3557_v57, 4  ;;  %v3493_v19 = vmax.f32 %v3491_v41, %v3492_v52  ;;  %v3500_v12 = vmax.f32 %v3498_v59, %v3499_v23  ;;  %v3730_v62 = vpack.c.bf16 %v3486_v46, %v3486_v46 }
 0x352   : > { %v3115_v21 = vcombine.high %v3113_v14, %v3113_v14  ;;  %v3564_v40 = vsel %vm18024_vm6, %v3114_v51, -inf  ;;  %v3571_v6 = vsel %vm18024_vm6, %v3113_v14, -inf  ;;  %v3857_v15 = vunpack.c.l.b16 %v3729_v18 }
 0x353   : > { %v3559_v60 = vmax.f32 %v3557_v57, %v3558_v61  ;;  %v3565_v20 = vrot.slane %v3564_v40, 4  ;;  %v3572_v63 = vrot.slane %v3571_v6, 4  ;;  %v3731_v4 = vpack.c.bf16 %v3493_v19, %v3493_v19 }
 0x354   : > { %v3578_v30 = vsel %vm18024_vm6, %v3115_v21, -inf  ;;  %v3732_v2 = vpack.c.bf16 %v3500_v12, %v3500_v12  ;;  %v3858_v25 = vunpack.c.l.b16 %v3730_v62  ;;  %v3079_v14 = vrot.slane %v3065_v29, %v15575_v50 }
 0x355   : > { %v3579_v39 = vrot.slane %v3578_v30, 4  ;;  %v3560_v0 = vrot.slane %v3559_v60, 2  ;;  %v3566_v47 = vmax.f32 %v3564_v40, %v3565_v20  ;;  %v3573_v5 = vmax.f32 %v3571_v6, %v3572_v63 }
 0x356   : > { %v3859_v28 = vunpack.c.l.b16 %v3731_v4  ;;  %v3922_v48 = vsel %vm3889_vm7, %v3858_v25, %v3857_v15  ;;  %v3860_v51 = vunpack.c.l.b16 %v3732_v2  ;;  %v3080_v46 = vcombine.high %v3072_v10, %v3072_v10 }
 0x357   : > { %v15835_v45 = vmax.f32 %v3578_v30, %v3579_v39  ;;  %v3561_v31 = vmax.f32 %v3559_v60, %v3560_v0  ;;  %v3567_v41 = vrot.slane %v3566_v47, 2  ;;  %v3574_v59 = vrot.slane %v3573_v5, 2 }
 0x358   : > { %v3923_v57 = vsel %vm3891_vm8, %v3859_v28, %v3922_v48  ;;  %v3501_v52 = vsel %vm18024_vm6, %v3072_v10, -inf  ;;  %v3081_v21 = vcombine.high %v3079_v14, %v3079_v14  ;;  %v3508_v53 = vsel %vm18024_vm6, %v3080_v46, -inf }
 0x359   : > { %v3562_v23 = vrot.slane %v3561_v31, 1  ;;  %v3568_v18 = vmax.f32 %v3566_v47, %v3567_v41  ;;  %v3575_v36 = vmax.f32 %v3573_v5, %v3574_v59  ;;  %v3581_v61 = vrot.slane %v15835_v45, 2 }
 0x35a   : > { %v3502_v40 = vrot.slane %v3501_v52, 4  ;;  %v3515_v6 = vsel %vm18024_vm6, %v3079_v14, -inf  ;;  %v3509_v62 = vrot.slane %v3508_v53, 4  ;;  %v3522_v20 = vsel %vm18024_vm6, %v3081_v21, -inf }
 0x35b   : > { %v3563_v19 = vmax.f32 %v3561_v31, %v3562_v23  ;;  %v3569_v12 = vrot.slane %v3568_v18, 1  ;;  %v3576_v29 = vrot.slane %v3575_v36, 1  ;;  %v3516_v60 = vrot.slane %v3515_v6, 4 }
 0x35c   : > { %v3503_v15 = vmax.f32 %v3501_v52, %v3502_v40  ;;  %v3150_v63 = vcombine.high %v2894_v8, %v2894_v8  ;;  %v3510_v25 = vmax.f32 %v3508_v53, %v3509_v62  ;;  %v3523_v47 = vrot.slane %v3522_v20, 4 }
 0x35d   : > { %v3570_v30 = vmax.f32 %v3568_v18, %v3569_v12  ;;  %v3577_v4 = vmax.f32 %v3575_v36, %v3576_v29  ;;  %v3741_v2 = vpack.c.bf16 %v3563_v19, %v3563_v19  ;;  %v3517_v0 = vmax.f32 %v3515_v6, %v3516_v60 }
 0x35e   : > { %v3504_v39 = vrot.slane %v3503_v15, 2  ;;  %v3157_v5 = vrot.slane %v2894_v8, %v15575_v50  ;;  %v3511_v48 = vrot.slane %v3510_v25, 2  ;;  %v3924_v31 = vsel %vm3893_vm9, %v3860_v51, %v3923_v57 }
 0x35f   : > { %v3742_v10 = vpack.c.bf16 %v3570_v30, %v3570_v30  ;;  %v3743_v28 = vpack.c.bf16 %v3577_v4, %v3577_v4  ;;  %v3518_v59 = vrot.slane %v3517_v0, 2  ;;  %v3524_v14 = vmax.f32 %v3522_v20, %v3523_v47 }
 0x360   : > { %v3505_v41 = vmax.f32 %v3503_v15, %v3504_v39  ;;  %v3164_v46 = vrot.slane %v3150_v63, %v15575_v50  ;;  %v15847_v52 = vunpack.c.l.b16 %v3741_v2  ;;  %v3512_v18 = vmax.f32 %v3510_v25, %v3511_v48 }
 0x361   : > { %v15849_v23 = vunpack.c.l.b16 %v3742_v10  ;;  %v3165_v36 = vcombine.high %v3157_v5, %v3157_v5  ;;  %v3519_v40 = vmax.f32 %v3517_v0, %v3518_v59  ;;  %v3525_v53 = vrot.slane %v3524_v14, 2 }
 0x362   : > { %v3506_v21 = vrot.slane %v3505_v41, 1  ;;  %v3166_v8 = vcombine.high %v3164_v46, %v3164_v46  ;;  %v3513_v6 = vrot.slane %v3512_v18, 1  ;;  %v3641_v19 = vsel %vm18024_vm6, %v3157_v5, -inf }
 0x363   : > { %v3648_v51 = vsel %vm18024_vm6, %v3165_v36, -inf  ;;  %v3655_v57 = vsel %vm18024_vm6, %v3164_v46, -inf  ;;  %v3520_v29 = vrot.slane %v3519_v40, 1  ;;  %v3526_v62 = vmax.f32 %v3524_v14, %v3525_v53 }
 0x364   : > { %v3507_v12 = vmax.f32 %v3505_v41, %v3506_v21  ;;  %v3642_v15 = vrot.slane %v3641_v19, 4  ;;  %v3514_v60 = vmax.f32 %v3512_v18, %v3513_v6  ;;  %v3649_v20 = vrot.slane %v3648_v51, 4 }
 0x365   : > { %v3656_v63 = vrot.slane %v3655_v57, 4  ;;  %v3662_v30 = vsel %vm18024_vm6, %v3166_v8, -inf  ;;  %v3521_v4 = vmax.f32 %v3519_v40, %v3520_v29  ;;  %v3527_v2 = vrot.slane %v3526_v62, 1 }
 0x366   : > { %v3733_v25 = vpack.c.bf16 %v3507_v12, %v3507_v12  ;;  %v3643_v39 = vmax.f32 %v3641_v19, %v3642_v15  ;;  %v3734_v0 = vpack.c.bf16 %v3514_v60, %v3514_v60  ;;  %v3650_v47 = vmax.f32 %v3648_v51, %v3649_v20 }
 0x367   : > { %v3657_v5 = vmax.f32 %v3655_v57, %v3656_v63  ;;  %v3663_v10 = vrot.slane %v3662_v30, 4  ;;  %v15855_v48 = vunpack.c.l.b16 %v3743_v28  ;;  %v3528_v59 = vmax.f32 %v3526_v62, %v3527_v2  ;;  %v14862_v28 = vld [vmem:[%s18044_s2] ss:$0 sm:$0xff] }
 0x368   : > { %v3861_v41 = vunpack.c.l.b16 %v3733_v25  ;;  %v3644_v46 = vrot.slane %v3643_v39, 2  ;;  %v3735_v14 = vpack.c.bf16 %v3521_v4, %v3521_v4  ;;  %v3651_v36 = vrot.slane %v3650_v47, 2 }
 0x369   : > { %v3658_v18 = vrot.slane %v3657_v5, 2  ;;  %v3664_v21 = vmax.f32 %v3662_v30, %v3663_v10  ;;  %v3736_v53 = vpack.c.bf16 %v3528_v59, %v3528_v59  ;;  %v15857_v6 = vunpack.c.l.b16 %v3734_v0 }
 0x36a   : > { %v15860_v40 = vsel %vm3895_vm10, %v3861_v41, %v3924_v31  ;;  %v3645_v8 = vmax.f32 %v3643_v39, %v3644_v46  ;;  %v3652_v19 = vmax.f32 %v3650_v47, %v3651_v36  ;;  %v2876_v12 = vadd.f32 %v14862_v28, %v2854_v9 }
 0x36b   : > { %v3659_v51 = vmax.f32 %v3657_v5, %v3658_v18  ;;  %v3665_v57 = vrot.slane %v3664_v21, 2  ;;  %v3864_v29 = vunpack.c.l.b16 %v3736_v53  ;;  %v2857_v15 = vmax.f32 %v15562_v11, %v15625_v33 }
 0x36c   : > { %v3646_v62 = vrot.slane %v3645_v8, 1  ;;  %v2855_v31 = vmax.f32 %v15564_v22, %v15631_v34  ;;  %v3653_v60 = vrot.slane %v3652_v19, 1  ;;  %v2892_v30 = vmax.f32 %v2876_v12, 0.0 }
 0x36d   : > { %v3660_v20 = vrot.slane %v3659_v51, 1  ;;  %v3666_v63 = vmax.f32 %v3664_v21, %v3665_v57  ;;  %v3928_v4 = vsel %vm3901_vm11, %v15799_v17, %v3864_v29  ;;  %v2879_v25 = vadd.f32 %v14862_v28, %v2857_v15 }
 0x36e   : > { %v3647_v2 = vmax.f32 %v3645_v8, %v3646_v62  ;;  %v2877_v39 = vadd.f32 %v14862_v28, %v2855_v31  ;;  %v15876_v43 = vsel %vm3889_vm7, %v15801_v38, %v3928_v4  ;;  %v3654_v26 = vmax.f32 %v3652_v19, %v3653_v60 }
 0x36f   : > { %v3661_v9 = vmax.f32 %v3659_v51, %v3660_v20  ;;  %v3667_v11 = vrot.slane %v3666_v63, 1  ;;  %v3116_v0 = vcombine.high %v2892_v30, %v2892_v30  ;;  %v3123_v22 = vrot.slane %v2892_v30, %v15575_v50 }
 0x370   : > { %v3753_v33 = vpack.c.bf16 %v3647_v2, %v3647_v2  ;;  %v2895_v34 = vmax.f32 %v2879_v25, 0.0  ;;  %v15879_v47 = vunpack.c.l.b16 %v3735_v14  ;;  %v3754_v10 = vpack.c.bf16 %v3654_v26, %v3654_v26 }
 0x371   : > { %v3668_v5 = vmax.f32 %v3666_v63, %v3667_v11  ;;  %v3755_v17 = vpack.c.bf16 %v3661_v9, %v3661_v9  ;;  %v3130_v59 = vrot.slane %v3116_v0, %v15575_v50  ;;  %v3131_v41 = vcombine.high %v3123_v22, %v3123_v22 }
 0x372   : > { %v3585_v46 = vsel %vm18024_vm6, %v3123_v22, -inf  ;;  %v15883_v38 = vmax.f32 %v2877_v39, 0.0  ;;  %v15885_v18 = vunpack.c.l.b16 %v3753_v33  ;;  %v15887_v21 = vunpack.c.l.b16 %v3754_v10 }
 0x373   : > { %v3756_v36 = vpack.c.bf16 %v3668_v5, %v3668_v5  ;;  %v3586_v53 = vrot.slane %v3585_v46, 4  ;;  %v3132_v8 = vcombine.high %v3130_v59, %v3130_v59  ;;  %v3592_v14 = vsel %vm18024_vm6, %v3131_v41, -inf }
 0x374   : > { %v3599_v19 = vsel %vm18024_vm6, %v3130_v59, -inf  ;;  %v3167_v51 = vcombine.high %v2895_v34, %v2895_v34  ;;  %v15891_v57 = vunpack.c.l.b16 %v3755_v17  ;;  %v3593_v12 = vrot.slane %v3592_v14, 4 }
 0x375   : > { %v3587_v28 = vmax.f32 %v3585_v46, %v3586_v53  ;;  %v3600_v29 = vrot.slane %v3599_v19, 4  ;;  %v15893_v62 = vunpack.c.l.b16 %v3756_v36  ;;  %v3606_v15 = vsel %vm18024_vm6, %v3132_v8, -inf }
 0x376   : > { %v3174_v31 = vrot.slane %v2895_v34, %v15575_v50  ;;  %v3181_v60 = vrot.slane %v3167_v51, %v15575_v50  ;;  %v3594_v63 = vmax.f32 %v3592_v14, %v3593_v12  ;;  %v3607_v4 = vrot.slane %v3606_v15, 4 }
 0x377   : > { %v3588_v20 = vrot.slane %v3587_v28, 2  ;;  %v3601_v30 = vmax.f32 %v3599_v19, %v3600_v29 }
 0x378   : > { %v3182_v2 = vcombine.high %v3174_v31, %v3174_v31  ;;  %v3183_v25 = vcombine.high %v3181_v60, %v3181_v60  ;;  %v3669_v39 = vsel %vm18024_vm6, %v3174_v31, -inf  ;;  %v3683_v26 = vsel %vm18024_vm6, %v3181_v60, -inf }
 0x379   : > { %v3589_v9 = vmax.f32 %v3587_v28, %v3588_v20  ;;  %v3595_v11 = vrot.slane %v3594_v63, 2  ;;  %v3602_v33 = vrot.slane %v3601_v30, 2  ;;  %v3608_v0 = vmax.f32 %v3606_v15, %v3607_v4 }
 0x37a   : > { %v3670_v22 = vrot.slane %v3669_v39, 4  ;;  %v3676_v5 = vsel %vm18024_vm6, %v3182_v2, -inf  ;;  %v3684_v34 = vrot.slane %v3683_v26, 4  ;;  %v3690_v10 = vsel %vm18024_vm6, %v3183_v25, -inf }
 0x37b   : > { %v3590_v17 = vrot.slane %v3589_v9, 1  ;;  %v3596_v59 = vmax.f32 %v3594_v63, %v3595_v11  ;;  %v3603_v41 = vmax.f32 %v3601_v30, %v3602_v33  ;;  %v3609_v46 = vrot.slane %v3608_v0, 2 }
 0x37c   : > { %v3671_v36 = vmax.f32 %v3669_v39, %v3670_v22  ;;  %v3677_v53 = vrot.slane %v3676_v5, 4  ;;  %v3685_v8 = vmax.f32 %v3683_v26, %v3684_v34  ;;  %v3691_v14 = vrot.slane %v3690_v10, 4 }
 0x37d   : > { %v3591_v19 = vmax.f32 %v3589_v9, %v3590_v17  ;;  %v3597_v51 = vrot.slane %v3596_v59, 1  ;;  %v3604_v28 = vrot.slane %v3603_v41, 1  ;;  %v3610_v12 = vmax.f32 %v3608_v0, %v3609_v46 }
 0x37e   : > { %v3672_v29 = vrot.slane %v3671_v36, 2  ;;  %v3678_v15 = vmax.f32 %v3676_v5, %v3677_v53  ;;  %v3686_v31 = vrot.slane %v3685_v8, 2  ;;  %v3133_v60 = vcombine.high %v15883_v38, %v15883_v38 }
 0x37f   : > { %v3598_v20 = vmax.f32 %v3596_v59, %v3597_v51  ;;  %v3605_v4 = vmax.f32 %v3603_v41, %v3604_v28  ;;  %v3611_v2 = vrot.slane %v3610_v12, 1  ;;  %v3745_v63 = vpack.c.bf16 %v3591_v19, %v3591_v19 }
 0x380   : > { %v3673_v30 = vmax.f32 %v3671_v36, %v3672_v29  ;;  %v3679_v25 = vrot.slane %v3678_v15, 2  ;;  %v3687_v39 = vmax.f32 %v3685_v8, %v3686_v31  ;;  %v15904_v11 = vmax.f32 %v3690_v10, %v3691_v14 }
 0x381   : > { %v3612_v26 = vmax.f32 %v3610_v12, %v3611_v2  ;;  %v3746_v9 = vpack.c.bf16 %v3598_v20, %v3598_v20  ;;  %v3747_v33 = vpack.c.bf16 %v3605_v4, %v3605_v4  ;;  %v3873_v22 = vunpack.c.l.b16 %v3745_v63 }
 0x382   : > { %v3674_v0 = vrot.slane %v3673_v30, 1  ;;  %v3680_v34 = vmax.f32 %v3678_v15, %v3679_v25  ;;  %v3688_v5 = vrot.slane %v3687_v39, 1  ;;  %v3140_v17 = vrot.slane %v15883_v38, %v15575_v50 }
 0x383   : > { %v3748_v46 = vpack.c.bf16 %v3612_v26, %v3612_v26  ;;  %v3874_v59 = vunpack.c.l.b16 %v3746_v9  ;;  %v3875_v41 = vunpack.c.l.b16 %v3747_v33  ;;  %v3147_v53 = vrot.slane %v3133_v60, %v15575_v50 }
 0x384   : > { %v3675_v36 = vmax.f32 %v3673_v30, %v3674_v0  ;;  %v3681_v19 = vrot.slane %v3680_v34, 1  ;;  %v3689_v8 = vmax.f32 %v3687_v39, %v3688_v5  ;;  %v3148_v10 = vcombine.high %v3140_v17, %v3140_v17 }
 0x385   : > { %v3876_v14 = vunpack.c.l.b16 %v3748_v46  ;;  %v3935_v51 = vsel %vm3889_vm7, %v3874_v59, %v3873_v22  ;;  %v3149_v28 = vcombine.high %v3147_v53, %v3147_v53  ;;  %v3613_v12 = vsel %vm18024_vm6, %v3140_v17, -inf }
 0x386   : > { %v3936_v29 = vsel %vm3891_vm8, %v3875_v41, %v3935_v51  ;;  %v3682_v15 = vmax.f32 %v3680_v34, %v3681_v19  ;;  %v3757_v31 = vpack.c.bf16 %v3675_v36, %v3675_v36  ;;  %v3759_v38 = vpack.c.bf16 %v3689_v8, %v3689_v8 }
 0x387   : > { %v3614_v20 = vrot.slane %v3613_v12, 4  ;;  %v3620_v4 = vsel %vm18024_vm6, %v3148_v10, -inf  ;;  %v3627_v60 = vsel %vm18024_vm6, %v3147_v53, -inf  ;;  %v3634_v2 = vsel %vm18024_vm6, %v3149_v28, -inf }
 0x388   : > { %v3693_v63 = vrot.slane %v15904_v11, 2  ;;  %v3758_v30 = vpack.c.bf16 %v3682_v15, %v3682_v15  ;;  %v15916_v25 = vunpack.c.l.b16 %v3757_v31  ;;  %v3621_v39 = vrot.slane %v3620_v4, 4 }
 0x389   : > { %v15918_v26 = vunpack.c.l.b16 %v3759_v38  ;;  %v3615_v9 = vmax.f32 %v3613_v12, %v3614_v20  ;;  %v3628_v33 = vrot.slane %v3627_v60, 4  ;;  %v3635_v22 = vrot.slane %v3634_v2, 4 }
 0x38a   : > { %v3622_v0 = vmax.f32 %v3620_v4, %v3621_v39  ;;  %v3937_v34 = vsel %vm3893_vm9, %v3876_v14, %v3936_v29  ;;  %v18050_v5 = vrot.slane %v15646_v3, 2  ;;  %v3898_v46 = vsel %vm3897_vm12, %v15704_v24, %v15678_v16 }
 0x38b   : > { %v3616_v59 = vrot.slane %v3615_v9, 2  ;;  %v3629_v41 = vmax.f32 %v3627_v60, %v3628_v33  ;;  %v3636_v53 = vmax.f32 %v3634_v2, %v3635_v22  ;;  %v3900_v36 = vsel %vm3899_vm13, %v15682_v32, %v3898_v46 }
 0x38c   : > { %v3358_v17 = vmax.f32 %v15646_v3, %v18050_v5  ;;  %v15929_v19 = vunpack.c.l.b16 %v3758_v30  ;;  %v3623_v8 = vrot.slane %v3622_v0, 2  ;;  %v3904_v14 = vsel %vm3891_vm8, %v15633_v42, %v15693_v35 }
 0x38d   : > { %v3617_v51 = vmax.f32 %v3615_v9, %v3616_v59  ;;  %v3630_v3 = vrot.slane %v3629_v41, 2  ;;  %v3637_v28 = vrot.slane %v3636_v53, 2  ;;  %v3905_v16 = vsel %vm3893_vm9, %v15636_v27, %v3904_v14 }
 0x38e   : > { %v3359_v10 = vrot.slane %v3358_v17, 1  ;;  %v3624_v24 = vmax.f32 %v3622_v0, %v3623_v8  ;;  %v3906_v29 = vsel %vm3895_vm10, %v15656_v54, %v3905_v16  ;;  %v12747_v32 = vpack.c.bf16 %v15788_v1, %v15788_v1 }
 0x38f   : > { %v3618_v15 = vrot.slane %v3617_v51, 1  ;;  %v3631_v31 = vmax.f32 %v3629_v41, %v3630_v3  ;;  %v3638_v38 = vmax.f32 %v3636_v53, %v3637_v28  ;;  %v3907_v42 = vsel %vm3897_vm12, %v15658_v56, %v3906_v29 }
 0x390   : > { %v3360_v12 = vmax.f32 %v3358_v17, %v3359_v10  ;;  %v3625_v35 = vrot.slane %v3624_v24, 1  ;;  %v3908_v20 = vsel %vm3899_vm13, %v15673_v37, %v3907_v42  ;;  %v15949_v27 = vsel %vm15050_vm2, 0, %v3950_v44 }
 0x391   : > { %v3619_v54 = vmax.f32 %v3617_v51, %v3618_v15  ;;  %v3632_v1 = vrot.slane %v3631_v31, 1  ;;  %v3639_v60 = vrot.slane %v3638_v38, 1  ;;  %v3948_v2 = vpack.c.b16 %v3908_v20, %v3900_v36  ;;  %v18051_v20 = vld [vmem:[#allocation3_spill] sm:$0xff] }
 0x392   : > { %v12746_v4 = vpack.c.bf16 %v3360_v12, %v3360_v12  ;;  %v3626_v30 = vmax.f32 %v3624_v24, %v3625_v35  ;;  %v15957_v37 = vsel %vm15050_vm2, %v12747_v32, 0  ;;  %v3994_v39 = vshrl.u32 %v15949_v27, 16 }
 0x393   : > { %v3633_v49 = vmax.f32 %v3631_v31, %v3632_v1  ;;  %v3640_v7 = vmax.f32 %v3638_v38, %v3639_v60  ;;  %v3749_v9 = vpack.c.bf16 %v3619_v54, %v3619_v54  ;;  %v15962_v44 = vsel %vm15050_vm2, 0, %v3948_v2 }
 0x394   : > { %v15953_v56 = vsel %vm15050_vm2, %v12746_v4, 0  ;;  %v3750_v33 = vpack.c.bf16 %v3626_v30, %v3626_v30  ;;  %v3982_v22 = vshrl.u32 %v15962_v44, 16  ;;  %v3984_v0 = vshll.u32 %v15962_v44, 16 }
 0x395   : > { %v3989_v5 = vshll.u32 %v15953_v56, 16  ;;  %v3751_v17 = vpack.c.bf16 %v3633_v49, %v3633_v49  ;;  %v3752_v46 = vpack.c.bf16 %v3640_v7, %v3640_v7  ;;  %v3877_v59 = vunpack.c.l.b16 %v3749_v9 }
 0x396   : > { %v3996_v41 = vshll.u32 %v15949_v27, 16  ;;  %v3878_v53 = vunpack.c.l.b16 %v3750_v33  ;;  %v3986_v36 = vrot.slane %v3984_v0, 1  ;;  %v4001_v10 = vshll.u32 %v15957_v37, 16 }
 0x397   : > { %v3991_v8 = vrot.slane %v3989_v5, 1  ;;  %v3879_v14 = vunpack.c.l.b16 %v3751_v17  ;;  %v3880_v51 = vunpack.c.l.b16 %v3752_v46  ;;  %v3938_v3 = vsel %vm3895_vm10, %v3877_v59, %v3937_v34 }
 0x398   : > { %v3998_v28 = vrot.slane %v3996_v41, 1  ;;  %v3987_v16 = vor.u32 %v3986_v36, %v3982_v22  ;;  %v4003_v24 = vrot.slane %v4001_v10, 1  ;;  %v3582_v12 = vmax.f32 %v15835_v45, %v3581_v61 }
 0x399   : > { %v3926_v29 = vsel %vm3897_vm12, %v15857_v6, %v15860_v40  ;;  %v3941_v32 = vsel %vm3901_vm11, %v15885_v18, %v3880_v51  ;;  %v3930_v34 = vsel %vm3891_vm8, %v15805_v55, %v15876_v43  ;;  %v14591_v40 = vld [vmem:[%s18045_s8 + $0x8] sm:$0xff]   ;;  %v3694_v43 = vmax.f32 %v15904_v11, %v3693_v63 }
 0x39a   : > { %v3999_v15 = vor.u32 %v3998_v28, %v3994_v39  ;;  %v3927_v31 = vsel %vm3899_vm13, %v15879_v47, %v3926_v29  ;;  %v3942_v38 = vsel %vm3889_vm7, %v15887_v21, %v3941_v32  ;;  %v3992_v45 = vsel %vm972_vm3, %v3987_v16, %v3991_v8  ;;  %v14594_v16 = vld [vmem:[%s18045_s8 + $0x40] sm:$0xff]  }
 0x39b   : > { %v3583_v61 = vrot.slane %v3582_v12, 1  ;;  %v3931_v6 = vsel %vm3893_vm9, %v15815_v58, %v3930_v34  ;;  %13532 = vmatprep.mubr.msk.bf16.mxu0 %vm4062_vm14, %v3992_v45  ;;  %v3939_v18 = vsel %vm3897_vm12, %v3878_v53, %v3938_v3  ;;  %v3943_v35 = vsel %vm3891_vm8, %v15891_v57, %v3942_v38  ;;  %v14592_v57 = vld [vmem:[%s18045_s8 + $0x10] sm:$0xff]   ;;  %v14600_v38 = vld [vmem:[%s18049_s28 + $0x48] sm:$0xff]  }
 0x39c   : > { %v4004_v47 = vsel %vm972_vm3, %v3999_v15, %v4003_v24  ;;  %v3932_v55 = vsel %vm3895_vm10, %v15847_v52, %v3931_v6  ;;  %v3940_v42 = vsel %vm3899_vm13, %v3879_v14, %v3939_v18  ;;  %v3695_v4 = vrot.slane %v3694_v43, 1  ;;  %v14596_v34 = vld [vmem:[%s18045_s8 + $0x50] sm:$0xff]   ;;  %v14604_v6 = vld [vmem:[%s18049_s28 + $0x58] sm:$0xff]   ;;  %v14609_v18 = vld [vmem:[%s18049_s28 + $0x128] sm:$0xff]  }
 0x39d   : > { %13533 = vmatmul.mubr.msk.bf16.vlgmr.msra.gmra.mrb[16].mxu0 %vm4062_vm14, %v4004_v47  ;;  %v3584_v58 = vmax.f32 %v3582_v12, %v3583_v61  ;;  %v3933_v21 = vsel %vm3897_vm12, %v15849_v23, %v3932_v55  ;;  %v3944_v11 = vsel %vm3893_vm9, %v15893_v62, %v3943_v35  ;;  %v4245_v63 = vrot.slane %v15962_v44, 1  ;;  %v14602_v45 = vld [vmem:[%s18049_s28 + $0x50] sm:$0xff]   ;;  %v14606_v47 = vld [vmem:[%s18049_s28 + $0x60] sm:$0xff]   ;;  %v14613_v35 = vld [vmem:[%s18049_s28 + $0x138] sm:$0xff]  }
 0x39e   : > { %v3934_v52 = vsel %vm3899_vm13, %v15855_v48, %v3933_v21  ;;  %13541 = vmatpush3.bf16.msra.mxu0 %v18051_v20  ;;  %v3945_v23 = vsel %vm3895_vm10, %v15916_v25, %v3944_v11  ;;  %v4246_v48 = vrot.slane %v15953_v56, 1  ;;  %v3696_v60 = vmax.f32 %v3694_v43, %v3695_v4  ;;  %v14603_v61 = vld [vmem:[%s18049_s28 + $0x110] sm:$0xff]   ;;  %v14607_v55 = vld [vmem:[%s18049_s28 + $0x120] sm:$0xff]   ;;  %v14608_v43 = vld [vmem:[%s18049_s28 + $0x68] sm:$0xff]  }
 0x39f   : > { %v3952_v54 = vpack.c.b16 %v3934_v52, %v3927_v31  ;;  %v12748_v1 = vpack.c.bf16 %v3584_v58, %v3584_v58  ;;  %13542 = vmatprep.subr.bf16.mxu0 %v14591_v40  ;;  %v3946_v2 = vsel %vm3897_vm12, %v15929_v19, %v3945_v23  ;;  %v4248_v62 = vrot.slane %v15949_v27, 1  ;;  %v14595_v31 = vld [vmem:[%s18045_s8 + $0x48] sm:$0xff]   ;;  %13624 = vmatprep.subr.bf16.mxu1 %v14603_v61  ;;  %v14610_v58 = vld [vmem:[%s18049_s28 + $0x70] sm:$0xff]   ;;  %v16109_v52 = vld [vmem:[%s18049_s28] sm:$0xff]  }
 0x3a0   : > { %v4249_v30 = vrot.slane %v15957_v37, 1  ;;  %v3947_v49 = vsel %vm3899_vm13, %v15918_v26, %v3946_v2  ;;  %v4247_v7 = vsel %vm1381_vm5, %v4245_v63, %v4246_v48  ;;  %v12749_v19 = vpack.c.bf16 %v3696_v60, %v3696_v60  ;;  %v14593_v37 = vld [vmem:[%s18045_s8 + $0x18] sm:$0xff]   ;;  %13625 = vmatpush3.bf16.msra.mxu1 %v14603_v61  ;;  %v14611_v21 = vld [vmem:[%s18049_s28 + $0x130] sm:$0xff]   ;;  %v16114_v20 = vld [vmem:[%s18049_s28 + $0xc0] sm:$0xff]  }
 0x3a1   : > { %v3966_v39 = vsel %vm15050_vm2, 0, %v3952_v54  ;;  %v3970_v25 = vsel %vm15050_vm2, %v12748_v1, 0  ;;  %v3954_v33 = vpack.c.b16 %v3947_v49, %v3940_v42  ;;  %v14612_v42 = vld [vmem:[%s18049_s28 + $0x78] sm:$0xff]   ;;  %v11961_v4 = vld [vmem:[%s18052_s4] ss:$0 sm:$0xff]  ;;  %s17957_s4 = scalar_lea.vmem %s18011_s27, %s18089_s5 }
 0x3a2   : > { %v4008_v56 = vshll.u32 %v3966_v39, 16  ;;  %v4013_v9 = vshll.u32 %v3970_v25, 16  ;;  %13543 = vmatpush3.bf16.msra.mxu0 %v14591_v40  ;;  %v4250_v22 = vsel %vm1381_vm5, %v4248_v62, %v4249_v30  ;;  %v4251_v0 = vrot.slane %v3966_v39, 1  ;;  %v14605_v40 = vld [vmem:[%s18049_s28 + $0x118] sm:$0xff]  }
 0x3a3   : > { %13544 = vmatprep.subr.bf16.mxu0 %v14592_v57  ;;  %v4252_v5 = vrot.slane %v3970_v25, 1  ;;  %v4006_v17 = vshrl.u32 %v3966_v39, 16  ;;  %v3967_v26 = vsel %vm15050_vm2, 0, %v3954_v33  ;;  %v3971_v41 = vsel %vm15050_vm2, %v12749_v19, 0  ;;  %13626 = vmatprep.subr.bf16.mxu1 %v14605_v40 }
 0x3a4   : > { %v4010_v46 = vrot.slane %v4008_v56, 1  ;;  %v4015_v59 = vrot.slane %v4013_v9, 1  ;;  %v4020_v53 = vshll.u32 %v3967_v26, 16  ;;  %v4025_v10 = vshll.u32 %v3971_v41, 16  ;;  %13627 = vmatpush3.bf16.msra.mxu1 %v14605_v40 }
 0x3a5   : > { %v4253_v36 = vsel %vm1381_vm5, %v4251_v0, %v4252_v5  ;;  %v4254_v14 = vrot.slane %v3967_v26, 1  ;;  %v4255_v51 = vrot.slane %v3971_v41, 1  ;;  %v4018_v3 = vshrl.u32 %v3967_v26, 16  ;;  %13628 = vmatprep.subr.bf16.mxu1 %v14607_v55 }
 0x3a6   : > { %v4011_v8 = vor.u32 %v4010_v46, %v4006_v17  ;;  %13545 = vmatpush3.bf16.msra.mxu0 %v14592_v57  ;;  %v4022_v28 = vrot.slane %v4020_v53, 1  ;;  %v4027_v32 = vrot.slane %v4025_v10, 1  ;;  %vm5916_vm11 = vsmask.f32 7440 }
 0x3a7   : > { %13546 = vmatprep.subr.bf16.mxu0 %v14593_v37  ;;  %v4256_v12 = vsel %vm1381_vm5, %v4254_v14, %v4255_v51 }
 0x3a8   : > { %v4016_v24 = vsel %vm972_vm3, %v4011_v8, %v4015_v59  ;;  %v4023_v29 = vor.u32 %v4022_v28, %v4018_v3  ;;  %13629 = vmatpush3.bf16.msra.mxu1 %v14607_v55 }
 0x3a9   : > { %13536 = vmatprep.mubr.msk.bf16.mxu0 %vm4062_vm14, %v4016_v24  ;;  %13630 = vmatprep.subr.bf16.mxu1 %v14609_v18 }
 0x3aa   : > { %13547 = vmatpush3.bf16.msra.mxu0 %v14593_v37  ;;  %v4028_v15 = vsel %vm972_vm3, %v4023_v29, %v4027_v32 }
 0x3ab   : > { %13556 = vmatprep.subr.bf16.mxu0 %v14594_v16  ;;  %13537 = vmatmul.mubr.msk.bf16.gmra.mrb[20].mxu0 %vm4062_vm14, %v4028_v15 }
 0x3ac   : > { %13548 = vmatprep.mubr.msk.bf16.mxu0 %vm4062_vm14, %v15962_v44  ;;  %v14597_v44 = vld [vmem:[%s18045_s8 + $0x58] sm:$0xff]   ;;  %13631 = vmatpush3.bf16.msra.mxu1 %v14609_v18 }
 0x3ad   : > { %13632 = vmatprep.subr.bf16.mxu1 %v14611_v21 }
 0x3b0   : > { %13633 = vmatpush3.bf16.msra.mxu1 %v14611_v21 }
 0x3b1   : > { %13634 = vmatprep.subr.bf16.mxu1 %v14613_v35 }
 0x3b3   : > { %13549 = vmatmul.mubr.msk.bf16.vlgmr.msra.gmra.mrb[16].mxu0 %vm4062_vm14, %v15949_v27  ;;  %v14598_v27 = vld [vmem:[%s18049_s28 + $0x40] sm:$0xff]  }
 0x3b4   : > { %13552 = vmatprep.mubr.msk.bf16.mxu0 %vm4062_vm14, %v3966_v39  ;;  %13557 = vmatpush3.bf16.msra.mxu0 %v14594_v16 }
 0x3b5   : > { %13558 = vmatprep.subr.bf16.mxu0 %v14595_v31  ;;  %13635 = vmatpush3.bf16.msra.mxu1 %v14613_v35 }
 0x3b6   : > { %13644 = vmatprep.subr.bf16.mxu1 %v16114_v20 }
 0x3b8   : > { %13559 = vmatpush3.bf16.msra.mxu0 %v14595_v31 }
 0x3b9   : > { %13560 = vmatprep.subr.bf16.mxu0 %v14596_v34 }
 0x3bb   : > { %13553 = vmatmul.mubr.msk.bf16.gmra.mrb[20].mxu0 %vm4062_vm14, %v3967_v26 }
 0x3bc   : > { %13561 = vmatpush3.bf16.msra.mxu0 %v14596_v34  ;;  %13564 = vmatprep.mubr.msk.bf16.mxu0 %vm4062_vm14, %v4247_v7 }
 0x3bd   : > { %13562 = vmatprep.subr.bf16.mxu0 %v14597_v44 }
 0x3c0   : > { %13563 = vmatpush3.bf16.msra.mxu0 %v14597_v44 }
 0x3c1   : > { %13572 = vmatprep.subr.bf16.mxu0 %v14598_v27 }
 0x3c3   : > { %13565 = vmatmul.mubr.msk.bf16.vlgmr.msra.gmra.mrb[16].mxu0 %vm4062_vm14, %v4250_v22 }
 0x3c4   : > { %13568 = vmatprep.mubr.msk.bf16.mxu0 %vm4062_vm14, %v4253_v36  ;;  %13573 = vmatpush3.bf16.msra.mxu0 %v14598_v27 }
 0x3c5   : > { %13574 = vmatprep.subr.bf16.mxu0 %v14600_v38 }
 0x3c8   : > { %13575 = vmatpush3.bf16.msra.mxu0 %v14600_v38 }
 0x3c9   : > { %13576 = vmatprep.subr.bf16.mxu0 %v14602_v45 }
 0x3cb   : > { %13569 = vmatmul.mubr.msk.bf16.gmra.mrb[20].mxu0 %vm4062_vm14, %v4256_v12 }
 0x3cc   : > { %13577 = vmatpush3.bf16.msra.mxu0 %v14602_v45 }
 0x3cd   : > { %13578 = vmatprep.subr.bf16.mxu0 %v14604_v6 }
 0x3d0   : > { %13579 = vmatpush3.bf16.msra.mxu0 %v14604_v6 }
 0x3d1   : > { %13580 = vmatprep.subr.bf16.mxu0 %v14606_v47 }
 0x3d4   : > { %13581 = vmatpush3.bf16.msra.mxu0 %v14606_v47 }
 0x3d5   : > { %13582 = vmatprep.subr.bf16.mxu0 %v14608_v43 }
 0x3d8   : > { %13583 = vmatpush3.bf16.msra.mxu0 %v14608_v43 }
 0x3d9   : > { %13584 = vmatprep.subr.bf16.mxu0 %v14610_v58 }
 0x3dc   : > { %13585 = vmatpush3.bf16.msra.mxu0 %v14610_v58 }
 0x3dd   : > { %13586 = vmatprep.subr.bf16.mxu0 %v14612_v42 }
 0x3e0   : > { %13587 = vmatpush3.bf16.msra.mxu0 %v14612_v42 }
 0x3e1   : > { %13596 = vmatprep.subr.bf16.mxu0 %v16109_v52 }
 0x496   : > { %v13566_v11 = vpop.f32.mrb[16].mxu0 }
 0x497   : > { %v4383_v63 = vadd.f32 %v13566_v11, %v11961_v4  ;;  %v4336_v54 = vpop.f32.mrb[17].mxu0 }
 0x498   : > { %v4381_v1 = vadd.f32 %v11961_v4, %v4336_v54  ;;  %v13567_v23 = vpop.f32.mrb[18].mxu0 }
 0x499   : > { %v4384_v57 = vadd.f32 %v13567_v23, %v11961_v4  ;;  %v4339_v48 = vpop.f32.mrb[19].mxu0  ;;  %v4391_v2 = vmax.f32 %v4383_v63, 0.0 }
 0x49a   : > { %v4382_v60 = vadd.f32 %v11961_v4, %v4339_v48  ;;  %v4389_v30 = vmax.f32 %v4381_v1, 0.0 }
 0x49b   : > { %v4392_v62 = vmax.f32 %v4384_v57, 0.0 }
 0x49c   : > { %v4390_v39 = vmax.f32 %v4382_v60, 0.0  ;;  %v14616_v60 = vld [vmem:[%s18049_s28 + $0x8] sm:$0xff]  }
 0x49d   : > { %v4398_v25 = vpack.c.bf16 %v4392_v62, %v4391_v2  ;;  %v14617_v2 = vld [vmem:[%s18049_s28 + $0xc8] sm:$0xff]  }
 0x49e   : > { %v4397_v49 = vpack.c.bf16 %v4390_v39, %v4389_v30  ;;  %v13570_v7 = vpop.f32.mrb[20].mxu0 }
 0x49f   : > { %v4409_v56 = vshrl.u32 %v4398_v25, 16  ;;  %v4387_v9 = vadd.f32 %v13570_v7, %v11961_v4  ;;  %v4352_v33 = vpop.f32.mrb[21].mxu0  ;;  %v4412_v5 = vshll.u32 %v4398_v25, 16 }
 0x4a0   : > { %v4402_v19 = vshrl.u32 %v4397_v49, 16  ;;  %v4385_v37 = vadd.f32 %v11961_v4, %v4352_v33  ;;  %v13571_v22 = vpop.f32.mrb[22].mxu0  ;;  %v4405_v59 = vshll.u32 %v4397_v49, 16 }
 0x4a1   : > { %v4411_v0 = vrot.slane %v4409_v56, 7  ;;  %v4388_v17 = vadd.f32 %v13571_v22, %v11961_v4  ;;  %v4355_v46 = vpop.f32.mrb[23].mxu0  ;;  %v4395_v36 = vmax.f32 %v4387_v9, 0.0 }
 0x4a2   : > { %v4404_v26 = vrot.slane %v4402_v19, 7  ;;  %v4386_v41 = vadd.f32 %v11961_v4, %v4355_v46  ;;  %v4393_v51 = vmax.f32 %v4385_v37, 0.0 }
 0x4a3   : > { %v4414_v53 = vor.u32 %v4412_v5, %v4411_v0  ;;  %v4396_v8 = vmax.f32 %v4388_v17, 0.0  ;;  %v4442_v10 = vsel %vm15050_vm2, %v4411_v0, 0  ;;  %v14618_v5 = vld [vmem:[%s18049_s28 + $0x10] sm:$0xff]  }
 0x4a4   : > { %v4407_v14 = vor.u32 %v4405_v59, %v4404_v26  ;;  %v16129_v28 = vsel %vm15050_vm2, %v4404_v26, 0  ;;  %v4394_v24 = vmax.f32 %v4386_v41, 0.0  ;;  %v4499_v31 = vshll.u32 %v4442_v10, 16 }
 0x4a5   : > { %v16125_v3 = vsel %vm15050_vm2, 0, %v4414_v53  ;;  %v4400_v16 = vpack.c.bf16 %v4396_v8, %v4395_v36  ;;  %v4487_v44 = vshll.u32 %v16129_v28, 16  ;;  %v5029_v40 = vrot.slane %v4442_v10, 1  ;;  %v14620_v53 = vld [vmem:[%s18049_s28 + $0x18] sm:$0xff]   ;;  %v14622_v8 = vld [vmem:[%s18049_s28 + $0x20] sm:$0xff]  }
 0x4a6   : > { %v16133_v12 = vsel %vm15050_vm2, 0, %v4407_v14  ;;  %v4494_v29 = vshll.u32 %v16125_v3, 16  ;;  %v4399_v15 = vpack.c.bf16 %v4394_v24, %v4393_v51  ;;  %v4492_v6 = vshrl.u32 %v16125_v3, 16  ;;  %v14621_v36 = vld [vmem:[%s18049_s28 + $0xd8] sm:$0xff]   ;;  %v14623_v10 = vld [vmem:[%s18049_s28 + $0xe0] sm:$0xff]   ;;  %v14624_v14 = vld [vmem:[%s18049_s28 + $0x28] sm:$0xff]  }
 0x4a7   : > { %v4423_v32 = vshrl.u32 %v4400_v16, 16  ;;  %v4482_v34 = vshll.u32 %v16133_v12, 16  ;;  %v4426_v45 = vshll.u32 %v4400_v16, 16  ;;  %v4480_v47 = vshrl.u32 %v16133_v12, 16  ;;  %v14625_v51 = vld [vmem:[%s18049_s28 + $0xe8] sm:$0xff]   ;;  %v14626_v16 = vld [vmem:[%s18049_s28 + $0x30] sm:$0xff]  }
 0x4a8   : > { %v4496_v27 = vrot.slane %v4494_v29, 1  ;;  %v4416_v61 = vshrl.u32 %v4399_v15, 16  ;;  %v5028_v43 = vrot.slane %v16125_v3, 1  ;;  %v4419_v21 = vshll.u32 %v4399_v15, 16  ;;  %v14627_v24 = vld [vmem:[%s18049_s28 + $0xf0] sm:$0xff]   ;;  %v14628_v29 = vld [vmem:[%s18049_s28 + $0x38] sm:$0xff]  }
 0x4a9   : > { %v4425_v38 = vrot.slane %v4423_v32, 7  ;;  %v4484_v55 = vrot.slane %v4482_v34, 1  ;;  %v4489_v11 = vrot.slane %v4487_v44, 1  ;;  %v4501_v54 = vrot.slane %v4499_v31, 1  ;;  %v14629_v32 = vld [vmem:[%s18049_s28 + $0xf8] sm:$0xff]   ;;  %v14630_v15 = vld [vmem:[%s18049_s28 + $0x80] sm:$0xff]  }
 0x4aa   : > { %v4418_v58 = vrot.slane %v4416_v61, 7  ;;  %v4497_v42 = vor.u32 %v4496_v27, %v4492_v6  ;;  %v16144_v63 = vsel %vm1381_vm5, %v5028_v43, %v5029_v40  ;;  %v14631_v31 = vld [vmem:[%s18049_s28 + $0x140] sm:$0xff]   ;;  %v14632_v34 = vld [vmem:[%s18049_s28 + $0x88] sm:$0xff]   ;;  %v14634_v27 = vld [vmem:[%s18049_s28 + $0x90] sm:$0xff]  }
 0x4ab   : > { %v4428_v18 = vor.u32 %v4426_v45, %v4425_v38  ;;  %v4444_v35 = vsel %vm15050_vm2, %v4425_v38, 0  ;;  %v4485_v4 = vor.u32 %v4484_v55, %v4480_v47  ;;  %v14633_v44 = vld [vmem:[%s18049_s28 + $0x148] sm:$0xff]   ;;  %v14635_v38 = vld [vmem:[%s18049_s28 + $0x150] sm:$0xff]   ;;  %v5025_v45 = vrot.slane %v16133_v12, 1  ;;  %v14636_v61 = vld [vmem:[%s18049_s28 + $0x98] sm:$0xff]  }
 0x4ac   : > { %v4421_v23 = vor.u32 %v4419_v21, %v4418_v58  ;;  %v16152_v57 = vsel %vm15050_vm2, %v4418_v58, 0  ;;  %v4502_v39 = vsel %vm972_vm3, %v4497_v42, %v4501_v54  ;;  %v5035_v49 = vrot.slane %v4444_v35, 1  ;;  %v14637_v6 = vld [vmem:[%s18049_s28 + $0x158] sm:$0xff]   ;;  %v14639_v40 = vld [vmem:[%s18049_s28 + $0x160] sm:$0xff]   ;;  %v14640_v47 = vld [vmem:[%s18049_s28 + $0xa8] sm:$0xff]  }
 0x4ad   : > { %v16148_v1 = vsel %vm15050_vm2, 0, %v4428_v18  ;;  %v4490_v48 = vsel %vm972_vm3, %v4485_v4, %v4489_v11  ;;  %v4511_v56 = vshll.u32 %v16152_v57, 16  ;;  %v4523_v19 = vshll.u32 %v4444_v35, 16  ;;  %v14641_v55 = vld [vmem:[%s18049_s28 + $0x168] sm:$0xff]   ;;  %v14642_v43 = vld [vmem:[%s18049_s28 + $0xb0] sm:$0xff]   ;;  %v14644_v58 = vld [vmem:[%s18049_s28 + $0xb8] sm:$0xff]  }
 0x4ae   : > { %v4518_v62 = vshll.u32 %v16148_v1, 16  ;;  %v16164_v30 = vsel %vm15050_vm2, 0, %v4421_v23  ;;  %13588 = vmatprep.mubr.bf16.mxu0 %v4490_v48  ;;  %13636 = vmatprep.mubr.bf16.mxu1 %v4490_v48  ;;  %v5034_v25 = vrot.slane %v16148_v1, 1  ;;  %v4516_v33 = vshrl.u32 %v16148_v1, 16  ;;  %v14643_v18 = vld [vmem:[%s18049_s28 + $0x170] sm:$0xff]   ;;  %v14645_v21 = vld [vmem:[%s18049_s28 + $0x178] sm:$0xff]  }
 0x4af   : > { %13589 = vmatmul.mubr.bf16.vlgmr.msra.gmra.mrb[24].mxu0 %v4502_v39  ;;  %13637 = vmatmul.mubr.bf16.vlgmr.msra.gmra.mrb[32].mxu1 %v4502_v39  ;;  %v4506_v7 = vshll.u32 %v16164_v30, 16  ;;  %v4504_v22 = vshrl.u32 %v16164_v30, 16  ;;  %v4513_v46 = vrot.slane %v4511_v56, 1  ;;  %v4525_v26 = vrot.slane %v4523_v19, 1  ;;  %v14646_v11 = vld [vmem:[%s18053_s29 + $0x20] sm:$0xff]   ;;  %v14647_v54 = vld [vmem:[%s18053_s29 + $0x28] sm:$0xff]  }
 0x4b0   : > { %v4520_v9 = vrot.slane %v4518_v62, 1  ;;  %13597 = vmatpush3.bf16.msra.mxu0 %v16109_v52  ;;  %13645 = vmatpush3.bf16.msra.mxu1 %v16114_v20  ;;  %v16174_v37 = vsel %vm1381_vm5, %v5034_v25, %v5035_v49  ;;  %v14619_v52 = vld [vmem:[%s18049_s28 + $0xd0] sm:$0xff]   ;;  %v5031_v42 = vrot.slane %v16164_v30, 1  ;;  %v5032_v35 = vrot.slane %v16152_v57, 1  ;;  %v16296_v23 = vld [vmem:[%s18053_s29] sm:$0xff]  }
 0x4b1   : > { %13598 = vmatprep.subr.bf16.mxu0 %v14616_v60  ;;  %13646 = vmatprep.subr.bf16.mxu1 %v14617_v2  ;;  %v4508_v0 = vrot.slane %v4506_v7, 1  ;;  %v16302_v48 = vld [vmem:[%s18054_s6] ss:$0 sm:$0xff] }
 0x4b2   : > { %v4521_v20 = vor.u32 %v4520_v9, %v4516_v33  ;;  %v5033_v4 = vsel %vm1381_vm5, %v5031_v42, %v5032_v35 }
 0x4b3   : > { %v4509_v17 = vor.u32 %v4508_v0, %v4504_v22 }
 0x4b4   : > { %13599 = vmatpush3.bf16.msra.mxu0 %v14616_v60  ;;  %13647 = vmatpush3.bf16.msra.mxu1 %v14617_v2  ;;  %v4526_v41 = vsel %vm972_vm3, %v4521_v20, %v4525_v26 }
 0x4b5   : > { %v4514_v59 = vsel %vm972_vm3, %v4509_v17, %v4513_v46  ;;  %13600 = vmatprep.subr.bf16.mxu0 %v14618_v5  ;;  %13648 = vmatprep.subr.bf16.mxu1 %v14619_v52  ;;  %vm5880_vm3 = vsmask.f32 4352 }
 0x4b6   : > { %13592 = vmatprep.mubr.bf16.mxu0 %v4514_v59  ;;  %13640 = vmatprep.mubr.bf16.mxu1 %v4514_v59  ;;  %vm16440_vm4 = vmand %vm5879_vm15, %vm5880_vm3  ;;  %vm6149_vm15 = vcmask 1042432   ;;  %vm6150_vm3 = vcmask 1046532  }
 0x4b7   : > { %13593 = vmatmul.mubr.bf16.gmra.mrb[28].mxu0 %v4526_v41  ;;  %13641 = vmatmul.mubr.bf16.gmra.mrb[36].mxu1 %v4526_v41 }
 0x4b8   : > { %13601 = vmatpush3.bf16.msra.mxu0 %v14618_v5  ;;  %13649 = vmatpush3.bf16.msra.mxu1 %v14619_v52 }
 0x4b9   : > { %13612 = vmatprep.mubr.bf16.mxu0 %v16133_v12  ;;  %13660 = vmatprep.mubr.bf16.mxu1 %v16133_v12 }
 0x4ba   : > { %13602 = vmatprep.subr.bf16.mxu0 %v14620_v53  ;;  %13650 = vmatprep.subr.bf16.mxu1 %v14621_v36 }
 0x4bc   : > { %13603 = vmatpush3.bf16.msra.mxu0 %v14620_v53  ;;  %13651 = vmatpush3.bf16.msra.mxu1 %v14621_v36 }
 0x4bd   : > { %13604 = vmatprep.subr.bf16.mxu0 %v14622_v8  ;;  %13652 = vmatprep.subr.bf16.mxu1 %v14623_v10 }
 0x4c0   : > { %13605 = vmatpush3.bf16.msra.mxu0 %v14622_v8  ;;  %13653 = vmatpush3.bf16.msra.mxu1 %v14623_v10 }
 0x4c1   : > { %13606 = vmatprep.subr.bf16.mxu0 %v14624_v14  ;;  %13654 = vmatprep.subr.bf16.mxu1 %v14625_v51 }
 0x4c4   : > { %13607 = vmatpush3.bf16.msra.mxu0 %v14624_v14  ;;  %13655 = vmatpush3.bf16.msra.mxu1 %v14625_v51 }
 0x4c5   : > { %13608 = vmatprep.subr.bf16.mxu0 %v14626_v16  ;;  %13656 = vmatprep.subr.bf16.mxu1 %v14627_v24 }
 0x4c8   : > { %13609 = vmatpush3.bf16.msra.mxu0 %v14626_v16  ;;  %13657 = vmatpush3.bf16.msra.mxu1 %v14627_v24 }
 0x4c9   : > { %13610 = vmatprep.subr.bf16.mxu0 %v14628_v29  ;;  %13658 = vmatprep.subr.bf16.mxu1 %v14629_v32 }
 0x4cc   : > { %13611 = vmatpush3.bf16.msra.mxu0 %v14628_v29  ;;  %13659 = vmatpush3.bf16.msra.mxu1 %v14629_v32 }
 0x4cd   : > { %13668 = vmatprep.subr.bf16.mxu0 %v14630_v15  ;;  %13692 = vmatprep.subr.bf16.mxu1 %v14631_v31 }
 0x4cf   : > { %13613 = vmatmul.mubr.bf16.vlgmr.msra.gmra.mrb[24].mxu0 %v16125_v3  ;;  %13661 = vmatmul.mubr.bf16.vlgmr.msra.gmra.mrb[32].mxu1 %v16125_v3  ;;  %v5026_v3 = vrot.slane %v16129_v28, 1  ;;  %v14638_v28 = vld [vmem:[%s18049_s28 + $0xa0] sm:$0xff]  }
 0x4d0   : > { %13616 = vmatprep.mubr.bf16.mxu0 %v16164_v30  ;;  %13664 = vmatprep.mubr.bf16.mxu1 %v16164_v30 }
 0x4d1   : > { %13669 = vmatpush3.bf16.msra.mxu0 %v14630_v15  ;;  %13693 = vmatpush3.bf16.msra.mxu1 %v14631_v31  ;;  %v5027_v12 = vsel %vm1381_vm5, %v5025_v45, %v5026_v3  ;;  %vm5915_vm5 = vsmask.f32 3328 }
 0x4d2   : > { %13670 = vmatprep.subr.bf16.mxu0 %v14632_v34  ;;  %13694 = vmatprep.subr.bf16.mxu1 %v14633_v44  ;;  %vm16492_vm0 = vmor %vm5915_vm5, %vm5916_vm11  ;;  %vm7986_vm11 = vsmask.f32 3336 }
 0x4d3   : > { %vm16505_vm5 = vmor %vm6149_vm15, %vm6150_vm3 }
 0x4d5   : > { %13671 = vmatpush3.bf16.msra.mxu0 %v14632_v34  ;;  %13695 = vmatpush3.bf16.msra.mxu1 %v14633_v44 }
 0x4d6   : > { %13672 = vmatprep.subr.bf16.mxu0 %v14634_v27  ;;  %13696 = vmatprep.subr.bf16.mxu1 %v14635_v38 }
 0x4d7   : > { %13617 = vmatmul.mubr.bf16.gmra.mrb[28].mxu0 %v16148_v1  ;;  %13665 = vmatmul.mubr.bf16.gmra.mrb[36].mxu1 %v16148_v1  ;;  %v14649_v1 = vld [vmem:[%s18053_s29 + $0x38] sm:$0xff]  }
 0x4d8   : > { %13684 = vmatprep.mubr.bf16.mxu0 %v5027_v12  ;;  %13708 = vmatprep.mubr.bf16.mxu1 %v5027_v12 }
 0x4d9   : > { %13673 = vmatpush3.bf16.msra.mxu0 %v14634_v27  ;;  %13697 = vmatpush3.bf16.msra.mxu1 %v14635_v38 }
 0x4da   : > { %13674 = vmatprep.subr.bf16.mxu0 %v14636_v61  ;;  %13698 = vmatprep.subr.bf16.mxu1 %v14637_v6 }
 0x4dd   : > { %13675 = vmatpush3.bf16.msra.mxu0 %v14636_v61  ;;  %13699 = vmatpush3.bf16.msra.mxu1 %v14637_v6 }
 0x4de   : > { %13676 = vmatprep.subr.bf16.mxu0 %v14638_v28  ;;  %13700 = vmatprep.subr.bf16.mxu1 %v14639_v40 }
 0x4e1   : > { %13677 = vmatpush3.bf16.msra.mxu0 %v14638_v28  ;;  %13701 = vmatpush3.bf16.msra.mxu1 %v14639_v40 }
 0x4e2   : > { %13678 = vmatprep.subr.bf16.mxu0 %v14640_v47  ;;  %13702 = vmatprep.subr.bf16.mxu1 %v14641_v55 }
 0x4e5   : > { %13679 = vmatpush3.bf16.msra.mxu0 %v14640_v47  ;;  %13703 = vmatpush3.bf16.msra.mxu1 %v14641_v55 }
 0x4e6   : > { %13680 = vmatprep.subr.bf16.mxu0 %v14642_v43  ;;  %13704 = vmatprep.subr.bf16.mxu1 %v14643_v18 }
 0x4e9   : > { %13681 = vmatpush3.bf16.msra.mxu0 %v14642_v43  ;;  %13705 = vmatpush3.bf16.msra.mxu1 %v14643_v18 }
 0x4ea   : > { %13682 = vmatprep.subr.bf16.mxu0 %v14644_v58  ;;  %13706 = vmatprep.subr.bf16.mxu1 %v14645_v21 }
 0x4ed   : > { %13683 = vmatpush3.bf16.msra.mxu0 %v14644_v58  ;;  %13707 = vmatpush3.bf16.msra.mxu1 %v14645_v21 }
 0x4ee   : > { %13716 = vmatprep.subr.bf16.mxu0 %v14646_v11 }
 0x4f0   : > { %13685 = vmatmul.mubr.bf16.vlgmr.msra.gmra.mrb[24].mxu0 %v16144_v63  ;;  %13709 = vmatmul.mubr.bf16.vlgmr.msra.gmra.mrb[32].mxu1 %v16144_v63  ;;  %v14648_v63 = vld [vmem:[%s18053_s29 + $0x30] sm:$0xff]  }
 0x4f1   : > { %13688 = vmatprep.mubr.bf16.mxu0 %v5033_v4  ;;  %13712 = vmatprep.mubr.bf16.mxu1 %v5033_v4 }
 0x4f2   : > { %13717 = vmatpush3.bf16.msra.mxu0 %v14646_v11 }
 0x4f3   : > { %13718 = vmatprep.subr.bf16.mxu0 %v14647_v54 }
 0x4f6   : > { %13719 = vmatpush3.bf16.msra.mxu0 %v14647_v54 }
 0x4f7   : > { %13720 = vmatprep.subr.bf16.mxu0 %v14648_v63 }
 0x4f8   : > { %13689 = vmatmul.mubr.bf16.gmra.mrb[28].mxu0 %v16174_v37  ;;  %13713 = vmatmul.mubr.bf16.gmra.mrb[36].mxu1 %v16174_v37 }
 0x4fa   : > { %13721 = vmatpush3.bf16.msra.mxu0 %v14648_v63 }
 0x4fb   : > { %13722 = vmatprep.subr.bf16.mxu0 %v14649_v1 }
 0x4fe   : > { %13723 = vmatpush3.bf16.msra.mxu0 %v14649_v1 }
 0x4ff   : > { %13728 = vmatprep.subr.bf16.mxu0 %v16296_v23 }
 0x5c3   : > { %v13686_v57 = vpop.f32.mrb[24].mxu0  ;;  %v13710_v60 = vpop.f32.mrb[32].mxu1 }
 0x5c4   : > { %v5319_v2 = vmax.f32 %v13686_v57, %v13710_v60  ;;  %v5140_v62 = vpop.f32.mrb[25].mxu0  ;;  %v5278_v30 = vpop.f32.mrb[33].mxu1 }
 0x5c5   : > { %v5317_v39 = vmax.f32 %v5140_v62, %v5278_v30  ;;  %v13687_v25 = vpop.f32.mrb[26].mxu0  ;;  %v13711_v49 = vpop.f32.mrb[34].mxu1 }
 0x5c6   : > { %v5333_v7 = vadd.f32 %v16302_v48, %v5319_v2  ;;  %v5320_v56 = vmax.f32 %v13687_v25, %v13711_v49  ;;  %v5143_v9 = vpop.f32.mrb[27].mxu0  ;;  %v5281_v33 = vpop.f32.mrb[35].mxu1 }
 0x5c7   : > { %v5331_v19 = vadd.f32 %v16302_v48, %v5317_v39  ;;  %v5318_v37 = vmax.f32 %v5143_v9, %v5281_v33 }
 0x5c8   : > { %v5341_v22 = vmax.f32 %v5333_v7, 0.0  ;;  %v5334_v0 = vadd.f32 %v16302_v48, %v5320_v56 }
 0x5c9   : > { %v5339_v5 = vmax.f32 %v5331_v19, 0.0  ;;  %v5332_v52 = vadd.f32 %v16302_v48, %v5318_v37 }
 0x5ca   : > { %v5389_v20 = vcombine.high %v5341_v22, %v5341_v22  ;;  %v5396_v17 = vrot.slane %v5341_v22, %v15575_v50  ;;  %v16309_v46 = vmax.f32 %v5334_v0, 0.0 }
 0x5cb   : > { %v5355_v26 = vcombine.high %v5339_v5, %v5339_v5  ;;  %v5362_v59 = vrot.slane %v5339_v5, %v15575_v50  ;;  %v16312_v41 = vmax.f32 %v5332_v52, 0.0  ;;  %v16314_v53 = vpop.f32.mrb[28].mxu0  ;;  %v16316_v36 = vpop.f32.mrb[36].mxu1 }
 0x5cc   : > { %v5403_v8 = vrot.slane %v5389_v20, %v15575_v50  ;;  %v5404_v10 = vcombine.high %v5396_v17, %v5396_v17  ;;  %v5579_v14 = vsel %vm18024_vm6, %v5396_v17, -inf  ;;  %v5406_v51 = vcombine.high %v16309_v46, %v16309_v46  ;;  %v16322_v16 = vpop.f32.mrb[29].mxu0  ;;  %v16324_v24 = vpop.f32.mrb[37].mxu1 }
 0x5cd   : > { %v5580_v29 = vrot.slane %v5579_v14, 4  ;;  %v5369_v32 = vrot.slane %v5355_v26, %v15575_v50  ;;  %v5370_v15 = vcombine.high %v5362_v59, %v5362_v59  ;;  %v5523_v31 = vsel %vm18024_vm6, %v5362_v59, -inf  ;;  %v16328_v34 = vpop.f32.mrb[30].mxu0  ;;  %v16330_v44 = vpop.f32.mrb[38].mxu1 }
 0x5ce   : > { %v5405_v27 = vcombine.high %v5403_v8, %v5403_v8  ;;  %v5586_v38 = vsel %vm18024_vm6, %v5404_v10, -inf  ;;  %v5593_v45 = vsel %vm18024_vm6, %v5403_v8, -inf  ;;  %v5524_v3 = vrot.slane %v5523_v31, 4  ;;  %v16334_v61 = vpop.f32.mrb[31].mxu0  ;;  %v16336_v6 = vpop.f32.mrb[39].mxu1 }
 0x5cf   : > { %v5581_v12 = vmax.f32 %v5579_v14, %v5580_v29  ;;  %v5587_v28 = vrot.slane %v5586_v38, 4  ;;  %v5594_v40 = vrot.slane %v5593_v45, 4  ;;  %v5371_v47 = vcombine.high %v5369_v32, %v5369_v32 }
 0x5d0   : > { %v5600_v55 = vsel %vm18024_vm6, %v5405_v27, -inf  ;;  %v5525_v43 = vmax.f32 %v5523_v31, %v5524_v3  ;;  %v5530_v18 = vsel %vm18024_vm6, %v5370_v15, -inf  ;;  %v5537_v58 = vsel %vm18024_vm6, %v5369_v32, -inf }
 0x5d1   : > { %v5582_v21 = vrot.slane %v5581_v12, 2  ;;  %v5588_v42 = vmax.f32 %v5586_v38, %v5587_v28  ;;  %v5595_v35 = vmax.f32 %v5593_v45, %v5594_v40  ;;  %v5601_v4 = vrot.slane %v5600_v55, 4 }
 0x5d2   : > { %v5526_v11 = vrot.slane %v5525_v43, 2  ;;  %v5531_v54 = vrot.slane %v5530_v18, 4  ;;  %v5538_v63 = vrot.slane %v5537_v58, 4  ;;  %v5544_v1 = vsel %vm18024_vm6, %v5371_v47, -inf }
 0x5d3   : > { %v5583_v57 = vmax.f32 %v5581_v12, %v5582_v21  ;;  %v5589_v60 = vrot.slane %v5588_v42, 2  ;;  %v5596_v2 = vrot.slane %v5595_v35, 2  ;;  %v5602_v62 = vmax.f32 %v5600_v55, %v5601_v4 }
 0x5d4   : > { %v5527_v30 = vmax.f32 %v5525_v43, %v5526_v11  ;;  %v5532_v39 = vmax.f32 %v5530_v18, %v5531_v54  ;;  %v5539_v25 = vmax.f32 %v5537_v58, %v5538_v63  ;;  %v5545_v49 = vrot.slane %v5544_v1, 4 }
 0x5d5   : > { %v5584_v7 = vrot.slane %v5583_v57, 1  ;;  %v5590_v56 = vmax.f32 %v5588_v42, %v5589_v60  ;;  %v5597_v9 = vmax.f32 %v5595_v35, %v5596_v2  ;;  %v5603_v33 = vrot.slane %v5602_v62, 2 }
 0x5d6   : > { %v5528_v19 = vrot.slane %v5527_v30, 1  ;;  %v5533_v37 = vrot.slane %v5532_v39, 2  ;;  %v5540_v22 = vrot.slane %v5539_v25, 2  ;;  %v5546_v0 = vmax.f32 %v5544_v1, %v5545_v49 }
 0x5d7   : > { %v5585_v5 = vmax.f32 %v5583_v57, %v5584_v7  ;;  %v5591_v52 = vrot.slane %v5590_v56, 1  ;;  %v5598_v20 = vrot.slane %v5597_v9, 1  ;;  %v5604_v17 = vmax.f32 %v5602_v62, %v5603_v33 }
 0x5d8   : > { %v5529_v26 = vmax.f32 %v5527_v30, %v5528_v19  ;;  %v5534_v59 = vmax.f32 %v5532_v39, %v5533_v37  ;;  %v5541_v8 = vmax.f32 %v5539_v25, %v5540_v22  ;;  %v5547_v10 = vrot.slane %v5546_v0, 2 }
 0x5d9   : > { %v5592_v14 = vmax.f32 %v5590_v56, %v5591_v52  ;;  %v5599_v29 = vmax.f32 %v5597_v9, %v5598_v20  ;;  %v5605_v32 = vrot.slane %v5604_v17, 1  ;;  %v5755_v15 = vpack.c.bf16 %v5585_v5, %v5585_v5 }
 0x5da   : > { %v5535_v31 = vrot.slane %v5534_v59, 1  ;;  %v5542_v27 = vrot.slane %v5541_v8, 1  ;;  %v5548_v38 = vmax.f32 %v5546_v0, %v5547_v10  ;;  %v5747_v45 = vpack.c.bf16 %v5529_v26, %v5529_v26 }
 0x5db   : > { %v5606_v3 = vmax.f32 %v5604_v17, %v5605_v32  ;;  %v5756_v12 = vpack.c.bf16 %v5592_v14, %v5592_v14  ;;  %v5757_v28 = vpack.c.bf16 %v5599_v29, %v5599_v29  ;;  %v5819_v40 = vunpack.c.l.b16 %v5755_v15 }
 0x5dc   : > { %v5536_v47 = vmax.f32 %v5534_v59, %v5535_v31  ;;  %v5543_v55 = vmax.f32 %v5541_v8, %v5542_v27  ;;  %v5549_v43 = vrot.slane %v5548_v38, 1  ;;  %v5811_v18 = vunpack.c.l.b16 %v5747_v45 }
 0x5dd   : > { %v5758_v58 = vpack.c.bf16 %v5606_v3, %v5606_v3  ;;  %v5820_v21 = vunpack.c.l.b16 %v5756_v12  ;;  %v5821_v42 = vunpack.c.l.b16 %v5757_v28  ;;  %v5413_v35 = vrot.slane %v16309_v46, %v15575_v50  ;;  %v14658_v46 = vld [vmem:[%s18055_s11 + $0x40] sm:$0xff]  }
 0x5de   : > { %v5550_v4 = vmax.f32 %v5548_v38, %v5549_v43  ;;  %v5748_v11 = vpack.c.bf16 %v5536_v47, %v5536_v47  ;;  %v5749_v54 = vpack.c.bf16 %v5543_v55, %v5543_v55  ;;  %v5420_v63 = vrot.slane %v5406_v51, %v15575_v50  ;;  %13752 = vmatprep.subr.bf16.mxu1 %v14658_v46 }
 0x5df   : > { %v5822_v1 = vunpack.c.l.b16 %v5758_v58  ;;  %v5849_v57 = vsel %vm3889_vm7, %v5820_v21, %v5819_v40  ;;  %v5421_v60 = vcombine.high %v5413_v35, %v5413_v35  ;;  %v5607_v2 = vsel %vm18024_vm6, %v5413_v35, -inf  ;;  %13753 = vmatpush3.bf16.msra.mxu1 %v14658_v46 }
 0x5e0   : > { %v5850_v62 = vsel %vm3891_vm8, %v5821_v42, %v5849_v57  ;;  %v5750_v30 = vpack.c.bf16 %v5550_v4, %v5550_v4  ;;  %v5812_v39 = vunpack.c.l.b16 %v5748_v11  ;;  %v5813_v25 = vunpack.c.l.b16 %v5749_v54 }
 0x5e1   : > { %v5422_v49 = vcombine.high %v5420_v63, %v5420_v63  ;;  %v5608_v7 = vrot.slane %v5607_v2, 4  ;;  %v5614_v56 = vsel %vm18024_vm6, %v5421_v60, -inf  ;;  %v5621_v9 = vsel %vm18024_vm6, %v5420_v63, -inf }
 0x5e2   : > { %v5814_v51 = vunpack.c.l.b16 %v5750_v30  ;;  %v5843_v33 = vsel %vm3889_vm7, %v5812_v39, %v5811_v18  ;;  %v5615_v19 = vrot.slane %v5614_v56, 4  ;;  %v5622_v37 = vrot.slane %v5621_v9, 4 }
 0x5e3   : > { %v5844_v22 = vsel %vm3891_vm8, %v5813_v25, %v5843_v33  ;;  %v5609_v0 = vmax.f32 %v5607_v2, %v5608_v7  ;;  %v5628_v5 = vsel %vm18024_vm6, %v5422_v49, -inf  ;;  %v5851_v52 = vsel %vm3893_vm9, %v5822_v1, %v5850_v62 }
 0x5e4   : > { %v5616_v20 = vmax.f32 %v5614_v56, %v5615_v19  ;;  %v5623_v17 = vmax.f32 %v5621_v9, %v5622_v37  ;;  %v5629_v26 = vrot.slane %v5628_v5, 4  ;;  %v5372_v59 = vcombine.high %v16312_v41, %v16312_v41 }
 0x5e5   : > { %v5610_v8 = vrot.slane %v5609_v0, 2  ;;  %v5379_v10 = vrot.slane %v16312_v41, %v15575_v50  ;;  %v16365_v14 = vsel %vm3893_vm9, %v5814_v51, %v5844_v22  ;;  %v5323_v29 = vmax.f32 %v16314_v53, %v16316_v36 }
 0x5e6   : > { %v5617_v32 = vrot.slane %v5616_v20, 2  ;;  %v5624_v15 = vrot.slane %v5623_v17, 2  ;;  %v5630_v31 = vmax.f32 %v5628_v5, %v5629_v26  ;;  %v5386_v27 = vrot.slane %v5372_v59, %v15575_v50 }
 0x5e7   : > { %v5611_v38 = vmax.f32 %v5609_v0, %v5610_v8  ;;  %v5387_v45 = vcombine.high %v5379_v10, %v5379_v10  ;;  %v5551_v3 = vsel %vm18024_vm6, %v5379_v10, -inf  ;;  %v5337_v12 = vadd.f32 %v16302_v48, %v5323_v29 }
 0x5e8   : > { %v5618_v28 = vmax.f32 %v5616_v20, %v5617_v32  ;;  %v5625_v40 = vmax.f32 %v5623_v17, %v5624_v15  ;;  %v5631_v41 = vrot.slane %v5630_v31, 2  ;;  %v5388_v47 = vcombine.high %v5386_v27, %v5386_v27 }
 0x5e9   : > { %v5612_v55 = vrot.slane %v5611_v38, 1  ;;  %v5552_v43 = vrot.slane %v5551_v3, 4  ;;  %v5558_v18 = vsel %vm18024_vm6, %v5387_v45, -inf  ;;  %v5565_v53 = vsel %vm18024_vm6, %v5386_v27, -inf }
 0x5ea   : > { %v5619_v36 = vrot.slane %v5618_v28, 1  ;;  %v5626_v58 = vrot.slane %v5625_v40, 1  ;;  %v5632_v21 = vmax.f32 %v5630_v31, %v5631_v41  ;;  %v5559_v42 = vrot.slane %v5558_v18, 4 }
 0x5eb   : > { %v5613_v35 = vmax.f32 %v5611_v38, %v5612_v55  ;;  %v5553_v4 = vmax.f32 %v5551_v3, %v5552_v43  ;;  %v5566_v11 = vrot.slane %v5565_v53, 4  ;;  %v5572_v54 = vsel %vm18024_vm6, %v5388_v47, -inf }
 0x5ec   : > { %v5620_v63 = vmax.f32 %v5618_v28, %v5619_v36  ;;  %v5627_v1 = vmax.f32 %v5625_v40, %v5626_v58  ;;  %v5633_v57 = vrot.slane %v5632_v21, 1  ;;  %v5560_v60 = vmax.f32 %v5558_v18, %v5559_v42 }
 0x5ed   : > { %v5759_v2 = vpack.c.bf16 %v5613_v35, %v5613_v35  ;;  %v5554_v62 = vrot.slane %v5553_v4, 2  ;;  %v5567_v30 = vmax.f32 %v5565_v53, %v5566_v11  ;;  %v5573_v39 = vrot.slane %v5572_v54, 4 }
 0x5ee   : > { %v5634_v25 = vmax.f32 %v5632_v21, %v5633_v57  ;;  %v5760_v49 = vpack.c.bf16 %v5620_v63, %v5620_v63  ;;  %v5761_v7 = vpack.c.bf16 %v5627_v1, %v5627_v1  ;;  %v5561_v56 = vrot.slane %v5560_v60, 2 }
 0x5ef   : > { %v5823_v9 = vunpack.c.l.b16 %v5759_v2  ;;  %v5555_v46 = vmax.f32 %v5553_v4, %v5554_v62  ;;  %v5568_v51 = vrot.slane %v5567_v30, 2  ;;  %v5574_v33 = vmax.f32 %v5572_v54, %v5573_v39 }
 0x5f0   : > { %v5762_v19 = vpack.c.bf16 %v5634_v25, %v5634_v25  ;;  %v5824_v37 = vunpack.c.l.b16 %v5760_v49  ;;  %v5825_v22 = vunpack.c.l.b16 %v5761_v7  ;;  %v5562_v0 = vmax.f32 %v5560_v60, %v5561_v56 }
 0x5f1   : > { %v5852_v5 = vsel %vm3895_vm10, %v5823_v9, %v5851_v52  ;;  %v5556_v20 = vrot.slane %v5555_v46, 1  ;;  %v5569_v17 = vmax.f32 %v5567_v30, %v5568_v51  ;;  %v5575_v26 = vrot.slane %v5574_v33, 2 }
 0x5f2   : > { %v16376_v59 = vunpack.c.l.b16 %v5762_v19  ;;  %v5853_v8 = vsel %vm3897_vm12, %v5824_v37, %v5852_v5  ;;  %v5563_v10 = vrot.slane %v5562_v0, 1  ;;  %v5345_v29 = vmax.f32 %v5337_v12, 0.0 }
 0x5f3   : > { %v16380_v32 = vsel %vm3899_vm13, %v5825_v22, %v5853_v8  ;;  %v5557_v15 = vmax.f32 %v5555_v46, %v5556_v20  ;;  %v5570_v31 = vrot.slane %v5569_v17, 1  ;;  %v5576_v27 = vmax.f32 %v5574_v33, %v5575_v26 }
 0x5f4   : > { %v5868_v38 = vpack.c.b16 %v16376_v59, %v16380_v32  ;;  %v5564_v45 = vmax.f32 %v5562_v0, %v5563_v10  ;;  %v5457_v52 = vcombine.high %v5345_v29, %v5345_v29  ;;  %v5464_v3 = vrot.slane %v5345_v29, %v15575_v50 }
 0x5f5   : > { %v5571_v28 = vmax.f32 %v5569_v17, %v5570_v31  ;;  %v5577_v40 = vrot.slane %v5576_v27, 1  ;;  %v5751_v41 = vpack.c.bf16 %v5557_v15, %v5557_v15  ;;  %v5321_v47 = vmax.f32 %v16322_v16, %v16324_v24 }
 0x5f6   : > { %v5752_v12 = vpack.c.bf16 %v5564_v45, %v5564_v45  ;;  %v5471_v55 = vrot.slane %v5457_v52, %v15575_v50  ;;  %v5472_v43 = vcombine.high %v5464_v3, %v5464_v3  ;;  %v5691_v18 = vsel %vm18024_vm6, %v5464_v3, -inf }
 0x5f7   : > { %v5578_v53 = vmax.f32 %v5576_v27, %v5577_v40  ;;  %v5753_v36 = vpack.c.bf16 %v5571_v28, %v5571_v28  ;;  %v5815_v58 = vunpack.c.l.b16 %v5751_v41  ;;  %v5692_v21 = vrot.slane %v5691_v18, 4 }
 0x5f8   : > { %v5816_v42 = vunpack.c.l.b16 %v5752_v12  ;;  %v5473_v35 = vcombine.high %v5471_v55, %v5471_v55  ;;  %v5698_v4 = vsel %vm18024_vm6, %v5472_v43, -inf  ;;  %v5705_v11 = vsel %vm18024_vm6, %v5471_v55, -inf }
 0x5f9   : > { %v5754_v54 = vpack.c.bf16 %v5578_v53, %v5578_v53  ;;  %v5817_v63 = vunpack.c.l.b16 %v5753_v36  ;;  %v5846_v16 = vsel %vm3895_vm10, %v5815_v58, %v16365_v14  ;;  %v5693_v24 = vmax.f32 %v5691_v18, %v5692_v21 }
 0x5fa   : > { %v5847_v1 = vsel %vm3897_vm12, %v5816_v42, %v5846_v16  ;;  %v5699_v57 = vrot.slane %v5698_v4, 4  ;;  %v5706_v60 = vrot.slane %v5705_v11, 4  ;;  %v5712_v2 = vsel %vm18024_vm6, %v5473_v35, -inf }
 0x5fb   : > { %v5818_v62 = vunpack.c.l.b16 %v5754_v54  ;;  %v5848_v30 = vsel %vm3899_vm13, %v5817_v63, %v5847_v1  ;;  %v5694_v39 = vrot.slane %v5693_v24, 2  ;;  %v5713_v25 = vrot.slane %v5712_v2, 4 }
 0x5fc   : > { %v5700_v49 = vmax.f32 %v5698_v4, %v5699_v57  ;;  %v5707_v7 = vmax.f32 %v5705_v11, %v5706_v60  ;;  %v5335_v56 = vadd.f32 %v16302_v48, %v5321_v47  ;;  %v5324_v9 = vmax.f32 %v16328_v34, %v16330_v44 }
 0x5fd   : > { %v5867_v14 = vpack.c.b16 %v5818_v62, %v5848_v30  ;;  %v5695_v46 = vmax.f32 %v5693_v24, %v5694_v39  ;;  %v5714_v51 = vmax.f32 %v5712_v2, %v5713_v25  ;;  %v5322_v33 = vmax.f32 %v16334_v61, %v16336_v6 }
 0x5fe   : > { %v5701_v19 = vrot.slane %v5700_v49, 2  ;;  %v5708_v37 = vrot.slane %v5707_v7, 2  ;;  %v5343_v22 = vmax.f32 %v5335_v56, 0.0  ;;  %v5338_v0 = vadd.f32 %v16302_v48, %v5324_v9 }
 0x5ff   : > { %v5696_v5 = vrot.slane %v5695_v46, 1  ;;  %v5715_v20 = vrot.slane %v5714_v51, 2  ;;  %v5336_v17 = vadd.f32 %v16302_v48, %v5322_v33  ;;  %v16406_v61 = vsel %vm15050_vm2, 0, %v5867_v14 }
 0x600   : > { %v5702_v26 = vmax.f32 %v5700_v49, %v5701_v19  ;;  %v5709_v8 = vmax.f32 %v5707_v7, %v5708_v37  ;;  %v5423_v10 = vcombine.high %v5343_v22, %v5343_v22  ;;  %v5430_v34 = vrot.slane %v5343_v22, %v15575_v50 }
 0x601   : > { %v5697_v44 = vmax.f32 %v5695_v46, %v5696_v5  ;;  %v5716_v29 = vmax.f32 %v5714_v51, %v5715_v20  ;;  %v5346_v15 = vmax.f32 %v5338_v0, 0.0  ;;  %v16410_v28 = vmax.f32 %v5336_v17, 0.0 }
 0x602   : > { %v5703_v6 = vrot.slane %v5702_v26, 1  ;;  %v5710_v31 = vrot.slane %v5709_v8, 1  ;;  %v5437_v27 = vrot.slane %v5423_v10, %v15575_v50  ;;  %v5438_v45 = vcombine.high %v5430_v34, %v5430_v34 }
 0x603   : > { %v5717_v52 = vrot.slane %v5716_v29, 1  ;;  %v5771_v3 = vpack.c.bf16 %v5697_v44, %v5697_v44  ;;  %v5635_v48 = vsel %vm18024_vm6, %v5430_v34, -inf  ;;  %v5474_v53 = vcombine.high %v5346_v15, %v5346_v15 }
 0x604   : > { %v5704_v40 = vmax.f32 %v5702_v26, %v5703_v6  ;;  %v5711_v41 = vmax.f32 %v5709_v8, %v5710_v31  ;;  %v5439_v47 = vcombine.high %v5437_v27, %v5437_v27  ;;  %v5636_v12 = vrot.slane %v5635_v48, 4 }
 0x605   : > { %v5718_v55 = vmax.f32 %v5716_v29, %v5717_v52  ;;  %v5642_v43 = vsel %vm18024_vm6, %v5438_v45, -inf  ;;  %v5649_v18 = vsel %vm18024_vm6, %v5437_v27, -inf  ;;  %v5481_v54 = vrot.slane %v5346_v15, %v15575_v50 }
 0x606   : > { %v5772_v36 = vpack.c.bf16 %v5704_v40, %v5704_v40  ;;  %v5773_v58 = vpack.c.bf16 %v5711_v41, %v5711_v41  ;;  %v5637_v21 = vmax.f32 %v5635_v48, %v5636_v12  ;;  %v5643_v42 = vrot.slane %v5642_v43, 4 }
 0x607   : > { %v5774_v35 = vpack.c.bf16 %v5718_v55, %v5718_v55  ;;  %v5650_v4 = vrot.slane %v5649_v18, 4  ;;  %v5656_v11 = vsel %vm18024_vm6, %v5439_v47, -inf  ;;  %v5835_v63 = vunpack.c.l.b16 %v5771_v3 }
 0x608   : > { %v5836_v16 = vunpack.c.l.b16 %v5772_v36  ;;  %v5638_v24 = vrot.slane %v5637_v21, 2  ;;  %v5644_v1 = vmax.f32 %v5642_v43, %v5643_v42  ;;  %v5837_v57 = vunpack.c.l.b16 %v5773_v58 }
 0x609   : > { %v5651_v60 = vmax.f32 %v5649_v18, %v5650_v4  ;;  %v5657_v2 = vrot.slane %v5656_v11, 4  ;;  %v5488_v62 = vrot.slane %v5474_v53, %v15575_v50  ;;  %v5838_v30 = vunpack.c.l.b16 %v5774_v35 }
 0x60a   : > { %v5639_v39 = vmax.f32 %v5637_v21, %v5638_v24  ;;  %v5645_v25 = vrot.slane %v5644_v1, 2  ;;  %v5489_v49 = vcombine.high %v5481_v54, %v5481_v54  ;;  %v5861_v7 = vsel %vm3889_vm7, %v5836_v16, %v5835_v63 }
 0x60b   : > { %v5652_v56 = vrot.slane %v5651_v60, 2  ;;  %v5658_v9 = vmax.f32 %v5656_v11, %v5657_v2  ;;  %v5490_v14 = vcombine.high %v5488_v62, %v5488_v62  ;;  %v5719_v33 = vsel %vm18024_vm6, %v5481_v54, -inf }
 0x60c   : > { %v5640_v46 = vrot.slane %v5639_v39, 1  ;;  %v5646_v51 = vmax.f32 %v5644_v1, %v5645_v25  ;;  %v5726_v19 = vsel %vm18024_vm6, %v5489_v49, -inf  ;;  %v5720_v0 = vrot.slane %v5719_v33, 4 }
 0x60d   : > { %v5653_v37 = vmax.f32 %v5651_v60, %v5652_v56  ;;  %v5659_v22 = vrot.slane %v5658_v9, 2  ;;  %v5727_v5 = vrot.slane %v5726_v19, 4  ;;  %v5733_v26 = vsel %vm18024_vm6, %v5488_v62, -inf }
 0x60e   : > { %v5641_v20 = vmax.f32 %v5639_v39, %v5640_v46  ;;  %v5647_v17 = vrot.slane %v5646_v51, 1  ;;  %v5740_v8 = vsel %vm18024_vm6, %v5490_v14, -inf  ;;  %v5721_v44 = vmax.f32 %v5719_v33, %v5720_v0 }
 0x60f   : > { %v5654_v10 = vrot.slane %v5653_v37, 1  ;;  %v5660_v34 = vmax.f32 %v5658_v9, %v5659_v22  ;;  %v5728_v29 = vmax.f32 %v5726_v19, %v5727_v5  ;;  %v5734_v31 = vrot.slane %v5733_v26, 4 }
 0x610   : > { %v5648_v15 = vmax.f32 %v5646_v51, %v5647_v17  ;;  %v5763_v6 = vpack.c.bf16 %v5641_v20, %v5641_v20  ;;  %v5741_v27 = vrot.slane %v5740_v8, 4  ;;  %v5722_v3 = vrot.slane %v5721_v44, 2 }
 0x611   : > { %v5655_v45 = vmax.f32 %v5653_v37, %v5654_v10  ;;  %v5661_v52 = vrot.slane %v5660_v34, 1  ;;  %v5729_v48 = vrot.slane %v5728_v29, 2  ;;  %v5862_v40 = vsel %vm3891_vm8, %v5837_v57, %v5861_v7 }
 0x612   : > { %v5764_v41 = vpack.c.bf16 %v5648_v15, %v5648_v15  ;;  %v5735_v47 = vmax.f32 %v5733_v26, %v5734_v31  ;;  %v5742_v12 = vmax.f32 %v5740_v8, %v5741_v27  ;;  %v5723_v18 = vmax.f32 %v5721_v44, %v5722_v3 }
 0x613   : > { %v5662_v55 = vmax.f32 %v5660_v34, %v5661_v52  ;;  %v5765_v43 = vpack.c.bf16 %v5655_v45, %v5655_v45  ;;  %v5730_v53 = vmax.f32 %v5728_v29, %v5729_v48  ;;  %v5827_v36 = vunpack.c.l.b16 %v5763_v6 }
 0x614   : > { %v5828_v58 = vunpack.c.l.b16 %v5764_v41  ;;  %v5736_v21 = vrot.slane %v5735_v47, 2  ;;  %v5743_v42 = vrot.slane %v5742_v12, 2  ;;  %v5724_v11 = vrot.slane %v5723_v18, 1 }
 0x615   : > { %v5766_v35 = vpack.c.bf16 %v5662_v55, %v5662_v55  ;;  %v5829_v4 = vunpack.c.l.b16 %v5765_v43  ;;  %v5731_v54 = vrot.slane %v5730_v53, 1  ;;  %v5440_v1 = vcombine.high %v16410_v28, %v16410_v28 }
 0x616   : > { %v5855_v63 = vsel %vm3889_vm7, %v5828_v58, %v5827_v36  ;;  %v5737_v16 = vmax.f32 %v5735_v47, %v5736_v21  ;;  %v5744_v24 = vmax.f32 %v5742_v12, %v5743_v42  ;;  %v5725_v60 = vmax.f32 %v5723_v18, %v5724_v11 }
 0x617   : > { %v5830_v57 = vunpack.c.l.b16 %v5766_v35  ;;  %v5732_v2 = vmax.f32 %v5730_v53, %v5731_v54  ;;  %v5863_v62 = vsel %vm3893_vm9, %v5838_v30, %v5862_v40  ;;  %v5447_v49 = vrot.slane %v16410_v28, %v15575_v50 }
 0x618   : > { %v5738_v39 = vrot.slane %v5737_v16, 1  ;;  %v5745_v25 = vrot.slane %v5744_v24, 1  ;;  %v5454_v7 = vrot.slane %v5440_v1, %v15575_v50  ;;  %v5856_v56 = vsel %vm3891_vm8, %v5829_v4, %v5855_v63 }
 0x619   : > { %v5775_v9 = vpack.c.bf16 %v5725_v60, %v5725_v60  ;;  %v5776_v14 = vpack.c.bf16 %v5732_v2, %v5732_v2  ;;  %v5876_v46 = vsel %vm15050_vm2, 0, %v5868_v38  ;;  %v5455_v30 = vcombine.high %v5447_v49, %v5447_v49 }
 0x61a   : > { %v5739_v51 = vmax.f32 %v5737_v16, %v5738_v39  ;;  %v5746_v33 = vmax.f32 %v5744_v24, %v5745_v25  ;;  %v5456_v19 = vcombine.high %v5454_v7, %v5454_v7  ;;  %v5663_v28 = vsel %vm18024_vm6, %v5447_v49, -inf }
 0x61b   : > { %v5839_v37 = vunpack.c.l.b16 %v5775_v9  ;;  %v5840_v22 = vunpack.c.l.b16 %v5776_v14  ;;  %v5677_v0 = vsel %vm18024_vm6, %v5454_v7, -inf  ;;  %v5664_v59 = vrot.slane %v5663_v28, 4 }
 0x61c   : > { %v5777_v5 = vpack.c.bf16 %v5739_v51, %v5739_v51  ;;  %v5778_v20 = vpack.c.bf16 %v5746_v33, %v5746_v33  ;;  %v5670_v32 = vsel %vm18024_vm6, %v5455_v30, -inf  ;;  %v5678_v8 = vrot.slane %v5677_v0, 4 }
 0x61d   : > { %v5864_v38 = vsel %vm3895_vm10, %v5839_v37, %v5863_v62  ;;  %v5671_v26 = vrot.slane %v5670_v32, 4  ;;  %v5684_v10 = vsel %vm18024_vm6, %v5456_v19, -inf  ;;  %v5665_v15 = vmax.f32 %v5663_v28, %v5664_v59  ;;  %v14692_v28 = vld [vmem:[%s17997_s13 + $0x10] sm:$0xff]  }
 0x61e   : > { %v5841_v34 = vunpack.c.l.b16 %v5777_v5  ;;  %v5842_v44 = vunpack.c.l.b16 %v5778_v20  ;;  %v5865_v29 = vsel %vm3897_vm12, %v5840_v22, %v5864_v38  ;;  %v5679_v31 = vmax.f32 %v5677_v0, %v5678_v8 }
 0x61f   : > { %v5672_v6 = vmax.f32 %v5670_v32, %v5671_v26  ;;  %v5685_v27 = vrot.slane %v5684_v10, 4  ;;  %v16451_v45 = vsel %vm16440_vm4, %v16406_v61, 0  ;;  %v5666_v3 = vrot.slane %v5665_v15, 2 }
 0x620   : > { %v5866_v52 = vsel %vm3899_vm13, %v5841_v34, %v5865_v29  ;;  %v16456_v48 = vsel %vm16440_vm4, %v5876_v46, 0  ;;  %v16460_v40 = vcombine.low %v16451_v45, %v16451_v45  ;;  %v5680_v12 = vrot.slane %v5679_v31, 2 }
 0x621   : > { %v5870_v41 = vpack.c.b16 %v5842_v44, %v5866_v52  ;;  %v5673_v47 = vrot.slane %v5672_v6, 2  ;;  %v5686_v55 = vmax.f32 %v5684_v10, %v5685_v27  ;;  %v5667_v43 = vmax.f32 %v5665_v15, %v5666_v3 }
 0x622   : > { %v5857_v61 = vsel %vm3893_vm9, %v5830_v57, %v5856_v56  ;;  %v16465_v18 = vcombine.high %v16451_v45, %v16451_v45  ;;  %v16469_v53 = vcombine.low %v16456_v48, %v16456_v48  ;;  %v5681_v21 = vmax.f32 %v5679_v31, %v5680_v12 }
 0x623   : > { %v5878_v36 = vsel %vm15050_vm2, 0, %v5870_v41  ;;  %v5674_v58 = vmax.f32 %v5672_v6, %v5673_v47  ;;  %v5687_v42 = vrot.slane %v5686_v55, 2  ;;  %v5668_v4 = vrot.slane %v5667_v43, 1  ;;  %v14693_v41 = vld [vmem:[%s17997_s13 + $0x18] sm:$0xff]  }
 0x624   : > { %v16475_v35 = vsel %vm16440_vm4, %v5878_v36, 0  ;;  %v5919_v11 = vshrl.u32 %v16460_v40, 16  ;;  %v5922_v54 = vshll.u32 %v16460_v40, 16  ;;  %v5682_v24 = vrot.slane %v5681_v21, 1 }
 0x625   : > { %v16481_v63 = vcombine.low %v16475_v35, %v16475_v35  ;;  %v5675_v16 = vrot.slane %v5674_v58, 1  ;;  %v12094_v1 = vcombine.high %v16456_v48, %v16456_v48  ;;  %v5669_v57 = vmax.f32 %v5667_v43, %v5668_v4 }
 0x626   : > { %v5688_v60 = vmax.f32 %v5686_v55, %v5687_v42  ;;  %v5921_v2 = vrot.slane %v5919_v11, 4  ;;  %v5924_v62 = vrot.slane %v5922_v54, 5  ;;  %v5683_v25 = vmax.f32 %v5681_v21, %v5682_v24 }
 0x627   : > { %v5676_v39 = vmax.f32 %v5674_v58, %v5675_v16  ;;  %v5928_v49 = vshll.u32 %v16465_v18, 16  ;;  %v5933_v7 = vshrl.u32 %v16469_v53, 16  ;;  %v5767_v9 = vpack.c.bf16 %v5669_v57, %v5669_v57 }
 0x628   : > { %v5689_v56 = vrot.slane %v5688_v60, 1  ;;  %v5925_v14 = vor.u32 %v5924_v62, %v5921_v2  ;;  %v5936_v46 = vshll.u32 %v16469_v53, 16  ;;  %v12098_v51 = vcombine.high %v16475_v35, %v16475_v35 }
 0x629   : > { %v5768_v33 = vpack.c.bf16 %v5676_v39, %v5676_v39  ;;  %v5769_v30 = vpack.c.bf16 %v5683_v25, %v5683_v25  ;;  %v5935_v19 = vrot.slane %v5933_v7, 4  ;;  %v5831_v22 = vunpack.c.l.b16 %v5767_v9 }
 0x62a   : > { %v5690_v37 = vmax.f32 %v5688_v60, %v5689_v56  ;;  %v5926_v0 = vrot.slane %v5925_v14, 4  ;;  %v5938_v5 = vrot.slane %v5936_v46, 5  ;;  %v5930_v59 = vrot.slane %v5928_v49, 5 }
 0x62b   : > { %v5832_v20 = vunpack.c.l.b16 %v5768_v33  ;;  %v5942_v32 = vshll.u32 %v12094_v1, 16  ;;  %v5961_v38 = vshrl.u32 %v16481_v63, 16  ;;  %v5833_v8 = vunpack.c.l.b16 %v5769_v30 }
 0x62c   : > { %v5770_v26 = vpack.c.bf16 %v5690_v37, %v5690_v37  ;;  %v5858_v10 = vsel %vm3895_vm10, %v5831_v22, %v5857_v61  ;;  %v5939_v34 = vor.u32 %v5938_v5, %v5935_v19  ;;  %v5931_v29 = vsel %vm16492_vm0, %v5926_v0, %v5930_v59  ;;  %v14651_v22 = vld [vmem:[%s18053_s29 + $0x8] sm:$0xff]   ;;  %v14652_v0 = vld [vmem:[%s18053_s29 + $0x10] sm:$0xff]   ;;  %v14653_v5 = vld [vmem:[%s18053_s29 + $0x18] sm:$0xff]  }
 0x62d   : > { %v5859_v44 = vsel %vm3897_vm12, %v5832_v20, %v5858_v10  ;;  %v5944_v15 = vrot.slane %v5942_v32, 5  ;;  %v5964_v6 = vshll.u32 %v16481_v63, 16  ;;  %v5963_v3 = vrot.slane %v5961_v38, 4  ;;  %v14654_v20 = vld [vmem:[%s18053_s29 + $0x40] sm:$0xff]   ;;  %v14656_v59 = vld [vmem:[%s18053_s29 + $0x50] sm:$0xff]   ;;  %v14657_v32 = vld [vmem:[%s18053_s29 + $0x58] sm:$0xff]  }
 0x62e   : > { %v5834_v31 = vunpack.c.l.b16 %v5770_v26  ;;  %v5860_v27 = vsel %vm3899_vm13, %v5833_v8, %v5859_v44  ;;  %v5940_v52 = vrot.slane %v5939_v34, 4  ;;  %v12115_v12 = vcombine.low %v16451_v45, %v16456_v48  ;;  %v14659_v38 = vld [vmem:[%s18055_s11 + $0x48] sm:$0xff]   ;;  %v14660_v26 = vld [vmem:[%s18055_s11 + $0x50] sm:$0xff]   ;;  %v14661_v8 = vld [vmem:[%s18055_s11 + $0x58] sm:$0xff]  }
 0x62f   : > { %v5966_v47 = vrot.slane %v5964_v6, 5  ;;  %v12123_v55 = vrot.slane %v16460_v40, 9  ;;  %v6154_v43 = vrot.slane %v16465_v18, 5  ;;  %v12124_v58 = vrot.slane %v16469_v53, 9  ;;  %13754 = vmatprep.subr.bf16.mxu1 %v14659_v38  ;;  %v14662_v10 = vld [vmem:[%s18055_s11 + $0x60] sm:$0xff]   ;;  %v14663_v34 = vld [vmem:[%s18055_s11 + $0x68] sm:$0xff]  }
 0x630   : > { %v5869_v61 = vpack.c.b16 %v5834_v31, %v5860_v27  ;;  %v5945_v36 = vsel %vm16492_vm0, %v5940_v52, %v5944_v15  ;;  %v6158_v4 = vrot.slane %v12094_v1, 5  ;;  %v12126_v40 = vrot.slane %v16481_v63, 9  ;;  %13755 = vmatpush3.bf16.msra.mxu1 %v14659_v38  ;;  %v14664_v44 = vld [vmem:[%s18055_s11 + $0x70] sm:$0xff]   ;;  %v16586_v15 = vld [vmem:[%s18055_s11] sm:$0xff]  }
 0x631   : > { %v12107_v21 = vcombine.low %v5931_v29, %v5945_v36  ;;  %v6155_v42 = vsel %vm16505_vm5, %v12123_v55, %v6154_v43  ;;  %v5967_v54 = vor.u32 %v5966_v47, %v5963_v3  ;;  %v6166_v18 = vrot.slane %v12098_v51, 5  ;;  %13756 = vmatprep.subr.bf16.mxu1 %v14660_v26  ;;  %v14665_v29 = vld [vmem:[%s18055_s11 + $0x78] sm:$0xff]   ;;  %v14682_v6 = vld [vmem:[%s17997_s13 + $0x40] sm:$0xff]  }
 0x632   : > { %v5877_v11 = vsel %vm15050_vm2, 0, %v5869_v61  ;;  %v6159_v48 = vsel %vm16505_vm5, %v12124_v58, %v6158_v4  ;;  %v5970_v2 = vshll.u32 %v12098_v51, 16  ;;  %v12143_v31 = vld [vmem:[%s18062_s30] ss:$0 sm:$0xff]  ;;  %vm7934_vm10 = vsmask.f32 2304 }
 0x633   : > { %v5884_v45 = vsel %vm16440_vm4, %v5877_v11, 0  ;;  %13724 = vmatprep.mubr.msk.bf16.mxu0 %vm4062_vm14, %v12107_v21  ;;  %v12135_v1 = vcombine.low %v6155_v42, %v6159_v48  ;;  %v6167_v25 = vsel %vm16505_vm5, %v12126_v40, %v6166_v18  ;;  %v5968_v9 = vrot.slane %v5967_v54, 4  ;;  %vm16960_vm13 = vmand %vm6149_vm15, %vm7934_vm10 }
 0x634   : > { %v12095_v53 = vcombine.low %v5884_v45, %v5884_v45  ;;  %v12096_v16 = vcombine.high %v5884_v45, %v5884_v45  ;;  %v12116_v24 = vcombine.low %v5884_v45, %v16475_v35  ;;  %v5972_v46 = vrot.slane %v5970_v2, 5  ;;  %13757 = vmatpush3.bf16.msra.mxu1 %v14660_v26  ;;  %vm8228_vm15 = vmor %vm949_vm1, %vm3889_vm7 }
 0x635   : > { %13758 = vmatprep.subr.bf16.mxu1 %v14661_v8  ;;  %vm7990_vm10 = vsmask.f32 7448 }
 0x636   : > { %v5947_v57 = vshrl.u32 %v12095_v53, 16  ;;  %v5950_v60 = vshll.u32 %v12095_v53, 16  ;;  %v12125_v62 = vrot.slane %v12095_v53, 9  ;;  %v6162_v39 = vrot.slane %v12096_v16, 5 }
 0x637   : > { %v5956_v56 = vshll.u32 %v12096_v16, 16  ;;  %v5973_v51 = vsel %vm16492_vm0, %v5968_v9, %v5972_v46 }
 0x638   : > { %v5949_v49 = vrot.slane %v5947_v57, 4  ;;  %v5952_v7 = vrot.slane %v5950_v60, 5  ;;  %v6163_v63 = vsel %vm16505_vm5, %v12125_v62, %v6162_v39  ;;  %13759 = vmatpush3.bf16.msra.mxu1 %v14661_v8 }
 0x639   : > { %v12136_v33 = vcombine.low %v6163_v63, %v6167_v25  ;;  %v5958_v30 = vrot.slane %v5956_v56, 5  ;;  %13760 = vmatprep.subr.bf16.mxu1 %v14662_v10 }
 0x63a   : > { %v5953_v14 = vor.u32 %v5952_v7, %v5949_v49 }
 0x63c   : > { %v5954_v35 = vrot.slane %v5953_v14, 4  ;;  %13761 = vmatpush3.bf16.msra.mxu1 %v14662_v10 }
 0x63d   : > { %13762 = vmatprep.subr.bf16.mxu1 %v14663_v34 }
 0x63e   : > { %v5959_v19 = vsel %vm16492_vm0, %v5954_v35, %v5958_v30 }
 0x63f   : > { %v12108_v37 = vcombine.low %v5959_v19, %v5973_v51 }
 0x640   : > { %13763 = vmatpush3.bf16.msra.mxu1 %v14663_v34 }
 0x641   : > { %13725 = vmatmul.mubr.msk.bf16.vlgmr.msra.gmra.mrb[32].mxu0 %vm4062_vm14, %v12108_v37  ;;  %13764 = vmatprep.subr.bf16.mxu1 %v14664_v44 }
 0x642   : > { %13729 = vmatpush3.bf16.msra.mxu0 %v16296_v23  ;;  %13736 = vmatprep.mubr.msk.bf16.mxu0 %vm4062_vm14, %v12115_v12  ;;  %v14655_v23 = vld [vmem:[%s18053_s29 + $0x48] sm:$0xff]  }
 0x643   : > { %13730 = vmatprep.subr.bf16.mxu0 %v14651_v22 }
 0x644   : > { %13765 = vmatpush3.bf16.msra.mxu1 %v14664_v44 }
 0x645   : > { %13766 = vmatprep.subr.bf16.mxu1 %v14665_v29 }
 0x646   : > { %13731 = vmatpush3.bf16.msra.mxu0 %v14651_v22 }
 0x647   : > { %13732 = vmatprep.subr.bf16.mxu0 %v14652_v0 }
 0x648   : > { %13767 = vmatpush3.bf16.msra.mxu1 %v14665_v29 }
 0x649   : > { %13772 = vmatprep.subr.bf16.mxu1 %v16586_v15 }
 0x64a   : > { %13733 = vmatpush3.bf16.msra.mxu0 %v14652_v0 }
 0x64b   : > { %13734 = vmatprep.subr.bf16.mxu0 %v14653_v5 }
 0x64e   : > { %13735 = vmatpush3.bf16.msra.mxu0 %v14653_v5 }
 0x64f   : > { %13740 = vmatprep.subr.bf16.mxu0 %v14654_v20 }
 0x651   : > { %13737 = vmatmul.mubr.msk.bf16.vlgmr.msra.gmra.mrb[32].mxu0 %vm4062_vm14, %v12116_v24 }
 0x652   : > { %13741 = vmatpush3.bf16.msra.mxu0 %v14654_v20  ;;  %13748 = vmatprep.mubr.msk.bf16.mxu0 %vm4062_vm14, %v12135_v1 }
 0x653   : > { %13742 = vmatprep.subr.bf16.mxu0 %v14655_v23 }
 0x656   : > { %13743 = vmatpush3.bf16.msra.mxu0 %v14655_v23 }
 0x657   : > { %13744 = vmatprep.subr.bf16.mxu0 %v14656_v59 }
 0x65a   : > { %13745 = vmatpush3.bf16.msra.mxu0 %v14656_v59 }
 0x65b   : > { %13746 = vmatprep.subr.bf16.mxu0 %v14657_v32 }
 0x65e   : > { %13747 = vmatpush3.bf16.msra.mxu0 %v14657_v32 }
 0x65f   : > { %13812 = vmatprep.subr.bf16.mxu0 %v14682_v6 }
 0x661   : > { %13749 = vmatmul.mubr.msk.bf16.vlgmr.msra.gmra.mrb[32].mxu0 %vm4062_vm14, %v12136_v33 }
 0x662   : > { %13813 = vmatpush3.bf16.msra.mxu0 %v14682_v6 }
 0x734   : > { %v13750_v27 = vpop.f32.mrb[32].mxu0 }
 0x735   : > { %v6274_v52 = vadd.f32 %v13750_v27, %v12143_v31  ;;  %v6247_v3 = vpop.f32.mrb[33].mxu0 }
 0x736   : > { %v6272_v47 = vadd.f32 %v12143_v31, %v6247_v3  ;;  %v13751_v12 = vpop.f32.mrb[34].mxu0 }
 0x737   : > { %v6278_v55 = vmax.f32 %v6274_v52, 0.0  ;;  %v6275_v43 = vadd.f32 %v13751_v12, %v12143_v31  ;;  %v6250_v61 = vpop.f32.mrb[35].mxu0 }
 0x738   : > { %v6276_v36 = vmax.f32 %v6272_v47, 0.0  ;;  %v6273_v58 = vadd.f32 %v12143_v31, %v6250_v61 }
 0x739   : > { %v6282_v21 = vpack.c.bf16 %v6278_v55, %v6278_v55  ;;  %v6279_v42 = vmax.f32 %v6275_v43, 0.0 }
 0x73a   : > { %v6280_v4 = vpack.c.bf16 %v6276_v36, %v6276_v36  ;;  %v6277_v11 = vmax.f32 %v6273_v58, 0.0 }
 0x73b   : > { %v6299_v54 = vshrl.u32 %v6282_v21, 16  ;;  %v6283_v45 = vpack.c.bf16 %v6279_v42, %v6279_v42  ;;  %v6302_v53 = vshll.u32 %v6282_v21, 16 }
 0x73c   : > { %v6285_v48 = vshrl.u32 %v6280_v4, 16  ;;  %v6281_v40 = vpack.c.bf16 %v6277_v11, %v6277_v11  ;;  %v6288_v1 = vshll.u32 %v6280_v4, 16 }
 0x73d   : > { %v6301_v18 = vrot.slane %v6299_v54, 7  ;;  %v6306_v16 = vshrl.u32 %v6283_v45, 16  ;;  %v6309_v62 = vshll.u32 %v6283_v45, 16 }
 0x73e   : > { %v6287_v24 = vrot.slane %v6285_v48, 7  ;;  %v6292_v57 = vshrl.u32 %v6281_v40, 16  ;;  %v6295_v49 = vshll.u32 %v6281_v40, 16 }
 0x73f   : > { %v6304_v60 = vor.u32 %v6302_v53, %v6301_v18  ;;  %v6308_v2 = vrot.slane %v6306_v16, 7 }
 0x740   : > { %v6290_v39 = vor.u32 %v6288_v1, %v6287_v24  ;;  %v6294_v25 = vrot.slane %v6292_v57, 7 }
 0x741   : > { %v6318_v7 = vsel %vm15050_vm2, 0, %v6304_v60  ;;  %v6311_v56 = vor.u32 %v6309_v62, %v6308_v2 }
 0x742   : > { %v16599_v9 = vsel %vm16440_vm4, %v6318_v7, 0  ;;  %v6316_v63 = vsel %vm15050_vm2, 0, %v6290_v39  ;;  %v6297_v14 = vor.u32 %v6295_v49, %v6294_v25 }
 0x743   : > { %v12148_v46 = vcombine.low %v16599_v9, %v16599_v9  ;;  %v12149_v33 = vcombine.high %v16599_v9, %v16599_v9  ;;  %v16609_v35 = vsel %vm16440_vm4, %v6316_v63, 0  ;;  %v6319_v30 = vsel %vm15050_vm2, 0, %v6311_v56 }
 0x744   : > { %v12144_v51 = vcombine.low %v16609_v35, %v16609_v35  ;;  %v16617_v19 = vsel %vm16440_vm4, %v6319_v30, 0  ;;  %v6317_v37 = vsel %vm15050_vm2, 0, %v6297_v14  ;;  %v12145_v8 = vcombine.high %v16609_v35, %v16609_v35 }
 0x745   : > { %v6390_v22 = vshrl.u32 %v12148_v46, 16  ;;  %v6393_v0 = vshll.u32 %v12148_v46, 16  ;;  %v6399_v5 = vshll.u32 %v12149_v33, 16  ;;  %v12150_v20 = vcombine.low %v16617_v19, %v16617_v19 }
 0x746   : > { %v12151_v23 = vcombine.high %v16617_v19, %v16617_v19  ;;  %v6321_v59 = vsel %vm16440_vm4, %v6317_v37, 0  ;;  %v6362_v32 = vshrl.u32 %v12144_v51, 16  ;;  %v6650_v34 = vrot.slane %v12149_v33, 5 }
 0x747   : > { %v6392_v38 = vrot.slane %v6390_v22, 4  ;;  %v6395_v26 = vrot.slane %v6393_v0, 5  ;;  %v12146_v10 = vcombine.low %v6321_v59, %v6321_v59  ;;  %v6404_v44 = vshrl.u32 %v12150_v20, 16 }
 0x748   : > { %v6407_v29 = vshll.u32 %v12150_v20, 16  ;;  %v6413_v6 = vshll.u32 %v12151_v23, 16  ;;  %v12147_v27 = vcombine.high %v6321_v59, %v6321_v59  ;;  %v6364_v52 = vrot.slane %v6362_v32, 4  ;;  %v14672_v32 = vld [vmem:[%s18055_s11 + $0x30] sm:$0xff]  }
 0x749   : > { %v6396_v31 = vor.u32 %v6395_v26, %v6392_v38  ;;  %v6365_v3 = vshll.u32 %v12144_v51, 16  ;;  %v6401_v47 = vrot.slane %v6399_v5, 5  ;;  %v6406_v12 = vrot.slane %v6404_v44, 4  ;;  %v14667_v5 = vld [vmem:[%s18055_s11 + $0x8] sm:$0xff]   ;;  %v14673_v38 = vld [vmem:[%s18055_s11 + $0x38] sm:$0xff]   ;;  %v14674_v26 = vld [vmem:[%s18055_s11 + $0x80] sm:$0xff]  }
 0x74a   : > { %v6409_v55 = vrot.slane %v6407_v29, 5  ;;  %v6654_v43 = vrot.slane %v12151_v23, 5  ;;  %v6415_v61 = vrot.slane %v6413_v6, 5  ;;  %v6376_v58 = vshrl.u32 %v12146_v10, 16  ;;  %v14669_v23 = vld [vmem:[%s18055_s11 + $0x18] sm:$0xff]   ;;  %v14678_v44 = vld [vmem:[%s18055_s11 + $0xa0] sm:$0xff]  }
 0x74b   : > { %v6367_v36 = vrot.slane %v6365_v3, 5  ;;  %v6379_v21 = vshll.u32 %v12146_v10, 16  ;;  %v6371_v4 = vshll.u32 %v12145_v8, 16  ;;  %v6397_v11 = vrot.slane %v6396_v31, 4  ;;  %v14679_v29 = vld [vmem:[%s18055_s11 + $0xa8] sm:$0xff]   ;;  %v14680_v6 = vld [vmem:[%s18055_s11 + $0xb0] sm:$0xff]  }
 0x74c   : > { %v6410_v42 = vor.u32 %v6409_v55, %v6406_v12  ;;  %v12178_v54 = vcombine.low %v16609_v35, %v6321_v59  ;;  %v6378_v48 = vrot.slane %v6376_v58, 4  ;;  %v6385_v18 = vshll.u32 %v12147_v27, 16  ;;  %v14670_v59 = vld [vmem:[%s18055_s11 + $0x20] sm:$0xff]   ;;  %v14681_v31 = vld [vmem:[%s18055_s11 + $0xb8] sm:$0xff]   ;;  %v14687_v12 = vld [vmem:[%s17997_s13 + $0x68] sm:$0xff]  }
 0x74d   : > { %v6368_v45 = vor.u32 %v6367_v36, %v6364_v52  ;;  %v6381_v40 = vrot.slane %v6379_v21, 5  ;;  %v6402_v53 = vsel %vm16492_vm0, %v6397_v11, %v6401_v47  ;;  %v12179_v24 = vcombine.low %v16599_v9, %v16617_v19  ;;  %v14684_v52 = vld [vmem:[%s17997_s13 + $0x50] sm:$0xff]   ;;  %v14685_v3 = vld [vmem:[%s17997_s13 + $0x58] sm:$0xff]   ;;  %v14686_v47 = vld [vmem:[%s17997_s13 + $0x60] sm:$0xff]  }
 0x74e   : > { %v6411_v16 = vrot.slane %v6410_v42, 4  ;;  %v12188_v1 = vrot.slane %v12144_v51, 9  ;;  %v6642_v2 = vrot.slane %v12145_v8, 5  ;;  %v12189_v62 = vrot.slane %v12146_v10, 9  ;;  %v14675_v8 = vld [vmem:[%s18055_s11 + $0x88] sm:$0xff]   ;;  %v14676_v10 = vld [vmem:[%s18055_s11 + $0x90] sm:$0xff]  }
 0x74f   : > { %v6369_v57 = vrot.slane %v6368_v45, 4  ;;  %v6382_v60 = vor.u32 %v6381_v40, %v6378_v48  ;;  %v6646_v25 = vrot.slane %v12147_v27, 5  ;;  %v12190_v49 = vrot.slane %v12148_v46, 9  ;;  %v14683_v27 = vld [vmem:[%s17997_s13 + $0x48] sm:$0xff]   ;;  %v14688_v55 = vld [vmem:[%s17997_s13 + $0x70] sm:$0xff]  }
 0x750   : > { %v6416_v39 = vsel %vm16492_vm0, %v6411_v16, %v6415_v61  ;;  %v12191_v7 = vrot.slane %v12150_v20, 9  ;;  %v6373_v56 = vrot.slane %v6371_v4, 5  ;;  %v6387_v14 = vrot.slane %v6385_v18, 5  ;;  %v14668_v20 = vld [vmem:[%s18055_s11 + $0x10] sm:$0xff]   ;;  %13814 = vmatprep.subr.bf16.mxu0 %v14683_v27  ;;  %v16718_v61 = vld [vmem:[%s17997_s13] sm:$0xff]  }
 0x751   : > { %v6383_v63 = vrot.slane %v6382_v60, 4  ;;  %v12169_v33 = vcombine.low %v6402_v53, %v6416_v39  ;;  %v6643_v35 = vsel %vm16505_vm5, %v12188_v1, %v6642_v2  ;;  %v6647_v9 = vsel %vm16505_vm5, %v12189_v62, %v6646_v25  ;;  %13815 = vmatpush3.bf16.msra.mxu0 %v14683_v27  ;;  %v12218_v36 = vld [vmem:[%s17996_s12] ss:$0 sm:$0xff] }
 0x752   : > { %v6651_v30 = vsel %vm16505_vm5, %v12190_v49, %v6650_v34  ;;  %v6655_v51 = vsel %vm16505_vm5, %v12191_v7, %v6654_v43  ;;  %v6374_v46 = vsel %vm16492_vm0, %v6369_v57, %v6373_v56  ;;  %v12208_v37 = vcombine.low %v6643_v35, %v6647_v9  ;;  %v14677_v34 = vld [vmem:[%s18055_s11 + $0x98] sm:$0xff]   ;;  %13816 = vmatprep.subr.bf16.mxu0 %v14684_v52 }
 0x753   : > { %v6388_v19 = vsel %vm16492_vm0, %v6383_v63, %v6387_v14  ;;  %v12209_v22 = vcombine.low %v6651_v30, %v6655_v51  ;;  %v14689_v43 = vld [vmem:[%s17997_s13 + $0x78] sm:$0xff]  }
 0x754   : > { %v12168_v0 = vcombine.low %v6374_v46, %v6388_v19 }
 0x755   : > { %13817 = vmatpush3.bf16.msra.mxu0 %v14684_v52 }
 0x756   : > { %13768 = vmatprep.mubr.bf16.mxu1 %v12168_v0  ;;  %13818 = vmatprep.subr.bf16.mxu0 %v14685_v3 }
 0x757   : > { %13769 = vmatmul.mubr.bf16.vlgmr.msra.gmra.mrb[40].mxu1 %v12169_v33 }
 0x758   : > { %13773 = vmatpush3.bf16.msra.mxu1 %v16586_v15  ;;  %13788 = vmatprep.mubr.bf16.mxu1 %v12178_v54  ;;  %v14671_v15 = vld [vmem:[%s18055_s11 + $0x28] sm:$0xff]  }
 0x759   : > { %13774 = vmatprep.subr.bf16.mxu1 %v14667_v5  ;;  %13819 = vmatpush3.bf16.msra.mxu0 %v14685_v3 }
 0x75a   : > { %13820 = vmatprep.subr.bf16.mxu0 %v14686_v47 }
 0x75c   : > { %13775 = vmatpush3.bf16.msra.mxu1 %v14667_v5 }
 0x75d   : > { %13776 = vmatprep.subr.bf16.mxu1 %v14668_v20  ;;  %13821 = vmatpush3.bf16.msra.mxu0 %v14686_v47 }
 0x75e   : > { %13822 = vmatprep.subr.bf16.mxu0 %v14687_v12 }
 0x760   : > { %13777 = vmatpush3.bf16.msra.mxu1 %v14668_v20 }
 0x761   : > { %13778 = vmatprep.subr.bf16.mxu1 %v14669_v23  ;;  %13823 = vmatpush3.bf16.msra.mxu0 %v14687_v12 }
 0x762   : > { %13824 = vmatprep.subr.bf16.mxu0 %v14688_v55 }
 0x764   : > { %13779 = vmatpush3.bf16.msra.mxu1 %v14669_v23 }
 0x765   : > { %13780 = vmatprep.subr.bf16.mxu1 %v14670_v59  ;;  %13825 = vmatpush3.bf16.msra.mxu0 %v14688_v55 }
 0x766   : > { %13826 = vmatprep.subr.bf16.mxu0 %v14689_v43 }
 0x768   : > { %13781 = vmatpush3.bf16.msra.mxu1 %v14670_v59 }
 0x769   : > { %13782 = vmatprep.subr.bf16.mxu1 %v14671_v15  ;;  %13827 = vmatpush3.bf16.msra.mxu0 %v14689_v43 }
 0x76a   : > { %13832 = vmatprep.subr.bf16.mxu0 %v16718_v61 }
 0x76c   : > { %13783 = vmatpush3.bf16.msra.mxu1 %v14671_v15 }
 0x76d   : > { %13784 = vmatprep.subr.bf16.mxu1 %v14672_v32 }
 0x770   : > { %13785 = vmatpush3.bf16.msra.mxu1 %v14672_v32 }
 0x771   : > { %13786 = vmatprep.subr.bf16.mxu1 %v14673_v38 }
 0x774   : > { %13787 = vmatpush3.bf16.msra.mxu1 %v14673_v38 }
 0x775   : > { %13792 = vmatprep.subr.bf16.mxu1 %v14674_v26 }
 0x777   : > { %13789 = vmatmul.mubr.bf16.vlgmr.msra.gmra.mrb[40].mxu1 %v12179_v24 }
 0x778   : > { %13793 = vmatpush3.bf16.msra.mxu1 %v14674_v26  ;;  %13808 = vmatprep.mubr.bf16.mxu1 %v12208_v37 }
 0x779   : > { %13794 = vmatprep.subr.bf16.mxu1 %v14675_v8 }
 0x77c   : > { %13795 = vmatpush3.bf16.msra.mxu1 %v14675_v8 }
 0x77d   : > { %13796 = vmatprep.subr.bf16.mxu1 %v14676_v10 }
 0x780   : > { %13797 = vmatpush3.bf16.msra.mxu1 %v14676_v10 }
 0x781   : > { %13798 = vmatprep.subr.bf16.mxu1 %v14677_v34 }
 0x784   : > { %13799 = vmatpush3.bf16.msra.mxu1 %v14677_v34 }
 0x785   : > { %13800 = vmatprep.subr.bf16.mxu1 %v14678_v44 }
 0x788   : > { %13801 = vmatpush3.bf16.msra.mxu1 %v14678_v44 }
 0x789   : > { %13802 = vmatprep.subr.bf16.mxu1 %v14679_v29 }
 0x78c   : > { %13803 = vmatpush3.bf16.msra.mxu1 %v14679_v29 }
 0x78d   : > { %13804 = vmatprep.subr.bf16.mxu1 %v14680_v6 }
 0x790   : > { %13805 = vmatpush3.bf16.msra.mxu1 %v14680_v6 }
 0x791   : > { %13806 = vmatprep.subr.bf16.mxu1 %v14681_v31 }
 0x794   : > { %13807 = vmatpush3.bf16.msra.mxu1 %v14681_v31 }
 0x797   : > { %13809 = vmatmul.mubr.bf16.vlgmr.msra.gmra.mrb[40].mxu1 %v12209_v22 }
 0x86a   : > { %v13810_v58 = vpop.f32.mrb[40].mxu1 }
 0x86b   : > { %v6790_v21 = vadd.f32 %v13810_v58, %v12218_v36  ;;  %v6763_v42 = vpop.f32.mrb[41].mxu1 }
 0x86c   : > { %v6788_v4 = vadd.f32 %v12218_v36, %v6763_v42  ;;  %v13811_v11 = vpop.f32.mrb[42].mxu1 }
 0x86d   : > { %v6794_v54 = vmax.f32 %v6790_v21, 0.0  ;;  %v6791_v45 = vadd.f32 %v13811_v11, %v12218_v36  ;;  %v6766_v48 = vpop.f32.mrb[43].mxu1 }
 0x86e   : > { %v6792_v40 = vmax.f32 %v6788_v4, 0.0  ;;  %v6789_v18 = vadd.f32 %v12218_v36, %v6766_v48 }
 0x86f   : > { %v6798_v53 = vpack.c.bf16 %v6794_v54, %v6794_v54  ;;  %v6795_v16 = vmax.f32 %v6791_v45, 0.0 }
 0x870   : > { %v6796_v24 = vpack.c.bf16 %v6792_v40, %v6792_v40  ;;  %v6793_v1 = vmax.f32 %v6789_v18, 0.0 }
 0x871   : > { %v6815_v57 = vshrl.u32 %v6798_v53, 16  ;;  %v6799_v60 = vpack.c.bf16 %v6795_v16, %v6795_v16  ;;  %v6818_v25 = vshll.u32 %v6798_v53, 16 }
 0x872   : > { %v6801_v2 = vshrl.u32 %v6796_v24, 16  ;;  %v6797_v62 = vpack.c.bf16 %v6793_v1, %v6793_v1  ;;  %v6804_v56 = vshll.u32 %v6796_v24, 16 }
 0x873   : > { %v6817_v39 = vrot.slane %v6815_v57, 7  ;;  %v6822_v49 = vshrl.u32 %v6799_v60, 16  ;;  %v6825_v35 = vshll.u32 %v6799_v60, 16 }
 0x874   : > { %v6803_v7 = vrot.slane %v6801_v2, 7  ;;  %v6808_v63 = vshrl.u32 %v6797_v62, 16  ;;  %v6811_v51 = vshll.u32 %v6797_v62, 16 }
 0x875   : > { %v6820_v14 = vor.u32 %v6818_v25, %v6817_v39  ;;  %v6824_v33 = vrot.slane %v6822_v49, 7 }
 0x876   : > { %v6806_v9 = vor.u32 %v6804_v56, %v6803_v7  ;;  %v6810_v30 = vrot.slane %v6808_v63, 7 }
 0x877   : > { %v6834_v46 = vsel %vm15050_vm2, 0, %v6820_v14  ;;  %v6827_v19 = vor.u32 %v6825_v35, %v6824_v33 }
 0x878   : > { %v6838_v37 = vsel %vm16440_vm4, %v6834_v46, 0  ;;  %v6832_v22 = vsel %vm15050_vm2, 0, %v6806_v9  ;;  %v6813_v0 = vor.u32 %v6811_v51, %v6810_v30 }
 0x879   : > { %v16730_v5 = vcombine.low %v6838_v37, %v6838_v37  ;;  %v16732_v20 = vcombine.high %v6838_v37, %v6838_v37  ;;  %v6836_v23 = vsel %vm16440_vm4, %v6832_v22, 0  ;;  %v6835_v59 = vsel %vm15050_vm2, 0, %v6827_v19 }
 0x87a   : > { %v12235_v15 = vcombine.low %v6836_v23, %v6836_v23  ;;  %v12236_v32 = vcombine.high %v6836_v23, %v6836_v23  ;;  %v6839_v38 = vsel %vm16440_vm4, %v6835_v59, 0  ;;  %v6833_v26 = vsel %vm15050_vm2, 0, %v6813_v0 }
 0x87b   : > { %v6923_v8 = vshrl.u32 %v16730_v5, 16  ;;  %v6926_v10 = vshll.u32 %v16730_v5, 16  ;;  %v6932_v34 = vshll.u32 %v16732_v20, 16  ;;  %v12241_v44 = vcombine.low %v6839_v38, %v6839_v38 }
 0x87c   : > { %v12242_v29 = vcombine.high %v6839_v38, %v6839_v38  ;;  %v6837_v6 = vsel %vm16440_vm4, %v6833_v26, 0  ;;  %v6895_v31 = vshrl.u32 %v12235_v15, 16  ;;  %v6898_v3 = vshll.u32 %v12235_v15, 16  ;;  %v14691_v26 = vld [vmem:[%s17997_s13 + $0x8] sm:$0xff]  }
 0x87d   : > { %v12237_v27 = vcombine.low %v6837_v6, %v6837_v6  ;;  %v12238_v52 = vcombine.high %v6837_v6, %v6837_v6  ;;  %v6904_v47 = vshll.u32 %v12236_v32, 16  ;;  %v7394_v12 = vrot.slane %v16732_v20, 5 }
 0x87e   : > { %v6937_v55 = vshrl.u32 %v12241_v44, 16  ;;  %v6940_v43 = vshll.u32 %v12241_v44, 16  ;;  %v6946_v36 = vshll.u32 %v12242_v29, 16  ;;  %v7398_v58 = vrot.slane %v12242_v29, 5  ;;  %v14698_v29 = vld [vmem:[%s17997_s13 + $0x100] sm:$0xff]  }
 0x87f   : > { %v6897_v21 = vrot.slane %v6895_v31, 4  ;;  %v6900_v42 = vrot.slane %v6898_v3, 5  ;;  %v6909_v4 = vshrl.u32 %v12237_v27, 16  ;;  %v6912_v11 = vshll.u32 %v12237_v27, 16  ;;  %v14700_v31 = vld [vmem:[%s17997_s13 + $0x110] sm:$0xff]   ;;  %v14703_v3 = vld [vmem:[%s17997_s13 + $0x128] sm:$0xff]  }
 0x880   : > { %v6918_v54 = vshll.u32 %v12238_v52, 16  ;;  %v6925_v45 = vrot.slane %v6923_v8, 4  ;;  %v6928_v48 = vrot.slane %v6926_v10, 5  ;;  %v6906_v40 = vrot.slane %v6904_v47, 5  ;;  %v14694_v10 = vld [vmem:[%s17997_s13 + $0x20] sm:$0xff]   ;;  %v14704_v47 = vld [vmem:[%s17997_s13 + $0x130] sm:$0xff]  }
 0x881   : > { %v6901_v17 = vor.u32 %v6900_v42, %v6897_v21  ;;  %v6911_v18 = vrot.slane %v6909_v4, 4  ;;  %v6939_v53 = vrot.slane %v6937_v55, 4  ;;  %v6914_v16 = vrot.slane %v6912_v11, 5  ;;  %v14706_v55 = vld [vmem:[%s17997_s13 + $0xc0] sm:$0xff]   ;;  %v14711_v42 = vld [vmem:[%s17997_s13 + $0xe8] sm:$0xff]   ;;  %v14712_v4 = vld [vmem:[%s17997_s13 + $0xf0] sm:$0xff]  }
 0x882   : > { %v6929_v24 = vor.u32 %v6928_v48, %v6925_v45  ;;  %v6934_v1 = vrot.slane %v6932_v34, 5  ;;  %v6942_v57 = vrot.slane %v6940_v43, 5  ;;  %v6920_v2 = vrot.slane %v6918_v54, 5  ;;  %v14696_v34 = vld [vmem:[%s17997_s13 + $0x30] sm:$0xff]   ;;  %v14707_v43 = vld [vmem:[%s17997_s13 + $0xc8] sm:$0xff]   ;;  %v14710_v21 = vld [vmem:[%s17997_s13 + $0xe0] sm:$0xff]  }
 0x883   : > { %v6902_v60 = vrot.slane %v6901_v17, 4  ;;  %v16748_v62 = vcombine.low %v6836_v23, %v6837_v6  ;;  %v16750_v39 = vcombine.low %v6838_v37, %v6839_v38  ;;  %v6915_v25 = vor.u32 %v6914_v16, %v6911_v18  ;;  %v14699_v6 = vld [vmem:[%s17997_s13 + $0x108] sm:$0xff]   ;;  %v14713_v11 = vld [vmem:[%s17997_s13 + $0xf8] sm:$0xff]   ;;  %v14714_v54 = vld [vmem:[%s17997_s13 + $0x80] sm:$0xff]  }
 0x884   : > { %v6930_v49 = vrot.slane %v6929_v24, 4  ;;  %v6943_v7 = vor.u32 %v6942_v57, %v6939_v53  ;;  %v12311_v56 = vrot.slane %v12235_v15, 9  ;;  %v6948_v63 = vrot.slane %v6946_v36, 5  ;;  %v14708_v36 = vld [vmem:[%s17997_s13 + $0xd0] sm:$0xff]   ;;  %v14715_v45 = vld [vmem:[%s17997_s13 + $0x88] sm:$0xff]   ;;  %v14717_v17 = vld [vmem:[%s17997_s13 + $0x98] sm:$0xff]  }
 0x885   : > { %v7386_v14 = vrot.slane %v12236_v32, 5  ;;  %v12312_v33 = vrot.slane %v12237_v27, 9  ;;  %v7390_v35 = vrot.slane %v12238_v52, 5  ;;  %v6907_v9 = vsel %vm16492_vm0, %v6902_v60, %v6906_v40  ;;  %v14701_v27 = vld [vmem:[%s17997_s13 + $0x118] sm:$0xff]   ;;  %v14702_v52 = vld [vmem:[%s17997_s13 + $0x120] sm:$0xff]   ;;  %v14716_v48 = vld [vmem:[%s17997_s13 + $0x90] sm:$0xff]  }
 0x886   : > { %v6916_v30 = vrot.slane %v6915_v25, 4  ;;  %v6944_v51 = vrot.slane %v6943_v7, 4  ;;  %v12313_v46 = vrot.slane %v16730_v5, 9  ;;  %v6935_v19 = vsel %vm16492_vm0, %v6930_v49, %v6934_v1  ;;  %v14718_v40 = vld [vmem:[%s17997_s13 + $0xa0] sm:$0xff]   ;;  %v14719_v18 = vld [vmem:[%s17997_s13 + $0xa8] sm:$0xff]   ;;  %v14720_v53 = vld [vmem:[%s17997_s13 + $0xb0] sm:$0xff]  }
 0x887   : > { %v7387_v37 = vsel %vm16505_vm5, %v12311_v56, %v7386_v14  ;;  %v7391_v22 = vsel %vm16505_vm5, %v12312_v33, %v7390_v35  ;;  %v12314_v0 = vrot.slane %v12241_v44, 9  ;;  %v14697_v44 = vld [vmem:[%s17997_s13 + $0x38] sm:$0xff]   ;;  %v14722_v24 = vld [vmem:[%s17997_s13 + $0x140] sm:$0xff]   ;;  %v14723_v1 = vld [vmem:[%s17997_s13 + $0x148] sm:$0xff]   ;;  %v14872_v7 = vmov 0.0  }
 0x888   : > { %v6921_v20 = vsel %vm16492_vm0, %v6916_v30, %v6920_v2  ;;  %v6949_v23 = vsel %vm16492_vm0, %v6944_v51, %v6948_v63  ;;  %v16765_v59 = vcombine.low %v7387_v37, %v7391_v22  ;;  %v7395_v5 = vsel %vm16505_vm5, %v12313_v46, %v7394_v12  ;;  %v14705_v12 = vld [vmem:[%s17997_s13 + $0x138] sm:$0xff]   ;;  %v14724_v57 = vld [vmem:[%s17997_s13 + $0x150] sm:$0xff]   ;;  %v14726_v2 = vld [vmem:[%s17997_s13 + $0x160] sm:$0xff]   ;;  %13932 = vmatprep.subr.bf16.mxu1 %v14872_v7 }
 0x889   : > { %v12259_v15 = vcombine.low %v6907_v9, %v6921_v20  ;;  %v12260_v32 = vcombine.low %v6935_v19, %v6949_v23  ;;  %v7399_v38 = vsel %vm16505_vm5, %v12314_v0, %v7398_v58  ;;  %v14709_v58 = vld [vmem:[%s17997_s13 + $0xd8] sm:$0xff]   ;;  %v14730_v49 = vld [vmem:[%s17999_s15 + $0x20] sm:$0xff]   ;;  %v14731_v56 = vld [vmem:[%s17999_s15 + $0x28] sm:$0xff]   ;;  %vm14873_vm0 = vmmov 0  }
 0x88a   : > { %v16774_v8 = vcombine.low %v7395_v5, %v7399_v38  ;;  %v14721_v16 = vld [vmem:[%s17997_s13 + $0xb8] sm:$0xff]   ;;  %13933 = vmatpush3.bf16.msra.mxu1 %v14730_v49  ;;  %13940 = vmatprep.mubr.msk.bf16.mxu1 %vm14873_vm0, %v14872_v7  ;;  %v14732_v63 = vld [vmem:[%s17999_s15 + $0x30] sm:$0xff]   ;;  %v12365_v51 = vld [vmem:[%s17998_s14] ss:$0 sm:$0xff]  ;;  %vm7985_vm4 = vsmask.f32 1280 }
 0x88b   : > { %13828 = vmatprep.mubr.bf16.mxu0 %v12259_v15  ;;  %v14725_v60 = vld [vmem:[%s17997_s13 + $0x158] sm:$0xff]   ;;  %13934 = vmatprep.subr.bf16.mxu1 %v14872_v7  ;;  %vm7987_vm3 = vmor %vm7985_vm4, %vm7986_vm11  ;;  %vm7988_vm5 = vsmask.f32 5392  ;;  %vm10008_vm11 = vsmask.f32 1284 }
 0x88c   : > { %13829 = vmatmul.mubr.bf16.vlgmr.msra.gmra.mrb[36].mxu0 %v12260_v32  ;;  %v14729_v25 = vld [vmem:[%s17997_s13 + $0x178] sm:$0xff]   ;;  %vm7989_vm1 = vmor %vm7987_vm3, %vm7988_vm5 }
 0x88d   : > { %13833 = vmatpush3.bf16.msra.mxu0 %v16718_v61  ;;  %13848 = vmatprep.mubr.bf16.mxu0 %v16748_v62  ;;  %v14695_v61 = vld [vmem:[%s17997_s13 + $0x28] sm:$0xff]   ;;  %v14733_v14 = vld [vmem:[%s17999_s15 + $0x38] sm:$0xff]  }
 0x88e   : > { %13834 = vmatprep.subr.bf16.mxu0 %v14691_v26  ;;  %13935 = vmatpush3.bf16.msra.mxu1 %v14731_v56 }
 0x88f   : > { %13936 = vmatprep.subr.bf16.mxu1 %v14872_v7 }
 0x891   : > { %13835 = vmatpush3.bf16.msra.mxu0 %v14691_v26 }
 0x892   : > { %13836 = vmatprep.subr.bf16.mxu0 %v14692_v28  ;;  %13937 = vmatpush3.bf16.msra.mxu1 %v14732_v63 }
 0x893   : > { %13938 = vmatprep.subr.bf16.mxu1 %v14872_v7 }
 0x895   : > { %13837 = vmatpush3.bf16.msra.mxu0 %v14692_v28 }
 0x896   : > { %13838 = vmatprep.subr.bf16.mxu0 %v14693_v41  ;;  %13939 = vmatpush3.bf16.msra.mxu1 %v14733_v14 }
 0x897   : > { %13944 = vmatprep.subr.bf16.mxu1 %v14872_v7 }
 0x899   : > { %13839 = vmatpush3.bf16.msra.mxu0 %v14693_v41 }
 0x89a   : > { %13840 = vmatprep.subr.bf16.mxu0 %v14694_v10 }
 0x89d   : > { %13841 = vmatpush3.bf16.msra.mxu0 %v14694_v10 }
 0x89e   : > { %13842 = vmatprep.subr.bf16.mxu0 %v14695_v61 }
 0x8a1   : > { %13843 = vmatpush3.bf16.msra.mxu0 %v14695_v61 }
 0x8a2   : > { %13844 = vmatprep.subr.bf16.mxu0 %v14696_v34 }
 0x8a5   : > { %13845 = vmatpush3.bf16.msra.mxu0 %v14696_v34 }
 0x8a6   : > { %13846 = vmatprep.subr.bf16.mxu0 %v14697_v44 }
 0x8a9   : > { %13847 = vmatpush3.bf16.msra.mxu0 %v14697_v44 }
 0x8aa   : > { %13852 = vmatprep.subr.bf16.mxu0 %v14698_v29 }
 0x8ac   : > { %13849 = vmatmul.mubr.bf16.vlgmr.msra.gmra.mrb[36].mxu0 %v16750_v39 }
 0x8ad   : > { %13853 = vmatpush3.bf16.msra.mxu0 %v14698_v29  ;;  %13868 = vmatprep.mubr.bf16.mxu0 %v12259_v15 }
 0x8ae   : > { %13854 = vmatprep.subr.bf16.mxu0 %v14699_v6 }
 0x8b1   : > { %13855 = vmatpush3.bf16.msra.mxu0 %v14699_v6 }
 0x8b2   : > { %13856 = vmatprep.subr.bf16.mxu0 %v14700_v31 }
 0x8b5   : > { %13857 = vmatpush3.bf16.msra.mxu0 %v14700_v31 }
 0x8b6   : > { %13858 = vmatprep.subr.bf16.mxu0 %v14701_v27 }
 0x8b9   : > { %13859 = vmatpush3.bf16.msra.mxu0 %v14701_v27 }
 0x8ba   : > { %13860 = vmatprep.subr.bf16.mxu0 %v14702_v52 }
 0x8bd   : > { %13861 = vmatpush3.bf16.msra.mxu0 %v14702_v52 }
 0x8be   : > { %13862 = vmatprep.subr.bf16.mxu0 %v14703_v3 }
 0x8c1   : > { %13863 = vmatpush3.bf16.msra.mxu0 %v14703_v3 }
 0x8c2   : > { %13864 = vmatprep.subr.bf16.mxu0 %v14704_v47 }
 0x8c5   : > { %13865 = vmatpush3.bf16.msra.mxu0 %v14704_v47 }
 0x8c6   : > { %13866 = vmatprep.subr.bf16.mxu0 %v14705_v12 }
 0x8c9   : > { %13867 = vmatpush3.bf16.msra.mxu0 %v14705_v12 }
 0x8ca   : > { %13872 = vmatprep.subr.bf16.mxu0 %v14706_v55 }
 0x8cc   : > { %13869 = vmatmul.mubr.bf16.vlgmr.msra.gmra.mrb[40].mxu0 %v12260_v32 }
 0x8cd   : > { %13873 = vmatpush3.bf16.msra.mxu0 %v14706_v55  ;;  %13888 = vmatprep.mubr.bf16.mxu0 %v16748_v62  ;;  %v14727_v62 = vld [vmem:[%s17997_s13 + $0x168] sm:$0xff]  }
 0x8ce   : > { %13874 = vmatprep.subr.bf16.mxu0 %v14707_v43 }
 0x8d1   : > { %13875 = vmatpush3.bf16.msra.mxu0 %v14707_v43 }
 0x8d2   : > { %13876 = vmatprep.subr.bf16.mxu0 %v14708_v36 }
 0x8d5   : > { %13877 = vmatpush3.bf16.msra.mxu0 %v14708_v36 }
 0x8d6   : > { %13878 = vmatprep.subr.bf16.mxu0 %v14709_v58 }
 0x8d9   : > { %13879 = vmatpush3.bf16.msra.mxu0 %v14709_v58 }
 0x8da   : > { %13880 = vmatprep.subr.bf16.mxu0 %v14710_v21 }
 0x8dd   : > { %13881 = vmatpush3.bf16.msra.mxu0 %v14710_v21 }
 0x8de   : > { %13882 = vmatprep.subr.bf16.mxu0 %v14711_v42 }
 0x8e1   : > { %13883 = vmatpush3.bf16.msra.mxu0 %v14711_v42 }
 0x8e2   : > { %13884 = vmatprep.subr.bf16.mxu0 %v14712_v4 }
 0x8e5   : > { %13885 = vmatpush3.bf16.msra.mxu0 %v14712_v4 }
 0x8e6   : > { %13886 = vmatprep.subr.bf16.mxu0 %v14713_v11 }
 0x8e9   : > { %13887 = vmatpush3.bf16.msra.mxu0 %v14713_v11 }
 0x8ea   : > { %13892 = vmatprep.subr.bf16.mxu0 %v14714_v54 }
 0x8ec   : > { %13889 = vmatmul.mubr.bf16.vlgmr.msra.gmra.mrb[40].mxu0 %v16750_v39  ;;  %v14728_v39 = vld [vmem:[%s17997_s13 + $0x170] sm:$0xff]  }
 0x8ed   : > { %13893 = vmatpush3.bf16.msra.mxu0 %v14714_v54  ;;  %13908 = vmatprep.mubr.bf16.mxu0 %v16765_v59 }
 0x8ee   : > { %13894 = vmatprep.subr.bf16.mxu0 %v14715_v45 }
 0x8f1   : > { %13895 = vmatpush3.bf16.msra.mxu0 %v14715_v45 }
 0x8f2   : > { %13896 = vmatprep.subr.bf16.mxu0 %v14716_v48 }
 0x8f5   : > { %13897 = vmatpush3.bf16.msra.mxu0 %v14716_v48 }
 0x8f6   : > { %13898 = vmatprep.subr.bf16.mxu0 %v14717_v17 }
 0x8f9   : > { %13899 = vmatpush3.bf16.msra.mxu0 %v14717_v17 }
 0x8fa   : > { %13900 = vmatprep.subr.bf16.mxu0 %v14718_v40 }
 0x8fd   : > { %13901 = vmatpush3.bf16.msra.mxu0 %v14718_v40 }
 0x8fe   : > { %13902 = vmatprep.subr.bf16.mxu0 %v14719_v18 }
 0x901   : > { %13903 = vmatpush3.bf16.msra.mxu0 %v14719_v18 }
 0x902   : > { %13904 = vmatprep.subr.bf16.mxu0 %v14720_v53 }
 0x905   : > { %13905 = vmatpush3.bf16.msra.mxu0 %v14720_v53 }
 0x906   : > { %13906 = vmatprep.subr.bf16.mxu0 %v14721_v16 }
 0x909   : > { %13907 = vmatpush3.bf16.msra.mxu0 %v14721_v16 }
 0x90a   : > { %13912 = vmatprep.subr.bf16.mxu0 %v14722_v24 }
 0x90c   : > { %13909 = vmatmul.mubr.bf16.vlgmr.msra.gmra.mrb[36].mxu0 %v16774_v8 }
 0x90d   : > { %13913 = vmatpush3.bf16.msra.mxu0 %v14722_v24  ;;  %13928 = vmatprep.mubr.bf16.mxu0 %v16765_v59 }
 0x90e   : > { %13914 = vmatprep.subr.bf16.mxu0 %v14723_v1 }
 0x911   : > { %13915 = vmatpush3.bf16.msra.mxu0 %v14723_v1 }
 0x912   : > { %13916 = vmatprep.subr.bf16.mxu0 %v14724_v57 }
 0x915   : > { %13917 = vmatpush3.bf16.msra.mxu0 %v14724_v57 }
 0x916   : > { %13918 = vmatprep.subr.bf16.mxu0 %v14725_v60 }
 0x919   : > { %13919 = vmatpush3.bf16.msra.mxu0 %v14725_v60 }
 0x91a   : > { %13920 = vmatprep.subr.bf16.mxu0 %v14726_v2 }
 0x91d   : > { %13921 = vmatpush3.bf16.msra.mxu0 %v14726_v2 }
 0x91e   : > { %13922 = vmatprep.subr.bf16.mxu0 %v14727_v62 }
 0x921   : > { %13923 = vmatpush3.bf16.msra.mxu0 %v14727_v62 }
 0x922   : > { %13924 = vmatprep.subr.bf16.mxu0 %v14728_v39 }
 0x925   : > { %13925 = vmatpush3.bf16.msra.mxu0 %v14728_v39 }
 0x926   : > { %13926 = vmatprep.subr.bf16.mxu0 %v14729_v25 }
 0x929   : > { %13927 = vmatpush3.bf16.msra.mxu0 %v14729_v25 }
 0x92a   : > { %14008 = vmatprep.subr.bf16.mxu0 %v14872_v7 }
 0x92c   : > { %13929 = vmatmul.mubr.bf16.vlgmr.msra.gmra.mrb[40].mxu0 %v16774_v8 }
 0x92d   : > { %14024 = vmatprep.mubr.msk.bf16.mxu0 %vm14873_vm0, %v14872_v7 }
 0x9df   : > { %v13910_v33 = vpop.f32.mrb[36].mxu0 }
 0x9e0   : > { %v7507_v35 = vpop.f32.mrb[37].mxu0 }
 0x9e1   : > { %v13911_v9 = vpop.f32.mrb[38].mxu0 }
 0x9e2   : > { %v7510_v30 = vpop.f32.mrb[39].mxu0 }
 0x9ff   : > { %v13930_v46 = vpop.f32.mrb[40].mxu0 }
 0xa00   : > { %v7646_v19 = vmax.f32 %v13910_v33, %v13930_v46  ;;  %v7625_v37 = vpop.f32.mrb[41].mxu0 }
 0xa01   : > { %v7644_v22 = vmax.f32 %v7507_v35, %v7625_v37  ;;  %v13931_v0 = vpop.f32.mrb[42].mxu0 }
 0xa02   : > { %v7656_v20 = vadd.f32 %v12365_v51, %v7646_v19  ;;  %v7647_v23 = vmax.f32 %v13911_v9, %v13931_v0  ;;  %v7628_v59 = vpop.f32.mrb[43].mxu0 }
 0xa03   : > { %v7654_v5 = vadd.f32 %v12365_v51, %v7644_v22  ;;  %v7645_v15 = vmax.f32 %v7510_v30, %v7628_v59 }
 0xa04   : > { %v7660_v32 = vmax.f32 %v7656_v20, 0.0  ;;  %v7657_v38 = vadd.f32 %v12365_v51, %v7647_v23 }
 0xa05   : > { %v7658_v26 = vmax.f32 %v7654_v5, 0.0  ;;  %v7655_v8 = vadd.f32 %v12365_v51, %v7645_v15 }
 0xa06   : > { %v7700_v28 = vcombine.high %v7660_v32, %v7660_v32  ;;  %v7707_v41 = vrot.slane %v7660_v32, %v15575_v50  ;;  %v16925_v10 = vmax.f32 %v7657_v38, 0.0 }
 0xa07   : > { %v7666_v61 = vcombine.high %v7658_v26, %v7658_v26  ;;  %v7673_v34 = vrot.slane %v7658_v26, %v15575_v50  ;;  %v16928_v44 = vmax.f32 %v7655_v8, 0.0 }
 0xa08   : > { %v7714_v29 = vrot.slane %v7700_v28, %v15575_v50  ;;  %v7715_v6 = vcombine.high %v7707_v41, %v7707_v41  ;;  %v7806_v31 = vsel %vm18024_vm6, %v7707_v41, -inf  ;;  %v7717_v27 = vcombine.high %v16925_v10, %v16925_v10 }
 0xa09   : > { %v7807_v52 = vrot.slane %v7806_v31, 4  ;;  %v7680_v3 = vrot.slane %v7666_v61, %v15575_v50  ;;  %v7681_v47 = vcombine.high %v7673_v34, %v7673_v34  ;;  %v7750_v12 = vsel %vm18024_vm6, %v7673_v34, -inf }
 0xa0a   : > { %v7716_v55 = vcombine.high %v7714_v29, %v7714_v29  ;;  %v7813_v43 = vsel %vm18024_vm6, %v7715_v6, -inf  ;;  %v7820_v36 = vsel %vm18024_vm6, %v7714_v29, -inf  ;;  %v7751_v58 = vrot.slane %v7750_v12, 4 }
 0xa0b   : > { %v7808_v21 = vmax.f32 %v7806_v31, %v7807_v52  ;;  %v7814_v42 = vrot.slane %v7813_v43, 4  ;;  %v7821_v4 = vrot.slane %v7820_v36, 4  ;;  %v7682_v11 = vcombine.high %v7680_v3, %v7680_v3 }
 0xa0c   : > { %v7827_v54 = vsel %vm18024_vm6, %v7716_v55, -inf  ;;  %v7752_v45 = vmax.f32 %v7750_v12, %v7751_v58  ;;  %v7757_v48 = vsel %vm18024_vm6, %v7681_v47, -inf  ;;  %v7764_v17 = vsel %vm18024_vm6, %v7680_v3, -inf }
 0xa0d   : > { %v7809_v40 = vrot.slane %v7808_v21, 2  ;;  %v7815_v18 = vmax.f32 %v7813_v43, %v7814_v42  ;;  %v7822_v53 = vmax.f32 %v7820_v36, %v7821_v4  ;;  %v7828_v16 = vrot.slane %v7827_v54, 4 }
 0xa0e   : > { %v7753_v24 = vrot.slane %v7752_v45, 2  ;;  %v7758_v1 = vrot.slane %v7757_v48, 4  ;;  %v7765_v57 = vrot.slane %v7764_v17, 4  ;;  %v7771_v60 = vsel %vm18024_vm6, %v7682_v11, -inf }
 0xa0f   : > { %v7810_v2 = vmax.f32 %v7808_v21, %v7809_v40  ;;  %v7816_v62 = vrot.slane %v7815_v18, 2  ;;  %v7823_v39 = vrot.slane %v7822_v53, 2  ;;  %v7829_v25 = vmax.f32 %v7827_v54, %v7828_v16 }
 0xa10   : > { %v7754_v49 = vmax.f32 %v7752_v45, %v7753_v24  ;;  %v7759_v56 = vmax.f32 %v7757_v48, %v7758_v1  ;;  %v7766_v63 = vmax.f32 %v7764_v17, %v7765_v57  ;;  %v7772_v14 = vrot.slane %v7771_v60, 4 }
 0xa11   : > { %v7811_v33 = vrot.slane %v7810_v2, 1  ;;  %v7817_v35 = vmax.f32 %v7815_v18, %v7816_v62  ;;  %v7824_v9 = vmax.f32 %v7822_v53, %v7823_v39  ;;  %v7830_v30 = vrot.slane %v7829_v25, 2 }
 0xa12   : > { %v7755_v51 = vrot.slane %v7754_v49, 1  ;;  %v7760_v46 = vrot.slane %v7759_v56, 2  ;;  %v7767_v19 = vrot.slane %v7766_v63, 2  ;;  %v7773_v37 = vmax.f32 %v7771_v60, %v7772_v14 }
 0xa13   : > { %v7812_v22 = vmax.f32 %v7810_v2, %v7811_v33  ;;  %v7818_v0 = vrot.slane %v7817_v35, 1  ;;  %v7825_v20 = vrot.slane %v7824_v9, 1  ;;  %v7831_v23 = vmax.f32 %v7829_v25, %v7830_v30 }
 0xa14   : > { %v7756_v59 = vmax.f32 %v7754_v49, %v7755_v51  ;;  %v7761_v5 = vmax.f32 %v7759_v56, %v7760_v46  ;;  %v7768_v15 = vmax.f32 %v7766_v63, %v7767_v19  ;;  %v7774_v32 = vrot.slane %v7773_v37, 2 }
 0xa15   : > { %v7819_v38 = vmax.f32 %v7817_v35, %v7818_v0  ;;  %v7826_v26 = vmax.f32 %v7824_v9, %v7825_v20  ;;  %v7832_v8 = vrot.slane %v7831_v23, 1  ;;  %v7870_v28 = vpack.c.bf16 %v7812_v22, %v7812_v22 }
 0xa16   : > { %v7762_v41 = vrot.slane %v7761_v5, 1  ;;  %v7769_v61 = vrot.slane %v7768_v15, 1  ;;  %v7775_v34 = vmax.f32 %v7773_v37, %v7774_v32  ;;  %v7862_v29 = vpack.c.bf16 %v7756_v59, %v7756_v59 }
 0xa17   : > { %v7833_v6 = vmax.f32 %v7831_v23, %v7832_v8  ;;  %v7871_v31 = vpack.c.bf16 %v7819_v38, %v7819_v38  ;;  %v7872_v52 = vpack.c.bf16 %v7826_v26, %v7826_v26  ;;  %v7902_v3 = vunpack.c.l.b16 %v7870_v28 }
 0xa18   : > { %v7763_v47 = vmax.f32 %v7761_v5, %v7762_v41  ;;  %v7770_v12 = vmax.f32 %v7768_v15, %v7769_v61  ;;  %v7776_v55 = vrot.slane %v7775_v34, 1  ;;  %v7894_v43 = vunpack.c.l.b16 %v7862_v29 }
 0xa19   : > { %v7873_v36 = vpack.c.bf16 %v7833_v6, %v7833_v6  ;;  %v7903_v58 = vunpack.c.l.b16 %v7871_v31  ;;  %v7904_v21 = vunpack.c.l.b16 %v7872_v52  ;;  %v7724_v42 = vrot.slane %v16925_v10, %v15575_v50 }
 0xa1a   : > { %v7777_v4 = vmax.f32 %v7775_v34, %v7776_v55  ;;  %v7863_v11 = vpack.c.bf16 %v7763_v47, %v7763_v47  ;;  %v7864_v54 = vpack.c.bf16 %v7770_v12, %v7770_v12  ;;  %v7731_v45 = vrot.slane %v7717_v27, %v15575_v50 }
 0xa1b   : > { %v7905_v48 = vunpack.c.l.b16 %v7873_v36  ;;  %v7916_v17 = vsel %vm3889_vm7, %v7903_v58, %v7902_v3  ;;  %v7732_v40 = vcombine.high %v7724_v42, %v7724_v42  ;;  %v7834_v18 = vsel %vm18024_vm6, %v7724_v42, -inf }
 0xa1c   : > { %v7917_v53 = vsel %vm3891_vm8, %v7904_v21, %v7916_v17  ;;  %v7865_v16 = vpack.c.bf16 %v7777_v4, %v7777_v4  ;;  %v7895_v24 = vunpack.c.l.b16 %v7863_v11  ;;  %v7896_v1 = vunpack.c.l.b16 %v7864_v54 }
 0xa1d   : > { %v7918_v57 = vsel %vm3893_vm9, %v7905_v48, %v7917_v53  ;;  %v7733_v60 = vcombine.high %v7731_v45, %v7731_v45  ;;  %v7835_v2 = vrot.slane %v7834_v18, 4  ;;  %v7841_v62 = vsel %vm18024_vm6, %v7732_v40, -inf }
 0xa1e   : > { %v7924_v39 = vpack.c.b16 %v7918_v57, %v7918_v57  ;;  %v7897_v10 = vunpack.c.l.b16 %v7865_v16  ;;  %v7910_v27 = vsel %vm3889_vm7, %v7895_v24, %v7894_v43  ;;  %v7842_v25 = vrot.slane %v7841_v62, 4 }
 0xa1f   : > { %v7911_v49 = vsel %vm3891_vm8, %v7896_v1, %v7910_v27  ;;  %v7836_v56 = vmax.f32 %v7834_v18, %v7835_v2  ;;  %v7848_v63 = vsel %vm18024_vm6, %v7731_v45, -inf  ;;  %v7855_v14 = vsel %vm18024_vm6, %v7733_v60, -inf }
 0xa20   : > { %v7912_v33 = vsel %vm3893_vm9, %v7897_v10, %v7911_v49  ;;  %v7843_v35 = vmax.f32 %v7841_v62, %v7842_v25  ;;  %v7849_v9 = vrot.slane %v7848_v63, 4  ;;  %v7932_v51 = vsel %vm15050_vm2, 0, %v7924_v39 }
 0xa21   : > { %v7922_v46 = vpack.c.b16 %v7912_v33, %v7912_v33  ;;  %v7837_v19 = vrot.slane %v7836_v56, 2  ;;  %v7856_v37 = vrot.slane %v7855_v14, 4  ;;  %v7683_v20 = vcombine.high %v16928_v44, %v16928_v44 }
 0xa22   : > { %v7844_v22 = vrot.slane %v7843_v35, 2  ;;  %v7850_v0 = vmax.f32 %v7848_v63, %v7849_v9  ;;  %v7690_v5 = vrot.slane %v16928_v44, %v15575_v50  ;;  %v16972_v15 = vsel %vm16960_vm13, %v7932_v51, 0 }
 0xa23   : > { %v7838_v23 = vmax.f32 %v7836_v56, %v7837_v19  ;;  %v7857_v59 = vmax.f32 %v7855_v14, %v7856_v37  ;;  %v7697_v26 = vrot.slane %v7683_v20, %v15575_v50  ;;  %v7930_v8 = vsel %vm15050_vm2, 0, %v7922_v46 }
 0xa24   : > { %v7845_v32 = vmax.f32 %v7843_v35, %v7844_v22  ;;  %v7851_v38 = vrot.slane %v7850_v0, 2  ;;  %v7698_v61 = vcombine.high %v7690_v5, %v7690_v5  ;;  %v7778_v31 = vsel %vm18024_vm6, %v7690_v5, -inf }
 0xa25   : > { %v7839_v28 = vrot.slane %v7838_v23, 1  ;;  %v7858_v41 = vrot.slane %v7857_v59, 2  ;;  %v7699_v6 = vcombine.high %v7697_v26, %v7697_v26  ;;  %v7779_v3 = vrot.slane %v7778_v31, 4 }
 0xa26   : > { %v7846_v34 = vrot.slane %v7845_v32, 1  ;;  %v7852_v29 = vmax.f32 %v7850_v0, %v7851_v38  ;;  %v7785_v47 = vsel %vm18024_vm6, %v7698_v61, -inf  ;;  %v7792_v36 = vsel %vm18024_vm6, %v7697_v26, -inf }
 0xa27   : > { %v7840_v44 = vmax.f32 %v7838_v23, %v7839_v28  ;;  %v7859_v52 = vmax.f32 %v7857_v59, %v7858_v41  ;;  %v7786_v43 = vrot.slane %v7785_v47, 4  ;;  %v7780_v42 = vmax.f32 %v7778_v31, %v7779_v3 }
 0xa28   : > { %v7847_v12 = vmax.f32 %v7845_v32, %v7846_v34  ;;  %v7853_v55 = vrot.slane %v7852_v29, 1  ;;  %v7793_v4 = vrot.slane %v7792_v36, 4  ;;  %v7799_v48 = vsel %vm18024_vm6, %v7699_v6, -inf  ;;  %vm8230_vm6 = vmor %vm8228_vm15, %vm3893_vm9 }
 0xa29   : > { %v7860_v58 = vrot.slane %v7859_v52, 1  ;;  %v7874_v21 = vpack.c.bf16 %v7840_v44, %v7840_v44  ;;  %v7787_v45 = vmax.f32 %v7785_v47, %v7786_v43  ;;  %v7781_v18 = vrot.slane %v7780_v42, 2 }
 0xa2a   : > { %v7854_v11 = vmax.f32 %v7852_v29, %v7853_v55  ;;  %v7875_v54 = vpack.c.bf16 %v7847_v12, %v7847_v12  ;;  %v7794_v53 = vmax.f32 %v7792_v36, %v7793_v4  ;;  %v7800_v57 = vrot.slane %v7799_v48, 4 }
 0xa2b   : > { %v7861_v17 = vmax.f32 %v7859_v52, %v7860_v58  ;;  %v7906_v40 = vunpack.c.l.b16 %v7874_v21  ;;  %v7788_v1 = vrot.slane %v7787_v45, 2  ;;  %v16983_v60 = vsel %vm16960_vm13, %v7930_v8, 0 }
 0xa2c   : > { %v7876_v16 = vpack.c.bf16 %v7854_v11, %v7854_v11  ;;  %v7907_v24 = vunpack.c.l.b16 %v7875_v54  ;;  %v7782_v62 = vmax.f32 %v7780_v42, %v7781_v18  ;;  %v7795_v39 = vrot.slane %v7794_v53, 2 }
 0xa2d   : > { %v7877_v2 = vpack.c.bf16 %v7861_v17, %v7861_v17  ;;  %v7789_v25 = vmax.f32 %v7787_v45, %v7788_v1  ;;  %v7801_v49 = vmax.f32 %v7799_v48, %v7800_v57  ;;  %v16988_v33 = vrot.slane %v16972_v15, %v15575_v50 }
 0xa2e   : > { %v7908_v10 = vunpack.c.l.b16 %v7876_v16  ;;  %v7919_v27 = vsel %vm3889_vm7, %v7907_v24, %v7906_v40  ;;  %v7783_v63 = vrot.slane %v7782_v62, 1  ;;  %v7796_v14 = vmax.f32 %v7794_v53, %v7795_v39 }
 0xa2f   : > { %v7909_v56 = vunpack.c.l.b16 %v7877_v2  ;;  %v7790_v9 = vrot.slane %v7789_v25, 1  ;;  %v7802_v51 = vrot.slane %v7801_v49, 2  ;;  %v16993_v46 = vrot.slane %v16983_v60, %v15575_v50 }
 0xa30   : > { %v7920_v35 = vsel %vm3891_vm8, %v7908_v10, %v7919_v27  ;;  %v7784_v37 = vmax.f32 %v7782_v62, %v7783_v63  ;;  %v7797_v22 = vrot.slane %v7796_v14, 1  ;;  %v8021_v8 = vshrl.u32 %v16988_v33, 16  ;;  %v14784_v10 = vld [vmem:[%s18003_s19 + $0x8] sm:$0xff]  }
 0xa31   : > { %v7921_v19 = vsel %vm3893_vm9, %v7909_v56, %v7920_v35  ;;  %v7791_v20 = vmax.f32 %v7789_v25, %v7790_v9  ;;  %v7803_v23 = vmax.f32 %v7801_v49, %v7802_v51  ;;  %v7993_v61 = vshrl.u32 %v16993_v46, 16 }
 0xa32   : > { %v7925_v0 = vpack.c.b16 %v7921_v19, %v7921_v19  ;;  %v7798_v59 = vmax.f32 %v7796_v14, %v7797_v22  ;;  %v7866_v5 = vpack.c.bf16 %v7784_v37, %v7784_v37  ;;  %v7996_v34 = vshll.u32 %v16993_v46, 16 }
 0xa33   : > { %v7804_v38 = vrot.slane %v7803_v23, 1  ;;  %v7867_v26 = vpack.c.bf16 %v7791_v20, %v7791_v20  ;;  %v8023_v3 = vrot.slane %v8021_v8, 6  ;;  %v8024_v47 = vshll.u32 %v16988_v33, 16 }
 0xa34   : > { %v7933_v32 = vsel %vm15050_vm2, 0, %v7925_v0  ;;  %v7868_v41 = vpack.c.bf16 %v7798_v59, %v7798_v59  ;;  %v7898_v31 = vunpack.c.l.b16 %v7866_v5  ;;  %v7976_v43 = vcombine.high %v16988_v33, %v16988_v33 }
 0xa35   : > { %v7939_v28 = vsel %vm16960_vm13, %v7933_v32, 0  ;;  %v7805_v6 = vmax.f32 %v7803_v23, %v7804_v38  ;;  %v7899_v44 = vunpack.c.l.b16 %v7867_v26  ;;  %v8026_v21 = vrot.slane %v8024_v47, 7 }
 0xa36   : > { %v7983_v29 = vrot.slane %v7939_v28, %v15575_v50  ;;  %v7900_v52 = vunpack.c.l.b16 %v7868_v41  ;;  %v7995_v11 = vrot.slane %v7993_v61, 6  ;;  %v7998_v54 = vrot.slane %v7996_v34, 7 }
 0xa37   : > { %v7869_v12 = vpack.c.bf16 %v7805_v6, %v7805_v6  ;;  %v7913_v55 = vsel %vm3889_vm7, %v7899_v44, %v7898_v31  ;;  %v8027_v48 = vor.u32 %v8026_v21, %v8023_v3  ;;  %v8143_v40 = vcombine.low %v16972_v15, %v7939_v28 }
 0xa38   : > { %v7984_v36 = vcombine.high %v7983_v29, %v7983_v29  ;;  %v7914_v58 = vsel %vm3891_vm8, %v7900_v52, %v7913_v55  ;;  %v8035_v42 = vshrl.u32 %v7983_v29, 16  ;;  %v8038_v45 = vshll.u32 %v7983_v29, 16  ;;  %vm17019_vm8 = vmor %vm8230_vm6, %vm3897_vm12 }
 0xa39   : > { %v7901_v4 = vunpack.c.l.b16 %v7869_v12  ;;  %v8030_v53 = vshll.u32 %v7976_v43, 16  ;;  %v7960_v57 = vcombine.high %v16993_v46, %v16993_v46  ;;  %v7999_v2 = vor.u32 %v7998_v54, %v7995_v11 }
 0xa3a   : > { %v8037_v17 = vrot.slane %v8035_v42, 6  ;;  %v8040_v16 = vrot.slane %v8038_v45, 7  ;;  %v8044_v24 = vshll.u32 %v7984_v36, 16  ;;  %v8028_v62 = vrot.slane %v8027_v48, 2 }
 0xa3b   : > { %v7915_v18 = vsel %vm3893_vm9, %v7901_v4, %v7914_v58  ;;  %v8243_v15 = vrot.slane %v7976_v43, 7  ;;  %vm17026_vm9 = vmor %vm7989_vm1, %vm7990_vm10  ;;  %v12386_v49 = vrot.slane %v16988_v33, 9  ;;  %v12387_v56 = vrot.slane %v7983_v29, 9 }
 0xa3c   : > { %v7923_v1 = vpack.c.b16 %v7915_v18, %v7915_v18  ;;  %v8041_v39 = vor.u32 %v8040_v16, %v8037_v17  ;;  %v8247_v63 = vrot.slane %v7984_v36, 7  ;;  %v8032_v35 = vrot.slane %v8030_v53, 7  ;;  %v14734_v17 = vld [vmem:[%s17999_s15] sm:$0xff]   ;;  %v14735_v18 = vld [vmem:[%s17999_s15 + $0x8] sm:$0xff]   ;;  %v14736_v53 = vld [vmem:[%s17999_s15 + $0x10] sm:$0xff]  }
 0xa3d   : > { %v8046_v51 = vrot.slane %v8044_v24, 7  ;;  %v8244_v22 = vsel %vm17019_vm8, %v12386_v49, %v8243_v15  ;;  %v8157_v23 = vrot.slane %v8143_v40, %v15575_v50  ;;  %v8235_v28 = vrot.slane %v7960_v57, 7  ;;  %v14737_v16 = vld [vmem:[%s17999_s15 + $0x18] sm:$0xff]   ;;  %v14738_v24 = vld [vmem:[%s17999_s15 + $0x40] sm:$0xff]   ;;  %v14744_v15 = vld [vmem:[%s18001_s17 + $0x88] sm:$0xff]  }
 0xa3e   : > { %v7931_v27 = vsel %vm15050_vm2, 0, %v7923_v1  ;;  %v8042_v9 = vrot.slane %v8041_v39, 2  ;;  %v8248_v0 = vsel %vm17019_vm8, %v12387_v56, %v8247_v63  ;;  %v8033_v33 = vsel %vm17026_vm9, %v8028_v62, %v8032_v35  ;;  %v14739_v1 = vld [vmem:[%s17999_s15 + $0x48] sm:$0xff]   ;;  %v14742_v62 = vld [vmem:[%s18001_s17 + $0x80] sm:$0xff]   ;;  %v14746_v49 = vld [vmem:[%s18001_s17 + $0x90] sm:$0xff]  }
 0xa3f   : > { %v7937_v14 = vsel %vm16960_vm13, %v7931_v27, 0  ;;  %v8259_v59 = vcombine.low %v8244_v22, %v8248_v0  ;;  %v12384_v6 = vrot.slane %v16993_v46, 9  ;;  %v8000_v52 = vrot.slane %v7999_v2, 2  ;;  %v14741_v2 = vld [vmem:[%s17999_s15 + $0x58] sm:$0xff]   ;;  %14009 = vmatpush3.bf16.msra.mxu0 %v14742_v62  ;;  %v14743_v39 = vld [vmem:[%s18001_s17 + $0x40] sm:$0xff]   ;;  %v14745_v27 = vld [vmem:[%s18001_s17 + $0x48] sm:$0xff]  }
 0xa40   : > { %v7967_v19 = vrot.slane %v7937_v14, %v15575_v50  ;;  %v8142_v37 = vcombine.low %v16983_v60, %v7937_v14  ;;  %v8047_v20 = vsel %vm17026_vm9, %v8042_v9, %v8046_v51  ;;  %v8002_v60 = vshll.u32 %v7960_v57, 16  ;;  %v14740_v57 = vld [vmem:[%s17999_s15 + $0x50] sm:$0xff]   ;;  %14010 = vmatprep.subr.bf16.mxu0 %v14872_v7  ;;  %v14748_v63 = vld [vmem:[%s18001_s17 + $0x98] sm:$0xff]   ;;  %v14750_v35 = vld [vmem:[%s18001_s17 + $0xa0] sm:$0xff]  }
 0xa41   : > { %v8058_v26 = vcombine.low %v8033_v33, %v8047_v20  ;;  %v8236_v12 = vsel %vm17019_vm8, %v12384_v6, %v8235_v28  ;;  %v8273_v21 = vrot.slane %v8259_v59, %v15575_v50  ;;  %v14747_v56 = vld [vmem:[%s18001_s17 + $0x50] sm:$0xff]   ;;  %v14749_v14 = vld [vmem:[%s18001_s17 + $0x58] sm:$0xff]   ;;  %v14751_v9 = vld [vmem:[%s18001_s17 + $0x60] sm:$0xff]   ;;  %vm18069_vm6 = vcmask 517120  }
 0xa42   : > { %v7968_v5 = vcombine.high %v7967_v19, %v7967_v19  ;;  %v8007_v32 = vshrl.u32 %v7967_v19, 16  ;;  %v8010_v38 = vshll.u32 %v7967_v19, 16  ;;  %v8150_v8 = vrot.slane %v8142_v37, %v15575_v50  ;;  %v14752_v51 = vld [vmem:[%s18001_s17 + $0xa8] sm:$0xff]   ;;  %v14754_v37 = vld [vmem:[%s18001_s17 + $0xb0] sm:$0xff]   ;;  %v14756_v0 = vld [vmem:[%s18001_s17 + $0xb8] sm:$0xff]  }
 0xa43   : > { %v12385_v31 = vrot.slane %v7967_v19, 9  ;;  %v8004_v47 = vrot.slane %v8002_v60, 7  ;;  %v8072_v54 = vrot.slane %v8058_v26, %v15575_v50  ;;  %14011 = vmatpush3.bf16.msra.mxu0 %v14744_v15  ;;  %v14753_v19 = vld [vmem:[%s18001_s17 + $0x68] sm:$0xff]   ;;  %v14755_v22 = vld [vmem:[%s18001_s17 + $0x70] sm:$0xff]   ;;  %v14757_v33 = vld [vmem:[%s18001_s17 + $0x78] sm:$0xff]  }
 0xa44   : > { %v8009_v41 = vrot.slane %v8007_v32, 6  ;;  %v8012_v61 = vrot.slane %v8010_v38, 7  ;;  %v8016_v34 = vshll.u32 %v7968_v5, 16  ;;  %v8158_v29 = vcombine.low %v8150_v8, %v8157_v23  ;;  %14012 = vmatprep.subr.bf16.mxu0 %v14872_v7  ;;  %vm18070_vm12 = vmmov %vm18069_vm6 }
 0xa45   : > { %v8239_v44 = vrot.slane %v7968_v5, 7  ;;  %v8005_v42 = vsel %vm17026_vm9, %v8000_v52, %v8004_v47  ;;  %vm18072_vm15 = vmmov %vm18069_vm6  ;;  %vm10010_vm10 = vsmask.f32 2312 }
 0xa46   : > { %v8013_v3 = vor.u32 %v8012_v61, %v8009_v41  ;;  %v8018_v36 = vrot.slane %v8016_v34, 7  ;;  %v12401_v41 = vld [vmem:[%s18000_s16] ss:$0 sm:$0xff]  ;;  %vm18073_vm3 = vmmov %vm18069_vm6 }
 0xa47   : > { %v8240_v55 = vsel %vm17019_vm8, %v12385_v31, %v8239_v44  ;;  %14013 = vmatpush3.bf16.msra.mxu0 %v14746_v49  ;;  %vm18074_vm5 = vmmov %vm18073_vm3 }
 0xa48   : > { %v8014_v43 = vrot.slane %v8013_v3, 2  ;;  %v8258_v58 = vcombine.low %v8236_v12, %v8240_v55  ;;  %14014 = vmatprep.subr.bf16.mxu0 %v14872_v7  ;;  %vm18075_vm1 = vmmov %vm18073_vm3 }
 0xa4a   : > { %v8019_v46 = vsel %vm17026_vm9, %v8014_v43, %v8018_v36  ;;  %v8266_v4 = vrot.slane %v8258_v58, %v15575_v50 }
 0xa4b   : > { %v8057_v11 = vcombine.low %v8005_v42, %v8019_v46  ;;  %14015 = vmatpush3.bf16.msra.mxu0 %v14748_v63 }
 0xa4c   : > { %v8274_v45 = vcombine.low %v8266_v4, %v8273_v21  ;;  %14016 = vmatprep.subr.bf16.mxu0 %v14872_v7 }
 0xa4d   : > { %v8065_v48 = vrot.slane %v8057_v11, %v15575_v50 }
 0xa4f   : > { %v8073_v40 = vcombine.low %v8065_v48, %v8072_v54  ;;  %14017 = vmatpush3.bf16.msra.mxu0 %v14750_v35 }
 0xa50   : > { %14018 = vmatprep.subr.bf16.mxu0 %v14872_v7 }
 0xa51   : > { %13941 = vmatmul.mubr.msk.bf16.vlgmr.msra.gmra.mrb[44].mxu1 %vm4062_vm14, %v8073_v40 }
 0xa52   : > { %13945 = vmatpush3.bf16.msra.mxu1 %v14734_v17  ;;  %13952 = vmatprep.mubr.msk.bf16.mxu1 %vm14873_vm0, %v14872_v7 }
 0xa53   : > { %13946 = vmatprep.subr.bf16.mxu1 %v14872_v7  ;;  %14019 = vmatpush3.bf16.msra.mxu0 %v14752_v51 }
 0xa54   : > { %14020 = vmatprep.subr.bf16.mxu0 %v14872_v7 }
 0xa56   : > { %13947 = vmatpush3.bf16.msra.mxu1 %v14735_v18 }
 0xa57   : > { %13948 = vmatprep.subr.bf16.mxu1 %v14872_v7  ;;  %14021 = vmatpush3.bf16.msra.mxu0 %v14754_v37 }
 0xa58   : > { %14022 = vmatprep.subr.bf16.mxu0 %v14872_v7 }
 0xa5a   : > { %13949 = vmatpush3.bf16.msra.mxu1 %v14736_v53 }
 0xa5b   : > { %13950 = vmatprep.subr.bf16.mxu1 %v14872_v7  ;;  %14023 = vmatpush3.bf16.msra.mxu0 %v14756_v0 }
 0xa5c   : > { %14068 = vmatprep.subr.bf16.mxu0 %v14872_v7 }
 0xa5e   : > { %13951 = vmatpush3.bf16.msra.mxu1 %v14737_v16 }
 0xa5f   : > { %13956 = vmatprep.subr.bf16.mxu1 %v14872_v7 }
 0xa61   : > { %13953 = vmatmul.mubr.msk.bf16.vlgmr.msra.gmra.mrb[48].mxu1 %vm4062_vm14, %v8158_v29 }
 0xa62   : > { %13957 = vmatpush3.bf16.msra.mxu1 %v14738_v24  ;;  %13964 = vmatprep.mubr.msk.bf16.mxu1 %vm14873_vm0, %v14872_v7 }
 0xa63   : > { %13958 = vmatprep.subr.bf16.mxu1 %v14872_v7 }
 0xa66   : > { %13959 = vmatpush3.bf16.msra.mxu1 %v14739_v1 }
 0xa67   : > { %13960 = vmatprep.subr.bf16.mxu1 %v14872_v7 }
 0xa6a   : > { %13961 = vmatpush3.bf16.msra.mxu1 %v14740_v57 }
 0xa6b   : > { %13962 = vmatprep.subr.bf16.mxu1 %v14872_v7 }
 0xa6e   : > { %13963 = vmatpush3.bf16.msra.mxu1 %v14741_v2 }
 0xa6f   : > { %13968 = vmatprep.subr.bf16.mxu1 %v14872_v7 }
 0xa71   : > { %13965 = vmatmul.mubr.msk.bf16.vlgmr.msra.gmra.mrb[52].mxu1 %vm4062_vm14, %v8274_v45 }
 0xa72   : > { %13984 = vmatprep.mubr.msk.bf16.mxu1 %vm14873_vm0, %v14872_v7  ;;  %13969 = vmatpush3.bf16.msra.mxu1 %v14743_v39 }
 0xa73   : > { %13970 = vmatprep.subr.bf16.mxu1 %v14872_v7 }
 0xa76   : > { %13971 = vmatpush3.bf16.msra.mxu1 %v14745_v27 }
 0xa77   : > { %13972 = vmatprep.subr.bf16.mxu1 %v14872_v7 }
 0xa7a   : > { %13973 = vmatpush3.bf16.msra.mxu1 %v14747_v56 }
 0xa7b   : > { %13974 = vmatprep.subr.bf16.mxu1 %v14872_v7 }
 0xa7e   : > { %13975 = vmatpush3.bf16.msra.mxu1 %v14749_v14 }
 0xa7f   : > { %13976 = vmatprep.subr.bf16.mxu1 %v14872_v7 }
 0xa82   : > { %13977 = vmatpush3.bf16.msra.mxu1 %v14751_v9 }
 0xa83   : > { %13978 = vmatprep.subr.bf16.mxu1 %v14872_v7 }
 0xa86   : > { %13979 = vmatpush3.bf16.msra.mxu1 %v14753_v19 }
 0xa87   : > { %13980 = vmatprep.subr.bf16.mxu1 %v14872_v7 }
 0xa8a   : > { %13981 = vmatpush3.bf16.msra.mxu1 %v14755_v22 }
 0xa8b   : > { %13982 = vmatprep.subr.bf16.mxu1 %v14872_v7 }
 0xa8e   : > { %13983 = vmatpush3.bf16.msra.mxu1 %v14757_v33 }
 0xa8f   : > { %13988 = vmatprep.subr.bf16.mxu1 %v14872_v7 }
 0xb24   : > { %v8135_v20 = vpop.f32.mrb[44].mxu1 }
 0xb25   : > { %v13942_v23 = vpop.f32.mrb[45].mxu1 }
 0xb26   : > { %v8138_v59 = vpop.f32.mrb[46].mxu1 }
 0xb27   : > { %v13943_v5 = vpop.f32.mrb[47].mxu1 }
 0xb34   : > { %v8220_v32 = vpop.f32.mrb[48].mxu1 }
 0xb35   : > { %v8221_v38 = vadd.f32 %v8220_v32, %v8135_v20  ;;  %v13954_v26 = vpop.f32.mrb[49].mxu1 }
 0xb36   : > { %v8223_v60 = vpop.f32.mrb[50].mxu1 }
 0xb37   : > { %v8224_v8 = vadd.f32 %v8223_v60, %v8138_v59  ;;  %v13955_v28 = vpop.f32.mrb[51].mxu1 }
 0xb44   : > { %v8336_v61 = vpop.f32.mrb[52].mxu1 }
 0xb45   : > { %v8343_v34 = vadd.f32 %v8336_v61, %v8221_v38  ;;  %v13966_v29 = vpop.f32.mrb[53].mxu1 }
 0xb46   : > { %v8339_v6 = vpop.f32.mrb[54].mxu1 }
 0xb47   : > { %v8351_v31 = vadd.f32 %v12401_v41, %v8343_v34  ;;  %v8344_v44 = vadd.f32 %v8339_v6, %v8224_v8  ;;  %v13967_v52 = vpop.f32.mrb[55].mxu1 }
 0xb49   : > { %v8353_v3 = vmax.f32 %v8351_v31, 0.0  ;;  %v8352_v47 = vadd.f32 %v12401_v41, %v8344_v44 }
 0xb4b   : > { %v8357_v12 = vcombine.high %v8353_v3, %v8353_v3  ;;  %v8361_v55 = vpack.c.bf16 %v8353_v3, %v8353_v3  ;;  %v8354_v43 = vmax.f32 %v8352_v47, 0.0 }
 0xb4d   : > { %v8362_v36 = vpack.c.bf16 %v8357_v12, %v8357_v12  ;;  %v8366_v58 = vshrl.u32 %v8361_v55, 16  ;;  %v8358_v21 = vcombine.high %v8354_v43, %v8354_v43  ;;  %v8363_v42 = vpack.c.bf16 %v8354_v43, %v8354_v43 }
 0xb4e   : > { %v8369_v4 = vshll.u32 %v8361_v55, 16 }
 0xb4f   : > { %v8368_v46 = vrot.slane %v8366_v58, 7  ;;  %v8373_v11 = vshrl.u32 %v8362_v36, 16  ;;  %v8364_v54 = vpack.c.bf16 %v8358_v21, %v8358_v21  ;;  %v8380_v45 = vshrl.u32 %v8363_v42, 16 }
 0xb50   : > { %v8376_v40 = vshll.u32 %v8362_v36, 16  ;;  %v8383_v16 = vshll.u32 %v8363_v42, 16 }
 0xb51   : > { %v8371_v48 = vor.u32 %v8369_v4, %v8368_v46  ;;  %v8375_v17 = vrot.slane %v8373_v11, 7  ;;  %v8387_v18 = vshrl.u32 %v8364_v54, 16  ;;  %v8382_v53 = vrot.slane %v8380_v45, 7 }
 0xb52   : > { %v8390_v2 = vshll.u32 %v8364_v54, 16 }
 0xb53   : > { %v8378_v24 = vor.u32 %v8376_v40, %v8375_v17  ;;  %v8397_v1 = vsel %vm15050_vm2, 0, %v8371_v48  ;;  %v8389_v57 = vrot.slane %v8387_v18, 7  ;;  %v8385_v39 = vor.u32 %v8383_v16, %v8382_v53 }
 0xb54   : > { %v17170_v62 = vsel %vm16960_vm13, %v8397_v1, 0 }
 0xb55   : > { %v8398_v15 = vsel %vm15050_vm2, 0, %v8378_v24  ;;  %v8432_v27 = vrot.slane %v17170_v62, %v15575_v50  ;;  %v8392_v49 = vor.u32 %v8390_v2, %v8389_v57  ;;  %v8399_v63 = vsel %vm15050_vm2, 0, %v8385_v39 }
 0xb56   : > { %v17178_v56 = vsel %vm16960_vm13, %v8398_v15, 0  ;;  %v8403_v9 = vsel %vm16960_vm13, %v8399_v63, 0 }
 0xb57   : > { %v8440_v14 = vrot.slane %v17178_v56, %v15575_v50  ;;  %v8400_v35 = vsel %vm15050_vm2, 0, %v8392_v49  ;;  %v8433_v51 = vcombine.high %v8432_v27, %v8432_v27  ;;  %v8448_v37 = vrot.slane %v8403_v9, %v15575_v50 }
 0xb58   : > { %v8404_v19 = vsel %vm16960_vm13, %v8400_v35, 0  ;;  %v8459_v22 = vshrl.u32 %v8432_v27, 16  ;;  %v12434_v20 = vrot.slane %v8432_v27, 9  ;;  %v8462_v38 = vshll.u32 %v8432_v27, 16 }
 0xb59   : > { %v8456_v0 = vrot.slane %v8404_v19, %v15575_v50  ;;  %v8441_v33 = vcombine.high %v8440_v14, %v8440_v14  ;;  %v8747_v23 = vrot.slane %v8433_v51, 7  ;;  %v8449_v59 = vcombine.high %v8448_v37, %v8448_v37 }
 0xb5a   : > { %v12435_v5 = vrot.slane %v8440_v14, 9  ;;  %v8461_v32 = vrot.slane %v8459_v22, 6  ;;  %v12436_v28 = vrot.slane %v8448_v37, 9  ;;  %v8464_v34 = vrot.slane %v8462_v38, 7  ;;  %v14758_v38 = vld [vmem:[%s18001_s17] sm:$0xff]  }
 0xb5b   : > { %v8457_v26 = vcombine.high %v8456_v0, %v8456_v0  ;;  %v8748_v60 = vsel %vm17019_vm8, %v12434_v20, %v8747_v23  ;;  %v8751_v8 = vrot.slane %v8441_v33, 7  ;;  %v8755_v41 = vrot.slane %v8449_v59, 7 }
 0xb5c   : > { %v12437_v61 = vrot.slane %v8456_v0, 9  ;;  %v8473_v29 = vshrl.u32 %v8440_v14, 16  ;;  %v8476_v44 = vshll.u32 %v8440_v14, 16  ;;  %v8482_v52 = vshll.u32 %v8441_v33, 16 }
 0xb5d   : > { %v8752_v6 = vsel %vm17019_vm8, %v12435_v5, %v8751_v8  ;;  %v8759_v31 = vrot.slane %v8457_v26, 7  ;;  %v8465_v47 = vor.u32 %v8464_v34, %v8461_v32  ;;  %v8756_v12 = vsel %vm17019_vm8, %v12436_v28, %v8755_v41  ;;  %v14760_v8 = vld [vmem:[%s18001_s17 + $0x10] sm:$0xff]   ;;  %v14761_v28 = vld [vmem:[%s18001_s17 + $0x18] sm:$0xff]   ;;  %v14762_v41 = vld [vmem:[%s18001_s17 + $0x20] sm:$0xff]  }
 0xb5e   : > { %v8778_v3 = vcombine.low %v8748_v60, %v8752_v6  ;;  %v8475_v43 = vrot.slane %v8473_v29, 6  ;;  %v8478_v36 = vrot.slane %v8476_v44, 7  ;;  %v8468_v21 = vshll.u32 %v8433_v51, 16  ;;  %v14759_v60 = vld [vmem:[%s18001_s17 + $0x8] sm:$0xff]   ;;  %v14764_v34 = vld [vmem:[%s18001_s17 + $0x30] sm:$0xff]   ;;  %v14765_v29 = vld [vmem:[%s18001_s17 + $0x38] sm:$0xff]  }
 0xb5f   : > { %v8760_v55 = vsel %vm17019_vm8, %v12437_v61, %v8759_v31  ;;  %v8484_v42 = vrot.slane %v8482_v52, 7  ;;  %v8487_v46 = vshrl.u32 %v8448_v37, 16  ;;  %v8490_v54 = vshll.u32 %v8448_v37, 16  ;;  %v14763_v61 = vld [vmem:[%s18001_s17 + $0x28] sm:$0xff]   ;;  %v14766_v6 = vld [vmem:[%s18003_s19 + $0x40] sm:$0xff]  }
 0xb60   : > { %v8779_v58 = vcombine.low %v8756_v12, %v8760_v55  ;;  %v8786_v4 = vrot.slane %v8778_v3, %v15575_v50  ;;  %v8479_v11 = vor.u32 %v8478_v36, %v8475_v43  ;;  %v8501_v45 = vshrl.u32 %v8456_v0, 16  ;;  %v14767_v31 = vld [vmem:[%s18003_s19 + $0x100] sm:$0xff]   ;;  %v14768_v44 = vld [vmem:[%s18003_s19 + $0x48] sm:$0xff]   ;;  %v14770_v3 = vld [vmem:[%s18003_s19 + $0x50] sm:$0xff]  }
 0xb61   : > { %v8466_v17 = vrot.slane %v8465_v47, 2  ;;  %v8489_v40 = vrot.slane %v8487_v46, 6  ;;  %v8504_v18 = vshll.u32 %v8456_v0, 16  ;;  %v8492_v16 = vrot.slane %v8490_v54, 7  ;;  %v14769_v52 = vld [vmem:[%s18003_s19 + $0x108] sm:$0xff]   ;;  %v14771_v47 = vld [vmem:[%s18003_s19 + $0x110] sm:$0xff]  }
 0xb62   : > { %v8793_v48 = vrot.slane %v8779_v58, %v15575_v50  ;;  %v8480_v53 = vrot.slane %v8479_v11, 2  ;;  %v8496_v24 = vshll.u32 %v8449_v59, 16  ;;  %v8503_v1 = vrot.slane %v8501_v45, 6  ;;  %v14772_v12 = vld [vmem:[%s18003_s19 + $0x58] sm:$0xff]   ;;  %v14774_v43 = vld [vmem:[%s18003_s19 + $0x60] sm:$0xff]   ;;  %v14776_v58 = vld [vmem:[%s18003_s19 + $0x68] sm:$0xff]  }
 0xb63   : > { %v8506_v2 = vrot.slane %v8504_v18, 7  ;;  %v8510_v39 = vshll.u32 %v8457_v26, 16  ;;  %v8638_v15 = vcombine.low %v17170_v62, %v17178_v56  ;;  %v8493_v27 = vor.u32 %v8492_v16, %v8489_v40  ;;  %v14773_v55 = vld [vmem:[%s18003_s19 + $0x118] sm:$0xff]   ;;  %v14775_v36 = vld [vmem:[%s18003_s19 + $0x120] sm:$0xff]   ;;  %v14779_v46 = vld [vmem:[%s18003_s19 + $0x130] sm:$0xff]  }
 0xb64   : > { %v8794_v57 = vcombine.low %v8786_v4, %v8793_v48  ;;  %v8639_v49 = vcombine.low %v8403_v9, %v8404_v19  ;;  %v8470_v63 = vrot.slane %v8468_v21, 7  ;;  %v8485_v14 = vsel %vm17026_vm9, %v8480_v53, %v8484_v42  ;;  %v14777_v21 = vld [vmem:[%s18003_s19 + $0x128] sm:$0xff]   ;;  %v14778_v42 = vld [vmem:[%s18003_s19 + $0x70] sm:$0xff]   ;;  %v14780_v4 = vld [vmem:[%s18003_s19 + $0x78] sm:$0xff]  }
 0xb65   : > { %v8507_v35 = vor.u32 %v8506_v2, %v8503_v1  ;;  %v8494_v51 = vrot.slane %v8493_v27, 2  ;;  %v8646_v37 = vrot.slane %v8638_v15, %v15575_v50  ;;  %v8498_v62 = vrot.slane %v8496_v24, 7  ;;  %v14781_v11 = vld [vmem:[%s18003_s19 + $0x138] sm:$0xff]   ;;  %v12462_v2 = vld [vmem:[%s18002_s18] ss:$0 sm:$0xff] }
 0xb66   : > { %14025 = vmatmul.mubr.bf16.vlgmr.msra.gmra.mrb[44].mxu0 %v8794_v57  ;;  %v8653_v22 = vrot.slane %v8639_v49, %v15575_v50  ;;  %v8471_v0 = vsel %vm17026_vm9, %v8466_v17, %v8470_v63  ;;  %v8512_v9 = vrot.slane %v8510_v39, 7 }
 0xb67   : > { %14084 = vmatprep.mubr.msk.bf16.mxu0 %vm14873_vm0, %v14872_v7  ;;  %v8508_v56 = vrot.slane %v8507_v35, 2  ;;  %v8531_v19 = vcombine.low %v8471_v0, %v8485_v14  ;;  %v8499_v20 = vsel %vm17026_vm9, %v8494_v51, %v8498_v62  ;;  %14069 = vmatpush3.bf16.msra.mxu0 %v14767_v31 }
 0xb68   : > { %v8654_v33 = vcombine.low %v8646_v37, %v8653_v22  ;;  %14070 = vmatprep.subr.bf16.mxu0 %v14872_v7 }
 0xb69   : > { %v8513_v23 = vsel %vm17026_vm9, %v8508_v56, %v8512_v9  ;;  %v8539_v5 = vrot.slane %v8531_v19, %v15575_v50 }
 0xb6a   : > { %v8532_v59 = vcombine.low %v8499_v20, %v8513_v23 }
 0xb6b   : > { %14071 = vmatpush3.bf16.msra.mxu0 %v14769_v52 }
 0xb6c   : > { %v8546_v32 = vrot.slane %v8532_v59, %v15575_v50  ;;  %14072 = vmatprep.subr.bf16.mxu0 %v14872_v7 }
 0xb6e   : > { %v8547_v26 = vcombine.low %v8539_v5, %v8546_v32 }
 0xb6f   : > { %14073 = vmatpush3.bf16.msra.mxu0 %v14771_v47 }
 0xb70   : > { %13985 = vmatmul.mubr.bf16.vlgmr.msra.gmra.mrb[56].mxu1 %v8547_v26  ;;  %14074 = vmatprep.subr.bf16.mxu0 %v14872_v7 }
 0xb71   : > { %13989 = vmatpush3.bf16.msra.mxu1 %v14758_v38  ;;  %14004 = vmatprep.mubr.msk.bf16.mxu1 %vm14873_vm0, %v14872_v7 }
 0xb72   : > { %13990 = vmatprep.subr.bf16.mxu1 %v14872_v7 }
 0xb73   : > { %14075 = vmatpush3.bf16.msra.mxu0 %v14773_v55 }
 0xb74   : > { %14076 = vmatprep.subr.bf16.mxu0 %v14872_v7 }
 0xb75   : > { %13991 = vmatpush3.bf16.msra.mxu1 %v14759_v60 }
 0xb76   : > { %13992 = vmatprep.subr.bf16.mxu1 %v14872_v7 }
 0xb77   : > { %14077 = vmatpush3.bf16.msra.mxu0 %v14775_v36 }
 0xb78   : > { %14078 = vmatprep.subr.bf16.mxu0 %v14872_v7 }
 0xb79   : > { %13993 = vmatpush3.bf16.msra.mxu1 %v14760_v8 }
 0xb7a   : > { %13994 = vmatprep.subr.bf16.mxu1 %v14872_v7 }
 0xb7b   : > { %14079 = vmatpush3.bf16.msra.mxu0 %v14777_v21 }
 0xb7c   : > { %14080 = vmatprep.subr.bf16.mxu0 %v14872_v7 }
 0xb7d   : > { %13995 = vmatpush3.bf16.msra.mxu1 %v14761_v28 }
 0xb7e   : > { %13996 = vmatprep.subr.bf16.mxu1 %v14872_v7 }
 0xb7f   : > { %14081 = vmatpush3.bf16.msra.mxu0 %v14779_v46 }
 0xb80   : > { %14082 = vmatprep.subr.bf16.mxu0 %v14872_v7 }
 0xb81   : > { %13997 = vmatpush3.bf16.msra.mxu1 %v14762_v41 }
 0xb82   : > { %13998 = vmatprep.subr.bf16.mxu1 %v14872_v7 }
 0xb83   : > { %14083 = vmatpush3.bf16.msra.mxu0 %v14781_v11 }
 0xb84   : > { %14088 = vmatprep.subr.bf16.mxu0 %v14872_v7 }
 0xb85   : > { %13999 = vmatpush3.bf16.msra.mxu1 %v14763_v61 }
 0xb86   : > { %14000 = vmatprep.subr.bf16.mxu1 %v14872_v7 }
 0xb89   : > { %14001 = vmatpush3.bf16.msra.mxu1 %v14764_v34 }
 0xb8a   : > { %14002 = vmatprep.subr.bf16.mxu1 %v14872_v7 }
 0xb8d   : > { %14003 = vmatpush3.bf16.msra.mxu1 %v14765_v29 }
 0xb8e   : > { %14028 = vmatprep.subr.bf16.mxu1 %v14872_v7 }
 0xb90   : > { %14005 = vmatmul.mubr.bf16.vlgmr.msra.gmra.mrb[60].mxu1 %v8654_v33 }
 0xb91   : > { %14044 = vmatprep.mubr.msk.bf16.mxu1 %vm14873_vm0, %v14872_v7  ;;  %14029 = vmatpush3.bf16.msra.mxu1 %v14766_v6 }
 0xb92   : > { %14030 = vmatprep.subr.bf16.mxu1 %v14872_v7 }
 0xb95   : > { %14031 = vmatpush3.bf16.msra.mxu1 %v14768_v44 }
 0xb96   : > { %14032 = vmatprep.subr.bf16.mxu1 %v14872_v7 }
 0xb99   : > { %14033 = vmatpush3.bf16.msra.mxu1 %v14770_v3 }
 0xb9a   : > { %14034 = vmatprep.subr.bf16.mxu1 %v14872_v7 }
 0xb9d   : > { %14035 = vmatpush3.bf16.msra.mxu1 %v14772_v12 }
 0xb9e   : > { %14036 = vmatprep.subr.bf16.mxu1 %v14872_v7 }
 0xba1   : > { %14037 = vmatpush3.bf16.msra.mxu1 %v14774_v43 }
 0xba2   : > { %14038 = vmatprep.subr.bf16.mxu1 %v14872_v7 }
 0xba5   : > { %14039 = vmatpush3.bf16.msra.mxu1 %v14776_v58 }
 0xba6   : > { %14040 = vmatprep.subr.bf16.mxu1 %v14872_v7 }
 0xba9   : > { %14041 = vmatpush3.bf16.msra.mxu1 %v14778_v42 }
 0xbaa   : > { %14042 = vmatprep.subr.bf16.mxu1 %v14872_v7 }
 0xbad   : > { %14043 = vmatpush3.bf16.msra.mxu1 %v14780_v4 }
 0xbae   : > { %14048 = vmatprep.subr.bf16.mxu1 %v14872_v7 }
 0xc39   : > { %v8878_v54 = vpop.f32.mrb[44].mxu0 }
 0xc3a   : > { %v14026_v45 = vpop.f32.mrb[45].mxu0 }
 0xc3b   : > { %v8881_v48 = vpop.f32.mrb[46].mxu0 }
 0xc3c   : > { %v14027_v17 = vpop.f32.mrb[47].mxu0 }
 0xc43   : > { %v8631_v40 = vpop.f32.mrb[56].mxu1 }
 0xc44   : > { %v13986_v18 = vpop.f32.mrb[57].mxu1 }
 0xc45   : > { %v8634_v53 = vpop.f32.mrb[58].mxu1 }
 0xc46   : > { %v13987_v16 = vpop.f32.mrb[59].mxu1 }
 0xc63   : > { %v8738_v24 = vpop.f32.mrb[60].mxu1 }
 0xc64   : > { %v8739_v1 = vadd.f32 %v8738_v24, %v8631_v40  ;;  %v14006_v57 = vpop.f32.mrb[61].mxu1 }
 0xc65   : > { %v8741_v39 = vpop.f32.mrb[62].mxu1 }
 0xc66   : > { %v8885_v15 = vadd.f32 %v8878_v54, %v8739_v1  ;;  %v8742_v27 = vadd.f32 %v8741_v39, %v8634_v53  ;;  %v14007_v49 = vpop.f32.mrb[63].mxu1 }
 0xc68   : > { %v8893_v63 = vadd.f32 %v12462_v2, %v8885_v15  ;;  %v8886_v14 = vadd.f32 %v8881_v48, %v8742_v27 }
 0xc6a   : > { %v8895_v35 = vmax.f32 %v8893_v63, 0.0  ;;  %v8894_v51 = vadd.f32 %v12462_v2, %v8886_v14 }
 0xc6c   : > { %v8899_v37 = vcombine.high %v8895_v35, %v8895_v35  ;;  %v8903_v22 = vpack.c.bf16 %v8895_v35, %v8895_v35  ;;  %v8896_v0 = vmax.f32 %v8894_v51, 0.0 }
 0xc6e   : > { %v8904_v62 = vpack.c.bf16 %v8899_v37, %v8899_v37  ;;  %v8908_v56 = vshrl.u32 %v8903_v22, 16  ;;  %v8900_v9 = vcombine.high %v8896_v0, %v8896_v0  ;;  %v8905_v19 = vpack.c.bf16 %v8896_v0, %v8896_v0 }
 0xc6f   : > { %v8911_v20 = vshll.u32 %v8903_v22, 16 }
 0xc70   : > { %v8910_v33 = vrot.slane %v8908_v56, 7  ;;  %v8915_v23 = vshrl.u32 %v8904_v62, 16  ;;  %v8906_v59 = vpack.c.bf16 %v8900_v9, %v8900_v9  ;;  %v8922_v5 = vshrl.u32 %v8905_v19, 16 }
 0xc71   : > { %v8918_v26 = vshll.u32 %v8904_v62, 16  ;;  %v8925_v28 = vshll.u32 %v8905_v19, 16 }
 0xc72   : > { %v8913_v32 = vor.u32 %v8911_v20, %v8910_v33  ;;  %v8917_v38 = vrot.slane %v8915_v23, 7  ;;  %v8929_v60 = vshrl.u32 %v8906_v59, 16  ;;  %v8924_v8 = vrot.slane %v8922_v5, 7 }
 0xc73   : > { %v8932_v29 = vshll.u32 %v8906_v59, 16 }
 0xc74   : > { %v8920_v41 = vor.u32 %v8918_v26, %v8917_v38  ;;  %v8939_v61 = vsel %vm15050_vm2, 0, %v8913_v32  ;;  %v8931_v34 = vrot.slane %v8929_v60, 7  ;;  %v8927_v31 = vor.u32 %v8925_v28, %v8924_v8 }
 0xc75   : > { %v8943_v6 = vsel %vm16960_vm13, %v8939_v61, 0 }
 0xc76   : > { %v8940_v44 = vsel %vm15050_vm2, 0, %v8920_v41  ;;  %v8991_v52 = vrot.slane %v8943_v6, %v15575_v50  ;;  %v8934_v3 = vor.u32 %v8932_v29, %v8931_v34  ;;  %v8941_v12 = vsel %vm15050_vm2, 0, %v8927_v31 }
 0xc77   : > { %v8944_v47 = vsel %vm16960_vm13, %v8940_v44, 0  ;;  %v8945_v36 = vsel %vm16960_vm13, %v8941_v12, 0 }
 0xc78   : > { %v8999_v55 = vrot.slane %v8944_v47, %v15575_v50  ;;  %v8942_v43 = vsel %vm15050_vm2, 0, %v8934_v3  ;;  %v8992_v58 = vcombine.high %v8991_v52, %v8991_v52  ;;  %v9007_v42 = vrot.slane %v8945_v36, %v15575_v50 }
 0xc79   : > { %v8946_v21 = vsel %vm16960_vm13, %v8942_v43, 0  ;;  %v9018_v46 = vshrl.u32 %v8991_v52, 16  ;;  %v9021_v4 = vshll.u32 %v8991_v52, 16  ;;  %v9197_v20 = vcombine.low %v8943_v6, %v8944_v47  ;;  %vm18071_vm13 = vmmov %vm18069_vm6 }
 0xc7a   : > { %v9015_v11 = vrot.slane %v8946_v21, %v15575_v50  ;;  %v9000_v54 = vcombine.high %v8999_v55, %v8999_v55  ;;  %v9027_v45 = vshll.u32 %v8992_v58, 16  ;;  %v9032_v48 = vshrl.u32 %v8999_v55, 16 }
 0xc7b   : > { %v9008_v17 = vcombine.high %v9007_v42, %v9007_v42  ;;  %v9020_v40 = vrot.slane %v9018_v46, 6  ;;  %v9023_v18 = vrot.slane %v9021_v4, 7  ;;  %v9035_v53 = vshll.u32 %v8999_v55, 16 }
 0xc7c   : > { %v9016_v16 = vcombine.high %v9015_v11, %v9015_v11  ;;  %v9034_v24 = vrot.slane %v9032_v48, 6  ;;  %v9041_v1 = vshll.u32 %v9000_v54, 16  ;;  %v9046_v30 = vshrl.u32 %v9007_v42, 16 }
 0xc7d   : > { %v9024_v57 = vor.u32 %v9023_v18, %v9020_v40  ;;  %v9037_v2 = vrot.slane %v9035_v53, 7  ;;  %v9049_v39 = vshll.u32 %v9007_v42, 16  ;;  %v9029_v15 = vrot.slane %v9027_v45, 7  ;;  %v14785_v18 = vld [vmem:[%s18003_s19 + $0xc8] sm:$0xff]  }
 0xc7e   : > { %v9055_v27 = vshll.u32 %v9008_v17, 16  ;;  %v9060_v49 = vshrl.u32 %v9015_v11, 16  ;;  %v9063_v63 = vshll.u32 %v9015_v11, 16  ;;  %v9048_v51 = vrot.slane %v9046_v30, 6  ;;  %v14791_v30 = vld [vmem:[%s18003_s19 + $0xe0] sm:$0xff]  }
 0xc7f   : > { %v9025_v14 = vrot.slane %v9024_v57, 2  ;;  %v9038_v35 = vor.u32 %v9037_v2, %v9034_v24  ;;  %v9051_v37 = vrot.slane %v9049_v39, 7  ;;  %v9043_v22 = vrot.slane %v9041_v1, 7  ;;  %v14787_v24 = vld [vmem:[%s18003_s19 + $0xd0] sm:$0xff]   ;;  %v14788_v1 = vld [vmem:[%s18003_s19 + $0x18] sm:$0xff]   ;;  %v14790_v2 = vld [vmem:[%s18003_s19 + $0x20] sm:$0xff]  }
 0xc80   : > { %v9062_v0 = vrot.slane %v9060_v49, 6  ;;  %v9065_v62 = vrot.slane %v9063_v63, 7  ;;  %v9069_v56 = vshll.u32 %v9016_v16, 16  ;;  %v9057_v33 = vrot.slane %v9055_v27, 7  ;;  %v14789_v57 = vld [vmem:[%s18003_s19 + $0xd8] sm:$0xff]   ;;  %v14792_v39 = vld [vmem:[%s18003_s19 + $0x28] sm:$0xff]  }
 0xc81   : > { %v9039_v9 = vrot.slane %v9038_v35, 2  ;;  %v9052_v19 = vor.u32 %v9051_v37, %v9048_v51  ;;  %v9030_v23 = vsel %vm17026_vm9, %v9025_v14, %v9029_v15  ;;  %v9198_v32 = vcombine.low %v8945_v36, %v8946_v21  ;;  %v14793_v15 = vld [vmem:[%s18003_s19 + $0xe8] sm:$0xff]   ;;  %v14794_v27 = vld [vmem:[%s18003_s19 + $0x30] sm:$0xff]   ;;  %v14796_v63 = vld [vmem:[%s18003_s19 + $0x38] sm:$0xff]  }
 0xc82   : > { %v9066_v59 = vor.u32 %v9065_v62, %v9062_v0  ;;  %v9071_v5 = vrot.slane %v9069_v56, 7  ;;  %v12543_v60 = vrot.slane %v8991_v52, 9  ;;  %v9501_v8 = vrot.slane %v8992_v58, 7  ;;  %v14795_v49 = vld [vmem:[%s18003_s19 + $0xf0] sm:$0xff]   ;;  %v14797_v14 = vld [vmem:[%s18003_s19 + $0xf8] sm:$0xff]   ;;  %v14798_v35 = vld [vmem:[%s18003_s19 + $0x80] sm:$0xff]  }
 0xc83   : > { %v9044_v38 = vsel %vm17026_vm9, %v9039_v9, %v9043_v22  ;;  %v9053_v26 = vrot.slane %v9052_v19, 2  ;;  %v9205_v61 = vrot.slane %v9197_v20, %v15575_v50  ;;  %v9212_v34 = vrot.slane %v9198_v32, %v15575_v50  ;;  %v14799_v51 = vld [vmem:[%s18003_s19 + $0x140] sm:$0xff]   ;;  %v14800_v37 = vld [vmem:[%s18003_s19 + $0x88] sm:$0xff]   ;;  %v14802_v0 = vld [vmem:[%s18003_s19 + $0x90] sm:$0xff]  }
 0xc84   : > { %v9067_v28 = vrot.slane %v9066_v59, 2  ;;  %v9090_v41 = vcombine.low %v9030_v23, %v9044_v38  ;;  %v9502_v6 = vsel %vm17019_vm8, %v12543_v60, %v9501_v8  ;;  %v12544_v31 = vrot.slane %v8999_v55, 9  ;;  %v14801_v22 = vld [vmem:[%s18003_s19 + $0x148] sm:$0xff]   ;;  %v14803_v62 = vld [vmem:[%s18003_s19 + $0x150] sm:$0xff]   ;;  %v14804_v56 = vld [vmem:[%s18003_s19 + $0x98] sm:$0xff]  }
 0xc85   : > { %v9058_v29 = vsel %vm17026_vm9, %v9053_v26, %v9057_v33  ;;  %v9505_v44 = vrot.slane %v9000_v54, 7  ;;  %v17353_v47 = vcombine.low %v9205_v61, %v9212_v34  ;;  %v12545_v52 = vrot.slane %v9007_v42, 9  ;;  %v14782_v42 = vld [vmem:[%s18003_s19] sm:$0xff]   ;;  %v14805_v9 = vld [vmem:[%s18003_s19 + $0x158] sm:$0xff]   ;;  %v14808_v20 = vld [vmem:[%s18003_s19 + $0xa8] sm:$0xff]  }
 0xc86   : > { %v9072_v3 = vsel %vm17026_vm9, %v9067_v28, %v9071_v5  ;;  %v9509_v12 = vrot.slane %v9008_v17, 7  ;;  %v12546_v58 = vrot.slane %v9015_v11, 9  ;;  %v9513_v21 = vrot.slane %v9016_v16, 7  ;;  %v14783_v11 = vld [vmem:[%s18003_s19 + $0xc0] sm:$0xff]   ;;  %v14786_v16 = vld [vmem:[%s18003_s19 + $0x10] sm:$0xff]   ;;  %v14809_v23 = vld [vmem:[%s18003_s19 + $0x168] sm:$0xff]  }
 0xc87   : > { %v9091_v43 = vcombine.low %v9058_v29, %v9072_v3  ;;  %v9506_v36 = vsel %vm17019_vm8, %v12544_v31, %v9505_v44  ;;  %v9098_v55 = vrot.slane %v9090_v41, %v15575_v50  ;;  %v14806_v19 = vld [vmem:[%s18003_s19 + $0xa0] sm:$0xff]   ;;  %v14810_v59 = vld [vmem:[%s18003_s19 + $0xb0] sm:$0xff]   ;;  %v14812_v32 = vld [vmem:[%s18003_s19 + $0xb8] sm:$0xff]   ;;  %vm18077_vm9 = vsmask.f32 256 }
 0xc88   : > { %v9510_v46 = vsel %vm17019_vm8, %v12545_v52, %v9509_v12  ;;  %v9532_v4 = vcombine.low %v9502_v6, %v9506_v36  ;;  %v9514_v25 = vsel %vm17019_vm8, %v12546_v58, %v9513_v21  ;;  %v14807_v33 = vld [vmem:[%s18003_s19 + $0x160] sm:$0xff]   ;;  %v14811_v5 = vld [vmem:[%s18003_s19 + $0x170] sm:$0xff]   ;;  %v14813_v38 = vld [vmem:[%s18003_s19 + $0x178] sm:$0xff]  }
 0xc89   : > { %v9105_v54 = vrot.slane %v9091_v43, %v15575_v50  ;;  %v9533_v45 = vcombine.low %v9510_v46, %v9514_v25  ;;  %v14814_v26 = vld [vmem:[%s18005_s21 + $0x40] sm:$0xff]   ;;  %v14816_v8 = vld [vmem:[%s18005_s21 + $0x48] sm:$0xff]   ;;  %v14818_v41 = vld [vmem:[%s18005_s21 + $0x50] sm:$0xff]  }
 0xc8a   : > { %v9540_v17 = vrot.slane %v9532_v4, %v15575_v50  ;;  %v14815_v60 = vld [vmem:[%s18005_s21 + $0x20] sm:$0xff]   ;;  %v14817_v28 = vld [vmem:[%s18005_s21 + $0x28] sm:$0xff]   ;;  %v14819_v61 = vld [vmem:[%s18005_s21 + $0x30] sm:$0xff]  }
 0xc8b   : > { %v9106_v48 = vcombine.low %v9098_v55, %v9105_v54  ;;  %v9547_v40 = vrot.slane %v9533_v45, %v15575_v50  ;;  %v14820_v34 = vld [vmem:[%s18005_s21 + $0x58] sm:$0xff]   ;;  %v12595_v31 = vld [vmem:[%s18004_s20] ss:$0 sm:$0xff]  ;;  %v14874_v54 = vmov 1966171168   ;;  %vm18076_vm8 = vmmov %vm18075_vm1 }
 0xc8c   : > { %v14821_v29 = vld [vmem:[%s18005_s21 + $0x38] sm:$0xff]   ;;  %v17546_v25 = vunpack.c.l.s4 %v14874_v54 }
 0xc8d   : > { %14045 = vmatmul.mubr.bf16.vlgmr.msra.gmra.mrb[64].mxu1 %v9106_v48  ;;  %14085 = vmatmul.mubr.bf16.vlgmr.msra.gmra.mrb[48].mxu0 %v9106_v48  ;;  %v17377_v53 = vcombine.low %v9540_v17, %v9547_v40 }
 0xc8e   : > { %14049 = vmatpush3.bf16.msra.mxu1 %v14782_v42  ;;  %14089 = vmatpush3.bf16.msra.mxu0 %v14783_v11 }
 0xc8f   : > { %14050 = vmatprep.subr.bf16.mxu1 %v14872_v7  ;;  %14090 = vmatprep.subr.bf16.mxu0 %v14872_v7 }
 0xc90   : > { %14064 = vmatprep.mubr.msk.bf16.mxu1 %vm14873_vm0, %v14872_v7  ;;  %14104 = vmatprep.mubr.msk.bf16.mxu0 %vm14873_vm0, %v14872_v7 }
 0xc92   : > { %14051 = vmatpush3.bf16.msra.mxu1 %v14784_v10  ;;  %14091 = vmatpush3.bf16.msra.mxu0 %v14785_v18 }
 0xc93   : > { %14052 = vmatprep.subr.bf16.mxu1 %v14872_v7  ;;  %14092 = vmatprep.subr.bf16.mxu0 %v14872_v7 }
 0xc96   : > { %14053 = vmatpush3.bf16.msra.mxu1 %v14786_v16  ;;  %14093 = vmatpush3.bf16.msra.mxu0 %v14787_v24 }
 0xc97   : > { %14054 = vmatprep.subr.bf16.mxu1 %v14872_v7  ;;  %14094 = vmatprep.subr.bf16.mxu0 %v14872_v7 }
 0xc9a   : > { %14055 = vmatpush3.bf16.msra.mxu1 %v14788_v1  ;;  %14095 = vmatpush3.bf16.msra.mxu0 %v14789_v57 }
 0xc9b   : > { %14056 = vmatprep.subr.bf16.mxu1 %v14872_v7  ;;  %14096 = vmatprep.subr.bf16.mxu0 %v14872_v7 }
 0xc9e   : > { %14057 = vmatpush3.bf16.msra.mxu1 %v14790_v2  ;;  %14097 = vmatpush3.bf16.msra.mxu0 %v14791_v30 }
 0xc9f   : > { %14058 = vmatprep.subr.bf16.mxu1 %v14872_v7  ;;  %14098 = vmatprep.subr.bf16.mxu0 %v14872_v7 }
 0xca2   : > { %14059 = vmatpush3.bf16.msra.mxu1 %v14792_v39  ;;  %14099 = vmatpush3.bf16.msra.mxu0 %v14793_v15 }
 0xca3   : > { %14060 = vmatprep.subr.bf16.mxu1 %v14872_v7  ;;  %14100 = vmatprep.subr.bf16.mxu0 %v14872_v7 }
 0xca6   : > { %14061 = vmatpush3.bf16.msra.mxu1 %v14794_v27  ;;  %14101 = vmatpush3.bf16.msra.mxu0 %v14795_v49 }
 0xca7   : > { %14062 = vmatprep.subr.bf16.mxu1 %v14872_v7  ;;  %14102 = vmatprep.subr.bf16.mxu0 %v14872_v7 }
 0xcaa   : > { %14063 = vmatpush3.bf16.msra.mxu1 %v14796_v63  ;;  %14103 = vmatpush3.bf16.msra.mxu0 %v14797_v14 }
 0xcab   : > { %14108 = vmatprep.subr.bf16.mxu1 %v14872_v7  ;;  %14128 = vmatprep.subr.bf16.mxu0 %v14872_v7 }
 0xcad   : > { %14065 = vmatmul.mubr.bf16.vlgmr.msra.gmra.mrb[64].mxu1 %v17353_v47  ;;  %14105 = vmatmul.mubr.bf16.vlgmr.msra.gmra.mrb[48].mxu0 %v17353_v47 }
 0xcae   : > { %14109 = vmatpush3.bf16.msra.mxu1 %v14798_v35  ;;  %14129 = vmatpush3.bf16.msra.mxu0 %v14799_v51 }
 0xcaf   : > { %14110 = vmatprep.subr.bf16.mxu1 %v14872_v7  ;;  %14130 = vmatprep.subr.bf16.mxu0 %v14872_v7 }
 0xcb0   : > { %14124 = vmatprep.mubr.msk.bf16.mxu1 %vm14873_vm0, %v14872_v7  ;;  %14144 = vmatprep.mubr.msk.bf16.mxu0 %vm14873_vm0, %v14872_v7 }
 0xcb2   : > { %14111 = vmatpush3.bf16.msra.mxu1 %v14800_v37  ;;  %14131 = vmatpush3.bf16.msra.mxu0 %v14801_v22 }
 0xcb3   : > { %14112 = vmatprep.subr.bf16.mxu1 %v14872_v7  ;;  %14132 = vmatprep.subr.bf16.mxu0 %v14872_v7 }
 0xcb6   : > { %14113 = vmatpush3.bf16.msra.mxu1 %v14802_v0  ;;  %14133 = vmatpush3.bf16.msra.mxu0 %v14803_v62 }
 0xcb7   : > { %14114 = vmatprep.subr.bf16.mxu1 %v14872_v7  ;;  %14134 = vmatprep.subr.bf16.mxu0 %v14872_v7 }
 0xcba   : > { %14115 = vmatpush3.bf16.msra.mxu1 %v14804_v56  ;;  %14135 = vmatpush3.bf16.msra.mxu0 %v14805_v9 }
 0xcbb   : > { %14116 = vmatprep.subr.bf16.mxu1 %v14872_v7  ;;  %14136 = vmatprep.subr.bf16.mxu0 %v14872_v7 }
 0xcbe   : > { %14117 = vmatpush3.bf16.msra.mxu1 %v14806_v19  ;;  %14137 = vmatpush3.bf16.msra.mxu0 %v14807_v33 }
 0xcbf   : > { %14118 = vmatprep.subr.bf16.mxu1 %v14872_v7  ;;  %14138 = vmatprep.subr.bf16.mxu0 %v14872_v7 }
 0xcc2   : > { %14119 = vmatpush3.bf16.msra.mxu1 %v14808_v20  ;;  %14139 = vmatpush3.bf16.msra.mxu0 %v14809_v23 }
 0xcc3   : > { %14120 = vmatprep.subr.bf16.mxu1 %v14872_v7  ;;  %14140 = vmatprep.subr.bf16.mxu0 %v14872_v7 }
 0xcc6   : > { %14121 = vmatpush3.bf16.msra.mxu1 %v14810_v59  ;;  %14141 = vmatpush3.bf16.msra.mxu0 %v14811_v5 }
 0xcc7   : > { %14122 = vmatprep.subr.bf16.mxu1 %v14872_v7  ;;  %14142 = vmatprep.subr.bf16.mxu0 %v14872_v7 }
 0xcca   : > { %14123 = vmatpush3.bf16.msra.mxu1 %v14812_v32  ;;  %14143 = vmatpush3.bf16.msra.mxu0 %v14813_v38 }
 0xccb   : > { %14172 = vmatprep.subr.bf16.mxu0 %v14872_v7  ;;  %14148 = vmatprep.subr.bf16.mxu1 %v14872_v7 }
 0xccd   : > { %14125 = vmatmul.mubr.bf16.vlgmr.msra.gmra.mrb[64].mxu1 %v17377_v53  ;;  %14145 = vmatmul.mubr.bf16.vlgmr.msra.gmra.mrb[48].mxu0 %v17377_v53  ;;  %v9922_v53 = vunpack.c.0.s8 %v17546_v25 }
 0xcce   : > { %14180 = vmatprep.mubr.msk.bf16.mxu0 %vm14873_vm0, %v14872_v7  ;;  %14156 = vmatprep.mubr.msk.bf16.mxu1 %vm14873_vm0, %v14872_v7 }
 0xccf   : > { %14173 = vmatpush3.bf16.msra.mxu0 %v14814_v26  ;;  %14149 = vmatpush3.bf16.msra.mxu1 %v14815_v60 }
 0xcd0   : > { %14174 = vmatprep.subr.bf16.mxu0 %v14872_v7  ;;  %14150 = vmatprep.subr.bf16.mxu1 %v14872_v7 }
 0xcd3   : > { %14175 = vmatpush3.bf16.msra.mxu0 %v14816_v8  ;;  %14151 = vmatpush3.bf16.msra.mxu1 %v14817_v28 }
 0xcd4   : > { %14176 = vmatprep.subr.bf16.mxu0 %v14872_v7  ;;  %14152 = vmatprep.subr.bf16.mxu1 %v14872_v7 }
 0xcd7   : > { %14177 = vmatpush3.bf16.msra.mxu0 %v14818_v41  ;;  %14153 = vmatpush3.bf16.msra.mxu1 %v14819_v61 }
 0xcd8   : > { %14178 = vmatprep.subr.bf16.mxu0 %v14872_v7  ;;  %14154 = vmatprep.subr.bf16.mxu1 %v14872_v7 }
 0xcdb   : > { %14179 = vmatpush3.bf16.msra.mxu0 %v14820_v34  ;;  %14155 = vmatpush3.bf16.msra.mxu1 %v14821_v29 }
 0xcdc   : > { %14160 = vmatprep.subr.bf16.mxu1 %v14872_v7  ;;  %14196 = vmatprep.subr.bf16.mxu0 %v14872_v7 }
 0xda0   : > { %v9632_v6 = vpop.f32.mrb[64].mxu1  ;;  %v9740_v44 = vpop.f32.mrb[48].mxu0 }
 0xda1   : > { %v9749_v3 = vmax.f32 %v9632_v6, %v9740_v44  ;;  %v14126_v47 = vpop.f32.mrb[65].mxu1  ;;  %v14146_v52 = vpop.f32.mrb[49].mxu0 }
 0xda2   : > { %v9635_v12 = vpop.f32.mrb[66].mxu1  ;;  %v9743_v43 = vpop.f32.mrb[50].mxu0 }
 0xda3   : > { %v9757_v36 = vadd.f32 %v12595_v31, %v9749_v3  ;;  %v9750_v58 = vmax.f32 %v9635_v12, %v9743_v43  ;;  %v14127_v21 = vpop.f32.mrb[67].mxu1  ;;  %v14147_v46 = vpop.f32.mrb[51].mxu0 }
 0xda5   : > { %v9759_v4 = vmax.f32 %v9757_v36, 0.0  ;;  %v9758_v55 = vadd.f32 %v12595_v31, %v9750_v58 }
 0xda7   : > { %v9763_v42 = vcombine.high %v9759_v4, %v9759_v4  ;;  %v9770_v11 = vrot.slane %v9759_v4, %v15575_v50  ;;  %v9760_v45 = vmax.f32 %v9758_v55, 0.0 }
 0xda9   : > { %v9777_v48 = vrot.slane %v9763_v42, %v15575_v50  ;;  %v9778_v17 = vcombine.high %v9770_v11, %v9770_v11  ;;  %v9805_v40 = vsel %vm18069_vm6, %v9770_v11, -inf  ;;  %v9780_v10 = vcombine.high %v9760_v45, %v9760_v45  ;;  %vm10009_vm6 = vmor %vm18077_vm9, %vm10008_vm11 }
 0xdaa   : > { %v9806_v18 = vrot.slane %v9805_v40, 4  ;;  %v9787_v16 = vrot.slane %v9760_v45, %v15575_v50  ;;  %vm10020_vm9 = vsmask.f32 7452 }
 0xdab   : > { %v9779_v24 = vcombine.high %v9777_v48, %v9777_v48  ;;  %v9812_v1 = vsel %vm18070_vm12, %v9778_v17, -inf  ;;  %v9819_v57 = vsel %vm18071_vm13, %v9777_v48, -inf  ;;  %v9794_v2 = vrot.slane %v9780_v10, %v15575_v50  ;;  %vm10011_vm13 = vmor %vm10009_vm6, %vm10010_vm10 }
 0xdac   : > { %v9807_v30 = vmax.f32 %v9805_v40, %v9806_v18  ;;  %v9813_v39 = vrot.slane %v9812_v1, 4  ;;  %v9820_v15 = vrot.slane %v9819_v57, 4  ;;  %v9795_v27 = vcombine.high %v9787_v16, %v9787_v16 }
 0xdad   : > { %v9826_v49 = vsel %vm18072_vm15, %v9779_v24, -inf  ;;  %v9796_v63 = vcombine.high %v9794_v2, %v9794_v2  ;;  %v9833_v14 = vsel %vm18073_vm3, %v9787_v16, -inf  ;;  %v9847_v35 = vsel %vm18074_vm5, %v9794_v2, -inf }
 0xdae   : > { %v9808_v51 = vrot.slane %v9807_v30, 2  ;;  %v9814_v37 = vmax.f32 %v9812_v1, %v9813_v39  ;;  %v9821_v22 = vmax.f32 %v9819_v57, %v9820_v15  ;;  %v9827_v0 = vrot.slane %v9826_v49, 4 }
 0xdaf   : > { %v9834_v62 = vrot.slane %v9833_v14, 4  ;;  %v9840_v56 = vsel %vm18075_vm1, %v9795_v27, -inf  ;;  %v9848_v9 = vrot.slane %v9847_v35, 4  ;;  %v9854_v19 = vsel %vm18076_vm8, %v9796_v63, -inf }
 0xdb0   : > { %v9809_v33 = vmax.f32 %v9807_v30, %v9808_v51  ;;  %v9815_v20 = vrot.slane %v9814_v37, 2  ;;  %v9822_v23 = vrot.slane %v9821_v22, 2  ;;  %v9828_v59 = vmax.f32 %v9826_v49, %v9827_v0 }
 0xdb1   : > { %v9835_v5 = vmax.f32 %v9833_v14, %v9834_v62  ;;  %v9841_v32 = vrot.slane %v9840_v56, 4  ;;  %v9849_v38 = vmax.f32 %v9847_v35, %v9848_v9  ;;  %v9855_v26 = vrot.slane %v9854_v19, 4 }
 0xdb2   : > { %v9810_v60 = vrot.slane %v9809_v33, 1  ;;  %v9816_v8 = vmax.f32 %v9814_v37, %v9815_v20  ;;  %v9823_v28 = vmax.f32 %v9821_v22, %v9822_v23  ;;  %v9829_v41 = vrot.slane %v9828_v59, 2  ;;  %v18082_v37 = vld [vmem:[#allocation2_spill] sm:$0xff] }
 0xdb3   : > { %v9836_v61 = vrot.slane %v9835_v5, 2  ;;  %v9842_v34 = vmax.f32 %v9840_v56, %v9841_v32  ;;  %v9850_v29 = vrot.slane %v9849_v38, 2  ;;  %v9856_v6 = vmax.f32 %v9854_v19, %v9855_v26 }
 0xdb4   : > { %v9811_v31 = vmax.f32 %v9809_v33, %v9810_v60  ;;  %v9817_v44 = vrot.slane %v9816_v8, 1  ;;  %v9824_v3 = vrot.slane %v9823_v28, 1  ;;  %v9830_v47 = vmax.f32 %v9828_v59, %v9829_v41 }
 0xdb5   : > { %v9837_v52 = vmax.f32 %v9835_v5, %v9836_v61  ;;  %v9843_v12 = vrot.slane %v9842_v34, 2  ;;  %v9851_v43 = vmax.f32 %v9849_v38, %v9850_v29  ;;  %v9857_v36 = vrot.slane %v9856_v6, 2 }
 0xdb6   : > { %v9818_v58 = vmax.f32 %v9816_v8, %v9817_v44  ;;  %v9825_v21 = vmax.f32 %v9823_v28, %v9824_v3  ;;  %v9831_v46 = vrot.slane %v9830_v47, 1  ;;  %v9861_v4 = vpack.c.bf16 %v9811_v31, %v9811_v31 }
 0xdb7   : > { %v9838_v55 = vrot.slane %v9837_v52, 1  ;;  %v9844_v54 = vmax.f32 %v9842_v34, %v9843_v12  ;;  %v9852_v42 = vrot.slane %v9851_v43, 1  ;;  %v9858_v11 = vmax.f32 %v9856_v6, %v9857_v36 }
 0xdb8   : > { %v9832_v45 = vmax.f32 %v9830_v47, %v9831_v46  ;;  %v9862_v48 = vpack.c.bf16 %v9818_v58, %v9818_v58  ;;  %v9863_v17 = vpack.c.bf16 %v9825_v21, %v9825_v21  ;;  %vm10012_vm12 = vsmask.f32 3340 }
 0xdb9   : > { %v9839_v40 = vmax.f32 %v9837_v52, %v9838_v55  ;;  %v9845_v10 = vrot.slane %v9844_v54, 1  ;;  %v9853_v18 = vmax.f32 %v9851_v43, %v9852_v42  ;;  %v9859_v16 = vrot.slane %v9858_v11, 1  ;;  %vm17566_vm11 = vmor %vm10011_vm13, %vm10012_vm12  ;;  %v14848_v42 = vld [vmem:[%s18009_s25 + $0x8] sm:$0xff]  }
 0xdba   : > { %v9864_v24 = vpack.c.bf16 %v9832_v45, %v9832_v45  ;;  %v9877_v1 = vunpack.c.l.b16 %v9861_v4  ;;  %v9878_v57 = vunpack.c.l.b16 %v9862_v48  ;;  %vm9901_vm15 = vcmask 1041408  }
 0xdbb   : > { %v9846_v2 = vmax.f32 %v9844_v54, %v9845_v10  ;;  %v9860_v30 = vmax.f32 %v9858_v11, %v9859_v16  ;;  %v9865_v39 = vpack.c.bf16 %v9839_v40, %v9839_v40  ;;  %v9867_v15 = vpack.c.bf16 %v9853_v18, %v9853_v18  ;;  %vm17571_vm5 = vmand %vm9901_vm15, %vm7985_vm4 }
 0xdbc   : > { %v9879_v27 = vunpack.c.l.b16 %v9863_v17  ;;  %v9880_v49 = vunpack.c.l.b16 %v9864_v24  ;;  %v9885_v63 = vsel %vm3889_vm7, %v9878_v57, %v9877_v1  ;;  %vm10014_vm3 = vsmask.f32 4368 }
 0xdbd   : > { %v9889_v35 = vpack.c.b16 %v9885_v63, %v9885_v63  ;;  %v17578_v22 = vsub.s32 %v9922_v53, %v18082_v37  ;;  %v9866_v0 = vpack.c.bf16 %v9846_v2, %v9846_v2  ;;  %v9868_v62 = vpack.c.bf16 %v9860_v30, %v9860_v30  ;;  %vm10015_vm4 = vmor %vm17566_vm11, %vm10014_vm3 }
 0xdbe   : > { %v9886_v56 = vsel %vm3889_vm7, %v9880_v49, %v9879_v27  ;;  %v9881_v9 = vunpack.c.l.b16 %v9865_v39  ;;  %v9883_v19 = vunpack.c.l.b16 %v9867_v15  ;;  %vm10016_vm10 = vsmask.f32 5396 }
 0xdbf   : > { %v9890_v33 = vpack.c.b16 %v9886_v56, %v9886_v56  ;;  %v9897_v20 = vsel %vm15050_vm2, 0, %v9889_v35  ;;  %v9882_v23 = vunpack.c.l.b16 %v9866_v0  ;;  %v9884_v59 = vunpack.c.l.b16 %v9868_v62  ;;  %vm10017_vm1 = vmor %vm10015_vm4, %vm10016_vm10 }
 0xdc0   : > { %v9903_v25 = vsel %vm17571_vm5, %v9897_v20, 0  ;;  %vm10018_vm8 = vsmask.f32 6424  ;;  %v14822_v20 = vld [vmem:[%s18005_s21] sm:$0xff]  }
 0xdc1   : > { %v9898_v53 = vsel %vm15050_vm2, 0, %v9890_v33  ;;  %v9926_v5 = vrot.slane %v9903_v25, %v17578_v22  ;;  %v9887_v32 = vsel %vm3889_vm7, %v9882_v23, %v9881_v9  ;;  %v9888_v38 = vsel %vm3889_vm7, %v9884_v59, %v9883_v19  ;;  %vm10019_vm7 = vmor %vm10017_vm1, %vm10018_vm8  ;;  %v14823_v59 = vld [vmem:[%s18005_s21 + $0x8] sm:$0xff]  }
 0xdc2   : > { %v9904_v26 = vsel %vm17571_vm5, %v9898_v53, 0  ;;  %v9891_v60 = vpack.c.b16 %v9887_v32, %v9887_v32  ;;  %v9892_v8 = vpack.c.b16 %v9888_v38, %v9888_v38  ;;  %vm17612_vm6 = vmor %vm10019_vm7, %vm10020_vm9  ;;  %v14825_v53 = vld [vmem:[%s18005_s21 + $0x18] sm:$0xff]   ;;  %v14826_v32 = vld [vmem:[%s18007_s23] sm:$0xff]  }
 0xdc3   : > { %v9948_v28 = vrot.slane %v9904_v26, %v17578_v22  ;;  %v9927_v41 = vcombine.high %v9926_v5, %v9926_v5  ;;  %v9934_v61 = vrot.slane %v9926_v5, %v17578_v22  ;;  %v10158_v43 = vcombine.low %v9903_v25, %v9904_v26  ;;  %v14824_v25 = vld [vmem:[%s18005_s21 + $0x10] sm:$0xff]   ;;  %v14827_v38 = vld [vmem:[%s18007_s23 + $0x8] sm:$0xff]   ;;  %v14828_v26 = vld [vmem:[%s18007_s23 + $0x20] sm:$0xff]  }
 0xdc4   : > { %v9899_v34 = vsel %vm15050_vm2, 0, %v9891_v60  ;;  %v9900_v29 = vsel %vm15050_vm2, 0, %v9892_v8  ;;  %v14829_v60 = vld [vmem:[%s18007_s23 + $0x10] sm:$0xff]   ;;  %v14830_v8 = vld [vmem:[%s18007_s23 + $0x28] sm:$0xff]  }
 0xdc5   : > { %v9905_v6 = vsel %vm17571_vm5, %v9899_v34, 0  ;;  %v9906_v31 = vsel %vm17571_vm5, %v9900_v29, 0  ;;  %v9941_v44 = vrot.slane %v9927_v41, %v17578_v22  ;;  %v9949_v3 = vcombine.high %v9948_v28, %v9948_v28  ;;  %v14832_v41 = vld [vmem:[%s18007_s23 + $0x30] sm:$0xff]  }
 0xdc6   : > { %v9970_v47 = vrot.slane %v9905_v6, %v17578_v22  ;;  %v9992_v52 = vrot.slane %v9906_v31, %v17578_v22  ;;  %v9956_v12 = vrot.slane %v9948_v28, %v17578_v22  ;;  %v10159_v21 = vcombine.low %v9905_v6, %v9906_v31  ;;  %v14831_v28 = vld [vmem:[%s18007_s23 + $0x18] sm:$0xff]  }
 0xdc7   : > { %v9963_v36 = vrot.slane %v9949_v3, %v17578_v22  ;;  %v10028_v58 = vshll.u32 %v9941_v44, 16  ;;  %v10023_v45 = vshrl.u32 %v9934_v61, 16  ;;  %v10166_v18 = vrot.slane %v10158_v43, %v17578_v22  ;;  %v14833_v61 = vld [vmem:[%s18007_s23 + $0x38] sm:$0xff]  }
 0xdc8   : > { %v9978_v46 = vrot.slane %v9970_v47, %v17578_v22  ;;  %v9971_v4 = vcombine.high %v9970_v47, %v9970_v47  ;;  %v9993_v55 = vcombine.high %v9992_v52, %v9992_v52  ;;  %v10000_v54 = vrot.slane %v9992_v52, %v17578_v22 }
 0xdc9   : > { %v10037_v11 = vshll.u32 %v9963_v36, 16  ;;  %v10032_v48 = vshrl.u32 %v9956_v12, 16  ;;  %v10258_v10 = vcombine.low %v9941_v44, %v9963_v36  ;;  %v10030_v16 = vsel %vm17612_vm6, %v10023_v45, %v10028_v58  ;;  %v12631_v58 = vld [vmem:[%s18006_s22] ss:$0 sm:$0xff] }
 0xdca   : > { %v9985_v17 = vrot.slane %v9971_v4, %v17578_v22  ;;  %v10007_v40 = vrot.slane %v9993_v55, %v17578_v22  ;;  %v10041_v1 = vshrl.u32 %v9978_v46, 16  ;;  %v10173_v57 = vrot.slane %v10159_v21, %v17578_v22 }
 0xdcb   : > { %v10039_v24 = vsel %vm17612_vm6, %v10032_v48, %v10037_v11  ;;  %v10050_v15 = vshrl.u32 %v10000_v54, 16  ;;  %v10266_v63 = vrot.slane %v10258_v10, %v17578_v22 }
 0xdcc   : > { %v10046_v2 = vshll.u32 %v9985_v17, 16  ;;  %v10055_v30 = vshll.u32 %v10007_v40, 16  ;;  %v10259_v39 = vcombine.low %v9985_v17, %v10007_v40  ;;  %v10067_v27 = vcombine.low %v10030_v16, %v10039_v24 }
 0xdcd   : > { %v10174_v49 = vcombine.low %v10166_v18, %v10173_v57 }
 0xdce   : > { %v10273_v14 = vrot.slane %v10259_v39, %v17578_v22  ;;  %v10048_v35 = vsel %vm17612_vm6, %v10041_v1, %v10046_v2  ;;  %v10057_v37 = vsel %vm17612_vm6, %v10050_v15, %v10055_v30  ;;  %v10075_v56 = vrot.slane %v10067_v27, %v17578_v22 }
 0xdcf   : > { %v10068_v0 = vcombine.low %v10048_v35, %v10057_v37  ;;  %v10181_v5 = vrot.slane %v10174_v49, %v17578_v22 }
 0xdd0   : > { %v10274_v62 = vcombine.low %v10266_v63, %v10273_v14 }
 0xdd1   : > { %v10082_v9 = vrot.slane %v10068_v0, %v17578_v22 }
 0xdd2   : > { %v10281_v19 = vrot.slane %v10274_v62, %v17578_v22 }
 0xdd3   : > { %v10083_v33 = vcombine.low %v10075_v56, %v10082_v9 }
 0xdd4   : > { %14181 = vmatmul.mubr.msk.bf16.vlgmr.msra.gmra.mrb[52].mxu0 %vm4062_vm14, %v10281_v19 }
 0xdd5   : > { %v10090_v23 = vrot.slane %v10083_v33, %v17578_v22  ;;  %14204 = vmatprep.mubr.msk.bf16.mxu0 %vm14873_vm0, %v14872_v7  ;;  %14197 = vmatpush3.bf16.msra.mxu0 %v14826_v32 }
 0xdd6   : > { %14198 = vmatprep.subr.bf16.mxu0 %v14872_v7 }
 0xdd7   : > { %14157 = vmatmul.mubr.msk.bf16.vlgmr.msra.gmra.mrb[68].mxu1 %vm4062_vm14, %v10090_v23 }
 0xdd8   : > { %14161 = vmatpush3.bf16.msra.mxu1 %v14822_v20  ;;  %14168 = vmatprep.mubr.msk.bf16.mxu1 %vm14873_vm0, %v14872_v7 }
 0xdd9   : > { %14162 = vmatprep.subr.bf16.mxu1 %v14872_v7  ;;  %14199 = vmatpush3.bf16.msra.mxu0 %v14827_v38 }
 0xdda   : > { %14200 = vmatprep.subr.bf16.mxu0 %v14872_v7 }
 0xddc   : > { %14163 = vmatpush3.bf16.msra.mxu1 %v14823_v59 }
 0xddd   : > { %14164 = vmatprep.subr.bf16.mxu1 %v14872_v7  ;;  %14201 = vmatpush3.bf16.msra.mxu0 %v14829_v60 }
 0xdde   : > { %14202 = vmatprep.subr.bf16.mxu0 %v14872_v7 }
 0xde0   : > { %14165 = vmatpush3.bf16.msra.mxu1 %v14824_v25 }
 0xde1   : > { %14166 = vmatprep.subr.bf16.mxu1 %v14872_v7  ;;  %14203 = vmatpush3.bf16.msra.mxu0 %v14831_v28 }
 0xde2   : > { %14220 = vmatprep.subr.bf16.mxu0 %v14872_v7 }
 0xde4   : > { %14167 = vmatpush3.bf16.msra.mxu1 %v14825_v53 }
 0xde5   : > { %14184 = vmatprep.subr.bf16.mxu1 %v14872_v7 }
 0xde7   : > { %14169 = vmatmul.mubr.msk.bf16.vlgmr.msra.gmra.mrb[72].mxu1 %vm4062_vm14, %v10181_v5 }
 0xde8   : > { %14192 = vmatprep.mubr.msk.bf16.mxu1 %vm14873_vm0, %v14872_v7  ;;  %14185 = vmatpush3.bf16.msra.mxu1 %v14828_v26 }
 0xde9   : > { %14186 = vmatprep.subr.bf16.mxu1 %v14872_v7 }
 0xdec   : > { %14187 = vmatpush3.bf16.msra.mxu1 %v14830_v8 }
 0xded   : > { %14188 = vmatprep.subr.bf16.mxu1 %v14872_v7 }
 0xdf0   : > { %14189 = vmatpush3.bf16.msra.mxu1 %v14832_v41 }
 0xdf1   : > { %14190 = vmatprep.subr.bf16.mxu1 %v14872_v7 }
 0xdf4   : > { %14191 = vmatpush3.bf16.msra.mxu1 %v14833_v61 }
 0xdf5   : > { %14208 = vmatprep.subr.bf16.mxu1 %v14872_v7 }
 0xea7   : > { %v10343_v34 = vpop.f32.mrb[52].mxu0 }
 0xea8   : > { %v14182_v29 = vpop.f32.mrb[53].mxu0 }
 0xea9   : > { %v10346_v6 = vpop.f32.mrb[54].mxu0 }
 0xeaa   : > { %v10152_v31 = vpop.f32.mrb[68].mxu1  ;;  %v14183_v44 = vpop.f32.mrb[55].mxu0 }
 0xeab   : > { %v14158_v3 = vpop.f32.mrb[69].mxu1 }
 0xeac   : > { %v10155_v47 = vpop.f32.mrb[70].mxu1 }
 0xead   : > { %v14159_v52 = vpop.f32.mrb[71].mxu1 }
 0xeba   : > { %v10243_v12 = vpop.f32.mrb[72].mxu1 }
 0xebb   : > { %v10244_v43 = vadd.f32 %v10243_v12, %v10152_v31  ;;  %v14170_v36 = vpop.f32.mrb[73].mxu1 }
 0xebc   : > { %v10246_v21 = vpop.f32.mrb[74].mxu1 }
 0xebd   : > { %v10349_v46 = vadd.f32 %v10343_v34, %v10244_v43  ;;  %v14171_v4 = vpop.f32.mrb[75].mxu1 }
 0xebf   : > { %v10356_v55 = vadd.f32 %v12631_v58, %v10349_v46 }
 0xec1   : > { %v10357_v54 = vmax.f32 %v10356_v55, 0.0 }
 0xec3   : > { %v10359_v11 = vcombine.high %v10357_v54, %v10357_v54  ;;  %v10366_v45 = vrot.slane %v10357_v54, %v15575_v50 }
 0xec5   : > { %v10373_v48 = vrot.slane %v10359_v11, %v15575_v50  ;;  %v10374_v17 = vcombine.high %v10366_v45, %v10366_v45  ;;  %v10380_v40 = vpack.c.bf16 %v10366_v45, %v10366_v45 }
 0xec7   : > { %v10375_v10 = vcombine.high %v10373_v48, %v10373_v48  ;;  %v10381_v18 = vpack.c.bf16 %v10374_v17, %v10374_v17  ;;  %v10382_v16 = vpack.c.bf16 %v10373_v48, %v10373_v48  ;;  %v10385_v24 = vshrl.u32 %v10380_v40, 16 }
 0xec8   : > { %v10388_v2 = vshll.u32 %v10380_v40, 16 }
 0xec9   : > { %v10383_v1 = vpack.c.bf16 %v10375_v10, %v10375_v10  ;;  %v10387_v57 = vrot.slane %v10385_v24, 7  ;;  %v10392_v30 = vshrl.u32 %v10381_v18, 16  ;;  %v10399_v39 = vshrl.u32 %v10382_v16, 16 }
 0xeca   : > { %v10395_v49 = vshll.u32 %v10381_v18, 16  ;;  %v10402_v35 = vshll.u32 %v10382_v16, 16 }
 0xecb   : > { %v10390_v15 = vor.u32 %v10388_v2, %v10387_v57  ;;  %v10394_v27 = vrot.slane %v10392_v30, 7  ;;  %v10406_v63 = vshrl.u32 %v10383_v1, 16  ;;  %v10401_v14 = vrot.slane %v10399_v39, 7 }
 0xecc   : > { %v10409_v62 = vshll.u32 %v10383_v1, 16 }
 0xecd   : > { %v10397_v37 = vor.u32 %v10395_v49, %v10394_v27  ;;  %v10408_v0 = vrot.slane %v10406_v63, 7  ;;  %v10416_v56 = vsel %vm15050_vm2, 0, %v10390_v15  ;;  %v10404_v9 = vor.u32 %v10402_v35, %v10401_v14  ;;  %v14834_v15 = vld [vmem:[%s18007_s23 + $0x40] sm:$0xff]   ;;  %v14835_v49 = vld [vmem:[%s18007_s23 + $0x48] sm:$0xff]   ;;  %v14836_v35 = vld [vmem:[%s18007_s23 + $0x50] sm:$0xff]  }
 0xece   : > { %v10420_v19 = vsel %vm17571_vm5, %v10416_v56, 0 }
 0xecf   : > { %v10411_v33 = vor.u32 %v10409_v62, %v10408_v0  ;;  %v10417_v20 = vsel %vm15050_vm2, 0, %v10397_v37  ;;  %v10443_v23 = vrot.slane %v10420_v19, %v17578_v22  ;;  %v10418_v59 = vsel %vm15050_vm2, 0, %v10404_v9  ;;  %v14837_v62 = vld [vmem:[%s18007_s23 + $0x58] sm:$0xff]  }
 0xed0   : > { %v10421_v25 = vsel %vm17571_vm5, %v10417_v20, 0  ;;  %v10422_v5 = vsel %vm17571_vm5, %v10418_v59, 0  ;;  %v14840_v20 = vld [vmem:[%s18009_s25 + $0x28] sm:$0xff]   ;;  %v14842_v59 = vld [vmem:[%s18009_s25 + $0x30] sm:$0xff]  }
 0xed1   : > { %v10419_v53 = vsel %vm15050_vm2, 0, %v10411_v33  ;;  %v10444_v32 = vcombine.high %v10443_v23, %v10443_v23  ;;  %v10465_v26 = vrot.slane %v10421_v25, %v17578_v22  ;;  %v10487_v60 = vrot.slane %v10422_v5, %v17578_v22  ;;  %v14839_v33 = vld [vmem:[%s18009_s25 + $0x80] sm:$0xff]  }
 0xed2   : > { %v10423_v38 = vsel %vm17571_vm5, %v10419_v53, 0  ;;  %v10661_v41 = vcombine.low %v10420_v19, %v10421_v25  ;;  %v10451_v34 = vrot.slane %v10443_v23, %v17578_v22  ;;  %v14838_v19 = vld [vmem:[%s18009_s25 + $0x20] sm:$0xff]   ;;  %v14841_v23 = vld [vmem:[%s18009_s25 + $0x88] sm:$0xff]   ;;  %v14843_v25 = vld [vmem:[%s18009_s25 + $0x90] sm:$0xff]  }
 0xed3   : > { %v10458_v8 = vrot.slane %v10444_v32, %v17578_v22  ;;  %v10509_v28 = vrot.slane %v10423_v38, %v17578_v22  ;;  %v10662_v61 = vcombine.low %v10422_v5, %v10423_v38  ;;  %v10466_v29 = vcombine.high %v10465_v26, %v10465_v26  ;;  %v14844_v53 = vld [vmem:[%s18009_s25 + $0x38] sm:$0xff]  }
 0xed4   : > { %v10473_v6 = vrot.slane %v10465_v26, %v17578_v22  ;;  %v10488_v31 = vcombine.high %v10487_v60, %v10487_v60  ;;  %v10495_v44 = vrot.slane %v10487_v60, %v17578_v22  ;;  %v10669_v58 = vrot.slane %v10661_v41, %v17578_v22  ;;  %v14845_v5 = vld [vmem:[%s18009_s25 + $0x98] sm:$0xff]  }
 0xed5   : > { %v10510_v3 = vcombine.high %v10509_v28, %v10509_v28  ;;  %v10517_v47 = vrot.slane %v10509_v28, %v17578_v22  ;;  %v10480_v52 = vrot.slane %v10466_v29, %v17578_v22  ;;  %v10531_v43 = vshll.u32 %v10458_v8, 16  ;;  %v12667_v29 = vld [vmem:[%s18008_s24] ss:$0 sm:$0xff] }
 0xed6   : > { %v10502_v12 = vrot.slane %v10488_v31, %v17578_v22  ;;  %v10676_v21 = vrot.slane %v10662_v61, %v17578_v22  ;;  %v10526_v46 = vshrl.u32 %v10451_v34, 16  ;;  %v10535_v4 = vshrl.u32 %v10473_v6, 16 }
 0xed7   : > { %v10524_v36 = vrot.slane %v10510_v3, %v17578_v22  ;;  %v10540_v55 = vshll.u32 %v10480_v52, 16  ;;  %v10544_v11 = vshrl.u32 %v10495_v44, 16  ;;  %v10553_v45 = vshrl.u32 %v10517_v47, 16 }
 0xed8   : > { %v10549_v54 = vshll.u32 %v10502_v12, 16  ;;  %v10677_v48 = vcombine.low %v10669_v58, %v10676_v21  ;;  %v10533_v40 = vsel %vm17612_vm6, %v10526_v46, %v10531_v43  ;;  %v10761_v14 = vcombine.low %v10458_v8, %v10480_v52 }
 0xed9   : > { %v10558_v17 = vshll.u32 %v10524_v36, 16  ;;  %v10542_v10 = vsel %vm17612_vm6, %v10535_v4, %v10540_v55  ;;  %v10762_v63 = vcombine.low %v10502_v12, %v10524_v36 }
 0xeda   : > { %v10684_v18 = vrot.slane %v10677_v48, %v17578_v22  ;;  %v10551_v16 = vsel %vm17612_vm6, %v10544_v11, %v10549_v54  ;;  %v10570_v1 = vcombine.low %v10533_v40, %v10542_v10  ;;  %v10769_v0 = vrot.slane %v10761_v14, %v17578_v22 }
 0xedb   : > { %v10560_v24 = vsel %vm17612_vm6, %v10553_v45, %v10558_v17  ;;  %v10776_v37 = vrot.slane %v10762_v63, %v17578_v22 }
 0xedc   : > { %v10571_v57 = vcombine.low %v10551_v16, %v10560_v24  ;;  %14205 = vmatmul.mubr.msk.bf16.vlgmr.msra.gmra.mrb[56].mxu0 %vm4062_vm14, %v10684_v18  ;;  %v10578_v2 = vrot.slane %v10570_v1, %v17578_v22 }
 0xedd   : > { %14228 = vmatprep.mubr.msk.bf16.mxu0 %vm14873_vm0, %v14872_v7  ;;  %v10777_v56 = vcombine.low %v10769_v0, %v10776_v37  ;;  %14221 = vmatpush3.bf16.msra.mxu0 %v14838_v19 }
 0xede   : > { %v10585_v30 = vrot.slane %v10571_v57, %v17578_v22  ;;  %14222 = vmatprep.subr.bf16.mxu0 %v14872_v7 }
 0xedf   : > { %v10784_v9 = vrot.slane %v10777_v56, %v17578_v22 }
 0xee0   : > { %v10586_v39 = vcombine.low %v10578_v2, %v10585_v30 }
 0xee1   : > { %14223 = vmatpush3.bf16.msra.mxu0 %v14840_v20 }
 0xee2   : > { %v10593_v27 = vrot.slane %v10586_v39, %v17578_v22  ;;  %14224 = vmatprep.subr.bf16.mxu0 %v14872_v7 }
 0xee4   : > { %14193 = vmatmul.mubr.msk.bf16.vlgmr.msra.gmra.mrb[76].mxu1 %vm4062_vm14, %v10593_v27 }
 0xee5   : > { %14209 = vmatpush3.bf16.msra.mxu1 %v14834_v15  ;;  %14216 = vmatprep.mubr.msk.bf16.mxu1 %vm14873_vm0, %v14872_v7 }
 0xee6   : > { %14210 = vmatprep.subr.bf16.mxu1 %v14872_v7  ;;  %14225 = vmatpush3.bf16.msra.mxu0 %v14842_v59 }
 0xee7   : > { %14226 = vmatprep.subr.bf16.mxu0 %v14872_v7 }
 0xee9   : > { %14211 = vmatpush3.bf16.msra.mxu1 %v14835_v49 }
 0xeea   : > { %14212 = vmatprep.subr.bf16.mxu1 %v14872_v7  ;;  %14227 = vmatpush3.bf16.msra.mxu0 %v14844_v53 }
 0xeeb   : > { %14232 = vmatprep.subr.bf16.mxu0 %v14872_v7 }
 0xeed   : > { %14213 = vmatpush3.bf16.msra.mxu1 %v14836_v35 }
 0xeee   : > { %14214 = vmatprep.subr.bf16.mxu1 %v14872_v7 }
 0xef1   : > { %14215 = vmatpush3.bf16.msra.mxu1 %v14837_v62 }
 0xef2   : > { %14244 = vmatprep.subr.bf16.mxu1 %v14872_v7 }
 0xef4   : > { %14217 = vmatmul.mubr.msk.bf16.vlgmr.msra.gmra.mrb[80].mxu1 %vm4062_vm14, %v10784_v9 }
 0xef5   : > { %14252 = vmatprep.mubr.msk.bf16.mxu1 %vm14873_vm0, %v14872_v7  ;;  %14245 = vmatpush3.bf16.msra.mxu1 %v14839_v33 }
 0xef6   : > { %14246 = vmatprep.subr.bf16.mxu1 %v14872_v7 }
 0xef9   : > { %14247 = vmatpush3.bf16.msra.mxu1 %v14841_v23 }
 0xefa   : > { %14248 = vmatprep.subr.bf16.mxu1 %v14872_v7 }
 0xefd   : > { %14249 = vmatpush3.bf16.msra.mxu1 %v14843_v25 }
 0xefe   : > { %14250 = vmatprep.subr.bf16.mxu1 %v14872_v7 }
 0xf01   : > { %14251 = vmatpush3.bf16.msra.mxu1 %v14845_v5 }
 0xf02   : > { %14256 = vmatprep.subr.bf16.mxu1 %v14872_v7 }
 0xfaf   : > { %v10746_v32 = vpop.f32.mrb[56].mxu0 }
 0xfb0   : > { %v14206_v38 = vpop.f32.mrb[57].mxu0 }
 0xfb1   : > { %v10749_v26 = vpop.f32.mrb[58].mxu0 }
 0xfb2   : > { %v14207_v60 = vpop.f32.mrb[59].mxu0 }
 0xfb7   : > { %v10655_v8 = vpop.f32.mrb[76].mxu1 }
 0xfb8   : > { %v10747_v28 = vadd.f32 %v10746_v32, %v10655_v8  ;;  %v14194_v41 = vpop.f32.mrb[77].mxu1 }
 0xfb9   : > { %v10658_v61 = vpop.f32.mrb[78].mxu1 }
 0xfba   : > { %v14195_v34 = vpop.f32.mrb[79].mxu1 }
 0xfc7   : > { %v10846_v6 = vpop.f32.mrb[80].mxu1 }
 0xfc8   : > { %v10852_v31 = vadd.f32 %v10846_v6, %v10747_v28  ;;  %v14218_v44 = vpop.f32.mrb[81].mxu1 }
 0xfc9   : > { %v10849_v3 = vpop.f32.mrb[82].mxu1 }
 0xfca   : > { %v10859_v47 = vadd.f32 %v12667_v29, %v10852_v31  ;;  %v14219_v52 = vpop.f32.mrb[83].mxu1 }
 0xfcc   : > { %v10860_v12 = vmax.f32 %v10859_v47, 0.0 }
 0xfce   : > { %v10862_v43 = vcombine.high %v10860_v12, %v10860_v12  ;;  %v10869_v36 = vrot.slane %v10860_v12, %v15575_v50 }
 0xfd0   : > { %v10876_v58 = vrot.slane %v10862_v43, %v15575_v50  ;;  %v10877_v21 = vcombine.high %v10869_v36, %v10869_v36  ;;  %v10883_v46 = vpack.c.bf16 %v10869_v36, %v10869_v36 }
 0xfd2   : > { %v10878_v4 = vcombine.high %v10876_v58, %v10876_v58  ;;  %v10884_v55 = vpack.c.bf16 %v10877_v21, %v10877_v21  ;;  %v10885_v54 = vpack.c.bf16 %v10876_v58, %v10876_v58  ;;  %v10888_v11 = vshrl.u32 %v10883_v46, 16 }
 0xfd3   : > { %v10891_v17 = vshll.u32 %v10883_v46, 16 }
 0xfd4   : > { %v10886_v45 = vpack.c.bf16 %v10878_v4, %v10878_v4  ;;  %v10890_v48 = vrot.slane %v10888_v11, 7  ;;  %v10895_v40 = vshrl.u32 %v10884_v55, 16  ;;  %v10902_v10 = vshrl.u32 %v10885_v54, 16 }
 0xfd5   : > { %v10898_v24 = vshll.u32 %v10884_v55, 16  ;;  %v10905_v2 = vshll.u32 %v10885_v54, 16  ;;  %v14846_v55 = vld [vmem:[%s18009_s25] sm:$0xff]  }
 0xfd6   : > { %v10893_v18 = vor.u32 %v10891_v17, %v10890_v48  ;;  %v10897_v16 = vrot.slane %v10895_v40, 7  ;;  %v10909_v1 = vshrl.u32 %v10886_v45, 16  ;;  %v10904_v57 = vrot.slane %v10902_v10, 7  ;;  %v14847_v54 = vld [vmem:[%s18009_s25 + $0x60] sm:$0xff]   ;;  %v14850_v40 = vld [vmem:[%s18009_s25 + $0x10] sm:$0xff]  }
 0xfd7   : > { %v10912_v15 = vshll.u32 %v10886_v45, 16  ;;  %v14849_v45 = vld [vmem:[%s18009_s25 + $0x68] sm:$0xff]   ;;  %v14851_v10 = vld [vmem:[%s18009_s25 + $0x70] sm:$0xff]  }
 0xfd8   : > { %v10900_v30 = vor.u32 %v10898_v24, %v10897_v16  ;;  %v10911_v39 = vrot.slane %v10909_v1, 7  ;;  %v10919_v27 = vsel %vm15050_vm2, 0, %v10893_v18  ;;  %v10907_v49 = vor.u32 %v10905_v2, %v10904_v57  ;;  %v14852_v24 = vld [vmem:[%s18009_s25 + $0x18] sm:$0xff]   ;;  %v14854_v2 = vld [vmem:[%s18009_s25 + $0x40] sm:$0xff]  }
 0xfd9   : > { %v17808_v63 = vsel %vm17571_vm5, %v10919_v27, 0  ;;  %v14853_v1 = vld [vmem:[%s18009_s25 + $0x78] sm:$0xff]   ;;  %v14857_v27 = vld [vmem:[%s18009_s25 + $0xa8] sm:$0xff]  }
 0xfda   : > { %v10914_v14 = vor.u32 %v10912_v15, %v10911_v39  ;;  %v10920_v35 = vsel %vm15050_vm2, 0, %v10900_v30  ;;  %v10955_v37 = vrot.slane %v17808_v63, %v17578_v22  ;;  %v10921_v0 = vsel %vm15050_vm2, 0, %v10907_v49  ;;  %v14855_v30 = vld [vmem:[%s18009_s25 + $0xa0] sm:$0xff]   ;;  %v14856_v15 = vld [vmem:[%s18009_s25 + $0x48] sm:$0xff]  }
 0xfdb   : > { %v10924_v62 = vsel %vm17571_vm5, %v10920_v35, 0  ;;  %v10925_v9 = vsel %vm17571_vm5, %v10921_v0, 0  ;;  %v14859_v35 = vld [vmem:[%s18009_s25 + $0xb0] sm:$0xff]  }
 0xfdc   : > { %v10922_v56 = vsel %vm15050_vm2, 0, %v10914_v14  ;;  %v10956_v19 = vcombine.high %v10955_v37, %v10955_v37  ;;  %v10977_v20 = vrot.slane %v10924_v62, %v17578_v22  ;;  %v10999_v23 = vrot.slane %v10925_v9, %v17578_v22  ;;  %v14858_v14 = vld [vmem:[%s18009_s25 + $0x50] sm:$0xff]  }
 0xfdd   : > { %v10926_v33 = vsel %vm17571_vm5, %v10922_v56, 0  ;;  %v10963_v53 = vrot.slane %v10955_v37, %v17578_v22  ;;  %v11173_v17 = vcombine.low %v17808_v63, %v10924_v62  ;;  %v14860_v62 = vld [vmem:[%s18009_s25 + $0x58] sm:$0xff]   ;;  %vm11607_vm2 = vcmask 254976  }
 0xfde   : > { %v17827_v59 = vrot.slane %v10956_v19, %v17578_v22  ;;  %v11021_v25 = vrot.slane %v10926_v33, %v17578_v22  ;;  %v10978_v13 = vcombine.high %v10977_v20, %v10977_v20  ;;  %v10985_v5 = vrot.slane %v10977_v20, %v17578_v22  ;;  %v14861_v56 = vld [vmem:[%s18009_s25 + $0xb8] sm:$0xff]   ;;  %v12742_v20 = vld [vmem:[%s18010_s26] ss:$0 sm:$0xff] }
 0xfdf   : > { %v11000_v32 = vcombine.high %v10999_v23, %v10999_v23  ;;  %v11007_v38 = vrot.slane %v10999_v23, %v17578_v22  ;;  %v11038_v61 = vshrl.u32 %v10963_v53, 16  ;;  %v11174_v48 = vcombine.low %v10925_v9, %v10926_v33 }
 0xfe0   : > { %v11022_v26 = vcombine.high %v11021_v25, %v11021_v25  ;;  %v11029_v51 = vrot.slane %v11021_v25, %v17578_v22  ;;  %v17835_v60 = vrot.slane %v10978_v13, %v17578_v22  ;;  %v11043_v28 = vshll.u32 %v17827_v59, 16 }
 0xfe1   : > { %v17838_v8 = vrot.slane %v11000_v32, %v17578_v22  ;;  %v11047_v34 = vshrl.u32 %v10985_v5, 16  ;;  %v11056_v31 = vshrl.u32 %v11007_v38, 16  ;;  %v11188_v18 = vrot.slane %v11174_v48, %v17578_v22 }
 0xfe2   : > { %v17842_v41 = vrot.slane %v11022_v26, %v17578_v22  ;;  %v11052_v29 = vshll.u32 %v17835_v60, 16  ;;  %v11065_v44 = vshrl.u32 %v11029_v51, 16  ;;  %v11045_v47 = vsel %vm17612_vm6, %v11038_v61, %v11043_v28 }
 0xfe3   : > { %v11061_v6 = vshll.u32 %v17838_v8, 16  ;;  %v11181_v16 = vrot.slane %v11173_v17, %v17578_v22  ;;  %v11410_v63 = vcombine.low %v17827_v59, %v17835_v60 }
 0xfe4   : > { %v11070_v3 = vshll.u32 %v17842_v41, 16  ;;  %v11054_v52 = vsel %vm17612_vm6, %v11047_v34, %v11052_v29  ;;  %v11411_v49 = vcombine.low %v17838_v8, %v17842_v41 }
 0xfe5   : > { %v11063_v12 = vsel %vm17612_vm6, %v11056_v31, %v11061_v6  ;;  %v11082_v36 = vcombine.low %v11045_v47, %v11054_v52  ;;  %v11189_v57 = vcombine.low %v11181_v16, %v11188_v18  ;;  %v11418_v0 = vrot.slane %v11410_v63, %v17578_v22  ;;  %v11645_v16 = vld [vmem:[%s17957_s4 + $0x1] sm:$0x1] }
 0xfe6   : > { %v11072_v43 = vsel %vm17612_vm6, %v11065_v44, %v11070_v3  ;;  %v11425_v37 = vrot.slane %v11411_v49, %v17578_v22 }
 0xfe7   : > { %v11083_v58 = vcombine.low %v11063_v12, %v11072_v43  ;;  %v11090_v21 = vrot.slane %v11082_v36, %v17578_v22  ;;  %v11196_v39 = vrot.slane %v11189_v57, %v17578_v22 }
 0xfe8   : > { %v11426_v9 = vcombine.low %v11418_v0, %v11425_v37 }
 0xfe9   : > { %v11097_v46 = vrot.slane %v11083_v58, %v17578_v22 }
 0xfea   : > { %v11433_v19 = vrot.slane %v11426_v9, %v17578_v22 }
 0xfeb   : > { %v11098_v4 = vcombine.low %v11090_v21, %v11097_v46  ;;  %v11642_v46 = vld [vmem:[%s17957_s4] sm:$0x1] }
 0xfed   : > { %v11105_v11 = vrot.slane %v11098_v4, %v17578_v22 }
 0xfef   : > { %14229 = vmatmul.mubr.msk.bf16.vlgmr.msra.gmra.mrb[60].mxu0 %vm4062_vm14, %v11105_v11  ;;  %14253 = vmatmul.mubr.msk.bf16.vlgmr.msra.gmra.mrb[84].mxu1 %vm4062_vm14, %v11105_v11 }
 0xff0   : > { %14233 = vmatpush3.bf16.msra.mxu0 %v14846_v55  ;;  %14257 = vmatpush3.bf16.msra.mxu1 %v14847_v54 }
 0xff1   : > { %14234 = vmatprep.subr.bf16.mxu0 %v14872_v7  ;;  %14258 = vmatprep.subr.bf16.mxu1 %v14872_v7 }
 0xff2   : > { %14240 = vmatprep.mubr.msk.bf16.mxu0 %vm14873_vm0, %v14872_v7  ;;  %14264 = vmatprep.mubr.msk.bf16.mxu1 %vm14873_vm0, %v14872_v7 }
 0xff4   : > { %14235 = vmatpush3.bf16.msra.mxu0 %v14848_v42  ;;  %14259 = vmatpush3.bf16.msra.mxu1 %v14849_v45 }
 0xff5   : > { %14236 = vmatprep.subr.bf16.mxu0 %v14872_v7  ;;  %14260 = vmatprep.subr.bf16.mxu1 %v14872_v7 }
 0xff8   : > { %14237 = vmatpush3.bf16.msra.mxu0 %v14850_v40  ;;  %14261 = vmatpush3.bf16.msra.mxu1 %v14851_v10 }
 0xff9   : > { %14238 = vmatprep.subr.bf16.mxu0 %v14872_v7  ;;  %14262 = vmatprep.subr.bf16.mxu1 %v14872_v7 }
 0xffc   : > { %14239 = vmatpush3.bf16.msra.mxu0 %v14852_v24  ;;  %14263 = vmatpush3.bf16.msra.mxu1 %v14853_v1 }
 0xffd   : > { %14268 = vmatprep.subr.bf16.mxu0 %v14872_v7  ;;  %14280 = vmatprep.subr.bf16.mxu1 %v14872_v7 }
 0xfff   : > { %14241 = vmatmul.mubr.msk.bf16.vlgmr.msra.gmra.mrb[60].mxu0 %vm4062_vm14, %v11196_v39  ;;  %14265 = vmatmul.mubr.msk.bf16.vlgmr.msra.gmra.mrb[84].mxu1 %vm4062_vm14, %v11196_v39 }
0x1000   : > { %14269 = vmatpush3.bf16.msra.mxu0 %v14854_v2  ;;  %14281 = vmatpush3.bf16.msra.mxu1 %v14855_v30 }
0x1001   : > { %14270 = vmatprep.subr.bf16.mxu0 %v14872_v7  ;;  %14282 = vmatprep.subr.bf16.mxu1 %v14872_v7 }
0x1002   : > { %14276 = vmatprep.mubr.msk.bf16.mxu0 %vm14873_vm0, %v14872_v7  ;;  %14288 = vmatprep.mubr.msk.bf16.mxu1 %vm14873_vm0, %v14872_v7  ;;  %vm18085_vm0 = vsmask.f32 256 }
0x1004   : > { %14271 = vmatpush3.bf16.msra.mxu0 %v14856_v15  ;;  %14283 = vmatpush3.bf16.msra.mxu1 %v14857_v27  ;;  %v11648_v15 = vld [vmem:[%s17957_s4 + $0x2] sm:$0x1] }
0x1005   : > { %14272 = vmatprep.subr.bf16.mxu0 %v14872_v7  ;;  %14284 = vmatprep.subr.bf16.mxu1 %v14872_v7 }
0x1008   : > { %14273 = vmatpush3.bf16.msra.mxu0 %v14858_v14  ;;  %14285 = vmatpush3.bf16.msra.mxu1 %v14859_v35  ;;  %v11651_v14 = vld [vmem:[%s17957_s4 + $0x3] sm:$0x1] }
0x1009   : > { %14274 = vmatprep.subr.bf16.mxu0 %v14872_v7  ;;  %14286 = vmatprep.subr.bf16.mxu1 %v14872_v7 }
0x100c   : > { %14275 = vmatpush3.bf16.msra.mxu0 %v14860_v62  ;;  %14287 = vmatpush3.bf16.msra.mxu1 %v14861_v56 }
0x100f   : > { %14277 = vmatmul.mubr.msk.bf16.vlgmr.msra.gmra.mrb[60].mxu0 %vm4062_vm14, %v11433_v19  ;;  %14289 = vmatmul.mubr.msk.bf16.vlgmr.msra.gmra.mrb[84].mxu1 %vm4062_vm14, %v11433_v19  ;;  %vm11640_vm14 = vcmask 253952  }
0x1010   : > { %vm17960_vm12 = vmand %vm11640_vm14, %vm18085_vm0 }
0x10e2   : > { %v11495_v33 = vpop.f32.mrb[60].mxu0  ;;  %v11569_v23 = vpop.f32.mrb[84].mxu1 }
0x10e3   : > { %v11576_v59 = vmax.f32 %v11495_v33, %v11569_v23  ;;  %v14278_v25 = vpop.f32.mrb[61].mxu0  ;;  %v14290_v53 = vpop.f32.mrb[85].mxu1 }
0x10e4   : > { %v11498_v13 = vpop.f32.mrb[62].mxu0  ;;  %v11572_v7 = vpop.f32.mrb[86].mxu1 }
0x10e5   : > { %v11583_v5 = vadd.f32 %v12742_v20, %v11576_v59  ;;  %v14279_v32 = vpop.f32.mrb[63].mxu0  ;;  %v14291_v38 = vpop.f32.mrb[87].mxu1 }
0x10e7   : > { %v11584_v26 = vmax.f32 %v11583_v5, 0.0 }
0x10e9   : > { %v11586_v22 = vcombine.high %v11584_v26, %v11584_v26  ;;  %v11593_v51 = vrot.slane %v11584_v26, %v15575_v50 }
0x10eb   : > { %v11600_v60 = vrot.slane %v11586_v22, %v15575_v50  ;;  %v11601_v8 = vcombine.high %v11593_v51, %v11593_v51  ;;  %v11608_v28 = vsel %vm11607_vm2, %v11593_v51, -inf }
0x10ec   : > { %v11609_v41 = vrot.slane %v11608_v28, 4 }
0x10ed   : > { %v11615_v61 = vsel %vm11607_vm2, %v11601_v8, -inf  ;;  %v11622_v6 = vsel %vm11607_vm2, %v11600_v60, -inf  ;;  %v11602_v50 = vcombine.high %v11600_v60, %v11600_v60 }
0x10ee   : > { %v11610_v34 = vmax.f32 %v11608_v28, %v11609_v41  ;;  %v11616_v29 = vrot.slane %v11615_v61, 4  ;;  %v11623_v52 = vrot.slane %v11622_v6, 4 }
0x10ef   : > { %v11629_v4 = vsel %vm11607_vm2, %v11602_v50, -inf }
0x10f0   : > { %v11611_v31 = vrot.slane %v11610_v34, 2  ;;  %v11617_v44 = vmax.f32 %v11615_v61, %v11616_v29  ;;  %v11624_v58 = vmax.f32 %v11622_v6, %v11623_v52  ;;  %v11630_v45 = vrot.slane %v11629_v4, 4 }
0x10f2   : > { %v11612_v3 = vmax.f32 %v11610_v34, %v11611_v31  ;;  %v11618_v47 = vrot.slane %v11617_v44, 2  ;;  %v11625_v11 = vrot.slane %v11624_v58, 2  ;;  %v11631_v40 = vmax.f32 %v11629_v4, %v11630_v45 }
0x10f4   : > { %v11613_v12 = vrot.slane %v11612_v3, 1  ;;  %v11619_v43 = vmax.f32 %v11617_v44, %v11618_v47  ;;  %v11626_v17 = vmax.f32 %v11624_v58, %v11625_v11  ;;  %v11632_v24 = vrot.slane %v11631_v40, 2 }
0x10f6   : > { %v11614_v36 = vmax.f32 %v11612_v3, %v11613_v12  ;;  %v11620_v54 = vrot.slane %v11619_v43, 1  ;;  %v11627_v18 = vrot.slane %v11626_v17, 1  ;;  %v11633_v2 = vmax.f32 %v11631_v40, %v11632_v24 }
0x10f8   : > { %v11636_v55 = vpack.c.bf16 %v11614_v36, %v11614_v36  ;;  %v11621_v48 = vmax.f32 %v11619_v43, %v11620_v54  ;;  %v11628_v57 = vmax.f32 %v11626_v17, %v11627_v18  ;;  %v11634_v39 = vrot.slane %v11633_v2, 1 }
0x10fa   : > { %v11643_v42 = vsel %vm17960_vm12, %v11636_v55, %v11642_v46  ;;  %v11637_v10 = vpack.c.bf16 %v11621_v48, %v11621_v48  ;;  %v11638_v30 = vpack.c.bf16 %v11628_v57, %v11628_v57  ;;  %v11635_v49 = vmax.f32 %v11633_v2, %v11634_v39 }
0x10fb   : > { %11644 = vst [vmem:[%s17957_s4] sm:$0x1] %v11643_v42 }
0x10fc   : > { %v11646_v1 = vsel %vm17960_vm12, %v11637_v10, %v11645_v16  ;;  %v11649_v27 = vsel %vm17960_vm12, %v11638_v30, %v11648_v15  ;;  %v11639_v63 = vpack.c.bf16 %v11635_v49, %v11635_v49 }
0x10fd   : > { %11647 = vst [vmem:[%s17957_s4 + $0x1] sm:$0x1] %v11646_v1  ;;  %11650 = vst [vmem:[%s17957_s4 + $0x2] sm:$0x1] %v11649_v27 }
0x10fe   : > { %v11652_v35 = vsel %vm17960_vm12, %v11639_v63, %v11651_v14 }
0x10ff   : > { %11653 = vst [vmem:[%s17957_s4 + $0x3] sm:$0x1] %v11652_v35 }
0x1100 PF: > { %s37_s7 = sadd.s32 1, %s14869_s7  }
0x1101   : > { %p34_p4 = scmp.ge.s32.totalorder %s37_s7, 4  }
0x1103   :  { %36 = sbr.rel (!%p34_p4) target bundleno = 13 (0xd), region = 199 }

</bundles_post_ra>
